<compile_context>
chip_gen: v5e
topology: v5e:2x2
jax: 0.10.0
libtpu: 0.0.40
codegen_flags: <defaults>
</compile_context>

<pallas_src>
import functools

import jax
import jax.numpy as jnp
import numpy as np
from jax.experimental import pallas as pl
from jax.experimental.pallas import tpu as pltpu

LANE = 128
SUBLANE = 8


def _round_up(x, m):
    return (x + m - 1) // m * m


def _row_tile(n, target=256):
    t = min(n, target)
    t -= t % SUBLANE
    while n % t:
        t -= SUBLANE
    return t


def _col_tile(v, target=512):
    t = min(v, target)
    t -= t % LANE
    while v % t:
        t -= LANE
    return t


# ------------------------ fused stacked-LSTM kernel ---------------------------
def _stacked_lstm_kernel(x_ref, wih_ref, whh_ref, b_ref, o_ref, xbuf, gbuf, *,
                         seq_len, batch_p, hidden_p, num_layers):
    T, Bp, Hp, L = seq_len, batch_p, hidden_p, num_layers
    zeros = jnp.zeros((Bp, Hp), jnp.float32)

    for l in range(L):                      # static unroll over layers
        wih_l = wih_ref[l]                  # (Hp, 4Hp)
        whh_l = whh_ref[l]                  # (Hp, 4Hp)
        b_l = b_ref[l]                      # (1, 4Hp)
        src = x_ref if l == 0 else xbuf     # layer input sequence (T*Bp, Hp)
        dst = o_ref if l == L - 1 else xbuf  # last layer writes output directly

        # Hoisted input projection for the whole sequence: one big MXU matmul.
        gbuf[...] = (
            jnp.dot(src[...], wih_l, preferred_element_type=jnp.float32) + b_l
        )                                   # (T*Bp, 4Hp), gate order i|f|g|o

        def step(t, carry, whh=whh_l, dst=dst):
            h, c = carry
            row = pl.multiple_of(t * Bp, Bp)
            gates = gbuf[pl.ds(row, Bp), :] + jnp.dot(
                h, whh, preferred_element_type=jnp.float32)        # (Bp, 4Hp)
            # 128-lane-aligned gate slabs (Hp is a multiple of 128).
            i_g = jax.nn.sigmoid(gates[:, 0 * Hp:1 * Hp])
            f_g = jax.nn.sigmoid(gates[:, 1 * Hp:2 * Hp])
            g_g = jnp.tanh(gates[:, 2 * Hp:3 * Hp])
            o_g = jax.nn.sigmoid(gates[:, 3 * Hp:4 * Hp])
            c_new = f_g * c + i_g * g_g
            h_new = o_g * jnp.tanh(c_new)
            dst[pl.ds(row, Bp), :] = h_new      # next-layer input / final output
            return (h_new, c_new)

        jax.lax.fori_loop(0, T, step, (zeros, zeros), unroll=True)


def stacked_lstm_pallas(x2d, wih_all, whh_all, b_all, *, seq_len, batch_p):
    """x2d: (T*Bp, Hp) time-major; weights stacked per layer, PyTorch gate order
    padded to 128-lane gate blocks. Returns last layer's hidden seq (T*Bp, Hp)."""
    N, Fp = x2d.shape
    L, Hp, H4 = whh_all.shape
    kernel = functools.partial(
        _stacked_lstm_kernel, seq_len=seq_len, batch_p=batch_p,
        hidden_p=Hp, num_layers=L)
    return pl.pallas_call(
        kernel,
        out_shape=jax.ShapeDtypeStruct((N, Hp), jnp.float32),
        grid_spec=pltpu.PrefetchScalarGridSpec(
            num_scalar_prefetch=0,
            grid=(1,),
            in_specs=[
                pl.BlockSpec((N, Fp), lambda i: (0, 0)),
                pl.BlockSpec((L, Fp, H4), lambda i: (0, 0, 0)),
                pl.BlockSpec((L, Hp, H4), lambda i: (0, 0, 0)),
                pl.BlockSpec((L, 1, H4), lambda i: (0, 0, 0)),
            ],
            out_specs=pl.BlockSpec((N, Hp), lambda i: (0, 0)),
            scratch_shapes=[
                pltpu.VMEM((N, Hp), jnp.float32),   # inter-layer sequence buffer
                pltpu.VMEM((N, H4), jnp.float32),   # hoisted input-projection gates
            ],
        ),
        compiler_params=pltpu.CompilerParams(
            dimension_semantics=("arbitrary",)),
    )(x2d, wih_all, whh_all, b_all)


# ------------------------------- Linear kernel --------------------------------
def _linear_kernel(x_ref, w_ref, b_ref, o_ref):
    o_ref[...] = (
        jnp.dot(x_ref[...], w_ref[...], preferred_element_type=jnp.float32)
        + b_ref[...]
    )


def linear_pallas(x2d, w_t, b2d):
    """x2d: (N, Hp); w_t: (Hp, Vp); b2d: (1, Vp) -> (N, Vp). Tiled over N and Vp."""
    N, Hp = x2d.shape
    Vp = w_t.shape[1]
    tn = _row_tile(N, 256)
    tv = _col_tile(Vp, 512)
    return pl.pallas_call(
        _linear_kernel,
        out_shape=jax.ShapeDtypeStruct((N, Vp), jnp.float32),
        grid_spec=pltpu.PrefetchScalarGridSpec(
            num_scalar_prefetch=0,
            grid=(N // tn, Vp // tv),
            in_specs=[
                pl.BlockSpec((tn, Hp), lambda i, j: (i, 0)),
                pl.BlockSpec((Hp, tv), lambda i, j: (0, j)),
                pl.BlockSpec((1, tv), lambda i, j: (0, j)),
            ],
            out_specs=pl.BlockSpec((tn, tv), lambda i, j: (i, j)),
        ),
        compiler_params=pltpu.CompilerParams(
            dimension_semantics=("parallel", "parallel")),
    )(x2d, w_t, b2d)


# ------------------------------- Full forward ---------------------------------
def simple_rnn_forward(tokens, params):
    """tokens: (B, T) int32 -> logits (B, T, V)."""
    B, T = tokens.shape
    Bp = _round_up(max(B, SUBLANE), SUBLANE)
    Hp = params["hidden_p"]
    V = params["vocab"]
    Vp = params["lin_w_t"].shape[1]

    # Time-major tokens, batch padded to a full sublane group (pad rows use id 0).
    tok_tm = jnp.zeros((T, Bp), tokens.dtype).at[:, :B].set(tokens.T)
    emb = params["embed_p"][tok_tm]                  # (T, Bp, Hp) gather glue
    x2d = emb.reshape(T * Bp, Hp)

    h2d = stacked_lstm_pallas(
        x2d, params["wih_p"], params["whh_p"], params["bias_p"],
        seq_len=T, batch_p=Bp)                       # (T*Bp, Hp)

    logits2d = linear_pallas(h2d, params["lin_w_t"], params["lin_b"])   # (T*Bp, Vp)
    logits = logits2d.reshape(T, Bp, Vp)[:, :B, :V]
    return jnp.transpose(logits, (1, 0, 2))          # (B, T, V)


# ----------------------------- Parameter creation -----------------------------
def init_params(key, vocab_size, input_size, hidden_size, num_layers):
    """PyTorch-layout raw parameters (for the reference)."""
    keys = jax.random.split(key, 3 + 4 * num_layers)
    k = 1.0 / np.sqrt(hidden_size)
    embed = jax.random.normal(keys[0], (vocab_size, input_size), jnp.float32)
    lstm = []
    in_sz = input_size
    for l in range(num_layers):
        kw = keys[3 + 4 * l: 3 + 4 * (l + 1)]
        w_ih = jax.random.uniform(kw[0], (4 * hidden_size, in_sz), jnp.float32, -k, k)
        w_hh = jax.random.uniform(kw[1], (4 * hidden_size, hidden_size), jnp.float32, -k, k)
        b_ih = jax.random.uniform(kw[2], (4 * hidden_size,), jnp.float32, -k, k)
        b_hh = jax.random.uniform(kw[3], (4 * hidden_size,), jnp.float32, -k, k)
        lstm.append(dict(w_ih=w_ih, w_hh=w_hh, b=b_ih + b_hh))
        in_sz = hidden_size
    lin_w = jax.random.uniform(keys[1], (vocab_size, hidden_size), jnp.float32, -k, k)
    lin_b = jax.random.uniform(keys[2], (vocab_size,), jnp.float32, -k, k)
    return dict(embed=embed, lstm=lstm, lin_w=lin_w, lin_b=lin_b)


def pack_params(raw, vocab_size, input_size, hidden_size, num_layers):
    """Pad/transpose raw params into the lane-aligned kernel layout."""
    H = hidden_size
    Hp = _round_up(max(input_size, H), LANE)   # shared padded feature/hidden width
    Vp = _round_up(vocab_size, LANE)

    embed_p = jnp.zeros((vocab_size, Hp), jnp.float32).at[:, :input_size].set(raw["embed"])

    wih_p = np.zeros((num_layers, Hp, 4 * Hp), np.float32)
    whh_p = np.zeros((num_layers, Hp, 4 * Hp), np.float32)
    bias_p = np.zeros((num_layers, 1, 4 * Hp), np.float32)
    for l, layer in enumerate(raw["lstm"]):
        w_ih_t = np.asarray(layer["w_ih"]).T       # (in_sz, 4H)
        w_hh_t = np.asarray(layer["w_hh"]).T       # (H, 4H)
        b = np.asarray(layer["b"])
        in_sz = w_ih_t.shape[0]
        for g in range(4):                         # gate order i|f|g|o, 128-lane blocks
            wih_p[l, :in_sz, g * Hp:g * Hp + H] = w_ih_t[:, g * H:(g + 1) * H]
            whh_p[l, :H, g * Hp:g * Hp + H] = w_hh_t[:, g * H:(g + 1) * H]
            bias_p[l, 0, g * Hp:g * Hp + H] = b[g * H:(g + 1) * H]

    lin_w_t = np.zeros((Hp, Vp), np.float32)
    lin_w_t[:H, :vocab_size] = np.asarray(raw["lin_w"]).T
    lin_b = np.zeros((1, Vp), np.float32)
    lin_b[0, :vocab_size] = np.asarray(raw["lin_b"])

    return dict(
        embed_p=embed_p,
        wih_p=jnp.asarray(wih_p), whh_p=jnp.asarray(whh_p), bias_p=jnp.asarray(bias_p),
        lin_w_t=jnp.asarray(lin_w_t), lin_b=jnp.asarray(lin_b),
        hidden_p=Hp, vocab=vocab_size)


# -------------------------- Pure-JAX reference (check) -------------------------
def reference_forward(tokens, raw):
    emb = raw["embed"][tokens]                       # (B, T, I)
    x = jnp.transpose(emb, (1, 0, 2))                # (T, B, I)
    for layer in raw["lstm"]:
        H = layer["w_hh"].shape[1]
        B = x.shape[1]
        wih_t, whh_t, b = layer["w_ih"].T, layer["w_hh"].T, layer["b"]

        def step(carry, x_t, wih_t=wih_t, whh_t=whh_t, b=b, H=H):
            h, c = carry
            gates = x_t @ wih_t + h @ whh_t + b
            i_g = jax.nn.sigmoid(gates[:, 0 * H:1 * H])
            f_g = jax.nn.sigmoid(gates[:, 1 * H:2 * H])
            g_g = jnp.tanh(gates[:, 2 * H:3 * H])
            o_g = jax.nn.sigmoid(gates[:, 3 * H:4 * H])
            c = f_g * c + i_g * g_g
            h = o_g * jnp.tanh(c)
            return (h, c), h

        init = (jnp.zeros((B, H), jnp.float32), jnp.zeros((B, H), jnp.float32))
        _, x = jax.lax.scan(step, init, x)
    o = jnp.transpose(x, (1, 0, 2))
    return o @ raw["lin_w"].T + raw["lin_b"]


if __name__ == "__main__":
    VOCAB, INPUT, HIDDEN, LAYERS = 50, 16, 32, 3
    B, T = 2, 8

    key = jax.random.PRNGKey(0)
    pkey, dkey = jax.random.split(key)
    raw = init_params(pkey, VOCAB, INPUT, HIDDEN, LAYERS)
    params = pack_params(raw, VOCAB, INPUT, HIDDEN, LAYERS)
    tokens = jax.random.randint(dkey, (B, T), 0, VOCAB, dtype=jnp.int32)

    logits = jax.block_until_ready(simple_rnn_forward(tokens, params))
    assert logits.shape == (B, T, VOCAB) and logits.dtype == jnp.float32

    ref = jax.block_until_ready(reference_forward(tokens, raw))
    np.testing.assert_allclose(np.asarray(logits), np.asarray(ref),
                               rtol=1e-3, atol=1e-3)
    print("KERNEL_OK")
</pallas_src>

<mosaic_0001>
module attributes {stable_mosaic.version = 11 : i64} {
  func.func @_stacked_lstm_kernel(%arg0: i32, %arg1: memref<64x128xf32, #tpu.memory_space<vmem>>, %arg2: memref<3x128x512xf32, #tpu.memory_space<vmem>>, %arg3: memref<3x128x512xf32, #tpu.memory_space<vmem>>, %arg4: memref<3x1x512xf32, #tpu.memory_space<vmem>>, %arg5: memref<64x128xf32, #tpu.memory_space<vmem>>, %arg6: memref<64x128xf32, #tpu.memory_space<vmem>>, %arg7: memref<64x512xf32, #tpu.memory_space<vmem>>) attributes {dimension_semantics = [#tpu.dimension_semantics<arbitrary>], iteration_bounds = array<i64: 1>, scalar_prefetch = 0 : i64, scratch_operands = 2 : i64, tpu.core_type = #tpu.core_type<tc>, window_params = [{pipeline_mode = #tpu.pipeline_mode<synchronous>, transform_indices = @transform_0, window_bounds = array<i64: 64, 128>}, {pipeline_mode = #tpu.pipeline_mode<synchronous>, transform_indices = @transform_1, window_bounds = array<i64: 3, 128, 512>}, {pipeline_mode = #tpu.pipeline_mode<synchronous>, transform_indices = @transform_2, window_bounds = array<i64: 3, 128, 512>}, {pipeline_mode = #tpu.pipeline_mode<synchronous>, transform_indices = @transform_3, window_bounds = array<i64: 3, 1, 512>}, {pipeline_mode = #tpu.pipeline_mode<synchronous>, transform_indices = @transform_4, window_bounds = array<i64: 64, 128>}]} {
    %cst = arith.constant 0.000000e+00 : f32
    %0 = vector.broadcast %cst : f32 to vector<8x128xf32>
    %c0 = arith.constant 0 : index
    %c0_0 = arith.constant 0 : index
    %c0_1 = arith.constant 0 : index
    %1 = vector.load %arg2[%c0, %c0_0, %c0_1] : memref<3x128x512xf32, #tpu.memory_space<vmem>>, vector<1x128x512xf32>
    %2 = vector.shape_cast %1 : vector<1x128x512xf32> to vector<128x512xf32>
    %c0_2 = arith.constant 0 : index
    %c0_3 = arith.constant 0 : index
    %c0_4 = arith.constant 0 : index
    %3 = vector.load %arg3[%c0_2, %c0_3, %c0_4] : memref<3x128x512xf32, #tpu.memory_space<vmem>>, vector<1x128x512xf32>
    %4 = vector.shape_cast %3 : vector<1x128x512xf32> to vector<128x512xf32>
    %c0_5 = arith.constant 0 : index
    %c0_6 = arith.constant 0 : index
    %c0_7 = arith.constant 0 : index
    %5 = vector.load %arg4[%c0_5, %c0_6, %c0_7] : memref<3x1x512xf32, #tpu.memory_space<vmem>>, vector<1x1x512xf32>
    %6 = vector.shape_cast %5 : vector<1x1x512xf32> to vector<1x512xf32>
    %c0_8 = arith.constant 0 : index
    %c0_9 = arith.constant 0 : index
    %7 = vector.load %arg1[%c0_8, %c0_9] : memref<64x128xf32, #tpu.memory_space<vmem>>, vector<64x128xf32>
    %cst_10 = arith.constant dense<0.000000e+00> : vector<64x512xf32>
    %8 = tpu.matmul %7, %2, %cst_10 {dimension_numbers = #tpu.dot_dimension_numbers<[1], [0], [0], [1], [0, 0, 1, 1], [], []>} : vector<64x128xf32>, vector<128x512xf32>, vector<64x512xf32> -> vector<64x512xf32>
    %9 = vector.broadcast %6 : vector<1x512xf32> to vector<64x512xf32>
    %10 = arith.addf %8, %9 : vector<64x512xf32>
    %c0_11 = arith.constant 0 : index
    %c0_12 = arith.constant 0 : index
    %11 = vector.load %arg7[%c0_11, %c0_12] : memref<64x512xf32, #tpu.memory_space<vmem>>, vector<64x512xf32>
    tpu.vector_store %arg7[%c0_11, %c0_12], %10 {strides = array<i32>} : memref<64x512xf32, #tpu.memory_space<vmem>>, vector<64x512xf32>,
    %c0_i32 = arith.constant 0 : i32
    %c8_i32 = arith.constant 8 : i32
    %12 = arith.muli %c0_i32, %c8_i32 : i32
    %13 = tpu.assume_multiple %12, 8 : i32
    %14 = arith.index_cast %13 : i32 to index
    %c0_13 = arith.constant 0 : index
    %15 = vector.load %arg7[%14, %c0_13] : memref<64x512xf32, #tpu.memory_space<vmem>>, vector<8x512xf32>
    %cst_14 = arith.constant dense<0.000000e+00> : vector<8x512xf32>
    %16 = tpu.matmul %0, %4, %cst_14 {dimension_numbers = #tpu.dot_dimension_numbers<[1], [0], [0], [1], [0, 0, 1, 1], [], []>} : vector<8x128xf32>, vector<128x512xf32>, vector<8x512xf32> -> vector<8x512xf32>
    %17 = arith.addf %15, %16 : vector<8x512xf32>
    %18 = vector.extract_strided_slice %17 {offsets = [0, 0], sizes = [8, 128], strides = [1, 1]} : vector<8x512xf32> to vector<8x128xf32>
    %19 = arith.negf %18 : vector<8x128xf32>
    %20 = math.exp %19 : vector<8x128xf32>
    %cst_15 = arith.constant 1.000000e+00 : f32
    %21 = vector.broadcast %cst_15 : f32 to vector<8x128xf32>
    %22 = arith.addf %21, %20 : vector<8x128xf32>
    %23 = arith.divf %21, %22 : vector<8x128xf32>
    %24 = vector.extract_strided_slice %17 {offsets = [0, 128], sizes = [8, 128], strides = [1, 1]} : vector<8x512xf32> to vector<8x128xf32>
    %25 = arith.negf %24 : vector<8x128xf32>
    %26 = math.exp %25 : vector<8x128xf32>
    %cst_16 = arith.constant 1.000000e+00 : f32
    %27 = vector.broadcast %cst_16 : f32 to vector<8x128xf32>
    %28 = arith.addf %27, %26 : vector<8x128xf32>
    %29 = arith.divf %27, %28 : vector<8x128xf32>
    %30 = vector.extract_strided_slice %17 {offsets = [0, 256], sizes = [8, 128], strides = [1, 1]} : vector<8x512xf32> to vector<8x128xf32>
    %31 = math.tanh %30 : vector<8x128xf32>
    %32 = vector.extract_strided_slice %17 {offsets = [0, 384], sizes = [8, 128], strides = [1, 1]} : vector<8x512xf32> to vector<8x128xf32>
    %33 = arith.negf %32 : vector<8x128xf32>
    %34 = math.exp %33 : vector<8x128xf32>
    %cst_17 = arith.constant 1.000000e+00 : f32
    %35 = vector.broadcast %cst_17 : f32 to vector<8x128xf32>
    %36 = arith.addf %35, %34 : vector<8x128xf32>
    %37 = arith.divf %35, %36 : vector<8x128xf32>
    %38 = arith.mulf %29, %0 : vector<8x128xf32>
    %39 = arith.mulf %23, %31 : vector<8x128xf32>
    %40 = arith.addf %38, %39 : vector<8x128xf32>
    %41 = math.tanh %40 : vector<8x128xf32>
    %42 = arith.mulf %37, %41 : vector<8x128xf32>
    %43 = arith.index_cast %13 : i32 to index
    %c0_18 = arith.constant 0 : index
    %44 = vector.load %arg6[%43, %c0_18] : memref<64x128xf32, #tpu.memory_space<vmem>>, vector<8x128xf32>
    tpu.vector_store %arg6[%43, %c0_18], %42 {strides = array<i32>} : memref<64x128xf32, #tpu.memory_space<vmem>>, vector<8x128xf32>,
    %c1_i32 = arith.constant 1 : i32
    %c8_i32_19 = arith.constant 8 : i32
    %45 = arith.muli %c1_i32, %c8_i32_19 : i32
    %46 = tpu.assume_multiple %45, 8 : i32
    %47 = arith.index_cast %46 : i32 to index
    %c0_20 = arith.constant 0 : index
    %48 = vector.load %arg7[%47, %c0_20] : memref<64x512xf32, #tpu.memory_space<vmem>>, vector<8x512xf32>
    %cst_21 = arith.constant dense<0.000000e+00> : vector<8x512xf32>
    %49 = tpu.matmul %42, %4, %cst_21 {dimension_numbers = #tpu.dot_dimension_numbers<[1], [0], [0], [1], [0, 0, 1, 1], [], []>} : vector<8x128xf32>, vector<128x512xf32>, vector<8x512xf32> -> vector<8x512xf32>
    %50 = arith.addf %48, %49 : vector<8x512xf32>
    %51 = vector.extract_strided_slice %50 {offsets = [0, 0], sizes = [8, 128], strides = [1, 1]} : vector<8x512xf32> to vector<8x128xf32>
    %52 = arith.negf %51 : vector<8x128xf32>
    %53 = math.exp %52 : vector<8x128xf32>
    %cst_22 = arith.constant 1.000000e+00 : f32
    %54 = vector.broadcast %cst_22 : f32 to vector<8x128xf32>
    %55 = arith.addf %54, %53 : vector<8x128xf32>
    %56 = arith.divf %54, %55 : vector<8x128xf32>
    %57 = vector.extract_strided_slice %50 {offsets = [0, 128], sizes = [8, 128], strides = [1, 1]} : vector<8x512xf32> to vector<8x128xf32>
    %58 = arith.negf %57 : vector<8x128xf32>
    %59 = math.exp %58 : vector<8x128xf32>
    %cst_23 = arith.constant 1.000000e+00 : f32
    %60 = vector.broadcast %cst_23 : f32 to vector<8x128xf32>
    %61 = arith.addf %60, %59 : vector<8x128xf32>
    %62 = arith.divf %60, %61 : vector<8x128xf32>
    %63 = vector.extract_strided_slice %50 {offsets = [0, 256], sizes = [8, 128], strides = [1, 1]} : vector<8x512xf32> to vector<8x128xf32>
    %64 = math.tanh %63 : vector<8x128xf32>
    %65 = vector.extract_strided_slice %50 {offsets = [0, 384], sizes = [8, 128], strides = [1, 1]} : vector<8x512xf32> to vector<8x128xf32>
    %66 = arith.negf %65 : vector<8x128xf32>
    %67 = math.exp %66 : vector<8x128xf32>
    %cst_24 = arith.constant 1.000000e+00 : f32
    %68 = vector.broadcast %cst_24 : f32 to vector<8x128xf32>
    %69 = arith.addf %68, %67 : vector<8x128xf32>
    %70 = arith.divf %68, %69 : vector<8x128xf32>
    %71 = arith.mulf %62, %40 : vector<8x128xf32>
    %72 = arith.mulf %56, %64 : vector<8x128xf32>
    %73 = arith.addf %71, %72 : vector<8x128xf32>
    %74 = math.tanh %73 : vector<8x128xf32>
    %75 = arith.mulf %70, %74 : vector<8x128xf32>
    %76 = arith.index_cast %46 : i32 to index
    %c0_25 = arith.constant 0 : index
    %77 = vector.load %arg6[%76, %c0_25] : memref<64x128xf32, #tpu.memory_space<vmem>>, vector<8x128xf32>
    tpu.vector_store %arg6[%76, %c0_25], %75 {strides = array<i32>} : memref<64x128xf32, #tpu.memory_space<vmem>>, vector<8x128xf32>,
    %c2_i32 = arith.constant 2 : i32
    %c8_i32_26 = arith.constant 8 : i32
    %78 = arith.muli %c2_i32, %c8_i32_26 : i32
    %79 = tpu.assume_multiple %78, 8 : i32
    %80 = arith.index_cast %79 : i32 to index
    %c0_27 = arith.constant 0 : index
    %81 = vector.load %arg7[%80, %c0_27] : memref<64x512xf32, #tpu.memory_space<vmem>>, vector<8x512xf32>
    %cst_28 = arith.constant dense<0.000000e+00> : vector<8x512xf32>
    %82 = tpu.matmul %75, %4, %cst_28 {dimension_numbers = #tpu.dot_dimension_numbers<[1], [0], [0], [1], [0, 0, 1, 1], [], []>} : vector<8x128xf32>, vector<128x512xf32>, vector<8x512xf32> -> vector<8x512xf32>
    %83 = arith.addf %81, %82 : vector<8x512xf32>
    %84 = vector.extract_strided_slice %83 {offsets = [0, 0], sizes = [8, 128], strides = [1, 1]} : vector<8x512xf32> to vector<8x128xf32>
    %85 = arith.negf %84 : vector<8x128xf32>
    %86 = math.exp %85 : vector<8x128xf32>
    %cst_29 = arith.constant 1.000000e+00 : f32
    %87 = vector.broadcast %cst_29 : f32 to vector<8x128xf32>
    %88 = arith.addf %87, %86 : vector<8x128xf32>
    %89 = arith.divf %87, %88 : vector<8x128xf32>
    %90 = vector.extract_strided_slice %83 {offsets = [0, 128], sizes = [8, 128], strides = [1, 1]} : vector<8x512xf32> to vector<8x128xf32>
    %91 = arith.negf %90 : vector<8x128xf32>
    %92 = math.exp %91 : vector<8x128xf32>
    %cst_30 = arith.constant 1.000000e+00 : f32
    %93 = vector.broadcast %cst_30 : f32 to vector<8x128xf32>
    %94 = arith.addf %93, %92 : vector<8x128xf32>
    %95 = arith.divf %93, %94 : vector<8x128xf32>
    %96 = vector.extract_strided_slice %83 {offsets = [0, 256], sizes = [8, 128], strides = [1, 1]} : vector<8x512xf32> to vector<8x128xf32>
    %97 = math.tanh %96 : vector<8x128xf32>
    %98 = vector.extract_strided_slice %83 {offsets = [0, 384], sizes = [8, 128], strides = [1, 1]} : vector<8x512xf32> to vector<8x128xf32>
    %99 = arith.negf %98 : vector<8x128xf32>
    %100 = math.exp %99 : vector<8x128xf32>
    %cst_31 = arith.constant 1.000000e+00 : f32
    %101 = vector.broadcast %cst_31 : f32 to vector<8x128xf32>
    %102 = arith.addf %101, %100 : vector<8x128xf32>
    %103 = arith.divf %101, %102 : vector<8x128xf32>
    %104 = arith.mulf %95, %73 : vector<8x128xf32>
    %105 = arith.mulf %89, %97 : vector<8x128xf32>
    %106 = arith.addf %104, %105 : vector<8x128xf32>
    %107 = math.tanh %106 : vector<8x128xf32>
    %108 = arith.mulf %103, %107 : vector<8x128xf32>
    %109 = arith.index_cast %79 : i32 to index
    %c0_32 = arith.constant 0 : index
    %110 = vector.load %arg6[%109, %c0_32] : memref<64x128xf32, #tpu.memory_space<vmem>>, vector<8x128xf32>
    tpu.vector_store %arg6[%109, %c0_32], %108 {strides = array<i32>} : memref<64x128xf32, #tpu.memory_space<vmem>>, vector<8x128xf32>,
    %c3_i32 = arith.constant 3 : i32
    %c8_i32_33 = arith.constant 8 : i32
    %111 = arith.muli %c3_i32, %c8_i32_33 : i32
    %112 = tpu.assume_multiple %111, 8 : i32
    %113 = arith.index_cast %112 : i32 to index
    %c0_34 = arith.constant 0 : index
    %114 = vector.load %arg7[%113, %c0_34] : memref<64x512xf32, #tpu.memory_space<vmem>>, vector<8x512xf32>
    %cst_35 = arith.constant dense<0.000000e+00> : vector<8x512xf32>
    %115 = tpu.matmul %108, %4, %cst_35 {dimension_numbers = #tpu.dot_dimension_numbers<[1], [0], [0], [1], [0, 0, 1, 1], [], []>} : vector<8x128xf32>, vector<128x512xf32>, vector<8x512xf32> -> vector<8x512xf32>
    %116 = arith.addf %114, %115 : vector<8x512xf32>
    %117 = vector.extract_strided_slice %116 {offsets = [0, 0], sizes = [8, 128], strides = [1, 1]} : vector<8x512xf32> to vector<8x128xf32>
    %118 = arith.negf %117 : vector<8x128xf32>
    %119 = math.exp %118 : vector<8x128xf32>
    %cst_36 = arith.constant 1.000000e+00 : f32
    %120 = vector.broadcast %cst_36 : f32 to vector<8x128xf32>
    %121 = arith.addf %120, %119 : vector<8x128xf32>
    %122 = arith.divf %120, %121 : vector<8x128xf32>
    %123 = vector.extract_strided_slice %116 {offsets = [0, 128], sizes = [8, 128], strides = [1, 1]} : vector<8x512xf32> to vector<8x128xf32>
    %124 = arith.negf %123 : vector<8x128xf32>
    %125 = math.exp %124 : vector<8x128xf32>
    %cst_37 = arith.constant 1.000000e+00 : f32
    %126 = vector.broadcast %cst_37 : f32 to vector<8x128xf32>
    %127 = arith.addf %126, %125 : vector<8x128xf32>
    %128 = arith.divf %126, %127 : vector<8x128xf32>
    %129 = vector.extract_strided_slice %116 {offsets = [0, 256], sizes = [8, 128], strides = [1, 1]} : vector<8x512xf32> to vector<8x128xf32>
    %130 = math.tanh %129 : vector<8x128xf32>
    %131 = vector.extract_strided_slice %116 {offsets = [0, 384], sizes = [8, 128], strides = [1, 1]} : vector<8x512xf32> to vector<8x128xf32>
    %132 = arith.negf %131 : vector<8x128xf32>
    %133 = math.exp %132 : vector<8x128xf32>
    %cst_38 = arith.constant 1.000000e+00 : f32
    %134 = vector.broadcast %cst_38 : f32 to vector<8x128xf32>
    %135 = arith.addf %134, %133 : vector<8x128xf32>
    %136 = arith.divf %134, %135 : vector<8x128xf32>
    %137 = arith.mulf %128, %106 : vector<8x128xf32>
    %138 = arith.mulf %122, %130 : vector<8x128xf32>
    %139 = arith.addf %137, %138 : vector<8x128xf32>
    %140 = math.tanh %139 : vector<8x128xf32>
    %141 = arith.mulf %136, %140 : vector<8x128xf32>
    %142 = arith.index_cast %112 : i32 to index
    %c0_39 = arith.constant 0 : index
    %143 = vector.load %arg6[%142, %c0_39] : memref<64x128xf32, #tpu.memory_space<vmem>>, vector<8x128xf32>
    tpu.vector_store %arg6[%142, %c0_39], %141 {strides = array<i32>} : memref<64x128xf32, #tpu.memory_space<vmem>>, vector<8x128xf32>,
    %c4_i32 = arith.constant 4 : i32
    %c8_i32_40 = arith.constant 8 : i32
    %144 = arith.muli %c4_i32, %c8_i32_40 : i32
    %145 = tpu.assume_multiple %144, 8 : i32
    %146 = arith.index_cast %145 : i32 to index
    %c0_41 = arith.constant 0 : index
    %147 = vector.load %arg7[%146, %c0_41] : memref<64x512xf32, #tpu.memory_space<vmem>>, vector<8x512xf32>
    %cst_42 = arith.constant dense<0.000000e+00> : vector<8x512xf32>
    %148 = tpu.matmul %141, %4, %cst_42 {dimension_numbers = #tpu.dot_dimension_numbers<[1], [0], [0], [1], [0, 0, 1, 1], [], []>} : vector<8x128xf32>, vector<128x512xf32>, vector<8x512xf32> -> vector<8x512xf32>
    %149 = arith.addf %147, %148 : vector<8x512xf32>
    %150 = vector.extract_strided_slice %149 {offsets = [0, 0], sizes = [8, 128], strides = [1, 1]} : vector<8x512xf32> to vector<8x128xf32>
    %151 = arith.negf %150 : vector<8x128xf32>
    %152 = math.exp %151 : vector<8x128xf32>
    %cst_43 = arith.constant 1.000000e+00 : f32
    %153 = vector.broadcast %cst_43 : f32 to vector<8x128xf32>
    %154 = arith.addf %153, %152 : vector<8x128xf32>
    %155 = arith.divf %153, %154 : vector<8x128xf32>
    %156 = vector.extract_strided_slice %149 {offsets = [0, 128], sizes = [8, 128], strides = [1, 1]} : vector<8x512xf32> to vector<8x128xf32>
    %157 = arith.negf %156 : vector<8x128xf32>
    %158 = math.exp %157 : vector<8x128xf32>
    %cst_44 = arith.constant 1.000000e+00 : f32
    %159 = vector.broadcast %cst_44 : f32 to vector<8x128xf32>
    %160 = arith.addf %159, %158 : vector<8x128xf32>
    %161 = arith.divf %159, %160 : vector<8x128xf32>
    %162 = vector.extract_strided_slice %149 {offsets = [0, 256], sizes = [8, 128], strides = [1, 1]} : vector<8x512xf32> to vector<8x128xf32>
    %163 = math.tanh %162 : vector<8x128xf32>
    %164 = vector.extract_strided_slice %149 {offsets = [0, 384], sizes = [8, 128], strides = [1, 1]} : vector<8x512xf32> to vector<8x128xf32>
    %165 = arith.negf %164 : vector<8x128xf32>
    %166 = math.exp %165 : vector<8x128xf32>
    %cst_45 = arith.constant 1.000000e+00 : f32
    %167 = vector.broadcast %cst_45 : f32 to vector<8x128xf32>
    %168 = arith.addf %167, %166 : vector<8x128xf32>
    %169 = arith.divf %167, %168 : vector<8x128xf32>
    %170 = arith.mulf %161, %139 : vector<8x128xf32>
    %171 = arith.mulf %155, %163 : vector<8x128xf32>
    %172 = arith.addf %170, %171 : vector<8x128xf32>
    %173 = math.tanh %172 : vector<8x128xf32>
    %174 = arith.mulf %169, %173 : vector<8x128xf32>
    %175 = arith.index_cast %145 : i32 to index
    %c0_46 = arith.constant 0 : index
    %176 = vector.load %arg6[%175, %c0_46] : memref<64x128xf32, #tpu.memory_space<vmem>>, vector<8x128xf32>
    tpu.vector_store %arg6[%175, %c0_46], %174 {strides = array<i32>} : memref<64x128xf32, #tpu.memory_space<vmem>>, vector<8x128xf32>,
    %c5_i32 = arith.constant 5 : i32
    %c8_i32_47 = arith.constant 8 : i32
    %177 = arith.muli %c5_i32, %c8_i32_47 : i32
    %178 = tpu.assume_multiple %177, 8 : i32
    %179 = arith.index_cast %178 : i32 to index
    %c0_48 = arith.constant 0 : index
    %180 = vector.load %arg7[%179, %c0_48] : memref<64x512xf32, #tpu.memory_space<vmem>>, vector<8x512xf32>
    %cst_49 = arith.constant dense<0.000000e+00> : vector<8x512xf32>
    %181 = tpu.matmul %174, %4, %cst_49 {dimension_numbers = #tpu.dot_dimension_numbers<[1], [0], [0], [1], [0, 0, 1, 1], [], []>} : vector<8x128xf32>, vector<128x512xf32>, vector<8x512xf32> -> vector<8x512xf32>
    %182 = arith.addf %180, %181 : vector<8x512xf32>
    %183 = vector.extract_strided_slice %182 {offsets = [0, 0], sizes = [8, 128], strides = [1, 1]} : vector<8x512xf32> to vector<8x128xf32>
    %184 = arith.negf %183 : vector<8x128xf32>
    %185 = math.exp %184 : vector<8x128xf32>
    %cst_50 = arith.constant 1.000000e+00 : f32
    %186 = vector.broadcast %cst_50 : f32 to vector<8x128xf32>
    %187 = arith.addf %186, %185 : vector<8x128xf32>
    %188 = arith.divf %186, %187 : vector<8x128xf32>
    %189 = vector.extract_strided_slice %182 {offsets = [0, 128], sizes = [8, 128], strides = [1, 1]} : vector<8x512xf32> to vector<8x128xf32>
    %190 = arith.negf %189 : vector<8x128xf32>
    %191 = math.exp %190 : vector<8x128xf32>
    %cst_51 = arith.constant 1.000000e+00 : f32
    %192 = vector.broadcast %cst_51 : f32 to vector<8x128xf32>
    %193 = arith.addf %192, %191 : vector<8x128xf32>
    %194 = arith.divf %192, %193 : vector<8x128xf32>
    %195 = vector.extract_strided_slice %182 {offsets = [0, 256], sizes = [8, 128], strides = [1, 1]} : vector<8x512xf32> to vector<8x128xf32>
    %196 = math.tanh %195 : vector<8x128xf32>
    %197 = vector.extract_strided_slice %182 {offsets = [0, 384], sizes = [8, 128], strides = [1, 1]} : vector<8x512xf32> to vector<8x128xf32>
    %198 = arith.negf %197 : vector<8x128xf32>
    %199 = math.exp %198 : vector<8x128xf32>
    %cst_52 = arith.constant 1.000000e+00 : f32
    %200 = vector.broadcast %cst_52 : f32 to vector<8x128xf32>
    %201 = arith.addf %200, %199 : vector<8x128xf32>
    %202 = arith.divf %200, %201 : vector<8x128xf32>
    %203 = arith.mulf %194, %172 : vector<8x128xf32>
    %204 = arith.mulf %188, %196 : vector<8x128xf32>
    %205 = arith.addf %203, %204 : vector<8x128xf32>
    %206 = math.tanh %205 : vector<8x128xf32>
    %207 = arith.mulf %202, %206 : vector<8x128xf32>
    %208 = arith.index_cast %178 : i32 to index
    %c0_53 = arith.constant 0 : index
    %209 = vector.load %arg6[%208, %c0_53] : memref<64x128xf32, #tpu.memory_space<vmem>>, vector<8x128xf32>
    tpu.vector_store %arg6[%208, %c0_53], %207 {strides = array<i32>} : memref<64x128xf32, #tpu.memory_space<vmem>>, vector<8x128xf32>,
    %c6_i32 = arith.constant 6 : i32
    %c8_i32_54 = arith.constant 8 : i32
    %210 = arith.muli %c6_i32, %c8_i32_54 : i32
    %211 = tpu.assume_multiple %210, 8 : i32
    %212 = arith.index_cast %211 : i32 to index
    %c0_55 = arith.constant 0 : index
    %213 = vector.load %arg7[%212, %c0_55] : memref<64x512xf32, #tpu.memory_space<vmem>>, vector<8x512xf32>
    %cst_56 = arith.constant dense<0.000000e+00> : vector<8x512xf32>
    %214 = tpu.matmul %207, %4, %cst_56 {dimension_numbers = #tpu.dot_dimension_numbers<[1], [0], [0], [1], [0, 0, 1, 1], [], []>} : vector<8x128xf32>, vector<128x512xf32>, vector<8x512xf32> -> vector<8x512xf32>
    %215 = arith.addf %213, %214 : vector<8x512xf32>
    %216 = vector.extract_strided_slice %215 {offsets = [0, 0], sizes = [8, 128], strides = [1, 1]} : vector<8x512xf32> to vector<8x128xf32>
    %217 = arith.negf %216 : vector<8x128xf32>
    %218 = math.exp %217 : vector<8x128xf32>
    %cst_57 = arith.constant 1.000000e+00 : f32
    %219 = vector.broadcast %cst_57 : f32 to vector<8x128xf32>
    %220 = arith.addf %219, %218 : vector<8x128xf32>
    %221 = arith.divf %219, %220 : vector<8x128xf32>
    %222 = vector.extract_strided_slice %215 {offsets = [0, 128], sizes = [8, 128], strides = [1, 1]} : vector<8x512xf32> to vector<8x128xf32>
    %223 = arith.negf %222 : vector<8x128xf32>
    %224 = math.exp %223 : vector<8x128xf32>
    %cst_58 = arith.constant 1.000000e+00 : f32
    %225 = vector.broadcast %cst_58 : f32 to vector<8x128xf32>
    %226 = arith.addf %225, %224 : vector<8x128xf32>
    %227 = arith.divf %225, %226 : vector<8x128xf32>
    %228 = vector.extract_strided_slice %215 {offsets = [0, 256], sizes = [8, 128], strides = [1, 1]} : vector<8x512xf32> to vector<8x128xf32>
    %229 = math.tanh %228 : vector<8x128xf32>
    %230 = vector.extract_strided_slice %215 {offsets = [0, 384], sizes = [8, 128], strides = [1, 1]} : vector<8x512xf32> to vector<8x128xf32>
    %231 = arith.negf %230 : vector<8x128xf32>
    %232 = math.exp %231 : vector<8x128xf32>
    %cst_59 = arith.constant 1.000000e+00 : f32
    %233 = vector.broadcast %cst_59 : f32 to vector<8x128xf32>
    %234 = arith.addf %233, %232 : vector<8x128xf32>
    %235 = arith.divf %233, %234 : vector<8x128xf32>
    %236 = arith.mulf %227, %205 : vector<8x128xf32>
    %237 = arith.mulf %221, %229 : vector<8x128xf32>
    %238 = arith.addf %236, %237 : vector<8x128xf32>
    %239 = math.tanh %238 : vector<8x128xf32>
    %240 = arith.mulf %235, %239 : vector<8x128xf32>
    %241 = arith.index_cast %211 : i32 to index
    %c0_60 = arith.constant 0 : index
    %242 = vector.load %arg6[%241, %c0_60] : memref<64x128xf32, #tpu.memory_space<vmem>>, vector<8x128xf32>
    tpu.vector_store %arg6[%241, %c0_60], %240 {strides = array<i32>} : memref<64x128xf32, #tpu.memory_space<vmem>>, vector<8x128xf32>,
    %c7_i32 = arith.constant 7 : i32
    %c8_i32_61 = arith.constant 8 : i32
    %243 = arith.muli %c7_i32, %c8_i32_61 : i32
    %244 = tpu.assume_multiple %243, 8 : i32
    %245 = arith.index_cast %244 : i32 to index
    %c0_62 = arith.constant 0 : index
    %246 = vector.load %arg7[%245, %c0_62] : memref<64x512xf32, #tpu.memory_space<vmem>>, vector<8x512xf32>
    %cst_63 = arith.constant dense<0.000000e+00> : vector<8x512xf32>
    %247 = tpu.matmul %240, %4, %cst_63 {dimension_numbers = #tpu.dot_dimension_numbers<[1], [0], [0], [1], [0, 0, 1, 1], [], []>} : vector<8x128xf32>, vector<128x512xf32>, vector<8x512xf32> -> vector<8x512xf32>
    %248 = arith.addf %246, %247 : vector<8x512xf32>
    %249 = vector.extract_strided_slice %248 {offsets = [0, 0], sizes = [8, 128], strides = [1, 1]} : vector<8x512xf32> to vector<8x128xf32>
    %250 = arith.negf %249 : vector<8x128xf32>
    %251 = math.exp %250 : vector<8x128xf32>
    %cst_64 = arith.constant 1.000000e+00 : f32
    %252 = vector.broadcast %cst_64 : f32 to vector<8x128xf32>
    %253 = arith.addf %252, %251 : vector<8x128xf32>
    %254 = arith.divf %252, %253 : vector<8x128xf32>
    %255 = vector.extract_strided_slice %248 {offsets = [0, 128], sizes = [8, 128], strides = [1, 1]} : vector<8x512xf32> to vector<8x128xf32>
    %256 = arith.negf %255 : vector<8x128xf32>
    %257 = math.exp %256 : vector<8x128xf32>
    %cst_65 = arith.constant 1.000000e+00 : f32
    %258 = vector.broadcast %cst_65 : f32 to vector<8x128xf32>
    %259 = arith.addf %258, %257 : vector<8x128xf32>
    %260 = arith.divf %258, %259 : vector<8x128xf32>
    %261 = vector.extract_strided_slice %248 {offsets = [0, 256], sizes = [8, 128], strides = [1, 1]} : vector<8x512xf32> to vector<8x128xf32>
    %262 = math.tanh %261 : vector<8x128xf32>
    %263 = vector.extract_strided_slice %248 {offsets = [0, 384], sizes = [8, 128], strides = [1, 1]} : vector<8x512xf32> to vector<8x128xf32>
    %264 = arith.negf %263 : vector<8x128xf32>
    %265 = math.exp %264 : vector<8x128xf32>
    %cst_66 = arith.constant 1.000000e+00 : f32
    %266 = vector.broadcast %cst_66 : f32 to vector<8x128xf32>
    %267 = arith.addf %266, %265 : vector<8x128xf32>
    %268 = arith.divf %266, %267 : vector<8x128xf32>
    %269 = arith.mulf %260, %238 : vector<8x128xf32>
    %270 = arith.mulf %254, %262 : vector<8x128xf32>
    %271 = arith.addf %269, %270 : vector<8x128xf32>
    %272 = math.tanh %271 : vector<8x128xf32>
    %273 = arith.mulf %268, %272 : vector<8x128xf32>
    %274 = arith.index_cast %244 : i32 to index
    %c0_67 = arith.constant 0 : index
    %275 = vector.load %arg6[%274, %c0_67] : memref<64x128xf32, #tpu.memory_space<vmem>>, vector<8x128xf32>
    tpu.vector_store %arg6[%274, %c0_67], %273 {strides = array<i32>} : memref<64x128xf32, #tpu.memory_space<vmem>>, vector<8x128xf32>,
    %c8_i32_68 = arith.constant 8 : i32
    %c1 = arith.constant 1 : index
    %c0_69 = arith.constant 0 : index
    %c0_70 = arith.constant 0 : index
    %276 = vector.load %arg2[%c1, %c0_69, %c0_70] : memref<3x128x512xf32, #tpu.memory_space<vmem>>, vector<1x128x512xf32>
    %277 = vector.shape_cast %276 : vector<1x128x512xf32> to vector<128x512xf32>
    %c1_71 = arith.constant 1 : index
    %c0_72 = arith.constant 0 : index
    %c0_73 = arith.constant 0 : index
    %278 = vector.load %arg3[%c1_71, %c0_72, %c0_73] : memref<3x128x512xf32, #tpu.memory_space<vmem>>, vector<1x128x512xf32>
    %279 = vector.shape_cast %278 : vector<1x128x512xf32> to vector<128x512xf32>
    %c1_74 = arith.constant 1 : index
    %c0_75 = arith.constant 0 : index
    %c0_76 = arith.constant 0 : index
    %280 = vector.load %arg4[%c1_74, %c0_75, %c0_76] : memref<3x1x512xf32, #tpu.memory_space<vmem>>, vector<1x1x512xf32>
    %281 = vector.shape_cast %280 : vector<1x1x512xf32> to vector<1x512xf32>
    %c0_77 = arith.constant 0 : index
    %c0_78 = arith.constant 0 : index
    %282 = vector.load %arg6[%c0_77, %c0_78] : memref<64x128xf32, #tpu.memory_space<vmem>>, vector<64x128xf32>
    %cst_79 = arith.constant dense<0.000000e+00> : vector<64x512xf32>
    %283 = tpu.matmul %282, %277, %cst_79 {dimension_numbers = #tpu.dot_dimension_numbers<[1], [0], [0], [1], [0, 0, 1, 1], [], []>} : vector<64x128xf32>, vector<128x512xf32>, vector<64x512xf32> -> vector<64x512xf32>
    %284 = vector.broadcast %281 : vector<1x512xf32> to vector<64x512xf32>
    %285 = arith.addf %283, %284 : vector<64x512xf32>
    %c0_80 = arith.constant 0 : index
    %c0_81 = arith.constant 0 : index
    %286 = vector.load %arg7[%c0_80, %c0_81] : memref<64x512xf32, #tpu.memory_space<vmem>>, vector<64x512xf32>
    tpu.vector_store %arg7[%c0_80, %c0_81], %285 {strides = array<i32>} : memref<64x512xf32, #tpu.memory_space<vmem>>, vector<64x512xf32>,
    %c0_i32_82 = arith.constant 0 : i32
    %c8_i32_83 = arith.constant 8 : i32
    %287 = arith.muli %c0_i32_82, %c8_i32_83 : i32
    %288 = tpu.assume_multiple %287, 8 : i32
    %289 = arith.index_cast %288 : i32 to index
    %c0_84 = arith.constant 0 : index
    %290 = vector.load %arg7[%289, %c0_84] : memref<64x512xf32, #tpu.memory_space<vmem>>, vector<8x512xf32>
    %cst_85 = arith.constant dense<0.000000e+00> : vector<8x512xf32>
    %291 = tpu.matmul %0, %279, %cst_85 {dimension_numbers = #tpu.dot_dimension_numbers<[1], [0], [0], [1], [0, 0, 1, 1], [], []>} : vector<8x128xf32>, vector<128x512xf32>, vector<8x512xf32> -> vector<8x512xf32>
    %292 = arith.addf %290, %291 : vector<8x512xf32>
    %293 = vector.extract_strided_slice %292 {offsets = [0, 0], sizes = [8, 128], strides = [1, 1]} : vector<8x512xf32> to vector<8x128xf32>
    %294 = arith.negf %293 : vector<8x128xf32>
    %295 = math.exp %294 : vector<8x128xf32>
    %cst_86 = arith.constant 1.000000e+00 : f32
    %296 = vector.broadcast %cst_86 : f32 to vector<8x128xf32>
    %297 = arith.addf %296, %295 : vector<8x128xf32>
    %298 = arith.divf %296, %297 : vector<8x128xf32>
    %299 = vector.extract_strided_slice %292 {offsets = [0, 128], sizes = [8, 128], strides = [1, 1]} : vector<8x512xf32> to vector<8x128xf32>
    %300 = arith.negf %299 : vector<8x128xf32>
    %301 = math.exp %300 : vector<8x128xf32>
    %cst_87 = arith.constant 1.000000e+00 : f32
    %302 = vector.broadcast %cst_87 : f32 to vector<8x128xf32>
    %303 = arith.addf %302, %301 : vector<8x128xf32>
    %304 = arith.divf %302, %303 : vector<8x128xf32>
    %305 = vector.extract_strided_slice %292 {offsets = [0, 256], sizes = [8, 128], strides = [1, 1]} : vector<8x512xf32> to vector<8x128xf32>
    %306 = math.tanh %305 : vector<8x128xf32>
    %307 = vector.extract_strided_slice %292 {offsets = [0, 384], sizes = [8, 128], strides = [1, 1]} : vector<8x512xf32> to vector<8x128xf32>
    %308 = arith.negf %307 : vector<8x128xf32>
    %309 = math.exp %308 : vector<8x128xf32>
    %cst_88 = arith.constant 1.000000e+00 : f32
    %310 = vector.broadcast %cst_88 : f32 to vector<8x128xf32>
    %311 = arith.addf %310, %309 : vector<8x128xf32>
    %312 = arith.divf %310, %311 : vector<8x128xf32>
    %313 = arith.mulf %304, %0 : vector<8x128xf32>
    %314 = arith.mulf %298, %306 : vector<8x128xf32>
    %315 = arith.addf %313, %314 : vector<8x128xf32>
    %316 = math.tanh %315 : vector<8x128xf32>
    %317 = arith.mulf %312, %316 : vector<8x128xf32>
    %318 = arith.index_cast %288 : i32 to index
    %c0_89 = arith.constant 0 : index
    %319 = vector.load %arg6[%318, %c0_89] : memref<64x128xf32, #tpu.memory_space<vmem>>, vector<8x128xf32>
    tpu.vector_store %arg6[%318, %c0_89], %317 {strides = array<i32>} : memref<64x128xf32, #tpu.memory_space<vmem>>, vector<8x128xf32>,
    %c1_i32_90 = arith.constant 1 : i32
    %c8_i32_91 = arith.constant 8 : i32
    %320 = arith.muli %c1_i32_90, %c8_i32_91 : i32
    %321 = tpu.assume_multiple %320, 8 : i32
    %322 = arith.index_cast %321 : i32 to index
    %c0_92 = arith.constant 0 : index
    %323 = vector.load %arg7[%322, %c0_92] : memref<64x512xf32, #tpu.memory_space<vmem>>, vector<8x512xf32>
    %cst_93 = arith.constant dense<0.000000e+00> : vector<8x512xf32>
    %324 = tpu.matmul %317, %279, %cst_93 {dimension_numbers = #tpu.dot_dimension_numbers<[1], [0], [0], [1], [0, 0, 1, 1], [], []>} : vector<8x128xf32>, vector<128x512xf32>, vector<8x512xf32> -> vector<8x512xf32>
    %325 = arith.addf %323, %324 : vector<8x512xf32>
    %326 = vector.extract_strided_slice %325 {offsets = [0, 0], sizes = [8, 128], strides = [1, 1]} : vector<8x512xf32> to vector<8x128xf32>
    %327 = arith.negf %326 : vector<8x128xf32>
    %328 = math.exp %327 : vector<8x128xf32>
    %cst_94 = arith.constant 1.000000e+00 : f32
    %329 = vector.broadcast %cst_94 : f32 to vector<8x128xf32>
    %330 = arith.addf %329, %328 : vector<8x128xf32>
    %331 = arith.divf %329, %330 : vector<8x128xf32>
    %332 = vector.extract_strided_slice %325 {offsets = [0, 128], sizes = [8, 128], strides = [1, 1]} : vector<8x512xf32> to vector<8x128xf32>
    %333 = arith.negf %332 : vector<8x128xf32>
    %334 = math.exp %333 : vector<8x128xf32>
    %cst_95 = arith.constant 1.000000e+00 : f32
    %335 = vector.broadcast %cst_95 : f32 to vector<8x128xf32>
    %336 = arith.addf %335, %334 : vector<8x128xf32>
    %337 = arith.divf %335, %336 : vector<8x128xf32>
    %338 = vector.extract_strided_slice %325 {offsets = [0, 256], sizes = [8, 128], strides = [1, 1]} : vector<8x512xf32> to vector<8x128xf32>
    %339 = math.tanh %338 : vector<8x128xf32>
    %340 = vector.extract_strided_slice %325 {offsets = [0, 384], sizes = [8, 128], strides = [1, 1]} : vector<8x512xf32> to vector<8x128xf32>
    %341 = arith.negf %340 : vector<8x128xf32>
    %342 = math.exp %341 : vector<8x128xf32>
    %cst_96 = arith.constant 1.000000e+00 : f32
    %343 = vector.broadcast %cst_96 : f32 to vector<8x128xf32>
    %344 = arith.addf %343, %342 : vector<8x128xf32>
    %345 = arith.divf %343, %344 : vector<8x128xf32>
    %346 = arith.mulf %337, %315 : vector<8x128xf32>
    %347 = arith.mulf %331, %339 : vector<8x128xf32>
    %348 = arith.addf %346, %347 : vector<8x128xf32>
    %349 = math.tanh %348 : vector<8x128xf32>
    %350 = arith.mulf %345, %349 : vector<8x128xf32>
    %351 = arith.index_cast %321 : i32 to index
    %c0_97 = arith.constant 0 : index
    %352 = vector.load %arg6[%351, %c0_97] : memref<64x128xf32, #tpu.memory_space<vmem>>, vector<8x128xf32>
    tpu.vector_store %arg6[%351, %c0_97], %350 {strides = array<i32>} : memref<64x128xf32, #tpu.memory_space<vmem>>, vector<8x128xf32>,
    %c2_i32_98 = arith.constant 2 : i32
    %c8_i32_99 = arith.constant 8 : i32
    %353 = arith.muli %c2_i32_98, %c8_i32_99 : i32
    %354 = tpu.assume_multiple %353, 8 : i32
    %355 = arith.index_cast %354 : i32 to index
    %c0_100 = arith.constant 0 : index
    %356 = vector.load %arg7[%355, %c0_100] : memref<64x512xf32, #tpu.memory_space<vmem>>, vector<8x512xf32>
    %cst_101 = arith.constant dense<0.000000e+00> : vector<8x512xf32>
    %357 = tpu.matmul %350, %279, %cst_101 {dimension_numbers = #tpu.dot_dimension_numbers<[1], [0], [0], [1], [0, 0, 1, 1], [], []>} : vector<8x128xf32>, vector<128x512xf32>, vector<8x512xf32> -> vector<8x512xf32>
    %358 = arith.addf %356, %357 : vector<8x512xf32>
    %359 = vector.extract_strided_slice %358 {offsets = [0, 0], sizes = [8, 128], strides = [1, 1]} : vector<8x512xf32> to vector<8x128xf32>
    %360 = arith.negf %359 : vector<8x128xf32>
    %361 = math.exp %360 : vector<8x128xf32>
    %cst_102 = arith.constant 1.000000e+00 : f32
    %362 = vector.broadcast %cst_102 : f32 to vector<8x128xf32>
    %363 = arith.addf %362, %361 : vector<8x128xf32>
    %364 = arith.divf %362, %363 : vector<8x128xf32>
    %365 = vector.extract_strided_slice %358 {offsets = [0, 128], sizes = [8, 128], strides = [1, 1]} : vector<8x512xf32> to vector<8x128xf32>
    %366 = arith.negf %365 : vector<8x128xf32>
    %367 = math.exp %366 : vector<8x128xf32>
    %cst_103 = arith.constant 1.000000e+00 : f32
    %368 = vector.broadcast %cst_103 : f32 to vector<8x128xf32>
    %369 = arith.addf %368, %367 : vector<8x128xf32>
    %370 = arith.divf %368, %369 : vector<8x128xf32>
    %371 = vector.extract_strided_slice %358 {offsets = [0, 256], sizes = [8, 128], strides = [1, 1]} : vector<8x512xf32> to vector<8x128xf32>
    %372 = math.tanh %371 : vector<8x128xf32>
    %373 = vector.extract_strided_slice %358 {offsets = [0, 384], sizes = [8, 128], strides = [1, 1]} : vector<8x512xf32> to vector<8x128xf32>
    %374 = arith.negf %373 : vector<8x128xf32>
    %375 = math.exp %374 : vector<8x128xf32>
    %cst_104 = arith.constant 1.000000e+00 : f32
    %376 = vector.broadcast %cst_104 : f32 to vector<8x128xf32>
    %377 = arith.addf %376, %375 : vector<8x128xf32>
    %378 = arith.divf %376, %377 : vector<8x128xf32>
    %379 = arith.mulf %370, %348 : vector<8x128xf32>
    %380 = arith.mulf %364, %372 : vector<8x128xf32>
    %381 = arith.addf %379, %380 : vector<8x128xf32>
    %382 = math.tanh %381 : vector<8x128xf32>
    %383 = arith.mulf %378, %382 : vector<8x128xf32>
    %384 = arith.index_cast %354 : i32 to index
    %c0_105 = arith.constant 0 : index
    %385 = vector.load %arg6[%384, %c0_105] : memref<64x128xf32, #tpu.memory_space<vmem>>, vector<8x128xf32>
    tpu.vector_store %arg6[%384, %c0_105], %383 {strides = array<i32>} : memref<64x128xf32, #tpu.memory_space<vmem>>, vector<8x128xf32>,
    %c3_i32_106 = arith.constant 3 : i32
    %c8_i32_107 = arith.constant 8 : i32
    %386 = arith.muli %c3_i32_106, %c8_i32_107 : i32
    %387 = tpu.assume_multiple %386, 8 : i32
    %388 = arith.index_cast %387 : i32 to index
    %c0_108 = arith.constant 0 : index
    %389 = vector.load %arg7[%388, %c0_108] : memref<64x512xf32, #tpu.memory_space<vmem>>, vector<8x512xf32>
    %cst_109 = arith.constant dense<0.000000e+00> : vector<8x512xf32>
    %390 = tpu.matmul %383, %279, %cst_109 {dimension_numbers = #tpu.dot_dimension_numbers<[1], [0], [0], [1], [0, 0, 1, 1], [], []>} : vector<8x128xf32>, vector<128x512xf32>, vector<8x512xf32> -> vector<8x512xf32>
    %391 = arith.addf %389, %390 : vector<8x512xf32>
    %392 = vector.extract_strided_slice %391 {offsets = [0, 0], sizes = [8, 128], strides = [1, 1]} : vector<8x512xf32> to vector<8x128xf32>
    %393 = arith.negf %392 : vector<8x128xf32>
    %394 = math.exp %393 : vector<8x128xf32>
    %cst_110 = arith.constant 1.000000e+00 : f32
    %395 = vector.broadcast %cst_110 : f32 to vector<8x128xf32>
    %396 = arith.addf %395, %394 : vector<8x128xf32>
    %397 = arith.divf %395, %396 : vector<8x128xf32>
    %398 = vector.extract_strided_slice %391 {offsets = [0, 128], sizes = [8, 128], strides = [1, 1]} : vector<8x512xf32> to vector<8x128xf32>
    %399 = arith.negf %398 : vector<8x128xf32>
    %400 = math.exp %399 : vector<8x128xf32>
    %cst_111 = arith.constant 1.000000e+00 : f32
    %401 = vector.broadcast %cst_111 : f32 to vector<8x128xf32>
    %402 = arith.addf %401, %400 : vector<8x128xf32>
    %403 = arith.divf %401, %402 : vector<8x128xf32>
    %404 = vector.extract_strided_slice %391 {offsets = [0, 256], sizes = [8, 128], strides = [1, 1]} : vector<8x512xf32> to vector<8x128xf32>
    %405 = math.tanh %404 : vector<8x128xf32>
    %406 = vector.extract_strided_slice %391 {offsets = [0, 384], sizes = [8, 128], strides = [1, 1]} : vector<8x512xf32> to vector<8x128xf32>
    %407 = arith.negf %406 : vector<8x128xf32>
    %408 = math.exp %407 : vector<8x128xf32>
    %cst_112 = arith.constant 1.000000e+00 : f32
    %409 = vector.broadcast %cst_112 : f32 to vector<8x128xf32>
    %410 = arith.addf %409, %408 : vector<8x128xf32>
    %411 = arith.divf %409, %410 : vector<8x128xf32>
    %412 = arith.mulf %403, %381 : vector<8x128xf32>
    %413 = arith.mulf %397, %405 : vector<8x128xf32>
    %414 = arith.addf %412, %413 : vector<8x128xf32>
    %415 = math.tanh %414 : vector<8x128xf32>
    %416 = arith.mulf %411, %415 : vector<8x128xf32>
    %417 = arith.index_cast %387 : i32 to index
    %c0_113 = arith.constant 0 : index
    %418 = vector.load %arg6[%417, %c0_113] : memref<64x128xf32, #tpu.memory_space<vmem>>, vector<8x128xf32>
    tpu.vector_store %arg6[%417, %c0_113], %416 {strides = array<i32>} : memref<64x128xf32, #tpu.memory_space<vmem>>, vector<8x128xf32>,
    %c4_i32_114 = arith.constant 4 : i32
    %c8_i32_115 = arith.constant 8 : i32
    %419 = arith.muli %c4_i32_114, %c8_i32_115 : i32
    %420 = tpu.assume_multiple %419, 8 : i32
    %421 = arith.index_cast %420 : i32 to index
    %c0_116 = arith.constant 0 : index
    %422 = vector.load %arg7[%421, %c0_116] : memref<64x512xf32, #tpu.memory_space<vmem>>, vector<8x512xf32>
    %cst_117 = arith.constant dense<0.000000e+00> : vector<8x512xf32>
    %423 = tpu.matmul %416, %279, %cst_117 {dimension_numbers = #tpu.dot_dimension_numbers<[1], [0], [0], [1], [0, 0, 1, 1], [], []>} : vector<8x128xf32>, vector<128x512xf32>, vector<8x512xf32> -> vector<8x512xf32>
    %424 = arith.addf %422, %423 : vector<8x512xf32>
    %425 = vector.extract_strided_slice %424 {offsets = [0, 0], sizes = [8, 128], strides = [1, 1]} : vector<8x512xf32> to vector<8x128xf32>
    %426 = arith.negf %425 : vector<8x128xf32>
    %427 = math.exp %426 : vector<8x128xf32>
    %cst_118 = arith.constant 1.000000e+00 : f32
    %428 = vector.broadcast %cst_118 : f32 to vector<8x128xf32>
    %429 = arith.addf %428, %427 : vector<8x128xf32>
    %430 = arith.divf %428, %429 : vector<8x128xf32>
    %431 = vector.extract_strided_slice %424 {offsets = [0, 128], sizes = [8, 128], strides = [1, 1]} : vector<8x512xf32> to vector<8x128xf32>
    %432 = arith.negf %431 : vector<8x128xf32>
    %433 = math.exp %432 : vector<8x128xf32>
    %cst_119 = arith.constant 1.000000e+00 : f32
    %434 = vector.broadcast %cst_119 : f32 to vector<8x128xf32>
    %435 = arith.addf %434, %433 : vector<8x128xf32>
    %436 = arith.divf %434, %435 : vector<8x128xf32>
    %437 = vector.extract_strided_slice %424 {offsets = [0, 256], sizes = [8, 128], strides = [1, 1]} : vector<8x512xf32> to vector<8x128xf32>
    %438 = math.tanh %437 : vector<8x128xf32>
    %439 = vector.extract_strided_slice %424 {offsets = [0, 384], sizes = [8, 128], strides = [1, 1]} : vector<8x512xf32> to vector<8x128xf32>
    %440 = arith.negf %439 : vector<8x128xf32>
    %441 = math.exp %440 : vector<8x128xf32>
    %cst_120 = arith.constant 1.000000e+00 : f32
    %442 = vector.broadcast %cst_120 : f32 to vector<8x128xf32>
    %443 = arith.addf %442, %441 : vector<8x128xf32>
    %444 = arith.divf %442, %443 : vector<8x128xf32>
    %445 = arith.mulf %436, %414 : vector<8x128xf32>
    %446 = arith.mulf %430, %438 : vector<8x128xf32>
    %447 = arith.addf %445, %446 : vector<8x128xf32>
    %448 = math.tanh %447 : vector<8x128xf32>
    %449 = arith.mulf %444, %448 : vector<8x128xf32>
    %450 = arith.index_cast %420 : i32 to index
    %c0_121 = arith.constant 0 : index
    %451 = vector.load %arg6[%450, %c0_121] : memref<64x128xf32, #tpu.memory_space<vmem>>, vector<8x128xf32>
    tpu.vector_store %arg6[%450, %c0_121], %449 {strides = array<i32>} : memref<64x128xf32, #tpu.memory_space<vmem>>, vector<8x128xf32>,
    %c5_i32_122 = arith.constant 5 : i32
    %c8_i32_123 = arith.constant 8 : i32
    %452 = arith.muli %c5_i32_122, %c8_i32_123 : i32
    %453 = tpu.assume_multiple %452, 8 : i32
    %454 = arith.index_cast %453 : i32 to index
    %c0_124 = arith.constant 0 : index
    %455 = vector.load %arg7[%454, %c0_124] : memref<64x512xf32, #tpu.memory_space<vmem>>, vector<8x512xf32>
    %cst_125 = arith.constant dense<0.000000e+00> : vector<8x512xf32>
    %456 = tpu.matmul %449, %279, %cst_125 {dimension_numbers = #tpu.dot_dimension_numbers<[1], [0], [0], [1], [0, 0, 1, 1], [], []>} : vector<8x128xf32>, vector<128x512xf32>, vector<8x512xf32> -> vector<8x512xf32>
    %457 = arith.addf %455, %456 : vector<8x512xf32>
    %458 = vector.extract_strided_slice %457 {offsets = [0, 0], sizes = [8, 128], strides = [1, 1]} : vector<8x512xf32> to vector<8x128xf32>
    %459 = arith.negf %458 : vector<8x128xf32>
    %460 = math.exp %459 : vector<8x128xf32>
    %cst_126 = arith.constant 1.000000e+00 : f32
    %461 = vector.broadcast %cst_126 : f32 to vector<8x128xf32>
    %462 = arith.addf %461, %460 : vector<8x128xf32>
    %463 = arith.divf %461, %462 : vector<8x128xf32>
    %464 = vector.extract_strided_slice %457 {offsets = [0, 128], sizes = [8, 128], strides = [1, 1]} : vector<8x512xf32> to vector<8x128xf32>
    %465 = arith.negf %464 : vector<8x128xf32>
    %466 = math.exp %465 : vector<8x128xf32>
    %cst_127 = arith.constant 1.000000e+00 : f32
    %467 = vector.broadcast %cst_127 : f32 to vector<8x128xf32>
    %468 = arith.addf %467, %466 : vector<8x128xf32>
    %469 = arith.divf %467, %468 : vector<8x128xf32>
    %470 = vector.extract_strided_slice %457 {offsets = [0, 256], sizes = [8, 128], strides = [1, 1]} : vector<8x512xf32> to vector<8x128xf32>
    %471 = math.tanh %470 : vector<8x128xf32>
    %472 = vector.extract_strided_slice %457 {offsets = [0, 384], sizes = [8, 128], strides = [1, 1]} : vector<8x512xf32> to vector<8x128xf32>
    %473 = arith.negf %472 : vector<8x128xf32>
    %474 = math.exp %473 : vector<8x128xf32>
    %cst_128 = arith.constant 1.000000e+00 : f32
    %475 = vector.broadcast %cst_128 : f32 to vector<8x128xf32>
    %476 = arith.addf %475, %474 : vector<8x128xf32>
    %477 = arith.divf %475, %476 : vector<8x128xf32>
    %478 = arith.mulf %469, %447 : vector<8x128xf32>
    %479 = arith.mulf %463, %471 : vector<8x128xf32>
    %480 = arith.addf %478, %479 : vector<8x128xf32>
    %481 = math.tanh %480 : vector<8x128xf32>
    %482 = arith.mulf %477, %481 : vector<8x128xf32>
    %483 = arith.index_cast %453 : i32 to index
    %c0_129 = arith.constant 0 : index
    %484 = vector.load %arg6[%483, %c0_129] : memref<64x128xf32, #tpu.memory_space<vmem>>, vector<8x128xf32>
    tpu.vector_store %arg6[%483, %c0_129], %482 {strides = array<i32>} : memref<64x128xf32, #tpu.memory_space<vmem>>, vector<8x128xf32>,
    %c6_i32_130 = arith.constant 6 : i32
    %c8_i32_131 = arith.constant 8 : i32
    %485 = arith.muli %c6_i32_130, %c8_i32_131 : i32
    %486 = tpu.assume_multiple %485, 8 : i32
    %487 = arith.index_cast %486 : i32 to index
    %c0_132 = arith.constant 0 : index
    %488 = vector.load %arg7[%487, %c0_132] : memref<64x512xf32, #tpu.memory_space<vmem>>, vector<8x512xf32>
    %cst_133 = arith.constant dense<0.000000e+00> : vector<8x512xf32>
    %489 = tpu.matmul %482, %279, %cst_133 {dimension_numbers = #tpu.dot_dimension_numbers<[1], [0], [0], [1], [0, 0, 1, 1], [], []>} : vector<8x128xf32>, vector<128x512xf32>, vector<8x512xf32> -> vector<8x512xf32>
    %490 = arith.addf %488, %489 : vector<8x512xf32>
    %491 = vector.extract_strided_slice %490 {offsets = [0, 0], sizes = [8, 128], strides = [1, 1]} : vector<8x512xf32> to vector<8x128xf32>
    %492 = arith.negf %491 : vector<8x128xf32>
    %493 = math.exp %492 : vector<8x128xf32>
    %cst_134 = arith.constant 1.000000e+00 : f32
    %494 = vector.broadcast %cst_134 : f32 to vector<8x128xf32>
    %495 = arith.addf %494, %493 : vector<8x128xf32>
    %496 = arith.divf %494, %495 : vector<8x128xf32>
    %497 = vector.extract_strided_slice %490 {offsets = [0, 128], sizes = [8, 128], strides = [1, 1]} : vector<8x512xf32> to vector<8x128xf32>
    %498 = arith.negf %497 : vector<8x128xf32>
    %499 = math.exp %498 : vector<8x128xf32>
    %cst_135 = arith.constant 1.000000e+00 : f32
    %500 = vector.broadcast %cst_135 : f32 to vector<8x128xf32>
    %501 = arith.addf %500, %499 : vector<8x128xf32>
    %502 = arith.divf %500, %501 : vector<8x128xf32>
    %503 = vector.extract_strided_slice %490 {offsets = [0, 256], sizes = [8, 128], strides = [1, 1]} : vector<8x512xf32> to vector<8x128xf32>
    %504 = math.tanh %503 : vector<8x128xf32>
    %505 = vector.extract_strided_slice %490 {offsets = [0, 384], sizes = [8, 128], strides = [1, 1]} : vector<8x512xf32> to vector<8x128xf32>
    %506 = arith.negf %505 : vector<8x128xf32>
    %507 = math.exp %506 : vector<8x128xf32>
    %cst_136 = arith.constant 1.000000e+00 : f32
    %508 = vector.broadcast %cst_136 : f32 to vector<8x128xf32>
    %509 = arith.addf %508, %507 : vector<8x128xf32>
    %510 = arith.divf %508, %509 : vector<8x128xf32>
    %511 = arith.mulf %502, %480 : vector<8x128xf32>
    %512 = arith.mulf %496, %504 : vector<8x128xf32>
    %513 = arith.addf %511, %512 : vector<8x128xf32>
    %514 = math.tanh %513 : vector<8x128xf32>
    %515 = arith.mulf %510, %514 : vector<8x128xf32>
    %516 = arith.index_cast %486 : i32 to index
    %c0_137 = arith.constant 0 : index
    %517 = vector.load %arg6[%516, %c0_137] : memref<64x128xf32, #tpu.memory_space<vmem>>, vector<8x128xf32>
    tpu.vector_store %arg6[%516, %c0_137], %515 {strides = array<i32>} : memref<64x128xf32, #tpu.memory_space<vmem>>, vector<8x128xf32>,
    %c7_i32_138 = arith.constant 7 : i32
    %c8_i32_139 = arith.constant 8 : i32
    %518 = arith.muli %c7_i32_138, %c8_i32_139 : i32
    %519 = tpu.assume_multiple %518, 8 : i32
    %520 = arith.index_cast %519 : i32 to index
    %c0_140 = arith.constant 0 : index
    %521 = vector.load %arg7[%520, %c0_140] : memref<64x512xf32, #tpu.memory_space<vmem>>, vector<8x512xf32>
    %cst_141 = arith.constant dense<0.000000e+00> : vector<8x512xf32>
    %522 = tpu.matmul %515, %279, %cst_141 {dimension_numbers = #tpu.dot_dimension_numbers<[1], [0], [0], [1], [0, 0, 1, 1], [], []>} : vector<8x128xf32>, vector<128x512xf32>, vector<8x512xf32> -> vector<8x512xf32>
    %523 = arith.addf %521, %522 : vector<8x512xf32>
    %524 = vector.extract_strided_slice %523 {offsets = [0, 0], sizes = [8, 128], strides = [1, 1]} : vector<8x512xf32> to vector<8x128xf32>
    %525 = arith.negf %524 : vector<8x128xf32>
    %526 = math.exp %525 : vector<8x128xf32>
    %cst_142 = arith.constant 1.000000e+00 : f32
    %527 = vector.broadcast %cst_142 : f32 to vector<8x128xf32>
    %528 = arith.addf %527, %526 : vector<8x128xf32>
    %529 = arith.divf %527, %528 : vector<8x128xf32>
    %530 = vector.extract_strided_slice %523 {offsets = [0, 128], sizes = [8, 128], strides = [1, 1]} : vector<8x512xf32> to vector<8x128xf32>
    %531 = arith.negf %530 : vector<8x128xf32>
    %532 = math.exp %531 : vector<8x128xf32>
    %cst_143 = arith.constant 1.000000e+00 : f32
    %533 = vector.broadcast %cst_143 : f32 to vector<8x128xf32>
    %534 = arith.addf %533, %532 : vector<8x128xf32>
    %535 = arith.divf %533, %534 : vector<8x128xf32>
    %536 = vector.extract_strided_slice %523 {offsets = [0, 256], sizes = [8, 128], strides = [1, 1]} : vector<8x512xf32> to vector<8x128xf32>
    %537 = math.tanh %536 : vector<8x128xf32>
    %538 = vector.extract_strided_slice %523 {offsets = [0, 384], sizes = [8, 128], strides = [1, 1]} : vector<8x512xf32> to vector<8x128xf32>
    %539 = arith.negf %538 : vector<8x128xf32>
    %540 = math.exp %539 : vector<8x128xf32>
    %cst_144 = arith.constant 1.000000e+00 : f32
    %541 = vector.broadcast %cst_144 : f32 to vector<8x128xf32>
    %542 = arith.addf %541, %540 : vector<8x128xf32>
    %543 = arith.divf %541, %542 : vector<8x128xf32>
    %544 = arith.mulf %535, %513 : vector<8x128xf32>
    %545 = arith.mulf %529, %537 : vector<8x128xf32>
    %546 = arith.addf %544, %545 : vector<8x128xf32>
    %547 = math.tanh %546 : vector<8x128xf32>
    %548 = arith.mulf %543, %547 : vector<8x128xf32>
    %549 = arith.index_cast %519 : i32 to index
    %c0_145 = arith.constant 0 : index
    %550 = vector.load %arg6[%549, %c0_145] : memref<64x128xf32, #tpu.memory_space<vmem>>, vector<8x128xf32>
    tpu.vector_store %arg6[%549, %c0_145], %548 {strides = array<i32>} : memref<64x128xf32, #tpu.memory_space<vmem>>, vector<8x128xf32>,
    %c8_i32_146 = arith.constant 8 : i32
    %c2 = arith.constant 2 : index
    %c0_147 = arith.constant 0 : index
    %c0_148 = arith.constant 0 : index
    %551 = vector.load %arg2[%c2, %c0_147, %c0_148] : memref<3x128x512xf32, #tpu.memory_space<vmem>>, vector<1x128x512xf32>
    %552 = vector.shape_cast %551 : vector<1x128x512xf32> to vector<128x512xf32>
    %c2_149 = arith.constant 2 : index
    %c0_150 = arith.constant 0 : index
    %c0_151 = arith.constant 0 : index
    %553 = vector.load %arg3[%c2_149, %c0_150, %c0_151] : memref<3x128x512xf32, #tpu.memory_space<vmem>>, vector<1x128x512xf32>
    %554 = vector.shape_cast %553 : vector<1x128x512xf32> to vector<128x512xf32>
    %c2_152 = arith.constant 2 : index
    %c0_153 = arith.constant 0 : index
    %c0_154 = arith.constant 0 : index
    %555 = vector.load %arg4[%c2_152, %c0_153, %c0_154] : memref<3x1x512xf32, #tpu.memory_space<vmem>>, vector<1x1x512xf32>
    %556 = vector.shape_cast %555 : vector<1x1x512xf32> to vector<1x512xf32>
    %c0_155 = arith.constant 0 : index
    %c0_156 = arith.constant 0 : index
    %557 = vector.load %arg6[%c0_155, %c0_156] : memref<64x128xf32, #tpu.memory_space<vmem>>, vector<64x128xf32>
    %cst_157 = arith.constant dense<0.000000e+00> : vector<64x512xf32>
    %558 = tpu.matmul %557, %552, %cst_157 {dimension_numbers = #tpu.dot_dimension_numbers<[1], [0], [0], [1], [0, 0, 1, 1], [], []>} : vector<64x128xf32>, vector<128x512xf32>, vector<64x512xf32> -> vector<64x512xf32>
    %559 = vector.broadcast %556 : vector<1x512xf32> to vector<64x512xf32>
    %560 = arith.addf %558, %559 : vector<64x512xf32>
    %c0_158 = arith.constant 0 : index
    %c0_159 = arith.constant 0 : index
    %561 = vector.load %arg7[%c0_158, %c0_159] : memref<64x512xf32, #tpu.memory_space<vmem>>, vector<64x512xf32>
    tpu.vector_store %arg7[%c0_158, %c0_159], %560 {strides = array<i32>} : memref<64x512xf32, #tpu.memory_space<vmem>>, vector<64x512xf32>,
    %c0_i32_160 = arith.constant 0 : i32
    %c8_i32_161 = arith.constant 8 : i32
    %562 = arith.muli %c0_i32_160, %c8_i32_161 : i32
    %563 = tpu.assume_multiple %562, 8 : i32
    %564 = arith.index_cast %563 : i32 to index
    %c0_162 = arith.constant 0 : index
    %565 = vector.load %arg7[%564, %c0_162] : memref<64x512xf32, #tpu.memory_space<vmem>>, vector<8x512xf32>
    %cst_163 = arith.constant dense<0.000000e+00> : vector<8x512xf32>
    %566 = tpu.matmul %0, %554, %cst_163 {dimension_numbers = #tpu.dot_dimension_numbers<[1], [0], [0], [1], [0, 0, 1, 1], [], []>} : vector<8x128xf32>, vector<128x512xf32>, vector<8x512xf32> -> vector<8x512xf32>
    %567 = arith.addf %565, %566 : vector<8x512xf32>
    %568 = vector.extract_strided_slice %567 {offsets = [0, 0], sizes = [8, 128], strides = [1, 1]} : vector<8x512xf32> to vector<8x128xf32>
    %569 = arith.negf %568 : vector<8x128xf32>
    %570 = math.exp %569 : vector<8x128xf32>
    %cst_164 = arith.constant 1.000000e+00 : f32
    %571 = vector.broadcast %cst_164 : f32 to vector<8x128xf32>
    %572 = arith.addf %571, %570 : vector<8x128xf32>
    %573 = arith.divf %571, %572 : vector<8x128xf32>
    %574 = vector.extract_strided_slice %567 {offsets = [0, 128], sizes = [8, 128], strides = [1, 1]} : vector<8x512xf32> to vector<8x128xf32>
    %575 = arith.negf %574 : vector<8x128xf32>
    %576 = math.exp %575 : vector<8x128xf32>
    %cst_165 = arith.constant 1.000000e+00 : f32
    %577 = vector.broadcast %cst_165 : f32 to vector<8x128xf32>
    %578 = arith.addf %577, %576 : vector<8x128xf32>
    %579 = arith.divf %577, %578 : vector<8x128xf32>
    %580 = vector.extract_strided_slice %567 {offsets = [0, 256], sizes = [8, 128], strides = [1, 1]} : vector<8x512xf32> to vector<8x128xf32>
    %581 = math.tanh %580 : vector<8x128xf32>
    %582 = vector.extract_strided_slice %567 {offsets = [0, 384], sizes = [8, 128], strides = [1, 1]} : vector<8x512xf32> to vector<8x128xf32>
    %583 = arith.negf %582 : vector<8x128xf32>
    %584 = math.exp %583 : vector<8x128xf32>
    %cst_166 = arith.constant 1.000000e+00 : f32
    %585 = vector.broadcast %cst_166 : f32 to vector<8x128xf32>
    %586 = arith.addf %585, %584 : vector<8x128xf32>
    %587 = arith.divf %585, %586 : vector<8x128xf32>
    %588 = arith.mulf %579, %0 : vector<8x128xf32>
    %589 = arith.mulf %573, %581 : vector<8x128xf32>
    %590 = arith.addf %588, %589 : vector<8x128xf32>
    %591 = math.tanh %590 : vector<8x128xf32>
    %592 = arith.mulf %587, %591 : vector<8x128xf32>
    %593 = arith.index_cast %563 : i32 to index
    %c0_167 = arith.constant 0 : index
    %594 = vector.load %arg5[%593, %c0_167] : memref<64x128xf32, #tpu.memory_space<vmem>>, vector<8x128xf32>
    tpu.vector_store %arg5[%593, %c0_167], %592 {strides = array<i32>} : memref<64x128xf32, #tpu.memory_space<vmem>>, vector<8x128xf32>,
    %c1_i32_168 = arith.constant 1 : i32
    %c8_i32_169 = arith.constant 8 : i32
    %595 = arith.muli %c1_i32_168, %c8_i32_169 : i32
    %596 = tpu.assume_multiple %595, 8 : i32
    %597 = arith.index_cast %596 : i32 to index
    %c0_170 = arith.constant 0 : index
    %598 = vector.load %arg7[%597, %c0_170] : memref<64x512xf32, #tpu.memory_space<vmem>>, vector<8x512xf32>
    %cst_171 = arith.constant dense<0.000000e+00> : vector<8x512xf32>
    %599 = tpu.matmul %592, %554, %cst_171 {dimension_numbers = #tpu.dot_dimension_numbers<[1], [0], [0], [1], [0, 0, 1, 1], [], []>} : vector<8x128xf32>, vector<128x512xf32>, vector<8x512xf32> -> vector<8x512xf32>
    %600 = arith.addf %598, %599 : vector<8x512xf32>
    %601 = vector.extract_strided_slice %600 {offsets = [0, 0], sizes = [8, 128], strides = [1, 1]} : vector<8x512xf32> to vector<8x128xf32>
    %602 = arith.negf %601 : vector<8x128xf32>
    %603 = math.exp %602 : vector<8x128xf32>
    %cst_172 = arith.constant 1.000000e+00 : f32
    %604 = vector.broadcast %cst_172 : f32 to vector<8x128xf32>
    %605 = arith.addf %604, %603 : vector<8x128xf32>
    %606 = arith.divf %604, %605 : vector<8x128xf32>
    %607 = vector.extract_strided_slice %600 {offsets = [0, 128], sizes = [8, 128], strides = [1, 1]} : vector<8x512xf32> to vector<8x128xf32>
    %608 = arith.negf %607 : vector<8x128xf32>
    %609 = math.exp %608 : vector<8x128xf32>
    %cst_173 = arith.constant 1.000000e+00 : f32
    %610 = vector.broadcast %cst_173 : f32 to vector<8x128xf32>
    %611 = arith.addf %610, %609 : vector<8x128xf32>
    %612 = arith.divf %610, %611 : vector<8x128xf32>
    %613 = vector.extract_strided_slice %600 {offsets = [0, 256], sizes = [8, 128], strides = [1, 1]} : vector<8x512xf32> to vector<8x128xf32>
    %614 = math.tanh %613 : vector<8x128xf32>
    %615 = vector.extract_strided_slice %600 {offsets = [0, 384], sizes = [8, 128], strides = [1, 1]} : vector<8x512xf32> to vector<8x128xf32>
    %616 = arith.negf %615 : vector<8x128xf32>
    %617 = math.exp %616 : vector<8x128xf32>
    %cst_174 = arith.constant 1.000000e+00 : f32
    %618 = vector.broadcast %cst_174 : f32 to vector<8x128xf32>
    %619 = arith.addf %618, %617 : vector<8x128xf32>
    %620 = arith.divf %618, %619 : vector<8x128xf32>
    %621 = arith.mulf %612, %590 : vector<8x128xf32>
    %622 = arith.mulf %606, %614 : vector<8x128xf32>
    %623 = arith.addf %621, %622 : vector<8x128xf32>
    %624 = math.tanh %623 : vector<8x128xf32>
    %625 = arith.mulf %620, %624 : vector<8x128xf32>
    %626 = arith.index_cast %596 : i32 to index
    %c0_175 = arith.constant 0 : index
    %627 = vector.load %arg5[%626, %c0_175] : memref<64x128xf32, #tpu.memory_space<vmem>>, vector<8x128xf32>
    tpu.vector_store %arg5[%626, %c0_175], %625 {strides = array<i32>} : memref<64x128xf32, #tpu.memory_space<vmem>>, vector<8x128xf32>,
    %c2_i32_176 = arith.constant 2 : i32
    %c8_i32_177 = arith.constant 8 : i32
    %628 = arith.muli %c2_i32_176, %c8_i32_177 : i32
    %629 = tpu.assume_multiple %628, 8 : i32
    %630 = arith.index_cast %629 : i32 to index
    %c0_178 = arith.constant 0 : index
    %631 = vector.load %arg7[%630, %c0_178] : memref<64x512xf32, #tpu.memory_space<vmem>>, vector<8x512xf32>
    %cst_179 = arith.constant dense<0.000000e+00> : vector<8x512xf32>
    %632 = tpu.matmul %625, %554, %cst_179 {dimension_numbers = #tpu.dot_dimension_numbers<[1], [0], [0], [1], [0, 0, 1, 1], [], []>} : vector<8x128xf32>, vector<128x512xf32>, vector<8x512xf32> -> vector<8x512xf32>
    %633 = arith.addf %631, %632 : vector<8x512xf32>
    %634 = vector.extract_strided_slice %633 {offsets = [0, 0], sizes = [8, 128], strides = [1, 1]} : vector<8x512xf32> to vector<8x128xf32>
    %635 = arith.negf %634 : vector<8x128xf32>
    %636 = math.exp %635 : vector<8x128xf32>
    %cst_180 = arith.constant 1.000000e+00 : f32
    %637 = vector.broadcast %cst_180 : f32 to vector<8x128xf32>
    %638 = arith.addf %637, %636 : vector<8x128xf32>
    %639 = arith.divf %637, %638 : vector<8x128xf32>
    %640 = vector.extract_strided_slice %633 {offsets = [0, 128], sizes = [8, 128], strides = [1, 1]} : vector<8x512xf32> to vector<8x128xf32>
    %641 = arith.negf %640 : vector<8x128xf32>
    %642 = math.exp %641 : vector<8x128xf32>
    %cst_181 = arith.constant 1.000000e+00 : f32
    %643 = vector.broadcast %cst_181 : f32 to vector<8x128xf32>
    %644 = arith.addf %643, %642 : vector<8x128xf32>
    %645 = arith.divf %643, %644 : vector<8x128xf32>
    %646 = vector.extract_strided_slice %633 {offsets = [0, 256], sizes = [8, 128], strides = [1, 1]} : vector<8x512xf32> to vector<8x128xf32>
    %647 = math.tanh %646 : vector<8x128xf32>
    %648 = vector.extract_strided_slice %633 {offsets = [0, 384], sizes = [8, 128], strides = [1, 1]} : vector<8x512xf32> to vector<8x128xf32>
    %649 = arith.negf %648 : vector<8x128xf32>
    %650 = math.exp %649 : vector<8x128xf32>
    %cst_182 = arith.constant 1.000000e+00 : f32
    %651 = vector.broadcast %cst_182 : f32 to vector<8x128xf32>
    %652 = arith.addf %651, %650 : vector<8x128xf32>
    %653 = arith.divf %651, %652 : vector<8x128xf32>
    %654 = arith.mulf %645, %623 : vector<8x128xf32>
    %655 = arith.mulf %639, %647 : vector<8x128xf32>
    %656 = arith.addf %654, %655 : vector<8x128xf32>
    %657 = math.tanh %656 : vector<8x128xf32>
    %658 = arith.mulf %653, %657 : vector<8x128xf32>
    %659 = arith.index_cast %629 : i32 to index
    %c0_183 = arith.constant 0 : index
    %660 = vector.load %arg5[%659, %c0_183] : memref<64x128xf32, #tpu.memory_space<vmem>>, vector<8x128xf32>
    tpu.vector_store %arg5[%659, %c0_183], %658 {strides = array<i32>} : memref<64x128xf32, #tpu.memory_space<vmem>>, vector<8x128xf32>,
    %c3_i32_184 = arith.constant 3 : i32
    %c8_i32_185 = arith.constant 8 : i32
    %661 = arith.muli %c3_i32_184, %c8_i32_185 : i32
    %662 = tpu.assume_multiple %661, 8 : i32
    %663 = arith.index_cast %662 : i32 to index
    %c0_186 = arith.constant 0 : index
    %664 = vector.load %arg7[%663, %c0_186] : memref<64x512xf32, #tpu.memory_space<vmem>>, vector<8x512xf32>
    %cst_187 = arith.constant dense<0.000000e+00> : vector<8x512xf32>
    %665 = tpu.matmul %658, %554, %cst_187 {dimension_numbers = #tpu.dot_dimension_numbers<[1], [0], [0], [1], [0, 0, 1, 1], [], []>} : vector<8x128xf32>, vector<128x512xf32>, vector<8x512xf32> -> vector<8x512xf32>
    %666 = arith.addf %664, %665 : vector<8x512xf32>
    %667 = vector.extract_strided_slice %666 {offsets = [0, 0], sizes = [8, 128], strides = [1, 1]} : vector<8x512xf32> to vector<8x128xf32>
    %668 = arith.negf %667 : vector<8x128xf32>
    %669 = math.exp %668 : vector<8x128xf32>
    %cst_188 = arith.constant 1.000000e+00 : f32
    %670 = vector.broadcast %cst_188 : f32 to vector<8x128xf32>
    %671 = arith.addf %670, %669 : vector<8x128xf32>
    %672 = arith.divf %670, %671 : vector<8x128xf32>
    %673 = vector.extract_strided_slice %666 {offsets = [0, 128], sizes = [8, 128], strides = [1, 1]} : vector<8x512xf32> to vector<8x128xf32>
    %674 = arith.negf %673 : vector<8x128xf32>
    %675 = math.exp %674 : vector<8x128xf32>
    %cst_189 = arith.constant 1.000000e+00 : f32
    %676 = vector.broadcast %cst_189 : f32 to vector<8x128xf32>
    %677 = arith.addf %676, %675 : vector<8x128xf32>
    %678 = arith.divf %676, %677 : vector<8x128xf32>
    %679 = vector.extract_strided_slice %666 {offsets = [0, 256], sizes = [8, 128], strides = [1, 1]} : vector<8x512xf32> to vector<8x128xf32>
    %680 = math.tanh %679 : vector<8x128xf32>
    %681 = vector.extract_strided_slice %666 {offsets = [0, 384], sizes = [8, 128], strides = [1, 1]} : vector<8x512xf32> to vector<8x128xf32>
    %682 = arith.negf %681 : vector<8x128xf32>
    %683 = math.exp %682 : vector<8x128xf32>
    %cst_190 = arith.constant 1.000000e+00 : f32
    %684 = vector.broadcast %cst_190 : f32 to vector<8x128xf32>
    %685 = arith.addf %684, %683 : vector<8x128xf32>
    %686 = arith.divf %684, %685 : vector<8x128xf32>
    %687 = arith.mulf %678, %656 : vector<8x128xf32>
    %688 = arith.mulf %672, %680 : vector<8x128xf32>
    %689 = arith.addf %687, %688 : vector<8x128xf32>
    %690 = math.tanh %689 : vector<8x128xf32>
    %691 = arith.mulf %686, %690 : vector<8x128xf32>
    %692 = arith.index_cast %662 : i32 to index
    %c0_191 = arith.constant 0 : index
    %693 = vector.load %arg5[%692, %c0_191] : memref<64x128xf32, #tpu.memory_space<vmem>>, vector<8x128xf32>
    tpu.vector_store %arg5[%692, %c0_191], %691 {strides = array<i32>} : memref<64x128xf32, #tpu.memory_space<vmem>>, vector<8x128xf32>,
    %c4_i32_192 = arith.constant 4 : i32
    %c8_i32_193 = arith.constant 8 : i32
    %694 = arith.muli %c4_i32_192, %c8_i32_193 : i32
    %695 = tpu.assume_multiple %694, 8 : i32
    %696 = arith.index_cast %695 : i32 to index
    %c0_194 = arith.constant 0 : index
    %697 = vector.load %arg7[%696, %c0_194] : memref<64x512xf32, #tpu.memory_space<vmem>>, vector<8x512xf32>
    %cst_195 = arith.constant dense<0.000000e+00> : vector<8x512xf32>
    %698 = tpu.matmul %691, %554, %cst_195 {dimension_numbers = #tpu.dot_dimension_numbers<[1], [0], [0], [1], [0, 0, 1, 1], [], []>} : vector<8x128xf32>, vector<128x512xf32>, vector<8x512xf32> -> vector<8x512xf32>
    %699 = arith.addf %697, %698 : vector<8x512xf32>
    %700 = vector.extract_strided_slice %699 {offsets = [0, 0], sizes = [8, 128], strides = [1, 1]} : vector<8x512xf32> to vector<8x128xf32>
    %701 = arith.negf %700 : vector<8x128xf32>
    %702 = math.exp %701 : vector<8x128xf32>
    %cst_196 = arith.constant 1.000000e+00 : f32
    %703 = vector.broadcast %cst_196 : f32 to vector<8x128xf32>
    %704 = arith.addf %703, %702 : vector<8x128xf32>
    %705 = arith.divf %703, %704 : vector<8x128xf32>
    %706 = vector.extract_strided_slice %699 {offsets = [0, 128], sizes = [8, 128], strides = [1, 1]} : vector<8x512xf32> to vector<8x128xf32>
    %707 = arith.negf %706 : vector<8x128xf32>
    %708 = math.exp %707 : vector<8x128xf32>
    %cst_197 = arith.constant 1.000000e+00 : f32
    %709 = vector.broadcast %cst_197 : f32 to vector<8x128xf32>
    %710 = arith.addf %709, %708 : vector<8x128xf32>
    %711 = arith.divf %709, %710 : vector<8x128xf32>
    %712 = vector.extract_strided_slice %699 {offsets = [0, 256], sizes = [8, 128], strides = [1, 1]} : vector<8x512xf32> to vector<8x128xf32>
    %713 = math.tanh %712 : vector<8x128xf32>
    %714 = vector.extract_strided_slice %699 {offsets = [0, 384], sizes = [8, 128], strides = [1, 1]} : vector<8x512xf32> to vector<8x128xf32>
    %715 = arith.negf %714 : vector<8x128xf32>
    %716 = math.exp %715 : vector<8x128xf32>
    %cst_198 = arith.constant 1.000000e+00 : f32
    %717 = vector.broadcast %cst_198 : f32 to vector<8x128xf32>
    %718 = arith.addf %717, %716 : vector<8x128xf32>
    %719 = arith.divf %717, %718 : vector<8x128xf32>
    %720 = arith.mulf %711, %689 : vector<8x128xf32>
    %721 = arith.mulf %705, %713 : vector<8x128xf32>
    %722 = arith.addf %720, %721 : vector<8x128xf32>
    %723 = math.tanh %722 : vector<8x128xf32>
    %724 = arith.mulf %719, %723 : vector<8x128xf32>
    %725 = arith.index_cast %695 : i32 to index
    %c0_199 = arith.constant 0 : index
    %726 = vector.load %arg5[%725, %c0_199] : memref<64x128xf32, #tpu.memory_space<vmem>>, vector<8x128xf32>
    tpu.vector_store %arg5[%725, %c0_199], %724 {strides = array<i32>} : memref<64x128xf32, #tpu.memory_space<vmem>>, vector<8x128xf32>,
    %c5_i32_200 = arith.constant 5 : i32
    %c8_i32_201 = arith.constant 8 : i32
    %727 = arith.muli %c5_i32_200, %c8_i32_201 : i32
    %728 = tpu.assume_multiple %727, 8 : i32
    %729 = arith.index_cast %728 : i32 to index
    %c0_202 = arith.constant 0 : index
    %730 = vector.load %arg7[%729, %c0_202] : memref<64x512xf32, #tpu.memory_space<vmem>>, vector<8x512xf32>
    %cst_203 = arith.constant dense<0.000000e+00> : vector<8x512xf32>
    %731 = tpu.matmul %724, %554, %cst_203 {dimension_numbers = #tpu.dot_dimension_numbers<[1], [0], [0], [1], [0, 0, 1, 1], [], []>} : vector<8x128xf32>, vector<128x512xf32>, vector<8x512xf32> -> vector<8x512xf32>
    %732 = arith.addf %730, %731 : vector<8x512xf32>
    %733 = vector.extract_strided_slice %732 {offsets = [0, 0], sizes = [8, 128], strides = [1, 1]} : vector<8x512xf32> to vector<8x128xf32>
    %734 = arith.negf %733 : vector<8x128xf32>
    %735 = math.exp %734 : vector<8x128xf32>
    %cst_204 = arith.constant 1.000000e+00 : f32
    %736 = vector.broadcast %cst_204 : f32 to vector<8x128xf32>
    %737 = arith.addf %736, %735 : vector<8x128xf32>
    %738 = arith.divf %736, %737 : vector<8x128xf32>
    %739 = vector.extract_strided_slice %732 {offsets = [0, 128], sizes = [8, 128], strides = [1, 1]} : vector<8x512xf32> to vector<8x128xf32>
    %740 = arith.negf %739 : vector<8x128xf32>
    %741 = math.exp %740 : vector<8x128xf32>
    %cst_205 = arith.constant 1.000000e+00 : f32
    %742 = vector.broadcast %cst_205 : f32 to vector<8x128xf32>
    %743 = arith.addf %742, %741 : vector<8x128xf32>
    %744 = arith.divf %742, %743 : vector<8x128xf32>
    %745 = vector.extract_strided_slice %732 {offsets = [0, 256], sizes = [8, 128], strides = [1, 1]} : vector<8x512xf32> to vector<8x128xf32>
    %746 = math.tanh %745 : vector<8x128xf32>
    %747 = vector.extract_strided_slice %732 {offsets = [0, 384], sizes = [8, 128], strides = [1, 1]} : vector<8x512xf32> to vector<8x128xf32>
    %748 = arith.negf %747 : vector<8x128xf32>
    %749 = math.exp %748 : vector<8x128xf32>
    %cst_206 = arith.constant 1.000000e+00 : f32
    %750 = vector.broadcast %cst_206 : f32 to vector<8x128xf32>
    %751 = arith.addf %750, %749 : vector<8x128xf32>
    %752 = arith.divf %750, %751 : vector<8x128xf32>
    %753 = arith.mulf %744, %722 : vector<8x128xf32>
    %754 = arith.mulf %738, %746 : vector<8x128xf32>
    %755 = arith.addf %753, %754 : vector<8x128xf32>
    %756 = math.tanh %755 : vector<8x128xf32>
    %757 = arith.mulf %752, %756 : vector<8x128xf32>
    %758 = arith.index_cast %728 : i32 to index
    %c0_207 = arith.constant 0 : index
    %759 = vector.load %arg5[%758, %c0_207] : memref<64x128xf32, #tpu.memory_space<vmem>>, vector<8x128xf32>
    tpu.vector_store %arg5[%758, %c0_207], %757 {strides = array<i32>} : memref<64x128xf32, #tpu.memory_space<vmem>>, vector<8x128xf32>,
    %c6_i32_208 = arith.constant 6 : i32
    %c8_i32_209 = arith.constant 8 : i32
    %760 = arith.muli %c6_i32_208, %c8_i32_209 : i32
    %761 = tpu.assume_multiple %760, 8 : i32
    %762 = arith.index_cast %761 : i32 to index
    %c0_210 = arith.constant 0 : index
    %763 = vector.load %arg7[%762, %c0_210] : memref<64x512xf32, #tpu.memory_space<vmem>>, vector<8x512xf32>
    %cst_211 = arith.constant dense<0.000000e+00> : vector<8x512xf32>
    %764 = tpu.matmul %757, %554, %cst_211 {dimension_numbers = #tpu.dot_dimension_numbers<[1], [0], [0], [1], [0, 0, 1, 1], [], []>} : vector<8x128xf32>, vector<128x512xf32>, vector<8x512xf32> -> vector<8x512xf32>
    %765 = arith.addf %763, %764 : vector<8x512xf32>
    %766 = vector.extract_strided_slice %765 {offsets = [0, 0], sizes = [8, 128], strides = [1, 1]} : vector<8x512xf32> to vector<8x128xf32>
    %767 = arith.negf %766 : vector<8x128xf32>
    %768 = math.exp %767 : vector<8x128xf32>
    %cst_212 = arith.constant 1.000000e+00 : f32
    %769 = vector.broadcast %cst_212 : f32 to vector<8x128xf32>
    %770 = arith.addf %769, %768 : vector<8x128xf32>
    %771 = arith.divf %769, %770 : vector<8x128xf32>
    %772 = vector.extract_strided_slice %765 {offsets = [0, 128], sizes = [8, 128], strides = [1, 1]} : vector<8x512xf32> to vector<8x128xf32>
    %773 = arith.negf %772 : vector<8x128xf32>
    %774 = math.exp %773 : vector<8x128xf32>
    %cst_213 = arith.constant 1.000000e+00 : f32
    %775 = vector.broadcast %cst_213 : f32 to vector<8x128xf32>
    %776 = arith.addf %775, %774 : vector<8x128xf32>
    %777 = arith.divf %775, %776 : vector<8x128xf32>
    %778 = vector.extract_strided_slice %765 {offsets = [0, 256], sizes = [8, 128], strides = [1, 1]} : vector<8x512xf32> to vector<8x128xf32>
    %779 = math.tanh %778 : vector<8x128xf32>
    %780 = vector.extract_strided_slice %765 {offsets = [0, 384], sizes = [8, 128], strides = [1, 1]} : vector<8x512xf32> to vector<8x128xf32>
    %781 = arith.negf %780 : vector<8x128xf32>
    %782 = math.exp %781 : vector<8x128xf32>
    %cst_214 = arith.constant 1.000000e+00 : f32
    %783 = vector.broadcast %cst_214 : f32 to vector<8x128xf32>
    %784 = arith.addf %783, %782 : vector<8x128xf32>
    %785 = arith.divf %783, %784 : vector<8x128xf32>
    %786 = arith.mulf %777, %755 : vector<8x128xf32>
    %787 = arith.mulf %771, %779 : vector<8x128xf32>
    %788 = arith.addf %786, %787 : vector<8x128xf32>
    %789 = math.tanh %788 : vector<8x128xf32>
    %790 = arith.mulf %785, %789 : vector<8x128xf32>
    %791 = arith.index_cast %761 : i32 to index
    %c0_215 = arith.constant 0 : index
    %792 = vector.load %arg5[%791, %c0_215] : memref<64x128xf32, #tpu.memory_space<vmem>>, vector<8x128xf32>
    tpu.vector_store %arg5[%791, %c0_215], %790 {strides = array<i32>} : memref<64x128xf32, #tpu.memory_space<vmem>>, vector<8x128xf32>,
    %c7_i32_216 = arith.constant 7 : i32
    %c8_i32_217 = arith.constant 8 : i32
    %793 = arith.muli %c7_i32_216, %c8_i32_217 : i32
    %794 = tpu.assume_multiple %793, 8 : i32
    %795 = arith.index_cast %794 : i32 to index
    %c0_218 = arith.constant 0 : index
    %796 = vector.load %arg7[%795, %c0_218] : memref<64x512xf32, #tpu.memory_space<vmem>>, vector<8x512xf32>
    %cst_219 = arith.constant dense<0.000000e+00> : vector<8x512xf32>
    %797 = tpu.matmul %790, %554, %cst_219 {dimension_numbers = #tpu.dot_dimension_numbers<[1], [0], [0], [1], [0, 0, 1, 1], [], []>} : vector<8x128xf32>, vector<128x512xf32>, vector<8x512xf32> -> vector<8x512xf32>
    %798 = arith.addf %796, %797 : vector<8x512xf32>
    %799 = vector.extract_strided_slice %798 {offsets = [0, 0], sizes = [8, 128], strides = [1, 1]} : vector<8x512xf32> to vector<8x128xf32>
    %800 = arith.negf %799 : vector<8x128xf32>
    %801 = math.exp %800 : vector<8x128xf32>
    %cst_220 = arith.constant 1.000000e+00 : f32
    %802 = vector.broadcast %cst_220 : f32 to vector<8x128xf32>
    %803 = arith.addf %802, %801 : vector<8x128xf32>
    %804 = arith.divf %802, %803 : vector<8x128xf32>
    %805 = vector.extract_strided_slice %798 {offsets = [0, 128], sizes = [8, 128], strides = [1, 1]} : vector<8x512xf32> to vector<8x128xf32>
    %806 = arith.negf %805 : vector<8x128xf32>
    %807 = math.exp %806 : vector<8x128xf32>
    %cst_221 = arith.constant 1.000000e+00 : f32
    %808 = vector.broadcast %cst_221 : f32 to vector<8x128xf32>
    %809 = arith.addf %808, %807 : vector<8x128xf32>
    %810 = arith.divf %808, %809 : vector<8x128xf32>
    %811 = vector.extract_strided_slice %798 {offsets = [0, 256], sizes = [8, 128], strides = [1, 1]} : vector<8x512xf32> to vector<8x128xf32>
    %812 = math.tanh %811 : vector<8x128xf32>
    %813 = vector.extract_strided_slice %798 {offsets = [0, 384], sizes = [8, 128], strides = [1, 1]} : vector<8x512xf32> to vector<8x128xf32>
    %814 = arith.negf %813 : vector<8x128xf32>
    %815 = math.exp %814 : vector<8x128xf32>
    %cst_222 = arith.constant 1.000000e+00 : f32
    %816 = vector.broadcast %cst_222 : f32 to vector<8x128xf32>
    %817 = arith.addf %816, %815 : vector<8x128xf32>
    %818 = arith.divf %816, %817 : vector<8x128xf32>
    %819 = arith.mulf %810, %788 : vector<8x128xf32>
    %820 = arith.mulf %804, %812 : vector<8x128xf32>
    %821 = arith.addf %819, %820 : vector<8x128xf32>
    %822 = math.tanh %821 : vector<8x128xf32>
    %823 = arith.mulf %818, %822 : vector<8x128xf32>
    %824 = arith.index_cast %794 : i32 to index
    %c0_223 = arith.constant 0 : index
    %825 = vector.load %arg5[%824, %c0_223] : memref<64x128xf32, #tpu.memory_space<vmem>>, vector<8x128xf32>
    tpu.vector_store %arg5[%824, %c0_223], %823 {strides = array<i32>} : memref<64x128xf32, #tpu.memory_space<vmem>>, vector<8x128xf32>,
    %c8_i32_224 = arith.constant 8 : i32
    return
  }
  func.func @transform_0(%arg0: i32) -> (i32, i32) {
    %c0_i32 = arith.constant 0 : i32
    %c0_i32_0 = arith.constant 0 : i32
    %c0_i32_1 = arith.constant 0 : i32
    return %c0_i32, %c0_i32_0 : i32, i32
  }
  func.func @transform_1(%arg0: i32) -> (i32, i32, i32) {
    %c0_i32 = arith.constant 0 : i32
    %c0_i32_0 = arith.constant 0 : i32
    %c0_i32_1 = arith.constant 0 : i32
    %c0_i32_2 = arith.constant 0 : i32
    return %c0_i32, %c0_i32_0, %c0_i32_1 : i32, i32, i32
  }
  func.func @transform_2(%arg0: i32) -> (i32, i32, i32) {
    %c0_i32 = arith.constant 0 : i32
    %c0_i32_0 = arith.constant 0 : i32
    %c0_i32_1 = arith.constant 0 : i32
    %c0_i32_2 = arith.constant 0 : i32
    return %c0_i32, %c0_i32_0, %c0_i32_1 : i32, i32, i32
  }
  func.func @transform_3(%arg0: i32) -> (i32, i32, i32) {
    %c0_i32 = arith.constant 0 : i32
    %c0_i32_0 = arith.constant 0 : i32
    %c0_i32_1 = arith.constant 0 : i32
    %c0_i32_2 = arith.constant 0 : i32
    return %c0_i32, %c0_i32_0, %c0_i32_1 : i32, i32, i32
  }
  func.func @transform_4(%arg0: i32) -> (i32, i32) {
    %c0_i32 = arith.constant 0 : i32
    %c0_i32_0 = arith.constant 0 : i32
    %c0_i32_1 = arith.constant 0 : i32
    return %c0_i32, %c0_i32_0 : i32, i32
  }
}

</mosaic_0001>

<bundles_post_ra>
// kernel: tpu_custom_call.1
= control target key start
LH: loop header
LB: loop body
LE: loop exit
PB: predicated region body
PF: predicated region fallthrough
CT: control target
= control target key end

     0   :  { %9 = vsyncpa [#allocation5], 0  ;;  %s8653_s0 = inlined_call_operand.hbm [shape: f32[64,128], index: 0, kind: input, shape index: {}]   ;;  %s8654_s1 = inlined_call_operand.hbm [shape: f32[3,128,512], index: 1, kind: input, shape index: {}]   ;;  %s8655_s2 = inlined_call_operand.hbm [shape: f32[3,128,512], index: 2, kind: input, shape index: {}]   ;;  %s8656_s3 = inlined_call_operand.hbm [shape: f32[3,1,512], index: 3, kind: input, shape index: {}]   ;;  %s8657_s4 = inlined_call_operand.hbm [shape: f32[64,128], index: 4, kind: output, shape index: {}]  }
   0x1   :  { %10 = vsyncpa [#allocation8], 0 }
   0x2   :  { %11 = vsyncpa [#allocation11], 0  ;;  %s30_s17 = sshll.u32 %s8654_s1, 4  ;;  %s31_s17 = int_to_ptr.hbm [resolvable:$true] %s30_s17 }
   0x3   :  { %12 = vsyncpa [#allocation6], 0  ;;  %s5615_s18 = smov [#allocation7]   ;;  %s17_s22 = sshll.u32 %s8653_s0, 4  ;;  %s18_s22 = int_to_ptr.hbm [resolvable:$true] %s17_s22 }
   0x4   :  { %s32_s19 = sshll.u32 %s5615_s18, 4  ;;  %s5616_s23 = smov 512   ;;  %s33_s19 = int_to_ptr.vmem [resolvable:$true] %s32_s19 }
   0x5   :  { %s5617_s24 = smov 32   ;;  %s5618_s25 = smov [#allocation4]  }
   0x6   :  { %38 = dma.hbm_to_vmem [thread:$0]  %s31_s17, 24576, %s33_s19, [#allocation8], %s5616_s23, %s5616_s23, %s5617_s24  }
   0x7   :  { %s19_s26 = sshll.u32 %s5618_s25, 4  ;;  %s5619_s27 = smov 128   ;;  %s20_s26 = int_to_ptr.vmem [resolvable:$true] %s19_s26 }
   0x8   :  { %s5620_s28 = smov 8   ;;  %s43_s30 = sshll.u32 %s8655_s2, 4  ;;  %s44_s30 = int_to_ptr.hbm [resolvable:$true] %s43_s30 }
   0x9   :  { %25 = dma.hbm_to_vmem [thread:$0]  %s18_s22, 1024, %s20_s26, [#allocation5], %s5619_s27, %s5619_s27, %s5620_s28  }
   0xa   :  { %s5621_s5 = smov [#allocation9]   ;;  %s56_s8 = sshll.u32 %s8656_s3, 4  ;;  %s57_s8 = int_to_ptr.hbm [resolvable:$true] %s56_s8 }
   0xb   :  { %s45_s0 = sshll.u32 %s5621_s5, 4  ;;  %s5622_s9 = smov [#allocation10]   ;;  %s46_s0 = int_to_ptr.vmem [resolvable:$true] %s45_s0 }
   0xc   :  { %51 = dma.hbm_to_vmem [thread:$0]  %s44_s30, 24576, %s46_s0, [#allocation8], %s5616_s23, %s5616_s23, %s5617_s24  }
   0xd   :  { %s58_s10 = sshll.u32 %s5622_s9, 4  ;;  %s5623_s11 = smov 64   ;;  %s59_s10 = int_to_ptr.vmem [resolvable:$true] %s58_s10 }
   0xe   :  { %s5624_s12 = smov 4  }
   0xf   :  { %64 = dma.hbm_to_vmem [thread:$0]  %s57_s8, 192, %s59_s10, [#allocation11], %s5623_s11, %s5623_s11, %s5624_s12  }
  0x10   :  { %5607 = dma.done.wait [#allocation5], 1024  }
  0x11   :  { %5608 = vsyncadd [#allocation5], 4294966272 }
  0x12   :  { %5609 = dma.done.wait [#allocation8], 49152  }
  0x13   :  { %5610 = vsyncadd [#allocation8], 4294918144 }
  0x14   :  { %5611 = dma.done.wait [#allocation11], 192  }
  0x15   :  { %5612 = vsyncadd [#allocation11], 4294967104  ;;  %v141_v0 = vld [vmem:[#allocation7 + $0x1e0] sm:$0xff]  ;;  %v142_v1 = vld [vmem:[#allocation7 + $0x1e8] sm:$0xff]  ;;  %s5626_s2 = smov [#allocation12]   ;;  %s4805_s15 = sshll.u32 %s8657_s4, 4  ;;  %s4806_s15 = int_to_ptr.hbm [resolvable:$true] %s4805_s15 }
  0x16   :  { %v143_v2 = vld [vmem:[#allocation7 + $0x1f0] sm:$0xff]  ;;  %227 = vmatpush.msra.mxu0 %v141_v0  ;;  %268 = vmatpush.msra.mxu1 %v142_v1  ;;  %v144_v3 = vld [vmem:[#allocation7 + $0x1f8] sm:$0xff]  ;;  %v137_v4 = vld [vmem:[#allocation7 + $0x1c0] sm:$0xff]  ;;  %s4803_s3 = sshll.u32 %s5626_s2, 4  ;;  %s4804_s3 = int_to_ptr.vmem [resolvable:$true] %s4803_s3 }
  0x17   :  { %v138_v5 = vld [vmem:[#allocation7 + $0x1c8] sm:$0xff]  ;;  %309 = vmatpush.msra.mxu2 %v143_v2  ;;  %350 = vmatpush.msra.mxu3 %v144_v3  ;;  %v139_v6 = vld [vmem:[#allocation7 + $0x1d0] sm:$0xff]  ;;  %v140_v7 = vld [vmem:[#allocation7 + $0x1d8] sm:$0xff] }
  0x18   :  { %v133_v8 = vld [vmem:[#allocation7 + $0x1a0] sm:$0xff]  ;;  %228 = vmatpush.msra.mxu0 %v137_v4  ;;  %269 = vmatpush.msra.mxu1 %v138_v5  ;;  %v134_v9 = vld [vmem:[#allocation7 + $0x1a8] sm:$0xff]  ;;  %v135_v10 = vld [vmem:[#allocation7 + $0x1b0] sm:$0xff] }
  0x19   :  { %v136_v11 = vld [vmem:[#allocation7 + $0x1b8] sm:$0xff]  ;;  %310 = vmatpush.msra.mxu2 %v139_v6  ;;  %351 = vmatpush.msra.mxu3 %v140_v7  ;;  %v129_v12 = vld [vmem:[#allocation7 + $0x180] sm:$0xff]  ;;  %v130_v13 = vld [vmem:[#allocation7 + $0x188] sm:$0xff] }
  0x1a   :  { %229 = vmatpush.msra.mxu0 %v133_v8  ;;  %270 = vmatpush.msra.mxu1 %v134_v9  ;;  %v131_v14 = vld [vmem:[#allocation7 + $0x190] sm:$0xff]  ;;  %v132_v15 = vld [vmem:[#allocation7 + $0x198] sm:$0xff]  ;;  %v125_v16 = vld [vmem:[#allocation7 + $0x160] sm:$0xff] }
  0x1b   :  { %311 = vmatpush.msra.mxu2 %v135_v10  ;;  %352 = vmatpush.msra.mxu3 %v136_v11  ;;  %v126_v17 = vld [vmem:[#allocation7 + $0x168] sm:$0xff]  ;;  %v127_v18 = vld [vmem:[#allocation7 + $0x170] sm:$0xff]  ;;  %v128_v19 = vld [vmem:[#allocation7 + $0x178] sm:$0xff] }
  0x1c   :  { %230 = vmatpush.msra.mxu0 %v129_v12  ;;  %271 = vmatpush.msra.mxu1 %v130_v13  ;;  %v121_v20 = vld [vmem:[#allocation7 + $0x140] sm:$0xff]  ;;  %v122_v21 = vld [vmem:[#allocation7 + $0x148] sm:$0xff]  ;;  %v123_v22 = vld [vmem:[#allocation7 + $0x150] sm:$0xff] }
  0x1d   :  { %312 = vmatpush.msra.mxu2 %v131_v14  ;;  %353 = vmatpush.msra.mxu3 %v132_v15  ;;  %v124_v23 = vld [vmem:[#allocation7 + $0x158] sm:$0xff]  ;;  %v117_v24 = vld [vmem:[#allocation7 + $0x120] sm:$0xff]  ;;  %v118_v25 = vld [vmem:[#allocation7 + $0x128] sm:$0xff] }
  0x1e   :  { %231 = vmatpush.msra.mxu0 %v125_v16  ;;  %272 = vmatpush.msra.mxu1 %v126_v17  ;;  %v119_v26 = vld [vmem:[#allocation7 + $0x130] sm:$0xff]  ;;  %v120_v27 = vld [vmem:[#allocation7 + $0x138] sm:$0xff]  ;;  %v113_v28 = vld [vmem:[#allocation7 + $0x100] sm:$0xff] }
  0x1f   :  { %313 = vmatpush.msra.mxu2 %v127_v18  ;;  %354 = vmatpush.msra.mxu3 %v128_v19  ;;  %v114_v29 = vld [vmem:[#allocation7 + $0x108] sm:$0xff]  ;;  %v115_v30 = vld [vmem:[#allocation7 + $0x110] sm:$0xff]  ;;  %v116_v31 = vld [vmem:[#allocation7 + $0x118] sm:$0xff] }
  0x20   :  { %232 = vmatpush.msra.mxu0 %v121_v20  ;;  %273 = vmatpush.msra.mxu1 %v122_v21  ;;  %v109_v32 = vld [vmem:[#allocation7 + $0xe0] sm:$0xff]  ;;  %v110_v33 = vld [vmem:[#allocation7 + $0xe8] sm:$0xff]  ;;  %v111_v34 = vld [vmem:[#allocation7 + $0xf0] sm:$0xff] }
  0x21   :  { %314 = vmatpush.msra.mxu2 %v123_v22  ;;  %355 = vmatpush.msra.mxu3 %v124_v23  ;;  %v112_v35 = vld [vmem:[#allocation7 + $0xf8] sm:$0xff]  ;;  %v105_v36 = vld [vmem:[#allocation7 + $0xc0] sm:$0xff]  ;;  %v106_v37 = vld [vmem:[#allocation7 + $0xc8] sm:$0xff] }
  0x22   :  { %233 = vmatpush.msra.mxu0 %v117_v24  ;;  %274 = vmatpush.msra.mxu1 %v118_v25  ;;  %v107_v38 = vld [vmem:[#allocation7 + $0xd0] sm:$0xff]  ;;  %v108_v39 = vld [vmem:[#allocation7 + $0xd8] sm:$0xff]  ;;  %v101_v40 = vld [vmem:[#allocation7 + $0xa0] sm:$0xff] }
  0x23   :  { %315 = vmatpush.msra.mxu2 %v119_v26  ;;  %356 = vmatpush.msra.mxu3 %v120_v27  ;;  %v102_v41 = vld [vmem:[#allocation7 + $0xa8] sm:$0xff]  ;;  %v103_v42 = vld [vmem:[#allocation7 + $0xb0] sm:$0xff]  ;;  %v104_v43 = vld [vmem:[#allocation7 + $0xb8] sm:$0xff] }
  0x24   :  { %234 = vmatpush.msra.mxu0 %v113_v28  ;;  %275 = vmatpush.msra.mxu1 %v114_v29  ;;  %v97_v44 = vld [vmem:[#allocation7 + $0x80] sm:$0xff]  ;;  %v98_v45 = vld [vmem:[#allocation7 + $0x88] sm:$0xff]  ;;  %v99_v46 = vld [vmem:[#allocation7 + $0x90] sm:$0xff] }
  0x25   :  { %316 = vmatpush.msra.mxu2 %v115_v30  ;;  %357 = vmatpush.msra.mxu3 %v116_v31  ;;  %v100_v47 = vld [vmem:[#allocation7 + $0x98] sm:$0xff]  ;;  %v93_v48 = vld [vmem:[#allocation7 + $0x60] sm:$0xff]  ;;  %v94_v49 = vld [vmem:[#allocation7 + $0x68] sm:$0xff] }
  0x26   :  { %235 = vmatpush.msra.mxu0 %v109_v32  ;;  %276 = vmatpush.msra.mxu1 %v110_v33  ;;  %v95_v50 = vld [vmem:[#allocation7 + $0x70] sm:$0xff]  ;;  %v96_v51 = vld [vmem:[#allocation7 + $0x78] sm:$0xff]  ;;  %v89_v52 = vld [vmem:[#allocation7 + $0x40] sm:$0xff] }
  0x27   :  { %317 = vmatpush.msra.mxu2 %v111_v34  ;;  %358 = vmatpush.msra.mxu3 %v112_v35  ;;  %v90_v53 = vld [vmem:[#allocation7 + $0x48] sm:$0xff]  ;;  %v91_v54 = vld [vmem:[#allocation7 + $0x50] sm:$0xff]  ;;  %v92_v55 = vld [vmem:[#allocation7 + $0x58] sm:$0xff] }
  0x28   :  { %236 = vmatpush.msra.mxu0 %v105_v36  ;;  %277 = vmatpush.msra.mxu1 %v106_v37  ;;  %v85_v56 = vld [vmem:[#allocation7 + $0x20] sm:$0xff]  ;;  %v86_v57 = vld [vmem:[#allocation7 + $0x28] sm:$0xff]  ;;  %v87_v58 = vld [vmem:[#allocation7 + $0x30] sm:$0xff] }
  0x29   :  { %318 = vmatpush.msra.mxu2 %v107_v38  ;;  %359 = vmatpush.msra.mxu3 %v108_v39  ;;  %v88_v59 = vld [vmem:[#allocation7 + $0x38] sm:$0xff]  ;;  %v81_v60 = vld [vmem:[#allocation7] sm:$0xff]  ;;  %v82_v61 = vld [vmem:[#allocation7 + $0x8] sm:$0xff] }
  0x2a   :  { %237 = vmatpush.msra.mxu0 %v101_v40  ;;  %278 = vmatpush.msra.mxu1 %v102_v41  ;;  %v83_v62 = vld [vmem:[#allocation7 + $0x10] sm:$0xff]  ;;  %v84_v63 = vld [vmem:[#allocation7 + $0x18] sm:$0xff]  ;;  %v210_v0 = vld [vmem:[#allocation4] sm:$0xff] }
  0x2b   :  { %319 = vmatpush.msra.mxu2 %v103_v42  ;;  %360 = vmatpush.msra.mxu3 %v104_v43  ;;  %v5667_v1 = vld [vmem:[#allocation9 + $0x1e0] sm:$0xff]  ;;  %v5669_v2 = vld [vmem:[#allocation9 + $0x1e8] sm:$0xff]  ;;  %v5671_v3 = vld [vmem:[#allocation9 + $0x1f8] sm:$0xff] }
  0x2c   :  { %238 = vmatpush.msra.mxu0 %v97_v44  ;;  %279 = vmatpush.msra.mxu1 %v98_v45  ;;  %v5673_v4 = vld [vmem:[#allocation9 + $0x1f0] sm:$0xff]  ;;  %v5675_v5 = vld [vmem:[#allocation9 + $0x1c0] sm:$0xff]  ;;  %v5677_v6 = vld [vmem:[#allocation9 + $0x1c8] sm:$0xff] }
  0x2d   :  { %320 = vmatpush.msra.mxu2 %v99_v46  ;;  %361 = vmatpush.msra.mxu3 %v100_v47  ;;  %v5681_v7 = vld [vmem:[#allocation9 + $0x1d8] sm:$0xff]  ;;  %v5683_v8 = vld [vmem:[#allocation9 + $0x1d0] sm:$0xff]  ;;  %v5686_v9 = vld [vmem:[#allocation9 + $0x1a0] sm:$0xff] }
  0x2e   :  { %239 = vmatpush.msra.mxu0 %v93_v48  ;;  %280 = vmatpush.msra.mxu1 %v94_v49  ;;  %v5688_v10 = vld [vmem:[#allocation9 + $0x1a8] sm:$0xff]  ;;  %v5693_v11 = vld [vmem:[#allocation9 + $0x1b8] sm:$0xff]  ;;  %v5695_v12 = vld [vmem:[#allocation9 + $0x1b0] sm:$0xff] }
  0x2f   :  { %321 = vmatpush.msra.mxu2 %v95_v50  ;;  %362 = vmatpush.msra.mxu3 %v96_v51  ;;  %v211_v13 = vld [vmem:[#allocation4 + $0x8] sm:$0xff]  ;;  %v5701_v14 = vld [vmem:[#allocation9 + $0x180] sm:$0xff]  ;;  %v5707_v16 = vld [vmem:[#allocation9 + $0x198] sm:$0xff] }
  0x30   :  { %240 = vmatpush.msra.mxu0 %v89_v52  ;;  %281 = vmatpush.msra.mxu1 %v90_v53  ;;  %v5703_v15 = vld [vmem:[#allocation9 + $0x188] sm:$0xff]  ;;  %v5709_v17 = vld [vmem:[#allocation9 + $0x190] sm:$0xff]  ;;  %v5711_v18 = vld [vmem:[#allocation9 + $0x160] sm:$0xff] }
  0x31   :  { %322 = vmatpush.msra.mxu2 %v91_v54  ;;  %363 = vmatpush.msra.mxu3 %v92_v55  ;;  %v5713_v19 = vld [vmem:[#allocation9 + $0x168] sm:$0xff]  ;;  %v5717_v20 = vld [vmem:[#allocation9 + $0x178] sm:$0xff]  ;;  %v5719_v21 = vld [vmem:[#allocation9 + $0x170] sm:$0xff] }
  0x32   :  { %241 = vmatpush.msra.mxu0 %v85_v56  ;;  %282 = vmatpush.msra.mxu1 %v86_v57  ;;  %v5722_v22 = vld [vmem:[#allocation9 + $0x140] sm:$0xff]  ;;  %v5724_v23 = vld [vmem:[#allocation9 + $0x148] sm:$0xff]  ;;  %v5729_v24 = vld [vmem:[#allocation9 + $0x158] sm:$0xff] }
  0x33   :  { %323 = vmatpush.msra.mxu2 %v87_v58  ;;  %364 = vmatpush.msra.mxu3 %v88_v59  ;;  %v5731_v25 = vld [vmem:[#allocation9 + $0x150] sm:$0xff]  ;;  %v5737_v27 = vld [vmem:[#allocation9 + $0x120] sm:$0xff]  ;;  %v5739_v28 = vld [vmem:[#allocation9 + $0x128] sm:$0xff] }
  0x34   :  { %242 = vmatpush.msra.mxu0 %v81_v60  ;;  %283 = vmatpush.msra.mxu1 %v82_v61  ;;  %v212_v26 = vld [vmem:[#allocation4 + $0x10] sm:$0xff]  ;;  %v5743_v29 = vld [vmem:[#allocation9 + $0x138] sm:$0xff]  ;;  %v5747_v31 = vld [vmem:[#allocation9 + $0x100] sm:$0xff] }
  0x35   :  { %324 = vmatpush.msra.mxu2 %v83_v62  ;;  %365 = vmatpush.msra.mxu3 %v84_v63  ;;  %v5745_v30 = vld [vmem:[#allocation9 + $0x130] sm:$0xff]  ;;  %v5749_v32 = vld [vmem:[#allocation9 + $0x108] sm:$0xff]  ;;  %v5753_v33 = vld [vmem:[#allocation9 + $0x118] sm:$0xff] }
  0x36   :  { %243 = vmatmul.f32.vlgmr.msra.gmra.mxu0 %v210_v0  ;;  %284 = vmatmul.f32.vlgmr.msra.gmra.mxu1 %v210_v0  ;;  %v5755_v34 = vld [vmem:[#allocation9 + $0x110] sm:$0xff]  ;;  %v5758_v35 = vld [vmem:[#allocation9 + $0xe0] sm:$0xff]  ;;  %v5760_v36 = vld [vmem:[#allocation9 + $0xe8] sm:$0xff] }
  0x37   :  { %325 = vmatmul.f32.vlgmr.msra.gmra.mxu2 %v210_v0  ;;  %366 = vmatmul.f32.vlgmr.msra.gmra.mxu3 %v210_v0  ;;  %v5765_v37 = vld [vmem:[#allocation9 + $0xf8] sm:$0xff]  ;;  %v5767_v38 = vld [vmem:[#allocation9 + $0xf0] sm:$0xff]  ;;  %v5773_v40 = vld [vmem:[#allocation9 + $0xc0] sm:$0xff] }
  0x38   :  { %430 = vmatpush.msrb.mxu0 %v5667_v1  ;;  %450 = vmatpush.msrb.mxu1 %v5669_v2  ;;  %v213_v39 = vld [vmem:[#allocation4 + $0x18] sm:$0xff]  ;;  %v5775_v41 = vld [vmem:[#allocation9 + $0xc8] sm:$0xff]  ;;  %v5781_v43 = vld [vmem:[#allocation9 + $0xd0] sm:$0xff] }
  0x39   :  { %490 = vmatpush.msrb.mxu3 %v5671_v3  ;;  %470 = vmatpush.msrb.mxu2 %v5673_v4  ;;  %v5779_v42 = vld [vmem:[#allocation9 + $0xd8] sm:$0xff]  ;;  %9067 = vst [vmem:[#allocation18_spill] sm:$0xff] %v5781_v43  ;;  %v5783_v44 = vld [vmem:[#allocation9 + $0xa0] sm:$0xff]  ;;  %v5785_v45 = vld [vmem:[#allocation9 + $0xa8] sm:$0xff] }
  0x3a   :  { %431 = vmatpush.msrb.mxu0 %v5675_v5  ;;  %451 = vmatpush.msrb.mxu1 %v5677_v6  ;;  %9066 = vst [vmem:[#allocation17_spill] sm:$0xff] %v5779_v42  ;;  %v5789_v46 = vld [vmem:[#allocation9 + $0xb8] sm:$0xff]  ;;  %v5791_v47 = vld [vmem:[#allocation9 + $0xb0] sm:$0xff]  ;;  %v5794_v48 = vld [vmem:[#allocation9 + $0x80] sm:$0xff] }
  0x3b   :  { %491 = vmatpush.msrb.mxu3 %v5681_v7  ;;  %471 = vmatpush.msrb.mxu2 %v5683_v8  ;;  %9068 = vst [vmem:[#allocation19_spill] sm:$0xff] %v5783_v44  ;;  %v5796_v49 = vld [vmem:[#allocation9 + $0x88] sm:$0xff]  ;;  %v5801_v50 = vld [vmem:[#allocation9 + $0x98] sm:$0xff]  ;;  %v5803_v51 = vld [vmem:[#allocation9 + $0x90] sm:$0xff] }
  0x3c   :  { %432 = vmatpush.msrb.mxu0 %v5686_v9  ;;  %452 = vmatpush.msrb.mxu1 %v5688_v10  ;;  %9069 = vst [vmem:[#allocation20_spill] sm:$0xff] %v5785_v45  ;;  %v214_v52 = vld [vmem:[#allocation4 + $0x20] sm:$0xff]  ;;  %v5811_v54 = vld [vmem:[#allocation9 + $0x68] sm:$0xff]  ;;  %v5815_v55 = vld [vmem:[#allocation9 + $0x78] sm:$0xff] }
  0x3d   :  { %492 = vmatpush.msrb.mxu3 %v5693_v11  ;;  %472 = vmatpush.msrb.mxu2 %v5695_v12  ;;  %9070 = vst [vmem:[#allocation21_spill] sm:$0xff] %v5789_v46  ;;  %v5809_v53 = vld [vmem:[#allocation9 + $0x60] sm:$0xff]  ;;  %v5817_v56 = vld [vmem:[#allocation9 + $0x70] sm:$0xff]  ;;  %v5821_v58 = vld [vmem:[#allocation9 + $0x48] sm:$0xff] }
  0x3e   :  { %246 = vmatmul.f32.gmra.mxu0 %v211_v13  ;;  %287 = vmatmul.f32.gmra.mxu1 %v211_v13  ;;  %9071 = vst [vmem:[#allocation22_spill] sm:$0xff] %v5791_v47  ;;  %v5819_v57 = vld [vmem:[#allocation9 + $0x40] sm:$0xff]  ;;  %v5825_v59 = vld [vmem:[#allocation9 + $0x58] sm:$0xff]  ;;  %v5827_v60 = vld [vmem:[#allocation9 + $0x50] sm:$0xff] }
  0x3f   :  { %328 = vmatmul.f32.gmra.mxu2 %v211_v13  ;;  %369 = vmatmul.f32.gmra.mxu3 %v211_v13  ;;  %9072 = vst [vmem:[#allocation23_spill] sm:$0xff] %v5794_v48  ;;  %v5830_v61 = vld [vmem:[#allocation9 + $0x20] sm:$0xff]  ;;  %v5832_v62 = vld [vmem:[#allocation9 + $0x28] sm:$0xff]  ;;  %v5837_v63 = vld [vmem:[#allocation9 + $0x30] sm:$0xff] }
  0x40   :  { %433 = vmatpush.msrb.mxu0 %v5701_v14  ;;  %453 = vmatpush.msrb.mxu1 %v5703_v15  ;;  %9073 = vst [vmem:[#allocation24_spill] sm:$0xff] %v5796_v49  ;;  %v5839_v0 = vld [vmem:[#allocation9 + $0x38] sm:$0xff]  ;;  %v215_v13 = vld [vmem:[#allocation4 + $0x28] sm:$0xff] }
  0x41   :  { %493 = vmatpush.msrb.mxu3 %v5707_v16  ;;  %473 = vmatpush.msrb.mxu2 %v5709_v17  ;;  %9074 = vst [vmem:[#allocation25_spill] sm:$0xff] %v5801_v50 }
  0x42   :  { %434 = vmatpush.msrb.mxu0 %v5711_v18  ;;  %454 = vmatpush.msrb.mxu1 %v5713_v19  ;;  %9075 = vst [vmem:[#allocation26_spill] sm:$0xff] %v5803_v51 }
  0x43   :  { %494 = vmatpush.msrb.mxu3 %v5717_v20  ;;  %474 = vmatpush.msrb.mxu2 %v5719_v21  ;;  %9076 = vst [vmem:[#allocation27_spill] sm:$0xff] %v5809_v53 }
  0x44   :  { %435 = vmatpush.msrb.mxu0 %v5722_v22  ;;  %455 = vmatpush.msrb.mxu1 %v5724_v23  ;;  %9077 = vst [vmem:[#allocation28_spill] sm:$0xff] %v5811_v54 }
  0x45   :  { %495 = vmatpush.msrb.mxu3 %v5729_v24  ;;  %475 = vmatpush.msrb.mxu2 %v5731_v25  ;;  %9078 = vst [vmem:[#allocation29_spill] sm:$0xff] %v5815_v55 }
  0x46   :  { %249 = vmatmul.f32.gmra.mxu0 %v212_v26  ;;  %290 = vmatmul.f32.gmra.mxu1 %v212_v26  ;;  %9079 = vst [vmem:[#allocation30_spill] sm:$0xff] %v5817_v56 }
  0x47   :  { %331 = vmatmul.f32.gmra.mxu2 %v212_v26  ;;  %372 = vmatmul.f32.gmra.mxu3 %v212_v26  ;;  %9080 = vst [vmem:[#allocation31_spill] sm:$0xff] %v5819_v57  ;;  %v5845_v26 = vld [vmem:[#allocation9] sm:$0xff] }
  0x48   :  { %436 = vmatpush.msrb.mxu0 %v5737_v27  ;;  %456 = vmatpush.msrb.mxu1 %v5739_v28  ;;  %9081 = vst [vmem:[#allocation32_spill] sm:$0xff] %v5821_v58 }
  0x49   :  { %496 = vmatpush.msrb.mxu3 %v5743_v29  ;;  %476 = vmatpush.msrb.mxu2 %v5745_v30  ;;  %9082 = vst [vmem:[#allocation33_spill] sm:$0xff] %v5825_v59 }
  0x4a   :  { %437 = vmatpush.msrb.mxu0 %v5747_v31  ;;  %457 = vmatpush.msrb.mxu1 %v5749_v32  ;;  %9083 = vst [vmem:[#allocation34_spill] sm:$0xff] %v5827_v60 }
  0x4b   :  { %497 = vmatpush.msrb.mxu3 %v5753_v33  ;;  %477 = vmatpush.msrb.mxu2 %v5755_v34  ;;  %9084 = vst [vmem:[#allocation35_spill] sm:$0xff] %v5830_v61 }
  0x4c   :  { %438 = vmatpush.msrb.mxu0 %v5758_v35  ;;  %458 = vmatpush.msrb.mxu1 %v5760_v36  ;;  %9085 = vst [vmem:[#allocation36_spill] sm:$0xff] %v5832_v62 }
  0x4d   :  { %498 = vmatpush.msrb.mxu3 %v5765_v37  ;;  %478 = vmatpush.msrb.mxu2 %v5767_v38  ;;  %9086 = vst [vmem:[#allocation37_spill] sm:$0xff] %v5837_v63 }
  0x4e   :  { %252 = vmatmul.f32.gmra.mxu0 %v213_v39  ;;  %293 = vmatmul.f32.gmra.mxu1 %v213_v39  ;;  %9087 = vst [vmem:[#allocation38_spill] sm:$0xff] %v5839_v0 }
  0x4f   :  { %334 = vmatmul.f32.gmra.mxu2 %v213_v39  ;;  %375 = vmatmul.f32.gmra.mxu3 %v213_v39  ;;  %9088 = vst [vmem:[#allocation39_spill] sm:$0xff] %v5845_v26  ;;  %v5847_v39 = vld [vmem:[#allocation9 + $0x8] sm:$0xff] }
  0x50   :  { %439 = vmatpush.msrb.mxu0 %v5773_v40  ;;  %459 = vmatpush.msrb.mxu1 %v5775_v41  ;;  %9089 = vst [vmem:[#allocation40_spill] sm:$0xff] %v5847_v39 }
  0x51   :  { %499 = vmatpush.msrb.mxu3 %v5779_v42  ;;  %479 = vmatpush.msrb.mxu2 %v5781_v43 }
  0x52   :  { %440 = vmatpush.msrb.mxu0 %v5783_v44  ;;  %460 = vmatpush.msrb.mxu1 %v5785_v45 }
  0x53   :  { %500 = vmatpush.msrb.mxu3 %v5789_v46  ;;  %480 = vmatpush.msrb.mxu2 %v5791_v47 }
  0x54   :  { %441 = vmatpush.msrb.mxu0 %v5794_v48  ;;  %461 = vmatpush.msrb.mxu1 %v5796_v49 }
  0x55   :  { %501 = vmatpush.msrb.mxu3 %v5801_v50  ;;  %481 = vmatpush.msrb.mxu2 %v5803_v51 }
  0x56   :  { %255 = vmatmul.f32.gmra.mxu0 %v214_v52  ;;  %296 = vmatmul.f32.gmra.mxu1 %v214_v52 }
  0x57   :  { %337 = vmatmul.f32.gmra.mxu2 %v214_v52  ;;  %378 = vmatmul.f32.gmra.mxu3 %v214_v52  ;;  %v5851_v52 = vld [vmem:[#allocation9 + $0x10] sm:$0xff] }
  0x58   :  { %442 = vmatpush.msrb.mxu0 %v5809_v53  ;;  %462 = vmatpush.msrb.mxu1 %v5811_v54  ;;  %9090 = vst [vmem:[#allocation41_spill] sm:$0xff] %v5851_v52 }
  0x59   :  { %502 = vmatpush.msrb.mxu3 %v5815_v55  ;;  %482 = vmatpush.msrb.mxu2 %v5817_v56 }
  0x5a   :  { %443 = vmatpush.msrb.mxu0 %v5819_v57  ;;  %463 = vmatpush.msrb.mxu1 %v5821_v58  ;;  %v5853_v58 = vld [vmem:[#allocation9 + $0x18] sm:$0xff] }
  0x5b   :  { %503 = vmatpush.msrb.mxu3 %v5825_v59  ;;  %483 = vmatpush.msrb.mxu2 %v5827_v60  ;;  %9091 = vst [vmem:[#allocation42_spill] sm:$0xff] %v5853_v58 }
  0x5c   :  { %444 = vmatpush.msrb.mxu0 %v5830_v61  ;;  %464 = vmatpush.msrb.mxu1 %v5832_v62 }
  0x5d   :  { %484 = vmatpush.msrb.mxu2 %v5837_v63  ;;  %504 = vmatpush.msrb.mxu3 %v5839_v0  ;;  %v216_v0 = vld [vmem:[#allocation4 + $0x30] sm:$0xff] }
  0x5e   :  { %258 = vmatmul.f32.gmra.mxu0 %v215_v13  ;;  %299 = vmatmul.f32.gmra.mxu1 %v215_v13 }
  0x5f   :  { %340 = vmatmul.f32.gmra.mxu2 %v215_v13  ;;  %381 = vmatmul.f32.gmra.mxu3 %v215_v13  ;;  %v217_v13 = vld [vmem:[#allocation4 + $0x38] sm:$0xff] }
  0x60   :  { %445 = vmatpush.msrb.mxu0 %v5845_v26  ;;  %465 = vmatpush.msrb.mxu1 %v5847_v39 }
  0x61   :  { %485 = vmatpush.msrb.mxu2 %v5851_v52  ;;  %505 = vmatpush.msrb.mxu3 %v5853_v58 }
  0x62   :  { %585 = vmatpush.msra.mxu0 %v5667_v1  ;;  %605 = vmatpush.msra.mxu1 %v5669_v2 }
  0x63   :  { %625 = vmatpush.msra.mxu2 %v5673_v4  ;;  %645 = vmatpush.msra.mxu3 %v5671_v3 }
  0x64   :  { %586 = vmatpush.msra.mxu0 %v5675_v5  ;;  %606 = vmatpush.msra.mxu1 %v5677_v6 }
  0x65   :  { %626 = vmatpush.msra.mxu2 %v5683_v8  ;;  %646 = vmatpush.msra.mxu3 %v5681_v7 }
  0x66   :  { %261 = vmatmul.f32.gmra.mxu0 %v216_v0  ;;  %302 = vmatmul.f32.gmra.mxu1 %v216_v0 }
  0x67   :  { %343 = vmatmul.f32.gmra.mxu2 %v216_v0  ;;  %384 = vmatmul.f32.gmra.mxu3 %v216_v0  ;;  %v8662_v0 = vmov 0.0  }
  0x68   :  { %587 = vmatpush.msra.mxu0 %v5686_v9  ;;  %607 = vmatpush.msra.mxu1 %v5688_v10 }
  0x69   :  { %627 = vmatpush.msra.mxu2 %v5695_v12  ;;  %647 = vmatpush.msra.mxu3 %v5693_v11 }
  0x6a   :  { %588 = vmatpush.msra.mxu0 %v5701_v14  ;;  %608 = vmatpush.msra.mxu1 %v5703_v15 }
  0x6b   :  { %628 = vmatpush.msra.mxu2 %v5709_v17  ;;  %648 = vmatpush.msra.mxu3 %v5707_v16 }
  0x6c   :  { %589 = vmatpush.msra.mxu0 %v5711_v18  ;;  %609 = vmatpush.msra.mxu1 %v5713_v19 }
  0x6d   :  { %629 = vmatpush.msra.mxu2 %v5719_v21  ;;  %649 = vmatpush.msra.mxu3 %v5717_v20 }
  0x6e   :  { %264 = vmatmul.f32.gmra.mxu0 %v217_v13  ;;  %305 = vmatmul.f32.gmra.mxu1 %v217_v13 }
  0x6f   :  { %346 = vmatmul.f32.gmra.mxu2 %v217_v13  ;;  %387 = vmatmul.f32.gmra.mxu3 %v217_v13  ;;  %v9092_v13 = vld [vmem:[#allocation32_spill] sm:$0xff] }
  0x70   :  { %590 = vmatpush.msra.mxu0 %v5722_v22  ;;  %610 = vmatpush.msra.mxu1 %v5724_v23 }
  0x71   :  { %630 = vmatpush.msra.mxu2 %v5731_v25  ;;  %650 = vmatpush.msra.mxu3 %v5729_v24 }
  0x72   :  { %591 = vmatpush.msra.mxu0 %v5737_v27  ;;  %611 = vmatpush.msra.mxu1 %v5739_v28 }
  0x73   :  { %631 = vmatpush.msra.mxu2 %v5745_v30  ;;  %651 = vmatpush.msra.mxu3 %v5743_v29 }
  0x74   :  { %592 = vmatpush.msra.mxu0 %v5747_v31  ;;  %612 = vmatpush.msra.mxu1 %v5749_v32 }
  0x75   :  { %632 = vmatpush.msra.mxu2 %v5755_v34  ;;  %652 = vmatpush.msra.mxu3 %v5753_v33 }
  0x76   :  { %446 = vmatmul.f32.vlgmr.msrb.gmra.mxu0 %v8662_v0  ;;  %466 = vmatmul.f32.vlgmr.msrb.gmra.mxu1 %v8662_v0 }
  0x77   :  { %486 = vmatmul.f32.vlgmr.msrb.gmra.mxu2 %v8662_v0  ;;  %506 = vmatmul.f32.vlgmr.msrb.gmra.mxu3 %v8662_v0  ;;  %v9093_v0 = vld [vmem:[#allocation38_spill] sm:$0xff] }
  0x78   :  { %593 = vmatpush.msra.mxu0 %v5758_v35  ;;  %613 = vmatpush.msra.mxu1 %v5760_v36 }
  0x79   :  { %633 = vmatpush.msra.mxu2 %v5767_v38  ;;  %653 = vmatpush.msra.mxu3 %v5765_v37 }
  0x7a   :  { %594 = vmatpush.msra.mxu0 %v5773_v40  ;;  %614 = vmatpush.msra.mxu1 %v5775_v41 }
  0x7b   :  { %634 = vmatpush.msra.mxu2 %v5781_v43  ;;  %654 = vmatpush.msra.mxu3 %v5779_v42 }
  0x7c   :  { %595 = vmatpush.msra.mxu0 %v5783_v44  ;;  %615 = vmatpush.msra.mxu1 %v5785_v45 }
  0x7d   :  { %635 = vmatpush.msra.mxu2 %v5791_v47  ;;  %655 = vmatpush.msra.mxu3 %v5789_v46 }
  0x7e   :  { %596 = vmatpush.msra.mxu0 %v5794_v48  ;;  %616 = vmatpush.msra.mxu1 %v5796_v49 }
  0x7f   :  { %636 = vmatpush.msra.mxu2 %v5803_v51  ;;  %656 = vmatpush.msra.mxu3 %v5801_v50 }
  0x80   :  { %597 = vmatpush.msra.mxu0 %v5809_v53  ;;  %617 = vmatpush.msra.mxu1 %v5811_v54 }
  0x81   :  { %637 = vmatpush.msra.mxu2 %v5817_v56  ;;  %657 = vmatpush.msra.mxu3 %v5815_v55 }
  0x82   :  { %598 = vmatpush.msra.mxu0 %v5819_v57  ;;  %618 = vmatpush.msra.mxu1 %v9092_v13 }
  0x83   :  { %638 = vmatpush.msra.mxu2 %v5827_v60  ;;  %658 = vmatpush.msra.mxu3 %v5825_v59 }
  0x84   :  { %599 = vmatpush.msra.mxu0 %v5830_v61  ;;  %619 = vmatpush.msra.mxu1 %v5832_v62 }
  0x85   :  { %639 = vmatpush.msra.mxu2 %v5837_v63  ;;  %659 = vmatpush.msra.mxu3 %v9093_v0 }
  0x86   :  { %600 = vmatpush.msra.mxu0 %v5845_v26  ;;  %620 = vmatpush.msra.mxu1 %v5847_v39 }
  0x87   :  { %640 = vmatpush.msra.mxu2 %v5851_v52  ;;  %660 = vmatpush.msra.mxu3 %v5853_v58 }
  0x88   :  { %741 = vmatpush.msrb.mxu0 %v5667_v1  ;;  %761 = vmatpush.msrb.mxu1 %v5669_v2 }
  0x89   :  { %781 = vmatpush.msrb.mxu2 %v5673_v4  ;;  %801 = vmatpush.msrb.mxu3 %v5671_v3 }
  0x8a   :  { %742 = vmatpush.msrb.mxu0 %v5675_v5  ;;  %762 = vmatpush.msrb.mxu1 %v5677_v6 }
  0x8b   :  { %782 = vmatpush.msrb.mxu2 %v5683_v8  ;;  %802 = vmatpush.msrb.mxu3 %v5681_v7 }
  0x8c   :  { %743 = vmatpush.msrb.mxu0 %v5686_v9  ;;  %763 = vmatpush.msrb.mxu1 %v5688_v10 }
  0x8d   :  { %783 = vmatpush.msrb.mxu2 %v5695_v12  ;;  %803 = vmatpush.msrb.mxu3 %v5693_v11 }
  0x8e   :  { %744 = vmatpush.msrb.mxu0 %v5701_v14  ;;  %764 = vmatpush.msrb.mxu1 %v5703_v15 }
  0x8f   :  { %784 = vmatpush.msrb.mxu2 %v5709_v17  ;;  %804 = vmatpush.msrb.mxu3 %v5707_v16 }
  0x90   :  { %745 = vmatpush.msrb.mxu0 %v5711_v18  ;;  %765 = vmatpush.msrb.mxu1 %v5713_v19 }
  0x91   :  { %785 = vmatpush.msrb.mxu2 %v5719_v21  ;;  %805 = vmatpush.msrb.mxu3 %v5717_v20 }
  0x92   :  { %746 = vmatpush.msrb.mxu0 %v5722_v22  ;;  %766 = vmatpush.msrb.mxu1 %v5724_v23 }
  0x93   :  { %786 = vmatpush.msrb.mxu2 %v5731_v25  ;;  %806 = vmatpush.msrb.mxu3 %v5729_v24 }
  0x94   :  { %747 = vmatpush.msrb.mxu0 %v5737_v27  ;;  %767 = vmatpush.msrb.mxu1 %v5739_v28 }
  0x95   :  { %787 = vmatpush.msrb.mxu2 %v5745_v30  ;;  %807 = vmatpush.msrb.mxu3 %v5743_v29 }
  0x96   :  { %748 = vmatpush.msrb.mxu0 %v5747_v31  ;;  %768 = vmatpush.msrb.mxu1 %v5749_v32 }
  0x97   :  { %788 = vmatpush.msrb.mxu2 %v5755_v34  ;;  %808 = vmatpush.msrb.mxu3 %v5753_v33 }
  0x98   :  { %749 = vmatpush.msrb.mxu0 %v5758_v35  ;;  %769 = vmatpush.msrb.mxu1 %v5760_v36 }
  0x99   :  { %789 = vmatpush.msrb.mxu2 %v5767_v38  ;;  %809 = vmatpush.msrb.mxu3 %v5765_v37 }
  0x9a   :  { %750 = vmatpush.msrb.mxu0 %v5773_v40  ;;  %770 = vmatpush.msrb.mxu1 %v5775_v41 }
  0x9b   :  { %790 = vmatpush.msrb.mxu2 %v5781_v43  ;;  %810 = vmatpush.msrb.mxu3 %v5779_v42 }
  0x9c   :  { %751 = vmatpush.msrb.mxu0 %v5783_v44  ;;  %771 = vmatpush.msrb.mxu1 %v5785_v45 }
  0x9d   :  { %791 = vmatpush.msrb.mxu2 %v5791_v47  ;;  %811 = vmatpush.msrb.mxu3 %v5789_v46 }
  0x9e   :  { %752 = vmatpush.msrb.mxu0 %v5794_v48  ;;  %772 = vmatpush.msrb.mxu1 %v5796_v49 }
  0x9f   :  { %792 = vmatpush.msrb.mxu2 %v5803_v51  ;;  %812 = vmatpush.msrb.mxu3 %v5801_v50 }
  0xa0   :  { %753 = vmatpush.msrb.mxu0 %v5809_v53  ;;  %773 = vmatpush.msrb.mxu1 %v5811_v54 }
  0xa1   :  { %793 = vmatpush.msrb.mxu2 %v5817_v56  ;;  %813 = vmatpush.msrb.mxu3 %v5815_v55 }
  0xa2   :  { %754 = vmatpush.msrb.mxu0 %v5819_v57  ;;  %774 = vmatpush.msrb.mxu1 %v9092_v13 }
  0xa3   :  { %794 = vmatpush.msrb.mxu2 %v5827_v60  ;;  %814 = vmatpush.msrb.mxu3 %v5825_v59 }
  0xa4   :  { %755 = vmatpush.msrb.mxu0 %v5830_v61  ;;  %775 = vmatpush.msrb.mxu1 %v5832_v62 }
  0xa5   :  { %795 = vmatpush.msrb.mxu2 %v5837_v63  ;;  %815 = vmatpush.msrb.mxu3 %v9093_v0 }
  0xa6   :  { %756 = vmatpush.msrb.mxu0 %v5845_v26  ;;  %776 = vmatpush.msrb.mxu1 %v5847_v39 }
  0xa7   :  { %796 = vmatpush.msrb.mxu2 %v5851_v52  ;;  %816 = vmatpush.msrb.mxu3 %v5853_v58 }
  0xb3   :  { %v244_v13 = vpop.f32.mrf.mxu0  ;;  %v285_v60 = vpop.f32.mrf.mxu1 }
  0xba   :  { %v326_v57 = vpop.f32.mrf.mxu2  ;;  %v367_v59 = vpop.f32.mrf.mxu3 }
  0xbb   :  { %v5991_v55 = vpop.f32.mrf.mxu0  ;;  %v5993_v61 = vpop.f32.mrf.mxu1 }
  0xbc   :  { %9094 = vst [vmem:[#allocation43_spill] sm:$0xff] %v5991_v55 }
  0xbd   :  { %9095 = vst [vmem:[#allocation44_spill] sm:$0xff] %v5993_v61 }
  0xc2   :  { %v5995_v62 = vpop.f32.mrf.mxu2  ;;  %v5997_v63 = vpop.f32.mrf.mxu3 }
  0xc3   :  { %9096 = vst [vmem:[#allocation45_spill] sm:$0xff] %v5995_v62  ;;  %v5999_v0 = vpop.f32.mrf.mxu0  ;;  %v6001_v26 = vpop.f32.mrf.mxu1 }
  0xc4   :  { %9097 = vst [vmem:[#allocation46_spill] sm:$0xff] %v5997_v63 }
  0xc5   :  { %9098 = vst [vmem:[#allocation47_spill] sm:$0xff] %v5999_v0 }
  0xc6   :  { %9099 = vst [vmem:[#allocation48_spill] sm:$0xff] %v6001_v26 }
  0xca   :  { %v6003_v39 = vpop.f32.mrf.mxu2  ;;  %v6005_v52 = vpop.f32.mrf.mxu3 }
  0xcb   :  { %9100 = vst [vmem:[#allocation49_spill] sm:$0xff] %v6003_v39  ;;  %v6007_v58 = vpop.f32.mrf.mxu0  ;;  %v6009_v56 = vpop.f32.mrf.mxu1 }
  0xcc   :  { %9101 = vst [vmem:[#allocation50_spill] sm:$0xff] %v6005_v52 }
  0xcd   :  { %9102 = vst [vmem:[#allocation51_spill] sm:$0xff] %v6007_v58 }
  0xce   :  { %9103 = vst [vmem:[#allocation52_spill] sm:$0xff] %v6009_v56 }
  0xd2   :  { %v6011_v54 = vpop.f32.mrf.mxu2  ;;  %v6013_v55 = vpop.f32.mrf.mxu3 }
  0xd3   :  { %9104 = vst [vmem:[#allocation53_spill] sm:$0xff] %v6011_v54  ;;  %v6015_v61 = vpop.f32.mrf.mxu0  ;;  %v6017_v62 = vpop.f32.mrf.mxu1 }
  0xd4   :  { %9105 = vst [vmem:[#allocation54_spill] sm:$0xff] %v6013_v55 }
  0xd5   :  { %9106 = vst [vmem:[#allocation55_spill] sm:$0xff] %v6015_v61  ;;  %v209_v61 = vld [vmem:[#allocation10] sm:$0xf] }
  0xd6   :  { %9107 = vst [vmem:[#allocation56_spill] sm:$0xff] %v6017_v62  ;;  %v6051_v51 = vperm.slane %v209_v61, 3 }
  0xd8   :  { %9123 = vst [vmem:[#allocation72_spill] sm:$0xff] %v6051_v51  ;;  %v368_v49 = vadd.f32 %v367_v59, %v6051_v51 }
  0xda   :  { %v6019_v63 = vpop.f32.mrf.mxu3  ;;  %v6025_v39 = vpop.f32.mrf.mxu2 }
  0xdb   :  { %9108 = vst [vmem:[#allocation57_spill] sm:$0xff] %v6019_v63  ;;  %v6021_v0 = vpop.f32.mrf.mxu0  ;;  %v6023_v26 = vpop.f32.mrf.mxu1 }
  0xdc   :  { %9109 = vst [vmem:[#allocation58_spill] sm:$0xff] %v6021_v0  ;;  %v6041_v0 = vperm.slane %v209_v61, 0 }
  0xdd   :  { %9110 = vst [vmem:[#allocation59_spill] sm:$0xff] %v6023_v26  ;;  %v6043_v26 = vperm.slane %v209_v61, 1 }
  0xde   :  { %9111 = vst [vmem:[#allocation60_spill] sm:$0xff] %v6025_v39 }
  0xdf   :  { %9119 = vst [vmem:[#allocation68_spill] sm:$0xff] %v6041_v0 }
  0xe0   :  { %9120 = vst [vmem:[#allocation69_spill] sm:$0xff] %v6043_v26 }
  0xe2   :  { %v6027_v52 = vpop.f32.mrf.mxu3  ;;  %v6033_v54 = vpop.f32.mrf.mxu2 }
  0xe3   :  { %9112 = vst [vmem:[#allocation61_spill] sm:$0xff] %v6027_v52  ;;  %v6029_v58 = vpop.f32.mrf.mxu0  ;;  %v6031_v56 = vpop.f32.mrf.mxu1  ;;  %v245_v52 = vadd.f32 %v244_v13, %v6041_v0 }
  0xe4   :  { %9113 = vst [vmem:[#allocation62_spill] sm:$0xff] %v6029_v58  ;;  %v286_v58 = vadd.f32 %v285_v60, %v6043_v26 }
  0xe5   :  { %9114 = vst [vmem:[#allocation63_spill] sm:$0xff] %v6031_v56 }
  0xe6   :  { %9115 = vst [vmem:[#allocation64_spill] sm:$0xff] %v6033_v54 }
  0xea   :  { %v6035_v55 = vpop.f32.mrf.mxu3  ;;  %v6045_v39 = vpop.f32.mrf.mxu2 }
  0xeb   :  { %9116 = vst [vmem:[#allocation65_spill] sm:$0xff] %v6035_v55  ;;  %v6037_v62 = vpop.f32.mrf.mxu0  ;;  %v6039_v63 = vpop.f32.mrf.mxu1 }
  0xec   :  { %9117 = vst [vmem:[#allocation66_spill] sm:$0xff] %v6037_v62 }
  0xed   :  { %9118 = vst [vmem:[#allocation67_spill] sm:$0xff] %v6039_v63 }
  0xee   :  { %9121 = vst [vmem:[#allocation70_spill] sm:$0xff] %v6045_v39 }
  0xf2   :  { %v6049_v56 = vpop.f32.mrf.mxu3  ;;  %v6054_v48 = vpop.f32.mrf.mxu2 }
  0xf3   :  { %9122 = vst [vmem:[#allocation71_spill] sm:$0xff] %v6049_v56  ;;  %v447_v54 = vpop.f32.mrf.mxu0  ;;  %v467_v53 = vpop.f32.mrf.mxu1 }
  0xf4   :  { %v510_v55 = vadd.f32 %v447_v54, %v245_v52  ;;  %v511_v50 = vadd.f32 %v467_v53, %v286_v58  ;;  %9124 = vst [vmem:[#allocation73_spill] sm:$0xff] %v6054_v48  ;;  %v6056_v54 = vperm.slane %v209_v61, 2 }
  0xf6   :  { %v4827_v62 = vmul.f32 -1.442695, %v510_v55  ;;  %v4828_v63 = vmul.f32 -1.442695, %v511_v50  ;;  %9125 = vst [vmem:[#allocation74_spill] sm:$0xff] %v6056_v54  ;;  %v327_v55 = vadd.f32 %v326_v57, %v6056_v54 }
  0xf8   :  { %4911 = vpow2.f32 %v4827_v62 }
  0xf9   :  { %4913 = vpow2.f32 %v4828_v63 }
  0xfa   :  { %v507_v39 = vpop.f32.mrf.mxu3  ;;  %v487_v53 = vpop.f32.mrf.mxu2 }
  0xfb   :  { %v513_v13 = vadd.f32 %v507_v39, %v368_v49  ;;  %v512_v62 = vadd.f32 %v487_v53, %v327_v55 }
  0xfd   :  { %v4829_v0 = vmul.f32 -1.442695, %v513_v13 }
  0xfe   :  { %v4912_v60 = vpop.eup %4911 }
  0xff   :  { %v4914_v26 = vpop.eup %4913  ;;  %v517_v56 = vadd.f32 1.0, %v4912_v60  ;;  %4915 = vpow2.f32 %v4829_v0 }
 0x100   :  { %v536_v46 = vadd.f32 1.0, %v4914_v26 }
 0x101   :  { %4917 = vrcp.f32 %v517_v56  ;;  %v529_v60 = vand.u32 2147483648, %v517_v56  ;;  %v527_v0 = vand.u32 2147483647, %v517_v56  ;;  %vm523_vm2 = vweird.f32 %v517_v56 }
 0x102   :  { %4919 = vrcp.f32 %v536_v46  ;;  %v548_v26 = vand.u32 2147483648, %v536_v46  ;;  %v546_v51 = vand.u32 2147483647, %v536_v46  ;;  %vm542_vm3 = vweird.f32 %v536_v46 }
 0x103   :  { %v530_v53 = vor.u32 1.1754944e-38, %v529_v60  ;;  %vm528_vm5 = vcmp.eq.f32.partialorder %v527_v0, 8.507059e+37 }
 0x104   :  { %v549_v54 = vor.u32 1.1754944e-38, %v548_v26  ;;  %vm547_vm7 = vcmp.eq.f32.partialorder %v546_v51, 8.507059e+37 }
 0x105   :  { %v4916_v50 = vpop.eup %4915 }
 0x106   :  { %v556_v58 = vadd.f32 1.0, %v4916_v50 }
 0x107   :  { %v4918_v59 = vpop.eup %4917 }
 0x108   :  { %v4920_v63 = vpop.eup %4919  ;;  %v519_v52 = vmul.f32 %v4918_v59, %v517_v56  ;;  %4921 = vrcp.f32 %v556_v58  ;;  %vm524_vm0 = vweird.f32 %v4918_v59  ;;  %vm562_vm9 = vweird.f32 %v556_v58 }
 0x109   :  { %v538_v49 = vmul.f32 %v4920_v63, %v536_v46  ;;  %4923 = vtanh.f32 %v512_v62  ;;  %vm543_vm1 = vweird.f32 %v4920_v63  ;;  %vm525_vm4 = vmor %vm523_vm2, %vm524_vm0  ;;  %v566_v56 = vand.u32 2147483647, %v556_v58 }
 0x10a   :  { %v520_v39 = vsub.f32 1.0, %v519_v52  ;;  %vm544_vm6 = vmor %vm542_vm3, %vm543_vm1 }
 0x10b   :  { %v539_v13 = vsub.f32 1.0, %v538_v49  ;;  %vm567_vm11 = vcmp.eq.f32.partialorder %v566_v56, 8.507059e+37 }
 0x10c   :  { %v521_v61 = vmul.f32 %v4918_v59, %v520_v39 }
 0x10d   :  { %v540_v48 = vmul.f32 %v4920_v63, %v539_v13 }
 0x10e   :  { %v4922_v47 = vpop.eup %4921  ;;  %v522_v57 = vadd.f32 %v4918_v59, %v521_v61 }
 0x10f   :  { %v541_v50 = vadd.f32 %v4920_v63, %v540_v48  ;;  %v558_v55 = vmul.f32 %v4922_v47, %v556_v58  ;;  %v4924_v62 = vpop.eup %4923  ;;  %vm563_vm8 = vweird.f32 %v4922_v47  ;;  %v568_v48 = vand.u32 2147483648, %v556_v58 }
 0x110   :  { %v526_v52 = vsel %vm525_vm4, %v4918_v59, %v522_v57  ;;  %vm564_vm10 = vmor %vm562_vm9, %vm563_vm8 }
 0x111   :  { %v531_v49 = vsel %vm528_vm5, %v530_v53, %v526_v52  ;;  %v545_v39 = vsel %vm544_vm6, %v4920_v63, %v541_v50  ;;  %v559_v45 = vsub.f32 1.0, %v558_v55  ;;  %v569_v60 = vor.u32 1.1754944e-38, %v568_v48  ;;  %v9159_v52 = vld [vmem:[#allocation74_spill] sm:$0xff] }
 0x112   :  { %v550_v13 = vsel %vm547_vm7, %v549_v54, %v545_v39  ;;  %v573_v44 = vmul.f32 %v4924_v62, %v531_v49  ;;  %v9160_v62 = vld [vmem:[#allocation45_spill] sm:$0xff] }
 0x113   :  { %v572_v42 = vmul.f32 0.0, %v550_v13  ;;  %v560_v43 = vmul.f32 %v4922_v47, %v559_v45  ;;  %v330_v49 = vadd.f32 %v9160_v62, %v9159_v52 }
 0x115   :  { %v6059_v61 = vadd.f32 %v573_v44, %v572_v42  ;;  %v561_v46 = vadd.f32 %v4922_v47, %v560_v43  ;;  %v9157_v42 = vld [vmem:[#allocation72_spill] sm:$0xff]  ;;  %v9158_v43 = vld [vmem:[#allocation46_spill] sm:$0xff] }
 0x116   :  { %v371_v44 = vadd.f32 %v9158_v43, %v9157_v42 }
 0x117   :  { %4925 = vtanh.f32 %v6059_v61  ;;  %v565_v59 = vsel %vm564_vm10, %v4922_v47, %v561_v46 }
 0x118   :  { %v570_v51 = vsel %vm567_vm11, %v569_v60, %v565_v59 }
 0x11d   :  { %v4926_v63 = vpop.eup %4925 }
 0x11e   :  { %v6062_v26 = vmul.f32 %v4926_v63, %v570_v51 }
 0x120   :  { %9126 = vst [vmem:[#allocation75_spill] sm:$0xff] %v6062_v26  ;;  %601 = vmatmul.f32.vlgmr.msra.gmra.mxu0 %v6062_v26  ;;  %621 = vmatmul.f32.vlgmr.msra.gmra.mxu1 %v6062_v26 }
 0x121   :  { %641 = vmatmul.f32.vlgmr.msra.gmra.mxu2 %v6062_v26  ;;  %661 = vmatmul.f32.vlgmr.msra.gmra.mxu3 %v6062_v26  ;;  %v6246_v26 = vld [vmem:[#allocation9 + $0xe0] sm:$0xff] }
 0x122   :  { %897 = vmatpush.msra.mxu0 %v5667_v1  ;;  %917 = vmatpush.msra.mxu1 %v5669_v2  ;;  %v9127_v1 = vld [vmem:[#allocation18_spill] sm:$0xff]  ;;  %v9128_v2 = vld [vmem:[#allocation17_spill] sm:$0xff] }
 0x123   :  { %937 = vmatpush.msra.mxu2 %v5673_v4  ;;  %957 = vmatpush.msra.mxu3 %v5671_v3  ;;  %v9129_v3 = vld [vmem:[#allocation19_spill] sm:$0xff]  ;;  %v9130_v4 = vld [vmem:[#allocation20_spill] sm:$0xff] }
 0x124   :  { %898 = vmatpush.msra.mxu0 %v5675_v5  ;;  %918 = vmatpush.msra.mxu1 %v5677_v6  ;;  %v9131_v5 = vld [vmem:[#allocation22_spill] sm:$0xff]  ;;  %v9132_v6 = vld [vmem:[#allocation21_spill] sm:$0xff] }
 0x125   :  { %938 = vmatpush.msra.mxu2 %v5683_v8  ;;  %958 = vmatpush.msra.mxu3 %v5681_v7  ;;  %v9133_v7 = vld [vmem:[#allocation23_spill] sm:$0xff]  ;;  %v9134_v8 = vld [vmem:[#allocation24_spill] sm:$0xff] }
 0x126   :  { %899 = vmatpush.msra.mxu0 %v5686_v9  ;;  %919 = vmatpush.msra.mxu1 %v5688_v10  ;;  %v9135_v9 = vld [vmem:[#allocation26_spill] sm:$0xff]  ;;  %v9136_v10 = vld [vmem:[#allocation25_spill] sm:$0xff] }
 0x127   :  { %939 = vmatpush.msra.mxu2 %v5695_v12  ;;  %959 = vmatpush.msra.mxu3 %v5693_v11  ;;  %v9137_v11 = vld [vmem:[#allocation27_spill] sm:$0xff]  ;;  %v9138_v12 = vld [vmem:[#allocation28_spill] sm:$0xff] }
 0x128   :  { %900 = vmatpush.msra.mxu0 %v5701_v14  ;;  %920 = vmatpush.msra.mxu1 %v5703_v15  ;;  %v9139_v14 = vld [vmem:[#allocation30_spill] sm:$0xff]  ;;  %v9140_v15 = vld [vmem:[#allocation29_spill] sm:$0xff] }
 0x129   :  { %940 = vmatpush.msra.mxu2 %v5709_v17  ;;  %960 = vmatpush.msra.mxu3 %v5707_v16  ;;  %v9141_v16 = vld [vmem:[#allocation31_spill] sm:$0xff]  ;;  %v9142_v17 = vld [vmem:[#allocation32_spill] sm:$0xff] }
 0x12a   :  { %901 = vmatpush.msra.mxu0 %v5711_v18  ;;  %921 = vmatpush.msra.mxu1 %v5713_v19  ;;  %v9143_v18 = vld [vmem:[#allocation34_spill] sm:$0xff]  ;;  %v9144_v19 = vld [vmem:[#allocation33_spill] sm:$0xff] }
 0x12b   :  { %941 = vmatpush.msra.mxu2 %v5719_v21  ;;  %961 = vmatpush.msra.mxu3 %v5717_v20  ;;  %v9145_v20 = vld [vmem:[#allocation35_spill] sm:$0xff]  ;;  %v9146_v21 = vld [vmem:[#allocation36_spill] sm:$0xff] }
 0x12c   :  { %902 = vmatpush.msra.mxu0 %v5722_v22  ;;  %922 = vmatpush.msra.mxu1 %v5724_v23  ;;  %v9147_v22 = vld [vmem:[#allocation37_spill] sm:$0xff]  ;;  %v9148_v23 = vld [vmem:[#allocation38_spill] sm:$0xff] }
 0x12d   :  { %942 = vmatpush.msra.mxu2 %v5731_v25  ;;  %962 = vmatpush.msra.mxu3 %v5729_v24  ;;  %v9149_v24 = vld [vmem:[#allocation39_spill] sm:$0xff]  ;;  %v9150_v25 = vld [vmem:[#allocation40_spill] sm:$0xff] }
 0x12e   :  { %903 = vmatpush.msra.mxu0 %v5737_v27  ;;  %923 = vmatpush.msra.mxu1 %v5739_v28  ;;  %v9151_v27 = vld [vmem:[#allocation41_spill] sm:$0xff]  ;;  %v9152_v28 = vld [vmem:[#allocation42_spill] sm:$0xff] }
 0x12f   :  { %943 = vmatpush.msra.mxu2 %v5745_v30  ;;  %963 = vmatpush.msra.mxu3 %v5743_v29  ;;  %v9153_v29 = vld [vmem:[#allocation68_spill] sm:$0xff]  ;;  %v9154_v30 = vld [vmem:[#allocation43_spill] sm:$0xff] }
 0x130   :  { %904 = vmatpush.msra.mxu0 %v5747_v31  ;;  %924 = vmatpush.msra.mxu1 %v5749_v32  ;;  %v248_v31 = vadd.f32 %v9154_v30, %v9153_v29  ;;  %v9155_v32 = vld [vmem:[#allocation69_spill] sm:$0xff] }
 0x131   :  { %944 = vmatpush.msra.mxu2 %v5755_v34  ;;  %964 = vmatpush.msra.mxu3 %v5753_v33  ;;  %v9156_v33 = vld [vmem:[#allocation44_spill] sm:$0xff] }
 0x132   :  { %905 = vmatpush.msra.mxu0 %v5758_v35  ;;  %925 = vmatpush.msra.mxu1 %v5760_v36  ;;  %v289_v34 = vadd.f32 %v9156_v33, %v9155_v32 }
 0x133   :  { %945 = vmatpush.msra.mxu2 %v5767_v38  ;;  %965 = vmatpush.msra.mxu3 %v5765_v37 }
 0x134   :  { %906 = vmatpush.msra.mxu0 %v5773_v40  ;;  %926 = vmatpush.msra.mxu1 %v5775_v41 }
 0x135   :  { %946 = vmatpush.msra.mxu2 %v9127_v1  ;;  %966 = vmatpush.msra.mxu3 %v9128_v2 }
 0x136   :  { %907 = vmatpush.msra.mxu0 %v9129_v3  ;;  %927 = vmatpush.msra.mxu1 %v9130_v4 }
 0x137   :  { %947 = vmatpush.msra.mxu2 %v9131_v5  ;;  %967 = vmatpush.msra.mxu3 %v9132_v6 }
 0x138   :  { %908 = vmatpush.msra.mxu0 %v9133_v7  ;;  %928 = vmatpush.msra.mxu1 %v9134_v8 }
 0x139   :  { %948 = vmatpush.msra.mxu2 %v9135_v9  ;;  %968 = vmatpush.msra.mxu3 %v9136_v10 }
 0x13a   :  { %909 = vmatpush.msra.mxu0 %v9137_v11  ;;  %929 = vmatpush.msra.mxu1 %v9138_v12 }
 0x13b   :  { %949 = vmatpush.msra.mxu2 %v9139_v14  ;;  %969 = vmatpush.msra.mxu3 %v9140_v15 }
 0x13c   :  { %910 = vmatpush.msra.mxu0 %v9141_v16  ;;  %930 = vmatpush.msra.mxu1 %v9142_v17 }
 0x13d   :  { %950 = vmatpush.msra.mxu2 %v9143_v18  ;;  %970 = vmatpush.msra.mxu3 %v9144_v19 }
 0x13e   :  { %911 = vmatpush.msra.mxu0 %v9145_v20  ;;  %931 = vmatpush.msra.mxu1 %v9146_v21 }
 0x13f   :  { %951 = vmatpush.msra.mxu2 %v9147_v22  ;;  %971 = vmatpush.msra.mxu3 %v9148_v23 }
 0x140   :  { %912 = vmatpush.msra.mxu0 %v9149_v24  ;;  %932 = vmatpush.msra.mxu1 %v9150_v25 }
 0x141   :  { %952 = vmatpush.msra.mxu2 %v9151_v27  ;;  %972 = vmatpush.msra.mxu3 %v9152_v28 }
 0x19d   :  { %v602_v35 = vpop.f32.mrf.mxu0  ;;  %v622_v36 = vpop.f32.mrf.mxu1 }
 0x19e   :  { %v665_v37 = vadd.f32 %v602_v35, %v248_v31  ;;  %v666_v38 = vadd.f32 %v622_v36, %v289_v34 }
 0x1a0   :  { %v4830_v40 = vmul.f32 -1.442695, %v665_v37  ;;  %v4831_v41 = vmul.f32 -1.442695, %v666_v38 }
 0x1a2   :  { %4927 = vpow2.f32 %v4830_v40 }
 0x1a3   :  { %4929 = vpow2.f32 %v4831_v41 }
 0x1a4   :  { %v662_v45 = vpop.f32.mrf.mxu3  ;;  %v642_v50 = vpop.f32.mrf.mxu2 }
 0x1a5   :  { %v668_v47 = vadd.f32 %v662_v45, %v371_v44  ;;  %v667_v46 = vadd.f32 %v642_v50, %v330_v49 }
 0x1a7   :  { %v4832_v54 = vmul.f32 -1.442695, %v668_v47 }
 0x1a8   :  { %v4928_v58 = vpop.eup %4927 }
 0x1a9   :  { %v4930_v0 = vpop.eup %4929  ;;  %v672_v57 = vadd.f32 1.0, %v4928_v58  ;;  %4931 = vpow2.f32 %v4832_v54 }
 0x1aa   :  { %v691_v53 = vadd.f32 1.0, %v4930_v0 }
 0x1ab   :  { %4933 = vrcp.f32 %v672_v57  ;;  %v684_v51 = vand.u32 2147483648, %v672_v57  ;;  %v682_v33 = vand.u32 2147483647, %v672_v57  ;;  %vm678_vm14 = vweird.f32 %v672_v57 }
 0x1ac   :  { %4935 = vrcp.f32 %v691_v53  ;;  %v703_v30 = vand.u32 2147483648, %v691_v53  ;;  %v701_v35 = vand.u32 2147483647, %v691_v53  ;;  %vm697_vm15 = vweird.f32 %v691_v53 }
 0x1ad   :  { %v685_v38 = vor.u32 1.1754944e-38, %v684_v51  ;;  %vm683_vm2 = vcmp.eq.f32.partialorder %v682_v33, 8.507059e+37  ;;  %v6159_v51 = vld [vmem:[#allocation9 + $0x1f8] sm:$0xff]  ;;  %v6168_v33 = vld [vmem:[#allocation9 + $0x1d0] sm:$0xff] }
 0x1ae   :  { %v704_v43 = vor.u32 1.1754944e-38, %v703_v30  ;;  %vm702_vm3 = vcmp.eq.f32.partialorder %v701_v35, 8.507059e+37  ;;  %v6162_v30 = vld [vmem:[#allocation9 + $0x1c0] sm:$0xff] }
 0x1af   :  { %v4932_v55 = vpop.eup %4931  ;;  %v6174_v35 = vld [vmem:[#allocation9 + $0x1a0] sm:$0xff] }
 0x1b0   :  { %v711_v39 = vadd.f32 1.0, %v4932_v55 }
 0x1b1   :  { %v4934_v13 = vpop.eup %4933 }
 0x1b2   :  { %v4936_v48 = vpop.eup %4935  ;;  %v674_v56 = vmul.f32 %v4934_v13, %v672_v57  ;;  %4937 = vrcp.f32 %v711_v39  ;;  %vm679_vm12 = vweird.f32 %v4934_v13  ;;  %v723_v49 = vand.u32 2147483648, %v711_v39 }
 0x1b3   :  { %v693_v59 = vmul.f32 %v4936_v48, %v691_v53  ;;  %4939 = vtanh.f32 %v667_v46  ;;  %vm698_vm13 = vweird.f32 %v4936_v48  ;;  %vm680_vm0 = vmor %vm678_vm14, %vm679_vm12  ;;  %vm717_vm5 = vweird.f32 %v711_v39 }
 0x1b4   :  { %v675_v60 = vsub.f32 1.0, %v674_v56  ;;  %vm699_vm1 = vmor %vm697_vm15, %vm698_vm13  ;;  %v724_v56 = vor.u32 1.1754944e-38, %v723_v49  ;;  %v6225_v49 = vld [vmem:[#allocation9 + $0x128] sm:$0xff] }
 0x1b5   :  { %v694_v63 = vsub.f32 1.0, %v693_v59 }
 0x1b6   :  { %v676_v31 = vmul.f32 %v4934_v13, %v675_v60 }
 0x1b7   :  { %v695_v34 = vmul.f32 %v4936_v48, %v694_v63  ;;  %v6156_v63 = vld [vmem:[#allocation9 + $0x1f0] sm:$0xff] }
 0x1b8   :  { %v4938_v36 = vpop.eup %4937  ;;  %v677_v37 = vadd.f32 %v4934_v13, %v676_v31  ;;  %v6165_v31 = vld [vmem:[#allocation9 + $0x1c8] sm:$0xff] }
 0x1b9   :  { %v696_v40 = vadd.f32 %v4936_v48, %v695_v34  ;;  %v713_v41 = vmul.f32 %v4938_v36, %v711_v39  ;;  %v4940_v45 = vpop.eup %4939  ;;  %vm718_vm4 = vweird.f32 %v4938_v36  ;;  %v6171_v34 = vld [vmem:[#allocation9 + $0x1d8] sm:$0xff] }
 0x1ba   :  { %v681_v44 = vsel %vm680_vm0, %v4934_v13, %v677_v37  ;;  %v721_v13 = vand.u32 2147483647, %v711_v39  ;;  %vm719_vm6 = vmor %vm717_vm5, %vm718_vm4  ;;  %v6153_v39 = vld [vmem:[#allocation9 + $0x1e8] sm:$0xff]  ;;  %v6180_v37 = vld [vmem:[#allocation9 + $0x1b0] sm:$0xff] }
 0x1bb   :  { %v686_v47 = vsel %vm683_vm2, %v685_v38, %v681_v44  ;;  %v700_v54 = vsel %vm699_vm1, %v4936_v48, %v696_v40  ;;  %v714_v58 = vsub.f32 1.0, %v713_v41  ;;  %v6183_v38 = vld [vmem:[#allocation9 + $0x1b8] sm:$0xff]  ;;  %v6186_v40 = vld [vmem:[#allocation9 + $0x180] sm:$0xff]  ;;  %v6189_v41 = vld [vmem:[#allocation9 + $0x188] sm:$0xff] }
 0x1bc   :  { %v705_v0 = vsel %vm702_vm3, %v704_v43, %v700_v54  ;;  %v728_v50 = vmul.f32 %v4940_v45, %v686_v47  ;;  %vm722_vm7 = vcmp.eq.f32.partialorder %v721_v13, 8.507059e+37  ;;  %v6192_v43 = vld [vmem:[#allocation9 + $0x190] sm:$0xff]  ;;  %v6195_v44 = vld [vmem:[#allocation9 + $0x198] sm:$0xff]  ;;  %v6198_v45 = vld [vmem:[#allocation9 + $0x160] sm:$0xff] }
 0x1bd   :  { %v727_v55 = vmul.f32 %v705_v0, %v6059_v61  ;;  %v715_v62 = vmul.f32 %v4938_v36, %v714_v58  ;;  %v6150_v61 = vld [vmem:[#allocation9 + $0x1e0] sm:$0xff]  ;;  %v6201_v47 = vld [vmem:[#allocation9 + $0x168] sm:$0xff]  ;;  %v6204_v54 = vld [vmem:[#allocation9 + $0x170] sm:$0xff] }
 0x1be   :  { %v6207_v58 = vld [vmem:[#allocation9 + $0x178] sm:$0xff]  ;;  %v6210_v0 = vld [vmem:[#allocation9 + $0x140] sm:$0xff]  ;;  %v6228_v13 = vld [vmem:[#allocation9 + $0x130] sm:$0xff] }
 0x1bf   :  { %v6141_v57 = vadd.f32 %v728_v50, %v727_v55  ;;  %v716_v53 = vadd.f32 %v4938_v36, %v715_v62  ;;  %v6213_v50 = vld [vmem:[#allocation9 + $0x148] sm:$0xff]  ;;  %v6216_v55 = vld [vmem:[#allocation9 + $0x150] sm:$0xff]  ;;  %v6219_v62 = vld [vmem:[#allocation9 + $0x158] sm:$0xff] }
 0x1c1   :  { %4941 = vtanh.f32 %v6141_v57  ;;  %v720_v46 = vsel %vm719_vm6, %v4938_v36, %v716_v53  ;;  %v6177_v36 = vld [vmem:[#allocation9 + $0x1a8] sm:$0xff]  ;;  %v6222_v53 = vld [vmem:[#allocation9 + $0x120] sm:$0xff] }
 0x1c2   :  { %v725_v59 = vsel %vm722_vm7, %v724_v56, %v720_v46  ;;  %v6231_v46 = vld [vmem:[#allocation9 + $0x138] sm:$0xff]  ;;  %v6234_v56 = vld [vmem:[#allocation9 + $0x100] sm:$0xff] }
 0x1c3   :  { %9162 = vst [vmem:[#allocation17_spill] sm:$0xff] %v6231_v46 }
 0x1c4   :  { %9163 = vst [vmem:[#allocation19_spill] sm:$0xff] %v6234_v56 }
 0x1c7   :  { %v4942_v48 = vpop.eup %4941 }
 0x1c8   :  { %v6144_v60 = vmul.f32 %v4942_v48, %v725_v59  ;;  %v6237_v48 = vld [vmem:[#allocation9 + $0x108] sm:$0xff]  ;;  %v6240_v59 = vld [vmem:[#allocation9 + $0x110] sm:$0xff] }
 0x1c9   :  { %9164 = vst [vmem:[#allocation20_spill] sm:$0xff] %v6237_v48 }
 0x1ca   :  { %9161 = vst [vmem:[#allocation18_spill] sm:$0xff] %v6144_v60  ;;  %757 = vmatmul.f32.vlgmr.msrb.gmra.mxu0 %v6144_v60  ;;  %777 = vmatmul.f32.vlgmr.msrb.gmra.mxu1 %v6144_v60 }
 0x1cb   :  { %797 = vmatmul.f32.vlgmr.msrb.gmra.mxu2 %v6144_v60  ;;  %817 = vmatmul.f32.vlgmr.msrb.gmra.mxu3 %v6144_v60  ;;  %9165 = vst [vmem:[#allocation22_spill] sm:$0xff] %v6240_v59  ;;  %v6243_v60 = vld [vmem:[#allocation9 + $0x118] sm:$0xff] }
 0x1cc   :  { %1053 = vmatpush.msrb.mxu0 %v6150_v61  ;;  %1073 = vmatpush.msrb.mxu1 %v6153_v39  ;;  %9166 = vst [vmem:[#allocation21_spill] sm:$0xff] %v6243_v60 }
 0x1cd   :  { %1093 = vmatpush.msrb.mxu2 %v6156_v63  ;;  %1113 = vmatpush.msrb.mxu3 %v6159_v51 }
 0x1ce   :  { %1054 = vmatpush.msrb.mxu0 %v6162_v30  ;;  %1074 = vmatpush.msrb.mxu1 %v6165_v31 }
 0x1cf   :  { %1094 = vmatpush.msrb.mxu2 %v6168_v33  ;;  %1114 = vmatpush.msrb.mxu3 %v6171_v34 }
 0x1d0   :  { %1055 = vmatpush.msrb.mxu0 %v6174_v35  ;;  %1075 = vmatpush.msrb.mxu1 %v6177_v36 }
 0x1d1   :  { %1095 = vmatpush.msrb.mxu2 %v6180_v37  ;;  %1115 = vmatpush.msrb.mxu3 %v6183_v38 }
 0x1d2   :  { %1056 = vmatpush.msrb.mxu0 %v6186_v40  ;;  %1076 = vmatpush.msrb.mxu1 %v6189_v41 }
 0x1d3   :  { %1096 = vmatpush.msrb.mxu2 %v6192_v43  ;;  %1116 = vmatpush.msrb.mxu3 %v6195_v44 }
 0x1d4   :  { %1057 = vmatpush.msrb.mxu0 %v6198_v45  ;;  %1077 = vmatpush.msrb.mxu1 %v6201_v47 }
 0x1d5   :  { %1097 = vmatpush.msrb.mxu2 %v6204_v54  ;;  %1117 = vmatpush.msrb.mxu3 %v6207_v58 }
 0x1d6   :  { %1058 = vmatpush.msrb.mxu0 %v6210_v0  ;;  %1078 = vmatpush.msrb.mxu1 %v6213_v50 }
 0x1d7   :  { %1098 = vmatpush.msrb.mxu2 %v6216_v55  ;;  %1118 = vmatpush.msrb.mxu3 %v6219_v62 }
 0x1d8   :  { %1059 = vmatpush.msrb.mxu0 %v6222_v53  ;;  %1079 = vmatpush.msrb.mxu1 %v6225_v49 }
 0x1d9   :  { %1099 = vmatpush.msrb.mxu2 %v6228_v13  ;;  %1119 = vmatpush.msrb.mxu3 %v6231_v46  ;;  %v6249_v46 = vld [vmem:[#allocation9 + $0xe8] sm:$0xff] }
 0x1da   :  { %1060 = vmatpush.msrb.mxu0 %v6234_v56  ;;  %1080 = vmatpush.msrb.mxu1 %v6237_v48  ;;  %v6252_v56 = vld [vmem:[#allocation9 + $0xf0] sm:$0xff]  ;;  %v6255_v48 = vld [vmem:[#allocation9 + $0xf8] sm:$0xff] }
 0x1db   :  { %1100 = vmatpush.msrb.mxu2 %v6240_v59  ;;  %1120 = vmatpush.msrb.mxu3 %v6243_v60  ;;  %v6258_v59 = vld [vmem:[#allocation9 + $0xc0] sm:$0xff]  ;;  %v6261_v60 = vld [vmem:[#allocation9 + $0xc8] sm:$0xff] }
 0x1dc   :  { %1061 = vmatpush.msrb.mxu0 %v6246_v26  ;;  %1081 = vmatpush.msrb.mxu1 %v6249_v46 }
 0x1dd   :  { %1101 = vmatpush.msrb.mxu2 %v6252_v56  ;;  %1121 = vmatpush.msrb.mxu3 %v6255_v48 }
 0x1de   :  { %1062 = vmatpush.msrb.mxu0 %v6258_v59  ;;  %1082 = vmatpush.msrb.mxu1 %v6261_v60 }
 0x1df   :  { %1102 = vmatpush.msrb.mxu2 %v9127_v1  ;;  %1122 = vmatpush.msrb.mxu3 %v9128_v2  ;;  %v9167_v1 = vld [vmem:[#allocation47_spill] sm:$0xff] }
 0x1e0   :  { %1063 = vmatpush.msrb.mxu0 %v9129_v3  ;;  %1083 = vmatpush.msrb.mxu1 %v9130_v4  ;;  %v251_v2 = vadd.f32 %v9167_v1, %v9153_v29  ;;  %v9168_v3 = vld [vmem:[#allocation48_spill] sm:$0xff] }
 0x1e1   :  { %1103 = vmatpush.msrb.mxu2 %v9131_v5  ;;  %1123 = vmatpush.msrb.mxu3 %v9132_v6  ;;  %v292_v4 = vadd.f32 %v9168_v3, %v9155_v32 }
 0x1e2   :  { %1064 = vmatpush.msrb.mxu0 %v9133_v7  ;;  %1084 = vmatpush.msrb.mxu1 %v9134_v8 }
 0x1e3   :  { %1104 = vmatpush.msrb.mxu2 %v9135_v9  ;;  %1124 = vmatpush.msrb.mxu3 %v9136_v10 }
 0x1e4   :  { %1065 = vmatpush.msrb.mxu0 %v9137_v11  ;;  %1085 = vmatpush.msrb.mxu1 %v9138_v12  ;;  %v9169_v11 = vld [vmem:[#allocation50_spill] sm:$0xff] }
 0x1e5   :  { %1105 = vmatpush.msrb.mxu2 %v9139_v14  ;;  %1125 = vmatpush.msrb.mxu3 %v9140_v15  ;;  %v374_v12 = vadd.f32 %v9169_v11, %v9157_v42 }
 0x1e6   :  { %1066 = vmatpush.msrb.mxu0 %v9141_v16  ;;  %1086 = vmatpush.msrb.mxu1 %v9142_v17 }
 0x1e7   :  { %1106 = vmatpush.msrb.mxu2 %v9143_v18  ;;  %1126 = vmatpush.msrb.mxu3 %v9144_v19 }
 0x1e8   :  { %1067 = vmatpush.msrb.mxu0 %v9145_v20  ;;  %1087 = vmatpush.msrb.mxu1 %v9146_v21 }
 0x1e9   :  { %1107 = vmatpush.msrb.mxu2 %v9147_v22  ;;  %1127 = vmatpush.msrb.mxu3 %v9148_v23  ;;  %v9170_v23 = vld [vmem:[#allocation49_spill] sm:$0xff] }
 0x1ea   :  { %1068 = vmatpush.msrb.mxu0 %v9149_v24  ;;  %1088 = vmatpush.msrb.mxu1 %v9150_v25  ;;  %v333_v24 = vadd.f32 %v9170_v23, %v9159_v52 }
 0x1eb   :  { %1108 = vmatpush.msrb.mxu2 %v9151_v27  ;;  %1128 = vmatpush.msrb.mxu3 %v9152_v28 }
 0x247   :  { %v758_v5 = vpop.f32.mrf.mxu0  ;;  %v778_v6 = vpop.f32.mrf.mxu1 }
 0x248   :  { %v821_v7 = vadd.f32 %v758_v5, %v251_v2  ;;  %v822_v8 = vadd.f32 %v778_v6, %v292_v4 }
 0x24a   :  { %v4833_v9 = vmul.f32 -1.442695, %v821_v7  ;;  %v4834_v10 = vmul.f32 -1.442695, %v822_v8 }
 0x24c   :  { %4943 = vpow2.f32 %v4833_v9 }
 0x24d   :  { %4945 = vpow2.f32 %v4834_v10 }
 0x24e   :  { %v818_v14 = vpop.f32.mrf.mxu3  ;;  %v798_v21 = vpop.f32.mrf.mxu2 }
 0x24f   :  { %v824_v15 = vadd.f32 %v818_v14, %v374_v12  ;;  %v823_v28 = vadd.f32 %v798_v21, %v333_v24 }
 0x251   :  { %v4835_v16 = vmul.f32 -1.442695, %v824_v15 }
 0x252   :  { %v4944_v17 = vpop.eup %4943 }
 0x253   :  { %v4946_v18 = vpop.eup %4945  ;;  %v828_v19 = vadd.f32 1.0, %v4944_v17  ;;  %4947 = vpow2.f32 %v4835_v16 }
 0x254   :  { %v847_v20 = vadd.f32 1.0, %v4946_v18 }
 0x255   :  { %4949 = vrcp.f32 %v828_v19  ;;  %v840_v6 = vand.u32 2147483648, %v828_v19  ;;  %v838_v9 = vand.u32 2147483647, %v828_v19  ;;  %vm834_vm10 = vweird.f32 %v828_v19 }
 0x256   :  { %4951 = vrcp.f32 %v847_v20  ;;  %v859_v7 = vand.u32 2147483648, %v847_v20  ;;  %v857_v11 = vand.u32 2147483647, %v847_v20  ;;  %vm853_vm11 = vweird.f32 %v847_v20 }
 0x257   :  { %v841_v15 = vor.u32 1.1754944e-38, %v840_v6  ;;  %vm839_vm14 = vcmp.eq.f32.partialorder %v838_v9, 8.507059e+37 }
 0x258   :  { %v860_v18 = vor.u32 1.1754944e-38, %v859_v7  ;;  %vm858_vm15 = vcmp.eq.f32.partialorder %v857_v11, 8.507059e+37  ;;  %v9174_v11 = vld [vmem:[#allocation20_spill] sm:$0xff] }
 0x259   :  { %v4948_v22 = vpop.eup %4947 }
 0x25a   :  { %v867_v25 = vadd.f32 1.0, %v4948_v22 }
 0x25b   :  { %v4950_v27 = vpop.eup %4949 }
 0x25c   :  { %v4952_v1 = vpop.eup %4951  ;;  %v830_v2 = vmul.f32 %v4950_v27, %v828_v19  ;;  %4953 = vrcp.f32 %v867_v25  ;;  %vm835_vm8 = vweird.f32 %v4950_v27  ;;  %v879_v6 = vand.u32 2147483648, %v867_v25 }
 0x25d   :  { %v849_v3 = vmul.f32 %v4952_v1, %v847_v20  ;;  %4955 = vtanh.f32 %v823_v28  ;;  %vm854_vm9 = vweird.f32 %v4952_v1  ;;  %vm836_vm12 = vmor %vm834_vm10, %vm835_vm8  ;;  %vm873_vm1 = vweird.f32 %v867_v25 }
 0x25e   :  { %v831_v4 = vsub.f32 1.0, %v830_v2  ;;  %vm855_vm13 = vmor %vm853_vm11, %vm854_vm9 }
 0x25f   :  { %v850_v5 = vsub.f32 1.0, %v849_v3 }
 0x260   :  { %v832_v8 = vmul.f32 %v4950_v27, %v831_v4 }
 0x261   :  { %v851_v10 = vmul.f32 %v4952_v1, %v850_v5 }
 0x262   :  { %v4954_v12 = vpop.eup %4953  ;;  %v833_v14 = vadd.f32 %v4950_v27, %v832_v8  ;;  %v880_v8 = vor.u32 1.1754944e-38, %v879_v6  ;;  %v6388_v6 = vld [vmem:[#allocation9 + $0x40] sm:$0xff] }
 0x263   :  { %v852_v16 = vadd.f32 %v4952_v1, %v851_v10  ;;  %v869_v17 = vmul.f32 %v4954_v12, %v867_v25  ;;  %v4956_v22 = vpop.eup %4955  ;;  %vm874_vm0 = vweird.f32 %v4954_v12  ;;  %9191 = vst [vmem:[#allocation38_spill] sm:$0xff] %v6388_v6 }
 0x264   :  { %v837_v21 = vsel %vm836_vm12, %v4950_v27, %v833_v14  ;;  %v877_v27 = vand.u32 2147483647, %v867_v25  ;;  %vm875_vm2 = vmor %vm873_vm1, %vm874_vm0  ;;  %v9173_v25 = vld [vmem:[#allocation19_spill] sm:$0xff]  ;;  %v9176_v14 = vld [vmem:[#allocation21_spill] sm:$0xff] }
 0x265   :  { %v842_v23 = vsel %vm839_vm14, %v841_v15, %v837_v21  ;;  %v856_v24 = vsel %vm855_vm13, %v4952_v1, %v852_v16  ;;  %v870_v28 = vsub.f32 1.0, %v869_v17  ;;  %v6346_v15 = vld [vmem:[#allocation9 + $0xd0] sm:$0xff]  ;;  %v6349_v16 = vld [vmem:[#allocation9 + $0xd8] sm:$0xff]  ;;  %v6352_v17 = vld [vmem:[#allocation9 + $0xa0] sm:$0xff] }
 0x266   :  { %v861_v2 = vsel %vm858_vm15, %v860_v18, %v856_v24  ;;  %v884_v3 = vmul.f32 %v4956_v22, %v842_v23  ;;  %vm878_vm3 = vcmp.eq.f32.partialorder %v877_v27, 8.507059e+37  ;;  %9177 = vst [vmem:[#allocation24_spill] sm:$0xff] %v6346_v15  ;;  %v6355_v18 = vld [vmem:[#allocation9 + $0xa8] sm:$0xff]  ;;  %v6358_v21 = vld [vmem:[#allocation9 + $0xb0] sm:$0xff]  ;;  %v6361_v22 = vld [vmem:[#allocation9 + $0xb8] sm:$0xff] }
 0x267   :  { %v883_v4 = vmul.f32 %v861_v2, %v6141_v57  ;;  %v871_v5 = vmul.f32 %v4954_v12, %v870_v28  ;;  %v9172_v57 = vld [vmem:[#allocation17_spill] sm:$0xff]  ;;  %9178 = vst [vmem:[#allocation26_spill] sm:$0xff] %v6349_v16  ;;  %v6364_v23 = vld [vmem:[#allocation9 + $0x80] sm:$0xff]  ;;  %v6373_v2 = vld [vmem:[#allocation9 + $0x98] sm:$0xff] }
 0x268   :  { %9179 = vst [vmem:[#allocation25_spill] sm:$0xff] %v6352_v17  ;;  %v6367_v24 = vld [vmem:[#allocation9 + $0x88] sm:$0xff]  ;;  %v6370_v28 = vld [vmem:[#allocation9 + $0x90] sm:$0xff] }
 0x269   :  { %v6299_v19 = vadd.f32 %v884_v3, %v883_v4  ;;  %v872_v20 = vadd.f32 %v4954_v12, %v871_v5  ;;  %9180 = vst [vmem:[#allocation27_spill] sm:$0xff] %v6355_v18  ;;  %v6376_v3 = vld [vmem:[#allocation9 + $0x60] sm:$0xff]  ;;  %v6379_v4 = vld [vmem:[#allocation9 + $0x68] sm:$0xff]  ;;  %v6382_v5 = vld [vmem:[#allocation9 + $0x70] sm:$0xff] }
 0x26a   :  { %9181 = vst [vmem:[#allocation28_spill] sm:$0xff] %v6358_v21  ;;  %v6391_v27 = vld [vmem:[#allocation9 + $0x48] sm:$0xff] }
 0x26b   :  { %4957 = vtanh.f32 %v6299_v19  ;;  %v876_v7 = vsel %vm875_vm2, %v4954_v12, %v872_v20  ;;  %v9175_v12 = vld [vmem:[#allocation22_spill] sm:$0xff]  ;;  %9182 = vst [vmem:[#allocation30_spill] sm:$0xff] %v6361_v22 }
 0x26c   :  { %v881_v9 = vsel %vm878_vm3, %v880_v8, %v876_v7  ;;  %9183 = vst [vmem:[#allocation29_spill] sm:$0xff] %v6364_v23  ;;  %v6385_v20 = vld [vmem:[#allocation9 + $0x78] sm:$0xff]  ;;  %v6394_v7 = vld [vmem:[#allocation9 + $0x50] sm:$0xff] }
 0x26d   :  { %9184 = vst [vmem:[#allocation31_spill] sm:$0xff] %v6367_v24  ;;  %v6397_v8 = vld [vmem:[#allocation9 + $0x58] sm:$0xff] }
 0x26e   :  { %9185 = vst [vmem:[#allocation32_spill] sm:$0xff] %v6370_v28 }
 0x26f   :  { %9186 = vst [vmem:[#allocation34_spill] sm:$0xff] %v6373_v2 }
 0x270   :  { %9187 = vst [vmem:[#allocation33_spill] sm:$0xff] %v6376_v3 }
 0x271   :  { %v4958_v1 = vpop.eup %4957  ;;  %9188 = vst [vmem:[#allocation35_spill] sm:$0xff] %v6379_v4 }
 0x272   :  { %v6302_v10 = vmul.f32 %v4958_v1, %v881_v9  ;;  %9189 = vst [vmem:[#allocation36_spill] sm:$0xff] %v6382_v5  ;;  %v6400_v1 = vld [vmem:[#allocation9 + $0x20] sm:$0xff]  ;;  %v6403_v9 = vld [vmem:[#allocation9 + $0x28] sm:$0xff] }
 0x273   :  { %9190 = vst [vmem:[#allocation37_spill] sm:$0xff] %v6385_v20 }
 0x274   :  { %9171 = vst [vmem:[#allocation23_spill] sm:$0xff] %v6302_v10  ;;  %913 = vmatmul.f32.vlgmr.msra.gmra.mxu0 %v6302_v10  ;;  %933 = vmatmul.f32.vlgmr.msra.gmra.mxu1 %v6302_v10 }
 0x275   :  { %953 = vmatmul.f32.vlgmr.msra.gmra.mxu2 %v6302_v10  ;;  %973 = vmatmul.f32.vlgmr.msra.gmra.mxu3 %v6302_v10  ;;  %9192 = vst [vmem:[#allocation39_spill] sm:$0xff] %v6391_v27  ;;  %v6406_v10 = vld [vmem:[#allocation9 + $0x30] sm:$0xff] }
 0x276   :  { %1209 = vmatpush.msra.mxu0 %v6150_v61  ;;  %1229 = vmatpush.msra.mxu1 %v6153_v39  ;;  %9193 = vst [vmem:[#allocation40_spill] sm:$0xff] %v6394_v7 }
 0x277   :  { %1249 = vmatpush.msra.mxu2 %v6156_v63  ;;  %1269 = vmatpush.msra.mxu3 %v6159_v51  ;;  %9194 = vst [vmem:[#allocation41_spill] sm:$0xff] %v6397_v8 }
 0x278   :  { %1210 = vmatpush.msra.mxu0 %v6162_v30  ;;  %1230 = vmatpush.msra.mxu1 %v6165_v31  ;;  %9195 = vst [vmem:[#allocation42_spill] sm:$0xff] %v6400_v1 }
 0x279   :  { %1250 = vmatpush.msra.mxu2 %v6168_v33  ;;  %1270 = vmatpush.msra.mxu3 %v6171_v34  ;;  %9196 = vst [vmem:[#allocation43_spill] sm:$0xff] %v6403_v9 }
 0x27a   :  { %1211 = vmatpush.msra.mxu0 %v6174_v35  ;;  %1231 = vmatpush.msra.mxu1 %v6177_v36  ;;  %9197 = vst [vmem:[#allocation44_spill] sm:$0xff] %v6406_v10 }
 0x27b   :  { %1251 = vmatpush.msra.mxu2 %v6180_v37  ;;  %1271 = vmatpush.msra.mxu3 %v6183_v38 }
 0x27c   :  { %1212 = vmatpush.msra.mxu0 %v6186_v40  ;;  %1232 = vmatpush.msra.mxu1 %v6189_v41 }
 0x27d   :  { %1252 = vmatpush.msra.mxu2 %v6192_v43  ;;  %1272 = vmatpush.msra.mxu3 %v6195_v44 }
 0x27e   :  { %1213 = vmatpush.msra.mxu0 %v6198_v45  ;;  %1233 = vmatpush.msra.mxu1 %v6201_v47 }
 0x27f   :  { %1253 = vmatpush.msra.mxu2 %v6204_v54  ;;  %1273 = vmatpush.msra.mxu3 %v6207_v58 }
 0x280   :  { %1214 = vmatpush.msra.mxu0 %v6210_v0  ;;  %1234 = vmatpush.msra.mxu1 %v6213_v50 }
 0x281   :  { %1254 = vmatpush.msra.mxu2 %v6216_v55  ;;  %1274 = vmatpush.msra.mxu3 %v6219_v62 }
 0x282   :  { %1215 = vmatpush.msra.mxu0 %v6222_v53  ;;  %1235 = vmatpush.msra.mxu1 %v6225_v49 }
 0x283   :  { %1255 = vmatpush.msra.mxu2 %v6228_v13  ;;  %1275 = vmatpush.msra.mxu3 %v9172_v57 }
 0x284   :  { %1216 = vmatpush.msra.mxu0 %v9173_v25  ;;  %1236 = vmatpush.msra.mxu1 %v9174_v11 }
 0x285   :  { %1256 = vmatpush.msra.mxu2 %v9175_v12  ;;  %1276 = vmatpush.msra.mxu3 %v9176_v14 }
 0x286   :  { %1217 = vmatpush.msra.mxu0 %v6246_v26  ;;  %1237 = vmatpush.msra.mxu1 %v6249_v46 }
 0x287   :  { %1257 = vmatpush.msra.mxu2 %v6252_v56  ;;  %1277 = vmatpush.msra.mxu3 %v6255_v48 }
 0x288   :  { %1218 = vmatpush.msra.mxu0 %v6258_v59  ;;  %1238 = vmatpush.msra.mxu1 %v6261_v60 }
 0x289   :  { %1258 = vmatpush.msra.mxu2 %v6346_v15  ;;  %1278 = vmatpush.msra.mxu3 %v6349_v16 }
 0x28a   :  { %1219 = vmatpush.msra.mxu0 %v6352_v17  ;;  %1239 = vmatpush.msra.mxu1 %v6355_v18 }
 0x28b   :  { %1259 = vmatpush.msra.mxu2 %v6358_v21  ;;  %1279 = vmatpush.msra.mxu3 %v6361_v22 }
 0x28c   :  { %1220 = vmatpush.msra.mxu0 %v6364_v23  ;;  %1240 = vmatpush.msra.mxu1 %v6367_v24 }
 0x28d   :  { %1260 = vmatpush.msra.mxu2 %v6370_v28  ;;  %1280 = vmatpush.msra.mxu3 %v6373_v2  ;;  %v9205_v28 = vld [vmem:[#allocation54_spill] sm:$0xff] }
 0x28e   :  { %1221 = vmatpush.msra.mxu0 %v6376_v3  ;;  %1241 = vmatpush.msra.mxu1 %v6379_v4 }
 0x28f   :  { %1261 = vmatpush.msra.mxu2 %v6382_v5  ;;  %1281 = vmatpush.msra.mxu3 %v6385_v20 }
 0x290   :  { %1222 = vmatpush.msra.mxu0 %v6388_v6  ;;  %1242 = vmatpush.msra.mxu1 %v6391_v27  ;;  %v6409_v27 = vld [vmem:[#allocation9 + $0x38] sm:$0xff] }
 0x291   :  { %1262 = vmatpush.msra.mxu2 %v6394_v7  ;;  %1282 = vmatpush.msra.mxu3 %v6397_v8  ;;  %9198 = vst [vmem:[#allocation46_spill] sm:$0xff] %v6409_v27  ;;  %v6412_v7 = vld [vmem:[#allocation9] sm:$0xff]  ;;  %v6415_v8 = vld [vmem:[#allocation9 + $0x8] sm:$0xff] }
 0x292   :  { %1223 = vmatpush.msra.mxu0 %v6400_v1  ;;  %1243 = vmatpush.msra.mxu1 %v6403_v9  ;;  %9199 = vst [vmem:[#allocation45_spill] sm:$0xff] %v6412_v7  ;;  %v6418_v1 = vld [vmem:[#allocation9 + $0x10] sm:$0xff]  ;;  %v6421_v9 = vld [vmem:[#allocation9 + $0x18] sm:$0xff] }
 0x293   :  { %1263 = vmatpush.msra.mxu2 %v6406_v10  ;;  %1283 = vmatpush.msra.mxu3 %v6409_v27  ;;  %9200 = vst [vmem:[#allocation47_spill] sm:$0xff] %v6415_v8  ;;  %v9203_v10 = vld [vmem:[#allocation51_spill] sm:$0xff]  ;;  %v9204_v27 = vld [vmem:[#allocation52_spill] sm:$0xff] }
 0x294   :  { %1224 = vmatpush.msra.mxu0 %v6412_v7  ;;  %1244 = vmatpush.msra.mxu1 %v6415_v8  ;;  %9201 = vst [vmem:[#allocation48_spill] sm:$0xff] %v6418_v1  ;;  %v254_v6 = vadd.f32 %v9203_v10, %v9153_v29  ;;  %v295_v20 = vadd.f32 %v9204_v27, %v9155_v32 }
 0x295   :  { %1264 = vmatpush.msra.mxu2 %v6418_v1  ;;  %9202 = vst [vmem:[#allocation50_spill] sm:$0xff] %v6421_v9  ;;  %1284 = vmatpush.msra.mxu3 %v6421_v9  ;;  %v377_v1 = vadd.f32 %v9205_v28, %v9157_v42 }
 0x2f1   :  { %v914_v5 = vpop.f32.mrf.mxu0  ;;  %v934_v7 = vpop.f32.mrf.mxu1 }
 0x2f2   :  { %v977_v4 = vadd.f32 %v914_v5, %v254_v6  ;;  %v978_v3 = vadd.f32 %v934_v7, %v295_v20 }
 0x2f4   :  { %v4836_v2 = vmul.f32 -1.442695, %v977_v4  ;;  %v4837_v8 = vmul.f32 -1.442695, %v978_v3  ;;  %v9206_v4 = vld [vmem:[#allocation53_spill] sm:$0xff] }
 0x2f5   :  { %v336_v3 = vadd.f32 %v9206_v4, %v9159_v52 }
 0x2f6   :  { %4959 = vpow2.f32 %v4836_v2 }
 0x2f7   :  { %4961 = vpow2.f32 %v4837_v8 }
 0x2f8   :  { %v974_v24 = vpop.f32.mrf.mxu3  ;;  %v954_v27 = vpop.f32.mrf.mxu2 }
 0x2f9   :  { %v980_v23 = vadd.f32 %v974_v24, %v377_v1  ;;  %v979_v6 = vadd.f32 %v954_v27, %v336_v3 }
 0x2fb   :  { %v4838_v9 = vmul.f32 -1.442695, %v980_v23 }
 0x2fc   :  { %v4960_v22 = vpop.eup %4959 }
 0x2fd   :  { %v4962_v21 = vpop.eup %4961  ;;  %v984_v10 = vadd.f32 1.0, %v4960_v22  ;;  %4963 = vpow2.f32 %v4838_v9 }
 0x2fe   :  { %v1003_v29 = vadd.f32 1.0, %v4962_v21 }
 0x2ff   :  { %4965 = vrcp.f32 %v984_v10  ;;  %v996_v1 = vand.u32 2147483648, %v984_v10  ;;  %v994_v9 = vand.u32 2147483647, %v984_v10  ;;  %vm990_vm6 = vweird.f32 %v984_v10 }
 0x300   :  { %4967 = vrcp.f32 %v1003_v29  ;;  %v1015_v22 = vand.u32 2147483648, %v1003_v29  ;;  %v1013_v32 = vand.u32 2147483647, %v1003_v29  ;;  %vm1009_vm7 = vweird.f32 %v1003_v29 }
 0x301   :  { %v997_v27 = vor.u32 1.1754944e-38, %v996_v1  ;;  %vm995_vm10 = vcmp.eq.f32.partialorder %v994_v9, 8.507059e+37 }
 0x302   :  { %vm1014_vm11 = vcmp.eq.f32.partialorder %v1013_v32, 8.507059e+37 }
 0x303   :  { %v4964_v5 = vpop.eup %4963 }
 0x304   :  { %v1023_v2 = vadd.f32 1.0, %v4964_v5 }
 0x305   :  { %v4966_v20 = vpop.eup %4965 }
 0x306   :  { %v4968_v28 = vpop.eup %4967  ;;  %v986_v7 = vmul.f32 %v4966_v20, %v984_v10  ;;  %4969 = vrcp.f32 %v1023_v2  ;;  %vm991_vm4 = vweird.f32 %v4966_v20  ;;  %vm1029_vm13 = vweird.f32 %v1023_v2 }
 0x307   :  { %v1005_v24 = vmul.f32 %v4968_v28, %v1003_v29  ;;  %4971 = vtanh.f32 %v979_v6  ;;  %vm1010_vm5 = vweird.f32 %v4968_v28  ;;  %vm992_vm8 = vmor %vm990_vm6, %vm991_vm4 }
 0x308   :  { %v987_v23 = vsub.f32 1.0, %v986_v7  ;;  %vm1011_vm9 = vmor %vm1009_vm7, %vm1010_vm5  ;;  %v1016_v7 = vor.u32 1.1754944e-38, %v1015_v22 }
 0x309   :  { %v1006_v8 = vsub.f32 1.0, %v1005_v24 }
 0x30a   :  { %v988_v21 = vmul.f32 %v4966_v20, %v987_v23 }
 0x30b   :  { %v1007_v42 = vmul.f32 %v4968_v28, %v1006_v8 }
 0x30c   :  { %v4970_v18 = vpop.eup %4969  ;;  %v989_v4 = vadd.f32 %v4966_v20, %v988_v21 }
 0x30d   :  { %v1008_v5 = vadd.f32 %v4968_v28, %v1007_v42  ;;  %v1025_v3 = vmul.f32 %v4970_v18, %v1023_v2  ;;  %v4972_v6 = vpop.eup %4971  ;;  %vm1030_vm12 = vweird.f32 %v4970_v18  ;;  %v1035_v42 = vand.u32 2147483648, %v1023_v2 }
 0x30e   :  { %v993_v24 = vsel %vm992_vm8, %v4966_v20, %v989_v4  ;;  %v1033_v20 = vand.u32 2147483647, %v1023_v2  ;;  %vm1031_vm14 = vmor %vm1029_vm13, %vm1030_vm12  ;;  %v9214_v2 = vld [vmem:[#allocation29_spill] sm:$0xff]  ;;  %v9215_v4 = vld [vmem:[#allocation31_spill] sm:$0xff] }
 0x30f   :  { %v998_v52 = vsel %vm995_vm10, %v997_v27, %v993_v24  ;;  %v1012_v23 = vsel %vm1011_vm9, %v4968_v28, %v1008_v5  ;;  %v1026_v17 = vsub.f32 1.0, %v1025_v3  ;;  %v1036_v22 = vor.u32 1.1754944e-38, %v1035_v42  ;;  %v9216_v27 = vld [vmem:[#allocation32_spill] sm:$0xff]  ;;  %v9217_v5 = vld [vmem:[#allocation34_spill] sm:$0xff]  ;;  %v9218_v3 = vld [vmem:[#allocation33_spill] sm:$0xff] }
 0x310   :  { %v1017_v8 = vsel %vm1014_vm11, %v1016_v7, %v1012_v23  ;;  %v1040_v16 = vmul.f32 %v4972_v6, %v998_v52  ;;  %vm1034_vm15 = vcmp.eq.f32.partialorder %v1033_v20, 8.507059e+37  ;;  %v9208_v52 = vld [vmem:[#allocation24_spill] sm:$0xff]  ;;  %v9219_v7 = vld [vmem:[#allocation35_spill] sm:$0xff]  ;;  %v9221_v6 = vld [vmem:[#allocation37_spill] sm:$0xff] }
 0x311   :  { %v1039_v15 = vmul.f32 %v1017_v8, %v6299_v19  ;;  %v1027_v21 = vmul.f32 %v4970_v18, %v1026_v17  ;;  %v9209_v19 = vld [vmem:[#allocation26_spill] sm:$0xff]  ;;  %v9212_v17 = vld [vmem:[#allocation28_spill] sm:$0xff]  ;;  %v9223_v8 = vld [vmem:[#allocation39_spill] sm:$0xff] }
 0x312   :  { %v9220_v24 = vld [vmem:[#allocation36_spill] sm:$0xff]  ;;  %v9222_v23 = vld [vmem:[#allocation38_spill] sm:$0xff]  ;;  %v9227_v20 = vld [vmem:[#allocation43_spill] sm:$0xff] }
 0x313   :  { %v6433_v10 = vadd.f32 %v1040_v16, %v1039_v15  ;;  %v1028_v29 = vadd.f32 %v4970_v18, %v1027_v21  ;;  %v9210_v15 = vld [vmem:[#allocation25_spill] sm:$0xff]  ;;  %v9211_v16 = vld [vmem:[#allocation27_spill] sm:$0xff]  ;;  %v9224_v21 = vld [vmem:[#allocation40_spill] sm:$0xff] }
 0x314   :  { %v9226_v42 = vld [vmem:[#allocation42_spill] sm:$0xff] }
 0x315   :  { %4973 = vtanh.f32 %v6433_v10  ;;  %v1032_v1 = vsel %vm1031_vm14, %v4970_v18, %v1028_v29  ;;  %v9213_v18 = vld [vmem:[#allocation30_spill] sm:$0xff]  ;;  %v9225_v29 = vld [vmem:[#allocation41_spill] sm:$0xff] }
 0x316   :  { %v1037_v28 = vsel %vm1034_vm15, %v1036_v22, %v1032_v1  ;;  %v9228_v1 = vld [vmem:[#allocation44_spill] sm:$0xff]  ;;  %v9229_v22 = vld [vmem:[#allocation46_spill] sm:$0xff] }
 0x31b   :  { %v4974_v32 = vpop.eup %4973 }
 0x31c   :  { %v6436_v9 = vmul.f32 %v4974_v32, %v1037_v28  ;;  %v9230_v32 = vld [vmem:[#allocation45_spill] sm:$0xff]  ;;  %v9231_v28 = vld [vmem:[#allocation47_spill] sm:$0xff] }
 0x31e   :  { %9207 = vst [vmem:[#allocation49_spill] sm:$0xff] %v6436_v9  ;;  %1069 = vmatmul.f32.vlgmr.msrb.gmra.mxu0 %v6436_v9  ;;  %1089 = vmatmul.f32.vlgmr.msrb.gmra.mxu1 %v6436_v9 }
 0x31f   :  { %1109 = vmatmul.f32.vlgmr.msrb.gmra.mxu2 %v6436_v9  ;;  %1129 = vmatmul.f32.vlgmr.msrb.gmra.mxu3 %v6436_v9  ;;  %v9232_v9 = vld [vmem:[#allocation48_spill] sm:$0xff] }
 0x320   :  { %1365 = vmatpush.msrb.mxu0 %v6150_v61  ;;  %1385 = vmatpush.msrb.mxu1 %v6153_v39 }
 0x321   :  { %1405 = vmatpush.msrb.mxu2 %v6156_v63  ;;  %1425 = vmatpush.msrb.mxu3 %v6159_v51 }
 0x322   :  { %1366 = vmatpush.msrb.mxu0 %v6162_v30  ;;  %1386 = vmatpush.msrb.mxu1 %v6165_v31 }
 0x323   :  { %1406 = vmatpush.msrb.mxu2 %v6168_v33  ;;  %1426 = vmatpush.msrb.mxu3 %v6171_v34 }
 0x324   :  { %1367 = vmatpush.msrb.mxu0 %v6174_v35  ;;  %1387 = vmatpush.msrb.mxu1 %v6177_v36 }
 0x325   :  { %1407 = vmatpush.msrb.mxu2 %v6180_v37  ;;  %1427 = vmatpush.msrb.mxu3 %v6183_v38 }
 0x326   :  { %1368 = vmatpush.msrb.mxu0 %v6186_v40  ;;  %1388 = vmatpush.msrb.mxu1 %v6189_v41 }
 0x327   :  { %1408 = vmatpush.msrb.mxu2 %v6192_v43  ;;  %1428 = vmatpush.msrb.mxu3 %v6195_v44 }
 0x328   :  { %1369 = vmatpush.msrb.mxu0 %v6198_v45  ;;  %1389 = vmatpush.msrb.mxu1 %v6201_v47 }
 0x329   :  { %1409 = vmatpush.msrb.mxu2 %v6204_v54  ;;  %1429 = vmatpush.msrb.mxu3 %v6207_v58 }
 0x32a   :  { %1370 = vmatpush.msrb.mxu0 %v6210_v0  ;;  %1390 = vmatpush.msrb.mxu1 %v6213_v50 }
 0x32b   :  { %1410 = vmatpush.msrb.mxu2 %v6216_v55  ;;  %1430 = vmatpush.msrb.mxu3 %v6219_v62 }
 0x32c   :  { %1371 = vmatpush.msrb.mxu0 %v6222_v53  ;;  %1391 = vmatpush.msrb.mxu1 %v6225_v49 }
 0x32d   :  { %1411 = vmatpush.msrb.mxu2 %v6228_v13  ;;  %1431 = vmatpush.msrb.mxu3 %v9172_v57 }
 0x32e   :  { %1372 = vmatpush.msrb.mxu0 %v9173_v25  ;;  %1392 = vmatpush.msrb.mxu1 %v9174_v11 }
 0x32f   :  { %1412 = vmatpush.msrb.mxu2 %v9175_v12  ;;  %1432 = vmatpush.msrb.mxu3 %v9176_v14 }
 0x330   :  { %1373 = vmatpush.msrb.mxu0 %v6246_v26  ;;  %1393 = vmatpush.msrb.mxu1 %v6249_v46 }
 0x331   :  { %1413 = vmatpush.msrb.mxu2 %v6252_v56  ;;  %1433 = vmatpush.msrb.mxu3 %v6255_v48 }
 0x332   :  { %1374 = vmatpush.msrb.mxu0 %v6258_v59  ;;  %1394 = vmatpush.msrb.mxu1 %v6261_v60 }
 0x333   :  { %1414 = vmatpush.msrb.mxu2 %v9208_v52  ;;  %1434 = vmatpush.msrb.mxu3 %v9209_v19 }
 0x334   :  { %1375 = vmatpush.msrb.mxu0 %v9210_v15  ;;  %1395 = vmatpush.msrb.mxu1 %v9211_v16 }
 0x335   :  { %1415 = vmatpush.msrb.mxu2 %v9212_v17  ;;  %1435 = vmatpush.msrb.mxu3 %v9213_v18 }
 0x336   :  { %1376 = vmatpush.msrb.mxu0 %v9214_v2  ;;  %1396 = vmatpush.msrb.mxu1 %v9215_v4 }
 0x337   :  { %1416 = vmatpush.msrb.mxu2 %v9216_v27  ;;  %1436 = vmatpush.msrb.mxu3 %v9217_v5  ;;  %v9239_v27 = vld [vmem:[#allocation57_spill] sm:$0xff] }
 0x338   :  { %1377 = vmatpush.msrb.mxu0 %v9218_v3  ;;  %1397 = vmatpush.msrb.mxu1 %v9219_v7 }
 0x339   :  { %1417 = vmatpush.msrb.mxu2 %v9220_v24  ;;  %1437 = vmatpush.msrb.mxu3 %v9221_v6  ;;  %v9237_v24 = vld [vmem:[#allocation56_spill] sm:$0xff] }
 0x33a   :  { %1378 = vmatpush.msrb.mxu0 %v9222_v23  ;;  %1398 = vmatpush.msrb.mxu1 %v9223_v8  ;;  %v9233_v23 = vld [vmem:[#allocation50_spill] sm:$0xff]  ;;  %v9234_v8 = vld [vmem:[#allocation68_spill] sm:$0xff] }
 0x33b   :  { %1418 = vmatpush.msrb.mxu2 %v9224_v21  ;;  %1438 = vmatpush.msrb.mxu3 %v9225_v29  ;;  %v9235_v21 = vld [vmem:[#allocation55_spill] sm:$0xff]  ;;  %v9236_v29 = vld [vmem:[#allocation69_spill] sm:$0xff] }
 0x33c   :  { %1379 = vmatpush.msrb.mxu0 %v9226_v42  ;;  %1399 = vmatpush.msrb.mxu1 %v9227_v20  ;;  %v257_v6 = vadd.f32 %v9235_v21, %v9234_v8  ;;  %v298_v42 = vadd.f32 %v9237_v24, %v9236_v29 }
 0x33d   :  { %1419 = vmatpush.msrb.mxu2 %v9228_v1  ;;  %1439 = vmatpush.msrb.mxu3 %v9229_v22 }
 0x33e   :  { %1380 = vmatpush.msrb.mxu0 %v9230_v32  ;;  %1400 = vmatpush.msrb.mxu1 %v9231_v28  ;;  %v9238_v32 = vld [vmem:[#allocation72_spill] sm:$0xff] }
 0x33f   :  { %1420 = vmatpush.msrb.mxu2 %v9232_v9  ;;  %1440 = vmatpush.msrb.mxu3 %v9233_v23  ;;  %v380_v28 = vadd.f32 %v9239_v27, %v9238_v32 }
 0x39b   :  { %v1070_v7 = vpop.f32.mrf.mxu0  ;;  %v1090_v20 = vpop.f32.mrf.mxu1 }
 0x39c   :  { %v1133_v3 = vadd.f32 %v1070_v7, %v257_v6  ;;  %v1134_v1 = vadd.f32 %v1090_v20, %v298_v42  ;;  %v9240_v6 = vld [vmem:[#allocation74_spill] sm:$0xff] }
 0x39e   :  { %v4839_v5 = vmul.f32 -1.442695, %v1133_v3  ;;  %v4840_v22 = vmul.f32 -1.442695, %v1134_v1  ;;  %v9241_v3 = vld [vmem:[#allocation60_spill] sm:$0xff] }
 0x39f   :  { %v339_v42 = vadd.f32 %v9241_v3, %v9240_v6 }
 0x3a0   :  { %4975 = vpow2.f32 %v4839_v5 }
 0x3a1   :  { %4977 = vpow2.f32 %v4840_v22 }
 0x3a2   :  { %v1130_v9 = vpop.f32.mrf.mxu3  ;;  %v1110_v24 = vpop.f32.mrf.mxu2 }
 0x3a3   :  { %v1136_v4 = vadd.f32 %v1130_v9, %v380_v28  ;;  %v1135_v1 = vadd.f32 %v1110_v24, %v339_v42 }
 0x3a5   :  { %v4841_v23 = vmul.f32 -1.442695, %v1136_v4 }
 0x3a6   :  { %v4976_v2 = vpop.eup %4975 }
 0x3a7   :  { %v4978_v18 = vpop.eup %4977  ;;  %v1140_v21 = vadd.f32 1.0, %v4976_v2  ;;  %4979 = vpow2.f32 %v4841_v23 }
 0x3a8   :  { %v1159_v8 = vadd.f32 1.0, %v4978_v18 }
 0x3a9   :  { %4981 = vrcp.f32 %v1140_v21  ;;  %v1152_v32 = vand.u32 2147483648, %v1140_v21  ;;  %v1150_v23 = vand.u32 2147483647, %v1140_v21  ;;  %vm1146_vm2 = vweird.f32 %v1140_v21 }
 0x3aa   :  { %4983 = vrcp.f32 %v1159_v8  ;;  %v1171_v2 = vand.u32 2147483648, %v1159_v8  ;;  %v1169_v17 = vand.u32 2147483647, %v1159_v8  ;;  %vm1165_vm3 = vweird.f32 %v1159_v8 }
 0x3ab   :  { %v1153_v24 = vor.u32 1.1754944e-38, %v1152_v32  ;;  %vm1151_vm6 = vcmp.eq.f32.partialorder %v1150_v23, 8.507059e+37 }
 0x3ac   :  { %vm1170_vm7 = vcmp.eq.f32.partialorder %v1169_v17, 8.507059e+37 }
 0x3ad   :  { %v4980_v7 = vpop.eup %4979 }
 0x3ae   :  { %v1179_v5 = vadd.f32 1.0, %v4980_v7 }
 0x3af   :  { %v4982_v20 = vpop.eup %4981 }
 0x3b0   :  { %v4984_v27 = vpop.eup %4983  ;;  %v1142_v22 = vmul.f32 %v4982_v20, %v1140_v21  ;;  %4985 = vrcp.f32 %v1179_v5  ;;  %vm1147_vm0 = vweird.f32 %v4982_v20  ;;  %vm1185_vm9 = vweird.f32 %v1179_v5 }
 0x3b1   :  { %v1161_v9 = vmul.f32 %v4984_v27, %v1159_v8  ;;  %4987 = vtanh.f32 %v1135_v1  ;;  %vm1166_vm1 = vweird.f32 %v4984_v27  ;;  %vm1148_vm4 = vmor %vm1146_vm2, %vm1147_vm0  ;;  %v1189_v32 = vand.u32 2147483647, %v1179_v5 }
 0x3b2   :  { %v1143_v4 = vsub.f32 1.0, %v1142_v22  ;;  %vm1167_vm5 = vmor %vm1165_vm3, %vm1166_vm1  ;;  %v1172_v22 = vor.u32 1.1754944e-38, %v1171_v2 }
 0x3b3   :  { %v1162_v28 = vsub.f32 1.0, %v1161_v9  ;;  %vm1190_vm11 = vcmp.eq.f32.partialorder %v1189_v32, 8.507059e+37 }
 0x3b4   :  { %v1144_v18 = vmul.f32 %v4982_v20, %v1143_v4 }
 0x3b5   :  { %v1163_v29 = vmul.f32 %v4984_v27, %v1162_v28 }
 0x3b6   :  { %v4986_v16 = vpop.eup %4985  ;;  %v1145_v3 = vadd.f32 %v4982_v20, %v1144_v18 }
 0x3b7   :  { %v1164_v7 = vadd.f32 %v4984_v27, %v1163_v29  ;;  %v1181_v42 = vmul.f32 %v4986_v16, %v1179_v5  ;;  %v4988_v1 = vpop.eup %4987  ;;  %vm1186_vm8 = vweird.f32 %v4986_v16  ;;  %v1191_v29 = vand.u32 2147483648, %v1179_v5 }
 0x3b8   :  { %v1149_v9 = vsel %vm1148_vm4, %v4982_v20, %v1145_v3  ;;  %vm1187_vm10 = vmor %vm1185_vm9, %vm1186_vm8 }
 0x3b9   :  { %v1154_v6 = vsel %vm1151_vm6, %v1153_v24, %v1149_v9  ;;  %v1168_v4 = vsel %vm1167_vm5, %v4984_v27, %v1164_v7  ;;  %v1182_v15 = vsub.f32 1.0, %v1181_v42  ;;  %v1192_v2 = vor.u32 1.1754944e-38, %v1191_v29  ;;  %v9274_v9 = vld [vmem:[#allocation74_spill] sm:$0xff] }
 0x3ba   :  { %v1173_v28 = vsel %vm1170_vm7, %v1172_v22, %v1168_v4  ;;  %v1196_v19 = vmul.f32 %v4988_v1, %v1154_v6  ;;  %v9275_v1 = vld [vmem:[#allocation64_spill] sm:$0xff] }
 0x3bb   :  { %v1195_v52 = vmul.f32 %v1173_v28, %v6433_v10  ;;  %v1183_v18 = vmul.f32 %v4986_v16, %v1182_v15  ;;  %v9272_v10 = vld [vmem:[#allocation72_spill] sm:$0xff]  ;;  %v342_v4 = vadd.f32 %v9275_v1, %v9274_v9  ;;  %v9276_v1 = vld [vmem:[#allocation62_spill] sm:$0xff] }
 0x3bd   :  { %v6515_v21 = vadd.f32 %v1196_v19, %v1195_v52  ;;  %v1184_v8 = vadd.f32 %v4986_v16, %v1183_v18  ;;  %v9273_v52 = vld [vmem:[#allocation61_spill] sm:$0xff] }
 0x3be   :  { %v383_v19 = vadd.f32 %v9273_v52, %v9272_v10  ;;  %v1723_v52 = vld [vmem:[#allocation7 + $0x3a0] sm:$0xff] }
 0x3bf   :  { %4989 = vtanh.f32 %v6515_v21  ;;  %v1188_v20 = vsel %vm1187_vm10, %v4986_v16, %v1184_v8 }
 0x3c0   :  { %v1193_v27 = vsel %vm1190_vm11, %v1192_v2, %v1188_v20 }
 0x3c5   :  { %v4990_v17 = vpop.eup %4989 }
 0x3c6   :  { %v6518_v23 = vmul.f32 %v4990_v17, %v1193_v27 }
 0x3c8   :  { %1225 = vmatmul.f32.vlgmr.msra.gmra.mxu0 %v6518_v23  ;;  %1245 = vmatmul.f32.vlgmr.msra.gmra.mxu1 %v6518_v23 }
 0x3c9   :  { %1265 = vmatmul.f32.vlgmr.msra.gmra.mxu2 %v6518_v23  ;;  %1285 = vmatmul.f32.vlgmr.msra.gmra.mxu3 %v6518_v23 }
 0x3ca   :  { %1521 = vmatpush.msra.mxu0 %v6150_v61  ;;  %1541 = vmatpush.msra.mxu1 %v6153_v39  ;;  %v9242_v61 = vld [vmem:[#allocation24_spill] sm:$0xff]  ;;  %v9243_v39 = vld [vmem:[#allocation26_spill] sm:$0xff] }
 0x3cb   :  { %1561 = vmatpush.msra.mxu2 %v6156_v63  ;;  %1581 = vmatpush.msra.mxu3 %v6159_v51  ;;  %v9244_v63 = vld [vmem:[#allocation25_spill] sm:$0xff]  ;;  %v9245_v51 = vld [vmem:[#allocation27_spill] sm:$0xff] }
 0x3cc   :  { %1522 = vmatpush.msra.mxu0 %v6162_v30  ;;  %1542 = vmatpush.msra.mxu1 %v6165_v31  ;;  %v9246_v30 = vld [vmem:[#allocation28_spill] sm:$0xff]  ;;  %v9248_v31 = vld [vmem:[#allocation29_spill] sm:$0xff] }
 0x3cd   :  { %1562 = vmatpush.msra.mxu2 %v6168_v33  ;;  %1582 = vmatpush.msra.mxu3 %v6171_v34  ;;  %v9249_v33 = vld [vmem:[#allocation31_spill] sm:$0xff]  ;;  %v9250_v34 = vld [vmem:[#allocation32_spill] sm:$0xff] }
 0x3ce   :  { %1523 = vmatpush.msra.mxu0 %v6174_v35  ;;  %1543 = vmatpush.msra.mxu1 %v6177_v36  ;;  %v9251_v35 = vld [vmem:[#allocation34_spill] sm:$0xff]  ;;  %v9253_v36 = vld [vmem:[#allocation35_spill] sm:$0xff] }
 0x3cf   :  { %1563 = vmatpush.msra.mxu2 %v6180_v37  ;;  %1583 = vmatpush.msra.mxu3 %v6183_v38  ;;  %v9254_v37 = vld [vmem:[#allocation36_spill] sm:$0xff]  ;;  %v9255_v38 = vld [vmem:[#allocation37_spill] sm:$0xff] }
 0x3d0   :  { %1524 = vmatpush.msra.mxu0 %v6186_v40  ;;  %1544 = vmatpush.msra.mxu1 %v6189_v41  ;;  %v9256_v40 = vld [vmem:[#allocation38_spill] sm:$0xff]  ;;  %v9257_v41 = vld [vmem:[#allocation39_spill] sm:$0xff] }
 0x3d1   :  { %1564 = vmatpush.msra.mxu2 %v6192_v43  ;;  %1584 = vmatpush.msra.mxu3 %v6195_v44  ;;  %v9258_v43 = vld [vmem:[#allocation40_spill] sm:$0xff]  ;;  %v9259_v44 = vld [vmem:[#allocation41_spill] sm:$0xff] }
 0x3d2   :  { %1525 = vmatpush.msra.mxu0 %v6198_v45  ;;  %1545 = vmatpush.msra.mxu1 %v6201_v47  ;;  %v9260_v45 = vld [vmem:[#allocation42_spill] sm:$0xff]  ;;  %v9261_v47 = vld [vmem:[#allocation43_spill] sm:$0xff] }
 0x3d3   :  { %1565 = vmatpush.msra.mxu2 %v6204_v54  ;;  %1585 = vmatpush.msra.mxu3 %v6207_v58  ;;  %v9262_v54 = vld [vmem:[#allocation44_spill] sm:$0xff]  ;;  %v9263_v58 = vld [vmem:[#allocation46_spill] sm:$0xff] }
 0x3d4   :  { %1526 = vmatpush.msra.mxu0 %v6210_v0  ;;  %1546 = vmatpush.msra.mxu1 %v6213_v50  ;;  %v9264_v0 = vld [vmem:[#allocation45_spill] sm:$0xff]  ;;  %v9265_v50 = vld [vmem:[#allocation47_spill] sm:$0xff] }
 0x3d5   :  { %1566 = vmatpush.msra.mxu2 %v6216_v55  ;;  %1586 = vmatpush.msra.mxu3 %v6219_v62  ;;  %v9266_v55 = vld [vmem:[#allocation48_spill] sm:$0xff]  ;;  %v9267_v62 = vld [vmem:[#allocation50_spill] sm:$0xff] }
 0x3d6   :  { %1527 = vmatpush.msra.mxu0 %v6222_v53  ;;  %1547 = vmatpush.msra.mxu1 %v6225_v49  ;;  %v9268_v53 = vld [vmem:[#allocation68_spill] sm:$0xff]  ;;  %v9269_v49 = vld [vmem:[#allocation58_spill] sm:$0xff] }
 0x3d7   :  { %1567 = vmatpush.msra.mxu2 %v6228_v13  ;;  %1587 = vmatpush.msra.mxu3 %v9172_v57  ;;  %v260_v13 = vadd.f32 %v9269_v49, %v9268_v53 }
 0x3d8   :  { %1528 = vmatpush.msra.mxu0 %v9173_v25  ;;  %1548 = vmatpush.msra.mxu1 %v9174_v11 }
 0x3d9   :  { %1568 = vmatpush.msra.mxu2 %v9175_v12  ;;  %1588 = vmatpush.msra.mxu3 %v9176_v14 }
 0x3da   :  { %1529 = vmatpush.msra.mxu0 %v6246_v26  ;;  %1549 = vmatpush.msra.mxu1 %v6249_v46  ;;  %v9247_v26 = vld [vmem:[#allocation30_spill] sm:$0xff]  ;;  %v9270_v46 = vld [vmem:[#allocation69_spill] sm:$0xff] }
 0x3db   :  { %1569 = vmatpush.msra.mxu2 %v6252_v56  ;;  %1589 = vmatpush.msra.mxu3 %v6255_v48  ;;  %v9271_v56 = vld [vmem:[#allocation59_spill] sm:$0xff] }
 0x3dc   :  { %1530 = vmatpush.msra.mxu0 %v6258_v59  ;;  %1550 = vmatpush.msra.mxu1 %v6261_v60  ;;  %v9252_v60 = vld [vmem:[#allocation33_spill] sm:$0xff]  ;;  %v301_v48 = vadd.f32 %v9271_v56, %v9270_v46 }
 0x3dd   :  { %1570 = vmatpush.msra.mxu2 %v9242_v61  ;;  %1590 = vmatpush.msra.mxu3 %v9243_v39 }
 0x3de   :  { %1531 = vmatpush.msra.mxu0 %v9244_v63  ;;  %1551 = vmatpush.msra.mxu1 %v9245_v51 }
 0x3df   :  { %1571 = vmatpush.msra.mxu2 %v9246_v30  ;;  %1591 = vmatpush.msra.mxu3 %v9247_v26 }
 0x3e0   :  { %1532 = vmatpush.msra.mxu0 %v9248_v31  ;;  %1552 = vmatpush.msra.mxu1 %v9249_v33 }
 0x3e1   :  { %1572 = vmatpush.msra.mxu2 %v9250_v34  ;;  %1592 = vmatpush.msra.mxu3 %v9251_v35 }
 0x3e2   :  { %1533 = vmatpush.msra.mxu0 %v9252_v60  ;;  %1553 = vmatpush.msra.mxu1 %v9253_v36 }
 0x3e3   :  { %1573 = vmatpush.msra.mxu2 %v9254_v37  ;;  %1593 = vmatpush.msra.mxu3 %v9255_v38 }
 0x3e4   :  { %1534 = vmatpush.msra.mxu0 %v9256_v40  ;;  %1554 = vmatpush.msra.mxu1 %v9257_v41 }
 0x3e5   :  { %1574 = vmatpush.msra.mxu2 %v9258_v43  ;;  %1594 = vmatpush.msra.mxu3 %v9259_v44 }
 0x3e6   :  { %1535 = vmatpush.msra.mxu0 %v9260_v45  ;;  %1555 = vmatpush.msra.mxu1 %v9261_v47 }
 0x3e7   :  { %1575 = vmatpush.msra.mxu2 %v9262_v54  ;;  %1595 = vmatpush.msra.mxu3 %v9263_v58 }
 0x3e8   :  { %1536 = vmatpush.msra.mxu0 %v9264_v0  ;;  %1556 = vmatpush.msra.mxu1 %v9265_v50 }
 0x3e9   :  { %1576 = vmatpush.msra.mxu2 %v9266_v55  ;;  %1596 = vmatpush.msra.mxu3 %v9267_v62 }
 0x445   :  { %v1226_v59 = vpop.f32.mrf.mxu0  ;;  %v1246_v57 = vpop.f32.mrf.mxu1 }
 0x446   :  { %v1289_v25 = vadd.f32 %v1226_v59, %v260_v13  ;;  %v1290_v11 = vadd.f32 %v1246_v57, %v301_v48  ;;  %v1732_v48 = vld [vmem:[#allocation7 + $0x3e8] sm:$0xff]  ;;  %v1733_v59 = vld [vmem:[#allocation7 + $0x3f0] sm:$0xff]  ;;  %v1734_v57 = vld [vmem:[#allocation7 + $0x3f8] sm:$0xff] }
 0x448   :  { %v4842_v12 = vmul.f32 -1.442695, %v1289_v25  ;;  %v4843_v14 = vmul.f32 -1.442695, %v1290_v11  ;;  %v1727_v25 = vld [vmem:[#allocation7 + $0x3c0] sm:$0xff]  ;;  %v1728_v11 = vld [vmem:[#allocation7 + $0x3c8] sm:$0xff] }
 0x44a   :  { %4991 = vpow2.f32 %v4842_v12  ;;  %v1729_v12 = vld [vmem:[#allocation7 + $0x3d0] sm:$0xff] }
 0x44b   :  { %4993 = vpow2.f32 %v4843_v14  ;;  %v1730_v14 = vld [vmem:[#allocation7 + $0x3d8] sm:$0xff] }
 0x44c   :  { %v1286_v15 = vpop.f32.mrf.mxu3  ;;  %v1266_v42 = vpop.f32.mrf.mxu2 }
 0x44d   :  { %v1292_v16 = vadd.f32 %v1286_v15, %v383_v19  ;;  %v1291_v8 = vadd.f32 %v1266_v42, %v342_v4  ;;  %v1724_v19 = vld [vmem:[#allocation7 + $0x3a8] sm:$0xff]  ;;  %v1725_v15 = vld [vmem:[#allocation7 + $0x3b0] sm:$0xff]  ;;  %v263_v4 = vadd.f32 %v9276_v1, %v9268_v53 }
 0x44e   :  { %v1716_v42 = vld [vmem:[#allocation7 + $0x368] sm:$0xff] }
 0x44f   :  { %v4844_v6 = vmul.f32 -1.442695, %v1292_v16  ;;  %v1726_v16 = vld [vmem:[#allocation7 + $0x3b8] sm:$0xff] }
 0x450   :  { %v4992_v5 = vpop.eup %4991 }
 0x451   :  { %v4994_v3 = vpop.eup %4993  ;;  %v1296_v24 = vadd.f32 1.0, %v4992_v5  ;;  %4995 = vpow2.f32 %v4844_v6  ;;  %v1719_v6 = vld [vmem:[#allocation7 + $0x380] sm:$0xff]  ;;  %v1720_v5 = vld [vmem:[#allocation7 + $0x388] sm:$0xff] }
 0x452   :  { %v1315_v7 = vadd.f32 1.0, %v4994_v3  ;;  %v1721_v3 = vld [vmem:[#allocation7 + $0x390] sm:$0xff] }
 0x453   :  { %4997 = vrcp.f32 %v1296_v24  ;;  %v1308_v27 = vand.u32 2147483648, %v1296_v24  ;;  %v1306_v63 = vand.u32 2147483647, %v1296_v24  ;;  %vm1302_vm14 = vweird.f32 %v1296_v24 }
 0x454   :  { %4999 = vrcp.f32 %v1315_v7  ;;  %v1327_v61 = vand.u32 2147483648, %v1315_v7  ;;  %v1325_v30 = vand.u32 2147483647, %v1315_v7  ;;  %vm1321_vm15 = vweird.f32 %v1315_v7 }
 0x455   :  { %v1309_v33 = vor.u32 1.1754944e-38, %v1308_v27  ;;  %vm1307_vm2 = vcmp.eq.f32.partialorder %v1306_v63, 8.507059e+37  ;;  %v1707_v63 = vld [vmem:[#allocation7 + $0x320] sm:$0xff] }
 0x456   :  { %v1328_v60 = vor.u32 1.1754944e-38, %v1327_v61  ;;  %vm1326_vm3 = vcmp.eq.f32.partialorder %v1325_v30, 8.507059e+37  ;;  %v1709_v30 = vld [vmem:[#allocation7 + $0x330] sm:$0xff] }
 0x457   :  { %v4996_v22 = vpop.eup %4995 }
 0x458   :  { %v1335_v28 = vadd.f32 1.0, %v4996_v22  ;;  %v1717_v22 = vld [vmem:[#allocation7 + $0x370] sm:$0xff] }
 0x459   :  { %v4998_v18 = vpop.eup %4997 }
 0x45a   :  { %v5000_v29 = vpop.eup %4999  ;;  %v1298_v32 = vmul.f32 %v4998_v18, %v1296_v24  ;;  %5001 = vrcp.f32 %v1335_v28  ;;  %vm1303_vm12 = vweird.f32 %v4998_v18  ;;  %v1347_v0 = vand.u32 2147483648, %v1335_v28  ;;  %v1722_v24 = vld [vmem:[#allocation7 + $0x398] sm:$0xff] }
 0x45b   :  { %v1317_v20 = vmul.f32 %v5000_v29, %v1315_v7  ;;  %5003 = vtanh.f32 %v1291_v8  ;;  %vm1322_vm13 = vweird.f32 %v5000_v29  ;;  %vm1304_vm0 = vmor %vm1302_vm14, %vm1303_vm12  ;;  %vm1341_vm5 = vweird.f32 %v1335_v28  ;;  %v1715_v7 = vld [vmem:[#allocation7 + $0x360] sm:$0xff]  ;;  %v1718_v8 = vld [vmem:[#allocation7 + $0x378] sm:$0xff] }
 0x45c   :  { %v1299_v2 = vsub.f32 1.0, %v1298_v32  ;;  %vm1323_vm1 = vmor %vm1321_vm15, %vm1322_vm13  ;;  %v1345_v50 = vand.u32 2147483647, %v1335_v28  ;;  %v1348_v62 = vor.u32 1.1754944e-38, %v1347_v0  ;;  %v1696_v0 = vld [vmem:[#allocation7 + $0x2c8] sm:$0xff] }
 0x45d   :  { %v1318_v17 = vsub.f32 1.0, %v1317_v20  ;;  %v1711_v20 = vld [vmem:[#allocation7 + $0x340] sm:$0xff] }
 0x45e   :  { %v1300_v39 = vmul.f32 %v4998_v18, %v1299_v2  ;;  %vm1346_vm7 = vcmp.eq.f32.partialorder %v1345_v50, 8.507059e+37  ;;  %v1712_v2 = vld [vmem:[#allocation7 + $0x348] sm:$0xff]  ;;  %v1697_v50 = vld [vmem:[#allocation7 + $0x2d0] sm:$0xff] }
 0x45f   :  { %v1319_v51 = vmul.f32 %v5000_v29, %v1318_v17  ;;  %v1713_v17 = vld [vmem:[#allocation7 + $0x350] sm:$0xff] }
 0x460   :  { %v5002_v26 = vpop.eup %5001  ;;  %v1301_v31 = vadd.f32 %v4998_v18, %v1300_v39  ;;  %v1714_v39 = vld [vmem:[#allocation7 + $0x358] sm:$0xff] }
 0x461   :  { %v1320_v34 = vadd.f32 %v5000_v29, %v1319_v51  ;;  %v1337_v35 = vmul.f32 %v5002_v26, %v1335_v28  ;;  %v5004_v37 = vpop.eup %5003  ;;  %vm1342_vm4 = vweird.f32 %v5002_v26  ;;  %v9277_v28 = vld [vmem:[#allocation63_spill] sm:$0xff]  ;;  %v1708_v51 = vld [vmem:[#allocation7 + $0x328] sm:$0xff] }
 0x462   :  { %v1305_v36 = vsel %vm1304_vm0, %v4998_v18, %v1301_v31  ;;  %vm1343_vm6 = vmor %vm1341_vm5, %vm1342_vm4  ;;  %v304_v18 = vadd.f32 %v9277_v28, %v9270_v46  ;;  %v1677_v28 = vld [vmem:[#allocation7 + $0x230] sm:$0xff] }
 0x463   :  { %v1310_v38 = vsel %vm1307_vm2, %v1309_v33, %v1305_v36  ;;  %v1324_v40 = vsel %vm1323_vm1, %v5000_v29, %v1320_v34  ;;  %v1338_v41 = vsub.f32 1.0, %v1337_v35  ;;  %v1710_v33 = vld [vmem:[#allocation7 + $0x338] sm:$0xff]  ;;  %v1703_v34 = vld [vmem:[#allocation7 + $0x300] sm:$0xff]  ;;  %v1704_v35 = vld [vmem:[#allocation7 + $0x308] sm:$0xff] }
 0x464   :  { %v1329_v43 = vsel %vm1326_vm3, %v1328_v60, %v1324_v40  ;;  %v1352_v44 = vmul.f32 %v5004_v37, %v1310_v38  ;;  %v1705_v60 = vld [vmem:[#allocation7 + $0x310] sm:$0xff]  ;;  %v1706_v36 = vld [vmem:[#allocation7 + $0x318] sm:$0xff]  ;;  %v1699_v40 = vld [vmem:[#allocation7 + $0x2e0] sm:$0xff] }
 0x465   :  { %v1351_v45 = vmul.f32 %v1329_v43, %v6515_v21  ;;  %v1339_v47 = vmul.f32 %v5002_v26, %v1338_v41  ;;  %v1731_v21 = vld [vmem:[#allocation7 + $0x3e0] sm:$0xff]  ;;  %v9278_v37 = vld [vmem:[#allocation65_spill] sm:$0xff] }
 0x466   :  { %v386_v38 = vadd.f32 %v9278_v37, %v9272_v10  ;;  %v1700_v41 = vld [vmem:[#allocation7 + $0x2e8] sm:$0xff]  ;;  %v1701_v43 = vld [vmem:[#allocation7 + $0x2f0] sm:$0xff] }
 0x467   :  { %v6597_v54 = vadd.f32 %v1352_v44, %v1351_v45  ;;  %v1340_v58 = vadd.f32 %v5002_v26, %v1339_v47  ;;  %v1702_v45 = vld [vmem:[#allocation7 + $0x2f8] sm:$0xff] }
 0x469   :  { %5005 = vtanh.f32 %v6597_v54  ;;  %v1344_v55 = vsel %vm1343_vm6, %v5002_v26, %v1340_v58  ;;  %v1695_v58 = vld [vmem:[#allocation7 + $0x2c0] sm:$0xff] }
 0x46a   :  { %v1349_v13 = vsel %vm1346_vm7, %v1348_v62, %v1344_v55  ;;  %v1698_v55 = vld [vmem:[#allocation7 + $0x2d8] sm:$0xff] }
 0x46f   :  { %v5006_v49 = vpop.eup %5005 }
 0x470   :  { %v6600_v56 = vmul.f32 %v5006_v49, %v1349_v13  ;;  %v1691_v49 = vld [vmem:[#allocation7 + $0x2a0] sm:$0xff]  ;;  %v1692_v13 = vld [vmem:[#allocation7 + $0x2a8] sm:$0xff] }
 0x472   :  { %1381 = vmatmul.f32.vlgmr.msrb.gmra.mxu0 %v6600_v56  ;;  %1401 = vmatmul.f32.vlgmr.msrb.gmra.mxu1 %v6600_v56 }
 0x473   :  { %1421 = vmatmul.f32.vlgmr.msrb.gmra.mxu2 %v6600_v56  ;;  %1441 = vmatmul.f32.vlgmr.msrb.gmra.mxu3 %v6600_v56 }
 0x474   :  { %1819 = vmatpush.msrb.mxu0 %v1731_v21  ;;  %1860 = vmatpush.msrb.mxu1 %v1732_v48  ;;  %v1693_v21 = vld [vmem:[#allocation7 + $0x2b0] sm:$0xff] }
 0x475   :  { %1901 = vmatpush.msrb.mxu2 %v1733_v59  ;;  %1942 = vmatpush.msrb.mxu3 %v1734_v57  ;;  %v1694_v59 = vld [vmem:[#allocation7 + $0x2b8] sm:$0xff]  ;;  %v1687_v57 = vld [vmem:[#allocation7 + $0x280] sm:$0xff] }
 0x476   :  { %1820 = vmatpush.msrb.mxu0 %v1727_v25  ;;  %1861 = vmatpush.msrb.mxu1 %v1728_v11  ;;  %v1688_v25 = vld [vmem:[#allocation7 + $0x288] sm:$0xff] }
 0x477   :  { %1902 = vmatpush.msrb.mxu2 %v1729_v12  ;;  %1943 = vmatpush.msrb.mxu3 %v1730_v14  ;;  %v1689_v14 = vld [vmem:[#allocation7 + $0x290] sm:$0xff] }
 0x478   :  { %1821 = vmatpush.msrb.mxu0 %v1723_v52  ;;  %1862 = vmatpush.msrb.mxu1 %v1724_v19  ;;  %v1690_v52 = vld [vmem:[#allocation7 + $0x298] sm:$0xff] }
 0x479   :  { %1903 = vmatpush.msrb.mxu2 %v1725_v15  ;;  %1944 = vmatpush.msrb.mxu3 %v1726_v16  ;;  %v1683_v15 = vld [vmem:[#allocation7 + $0x260] sm:$0xff]  ;;  %v1684_v16 = vld [vmem:[#allocation7 + $0x268] sm:$0xff] }
 0x47a   :  { %1822 = vmatpush.msrb.mxu0 %v1719_v6  ;;  %1863 = vmatpush.msrb.mxu1 %v1720_v5  ;;  %v1685_v6 = vld [vmem:[#allocation7 + $0x270] sm:$0xff]  ;;  %v1686_v5 = vld [vmem:[#allocation7 + $0x278] sm:$0xff] }
 0x47b   :  { %1904 = vmatpush.msrb.mxu2 %v1721_v3  ;;  %1945 = vmatpush.msrb.mxu3 %v1722_v24  ;;  %v1679_v3 = vld [vmem:[#allocation7 + $0x240] sm:$0xff]  ;;  %v1680_v24 = vld [vmem:[#allocation7 + $0x248] sm:$0xff] }
 0x47c   :  { %1823 = vmatpush.msrb.mxu0 %v1715_v7  ;;  %1864 = vmatpush.msrb.mxu1 %v1716_v42  ;;  %v1681_v7 = vld [vmem:[#allocation7 + $0x250] sm:$0xff]  ;;  %v1682_v42 = vld [vmem:[#allocation7 + $0x258] sm:$0xff] }
 0x47d   :  { %1905 = vmatpush.msrb.mxu2 %v1717_v22  ;;  %1946 = vmatpush.msrb.mxu3 %v1718_v8  ;;  %v1675_v22 = vld [vmem:[#allocation7 + $0x220] sm:$0xff] }
 0x47e   :  { %1824 = vmatpush.msrb.mxu0 %v1711_v20  ;;  %1865 = vmatpush.msrb.mxu1 %v1712_v2  ;;  %v1671_v20 = vld [vmem:[#allocation7 + $0x200] sm:$0xff]  ;;  %v1672_v2 = vld [vmem:[#allocation7 + $0x208] sm:$0xff] }
 0x47f   :  { %1906 = vmatpush.msrb.mxu2 %v1713_v17  ;;  %1947 = vmatpush.msrb.mxu3 %v1714_v39 }
 0x480   :  { %1825 = vmatpush.msrb.mxu0 %v1707_v63  ;;  %1866 = vmatpush.msrb.mxu1 %v1708_v51 }
 0x481   :  { %1907 = vmatpush.msrb.mxu2 %v1709_v30  ;;  %1948 = vmatpush.msrb.mxu3 %v1710_v33 }
 0x482   :  { %1826 = vmatpush.msrb.mxu0 %v1703_v34  ;;  %1867 = vmatpush.msrb.mxu1 %v1704_v35 }
 0x483   :  { %1908 = vmatpush.msrb.mxu2 %v1705_v60  ;;  %1949 = vmatpush.msrb.mxu3 %v1706_v36 }
 0x484   :  { %1827 = vmatpush.msrb.mxu0 %v1699_v40  ;;  %1868 = vmatpush.msrb.mxu1 %v1700_v41 }
 0x485   :  { %1909 = vmatpush.msrb.mxu2 %v1701_v43  ;;  %1950 = vmatpush.msrb.mxu3 %v1702_v45 }
 0x486   :  { %1828 = vmatpush.msrb.mxu0 %v1695_v58  ;;  %1869 = vmatpush.msrb.mxu1 %v1696_v0 }
 0x487   :  { %1910 = vmatpush.msrb.mxu2 %v1697_v50  ;;  %1951 = vmatpush.msrb.mxu3 %v1698_v55 }
 0x488   :  { %1829 = vmatpush.msrb.mxu0 %v1691_v49  ;;  %1870 = vmatpush.msrb.mxu1 %v1692_v13 }
 0x489   :  { %1911 = vmatpush.msrb.mxu2 %v1693_v21  ;;  %1952 = vmatpush.msrb.mxu3 %v1694_v59 }
 0x48a   :  { %1830 = vmatpush.msrb.mxu0 %v1687_v57  ;;  %1871 = vmatpush.msrb.mxu1 %v1688_v25 }
 0x48b   :  { %1912 = vmatpush.msrb.mxu2 %v1689_v14  ;;  %1953 = vmatpush.msrb.mxu3 %v1690_v52 }
 0x48c   :  { %1831 = vmatpush.msrb.mxu0 %v1683_v15  ;;  %1872 = vmatpush.msrb.mxu1 %v1684_v16  ;;  %v9281_v16 = vld [vmem:[#allocation18_spill] sm:$0xff] }
 0x48d   :  { %1913 = vmatpush.msrb.mxu2 %v1685_v6  ;;  %1954 = vmatpush.msrb.mxu3 %v1686_v5  ;;  %v9282_v6 = vld [vmem:[#allocation23_spill] sm:$0xff] }
 0x48e   :  { %1832 = vmatpush.msrb.mxu0 %v1679_v3  ;;  %1873 = vmatpush.msrb.mxu1 %v1680_v24  ;;  %v6644_v5 = vld [vmem:[#allocation9 + $0x3e0] sm:$0xff]  ;;  %v6646_v3 = vld [vmem:[#allocation9 + $0x3e8] sm:$0xff] }
 0x48f   :  { %1914 = vmatpush.msrb.mxu2 %v1681_v7  ;;  %1955 = vmatpush.msrb.mxu3 %v1682_v42  ;;  %9283 = vst [vmem:[#allocation17_spill] sm:$0xff] %v6644_v5  ;;  %v6648_v24 = vld [vmem:[#allocation9 + $0x3c0] sm:$0xff]  ;;  %v6652_v7 = vld [vmem:[#allocation9 + $0x3c8] sm:$0xff]  ;;  %v6654_v42 = vld [vmem:[#allocation9 + $0x3f8] sm:$0xff] }
 0x490   :  { %1833 = vmatpush.msrb.mxu0 %v1675_v22  ;;  %9284 = vst [vmem:[#allocation19_spill] sm:$0xff] %v6652_v7  ;;  %v6657_v22 = vld [vmem:[#allocation9 + $0x3a0] sm:$0xff] }
 0x491   :  { %1915 = vmatpush.msrb.mxu2 %v1677_v28  ;;  %v9287_v28 = vld [vmem:[#allocation49_spill] sm:$0xff] }
 0x492   :  { %1834 = vmatpush.msrb.mxu0 %v1671_v20  ;;  %v6692_v20 = vld [vmem:[#allocation9 + $0x388] sm:$0xff] }
 0x4ef   :  { %v1382_v29 = vpop.f32.mrf.mxu0  ;;  %v1402_v32 = vpop.f32.mrf.mxu1 }
 0x4f0   :  { %v1445_v27 = vadd.f32 %v1382_v29, %v263_v4  ;;  %v1446_v61 = vadd.f32 %v1402_v32, %v304_v18  ;;  %v1676_v4 = vld [vmem:[#allocation7 + $0x228] sm:$0xff]  ;;  %v1678_v18 = vld [vmem:[#allocation7 + $0x238] sm:$0xff] }
 0x4f1   :  { %v9279_v29 = vld [vmem:[#allocation70_spill] sm:$0xff]  ;;  %1874 = vmatpush.msrb.mxu1 %v1676_v4  ;;  %1956 = vmatpush.msrb.mxu3 %v1678_v18 }
 0x4f2   :  { %v4845_v26 = vmul.f32 -1.442695, %v1445_v27  ;;  %v4846_v31 = vmul.f32 -1.442695, %v1446_v61  ;;  %v345_v32 = vadd.f32 %v9279_v29, %v9274_v9  ;;  %v1673_v27 = vld [vmem:[#allocation7 + $0x210] sm:$0xff]  ;;  %v1674_v61 = vld [vmem:[#allocation7 + $0x218] sm:$0xff] }
 0x4f3   :  { %1875 = vmatpush.msrb.mxu1 %v1672_v2  ;;  %1916 = vmatpush.msrb.mxu2 %v1673_v27  ;;  %v6661_v4 = vld [vmem:[#allocation9 + $0x3d8] sm:$0xff]  ;;  %v6680_v18 = vld [vmem:[#allocation9 + $0x3f0] sm:$0xff]  ;;  %v6700_v2 = vld [vmem:[#allocation9 + $0x368] sm:$0xff] }
 0x4f4   :  { %5007 = vpow2.f32 %v4845_v26  ;;  %1957 = vmatpush.msrb.mxu3 %v1674_v61  ;;  %9286 = vst [vmem:[#allocation22_spill] sm:$0xff] %v6661_v4  ;;  %v6688_v29 = vld [vmem:[#allocation9 + $0x3b0] sm:$0xff]  ;;  %v6710_v61 = vld [vmem:[#allocation9 + $0x378] sm:$0xff] }
 0x4f5   :  { %5009 = vpow2.f32 %v4846_v31  ;;  %v6704_v27 = vld [vmem:[#allocation9 + $0x390] sm:$0xff] }
 0x4f6   :  { %v1442_v44 = vpop.f32.mrf.mxu3  ;;  %v1422_v1 = vpop.f32.mrf.mxu2 }
 0x4f7   :  { %v1448_v47 = vadd.f32 %v1442_v44, %v386_v38  ;;  %v1447_v63 = vadd.f32 %v1422_v1, %v345_v32  ;;  %v6659_v1 = vld [vmem:[#allocation9 + $0x3a8] sm:$0xff]  ;;  %v6690_v32 = vld [vmem:[#allocation9 + $0x380] sm:$0xff] }
 0x4f8   :  { %9285 = vst [vmem:[#allocation20_spill] sm:$0xff] %v6659_v1 }
 0x4f9   :  { %v4847_v62 = vmul.f32 -1.442695, %v1448_v47  ;;  %9289 = vst [vmem:[#allocation51_spill] sm:$0xff] %v6690_v32 }
 0x4fa   :  { %v5008_v48 = vpop.eup %5007 }
 0x4fb   :  { %v5010_v11 = vpop.eup %5009  ;;  %v6612_v12 = vadd.f32 1.0, %v5008_v48  ;;  %5011 = vpow2.f32 %v4847_v62 }
 0x4fc   :  { %v6614_v19 = vadd.f32 1.0, %v5010_v11 }
 0x4fd   :  { %5013 = vrcp.f32 %v6612_v12  ;;  %v1464_v34 = vand.u32 2147483648, %v6612_v12  ;;  %v1462_v36 = vand.u32 2147483647, %v6612_v12  ;;  %vm1458_vm10 = vweird.f32 %v6612_v12 }
 0x4fe   :  { %5015 = vrcp.f32 %v6614_v19  ;;  %v1483_v35 = vand.u32 2147483648, %v6614_v19  ;;  %v1481_v38 = vand.u32 2147483647, %v6614_v19  ;;  %vm1477_vm11 = vweird.f32 %v6614_v19 }
 0x4ff   :  { %v1465_v43 = vor.u32 1.1754944e-38, %v1464_v34  ;;  %vm1463_vm14 = vcmp.eq.f32.partialorder %v1462_v36, 8.507059e+37  ;;  %v6724_v34 = vld [vmem:[#allocation9 + $0x358] sm:$0xff]  ;;  %v6728_v36 = vld [vmem:[#allocation9 + $0x350] sm:$0xff] }
 0x500   :  { %v1484_v47 = vor.u32 1.1754944e-38, %v1483_v35  ;;  %vm1482_vm15 = vcmp.eq.f32.partialorder %v1481_v38, 8.507059e+37 }
 0x501   :  { %v5012_v8 = vpop.eup %5011 }
 0x502   :  { %v1491_v17 = vadd.f32 1.0, %v5012_v8  ;;  %v6683_v8 = vld [vmem:[#allocation9 + $0x3d0] sm:$0xff] }
 0x503   :  { %v5014_v39 = vpop.eup %5013 }
 0x504   :  { %v5016_v51 = vpop.eup %5015  ;;  %v1454_v30 = vmul.f32 %v5014_v39, %v6612_v12  ;;  %5017 = vrcp.f32 %v1491_v17  ;;  %vm1459_vm8 = vweird.f32 %v5014_v39  ;;  %v1503_v25 = vand.u32 2147483648, %v1491_v17 }
 0x505   :  { %v1473_v26 = vmul.f32 %v5016_v51, %v6614_v19  ;;  %5019 = vtanh.f32 %v1447_v63  ;;  %vm1478_vm9 = vweird.f32 %v5016_v51  ;;  %vm1460_vm12 = vmor %vm1458_vm10, %vm1459_vm8  ;;  %vm1497_vm1 = vweird.f32 %v1491_v17  ;;  %v9290_v63 = vld [vmem:[#allocation66_spill] sm:$0xff] }
 0x506   :  { %v1455_v31 = vsub.f32 1.0, %v1454_v30  ;;  %vm1479_vm13 = vmor %vm1477_vm11, %vm1478_vm9  ;;  %v1501_v11 = vand.u32 2147483647, %v1491_v17  ;;  %v1504_v14 = vor.u32 1.1754944e-38, %v1503_v25  ;;  %v9291_v30 = vld [vmem:[#allocation67_spill] sm:$0xff] }
 0x507   :  { %v1474_v33 = vsub.f32 1.0, %v1473_v26  ;;  %v307_v26 = vadd.f32 %v9291_v30, %v9270_v46  ;;  %v6735_v46 = vld [vmem:[#allocation9 + $0x338] sm:$0xff]  ;;  %v6770_v25 = vld [vmem:[#allocation9 + $0x2a0] sm:$0xff] }
 0x508   :  { %v1456_v60 = vmul.f32 %v5014_v39, %v1455_v31  ;;  %vm1502_vm3 = vcmp.eq.f32.partialorder %v1501_v11, 8.507059e+37  ;;  %v6720_v31 = vld [vmem:[#allocation9 + $0x340] sm:$0xff]  ;;  %9294 = vst [vmem:[#allocation54_spill] sm:$0xff] %v6770_v25  ;;  %v6772_v11 = vld [vmem:[#allocation9 + $0x2a8] sm:$0xff] }
 0x509   :  { %v1475_v37 = vmul.f32 %v5016_v51, %v1474_v33  ;;  %v6722_v33 = vld [vmem:[#allocation9 + $0x348] sm:$0xff]  ;;  %9295 = vst [vmem:[#allocation53_spill] sm:$0xff] %v6772_v11 }
 0x50a   :  { %v5018_v40 = vpop.eup %5017  ;;  %v1457_v41 = vadd.f32 %v5014_v39, %v1456_v60 }
 0x50b   :  { %v1476_v44 = vadd.f32 %v5016_v51, %v1475_v37  ;;  %v1493_v45 = vmul.f32 %v5018_v40, %v1491_v17  ;;  %v5020_v0 = vpop.eup %5019  ;;  %vm1498_vm0 = vweird.f32 %v5018_v40  ;;  %v6702_v17 = vld [vmem:[#allocation9 + $0x398] sm:$0xff] }
 0x50c   :  { %v1461_v58 = vsel %vm1460_vm12, %v5014_v39, %v1457_v41  ;;  %vm1499_vm2 = vmor %vm1497_vm1, %vm1498_vm0  ;;  %v6712_v39 = vld [vmem:[#allocation9 + $0x370] sm:$0xff] }
 0x50d   :  { %v1466_v50 = vsel %vm1463_vm14, %v1465_v43, %v1461_v58  ;;  %v1480_v55 = vsel %vm1479_vm13, %v5016_v51, %v1476_v44  ;;  %v1494_v62 = vsub.f32 1.0, %v1493_v45  ;;  %v266_v51 = vadd.f32 %v9290_v63, %v9268_v53  ;;  %v6730_v53 = vld [vmem:[#allocation9 + $0x320] sm:$0xff]  ;;  %v6740_v41 = vld [vmem:[#allocation9 + $0x330] sm:$0xff] }
 0x50e   :  { %v1485_v49 = vsel %vm1482_vm15, %v1484_v47, %v1480_v55  ;;  %v1508_v13 = vmul.f32 %v5020_v0, %v1466_v50  ;;  %v6742_v45 = vld [vmem:[#allocation9 + $0x300] sm:$0xff]  ;;  %v6744_v47 = vld [vmem:[#allocation9 + $0x308] sm:$0xff]  ;;  %v6754_v50 = vld [vmem:[#allocation9 + $0x318] sm:$0xff] }
 0x50f   :  { %v1507_v21 = vmul.f32 %v1485_v49, %v6597_v54  ;;  %v1495_v48 = vmul.f32 %v5018_v40, %v1494_v62  ;;  %v9280_v54 = vld [vmem:[#allocation75_spill] sm:$0xff]  ;;  %v6752_v0 = vld [vmem:[#allocation9 + $0x2e8] sm:$0xff] }
 0x510   :  { %v6750_v58 = vld [vmem:[#allocation9 + $0x2e0] sm:$0xff]  ;;  %v6759_v62 = vld [vmem:[#allocation9 + $0x2c8] sm:$0xff]  ;;  %v6761_v49 = vld [vmem:[#allocation9 + $0x2f8] sm:$0xff] }
 0x511   :  { %v6629_v59 = vadd.f32 %v1508_v13, %v1507_v21  ;;  %v1496_v57 = vadd.f32 %v5018_v40, %v1495_v48  ;;  %v6757_v55 = vld [vmem:[#allocation9 + $0x2c0] sm:$0xff]  ;;  %v6767_v48 = vld [vmem:[#allocation9 + $0x2d8] sm:$0xff] }
 0x512   :  { %v9292_v13 = vld [vmem:[#allocation71_spill] sm:$0xff]  ;;  %9293 = vst [vmem:[#allocation52_spill] sm:$0xff] %v6767_v48 }
 0x513   :  { %5021 = vtanh.f32 %v6629_v59  ;;  %v1500_v12 = vsel %vm1499_vm2, %v5018_v40, %v1496_v57  ;;  %v6732_v40 = vld [vmem:[#allocation9 + $0x328] sm:$0xff]  ;;  %v389_v21 = vadd.f32 %v9292_v13, %v9272_v10  ;;  %v6778_v10 = vld [vmem:[#allocation9 + $0x2b8] sm:$0xff]  ;;  %v6796_v63 = vld [vmem:[#allocation9 + $0x260] sm:$0xff] }
 0x514   :  { %v1505_v19 = vsel %vm1502_vm3, %v1504_v14, %v1500_v12  ;;  %v6774_v12 = vld [vmem:[#allocation9 + $0x310] sm:$0xff]  ;;  %9296 = vst [vmem:[#allocation55_spill] sm:$0xff] %v6778_v10  ;;  %v6824_v13 = vld [vmem:[#allocation9 + $0x220] sm:$0xff] }
 0x515   :  { %9301 = vst [vmem:[#allocation26_spill] sm:$0xff] %v6796_v63 }
 0x516   :  { %9308 = vst [vmem:[#allocation32_spill] sm:$0xff] %v6824_v13 }
 0x519   :  { %v5022_v52 = vpop.eup %5021 }
 0x51a   :  { %v1511_v15 = vmul.f32 %v5022_v52, %v1505_v19  ;;  %v6780_v52 = vld [vmem:[#allocation9 + $0x2f0] sm:$0xff]  ;;  %v6784_v19 = vld [vmem:[#allocation9 + $0x280] sm:$0xff] }
 0x51b   :  { %9297 = vst [vmem:[#allocation56_spill] sm:$0xff] %v6784_v19 }
 0x51c   :  { %1537 = vmatmul.f32.vlgmr.msra.gmra.mxu0 %v1511_v15  ;;  %1557 = vmatmul.f32.vlgmr.msra.gmra.mxu1 %v1511_v15 }
 0x51d   :  { %1577 = vmatmul.f32.vlgmr.msra.gmra.mxu2 %v1511_v15  ;;  %1597 = vmatmul.f32.vlgmr.msra.gmra.mxu3 %v1511_v15 }
 0x51e   :  { %2019 = vmatpush.msra.mxu0 %v6644_v5  ;;  %2039 = vmatpush.msra.mxu1 %v6646_v3 }
 0x51f   :  { %2079 = vmatpush.msra.mxu3 %v6654_v42  ;;  %2059 = vmatpush.msra.mxu2 %v6680_v18 }
 0x520   :  { %2020 = vmatpush.msra.mxu0 %v6648_v24  ;;  %2040 = vmatpush.msra.mxu1 %v6652_v7 }
 0x521   :  { %2080 = vmatpush.msra.mxu3 %v6661_v4  ;;  %2060 = vmatpush.msra.mxu2 %v6683_v8 }
 0x522   :  { %2021 = vmatpush.msra.mxu0 %v6657_v22  ;;  %2041 = vmatpush.msra.mxu1 %v6659_v1 }
 0x523   :  { %2061 = vmatpush.msra.mxu2 %v6688_v29 }
 0x524   :  { %1835 = vmatmul.f32.vlgmr.msrb.gmra.mxu0 %v9280_v54  ;;  %1876 = vmatmul.f32.vlgmr.msrb.gmra.mxu1 %v9280_v54 }
 0x525   :  { %1917 = vmatmul.f32.vlgmr.msrb.gmra.mxu2 %v9280_v54  ;;  %1958 = vmatmul.f32.vlgmr.msrb.gmra.mxu3 %v9280_v54 }
 0x526   :  { %2022 = vmatpush.msra.mxu0 %v6690_v32  ;;  %2042 = vmatpush.msra.mxu1 %v6692_v20 }
 0x527   :  { %2062 = vmatpush.msra.mxu2 %v6704_v27 }
 0x528   :  { %2043 = vmatpush.msra.mxu1 %v6700_v2 }
 0x529   :  { %2063 = vmatpush.msra.mxu2 %v6712_v39 }
 0x52a   :  { %2044 = vmatpush.msra.mxu1 %v6722_v33 }
 0x52b   :  { %2064 = vmatpush.msra.mxu2 %v6728_v36 }
 0x52c   :  { %1838 = vmatmul.f32.gmra.mxu0 %v9281_v16  ;;  %1879 = vmatmul.f32.gmra.mxu1 %v9281_v16 }
 0x52d   :  { %1920 = vmatmul.f32.gmra.mxu2 %v9281_v16  ;;  %1961 = vmatmul.f32.gmra.mxu3 %v9281_v16  ;;  %v6790_v16 = vld [vmem:[#allocation9 + $0x298] sm:$0xff] }
 0x52e   :  { %2045 = vmatpush.msra.mxu1 %v6732_v40  ;;  %2065 = vmatpush.msra.mxu2 %v6740_v41  ;;  %9299 = vst [vmem:[#allocation60_spill] sm:$0xff] %v6790_v16 }
 0x530   :  { %2046 = vmatpush.msra.mxu1 %v6744_v47  ;;  %2066 = vmatpush.msra.mxu2 %v6774_v12 }
 0x532   :  { %2047 = vmatpush.msra.mxu1 %v6752_v0  ;;  %2067 = vmatpush.msra.mxu2 %v6780_v52 }
 0x534   :  { %1841 = vmatmul.f32.gmra.mxu0 %v9282_v6  ;;  %1882 = vmatmul.f32.gmra.mxu1 %v9282_v6 }
 0x535   :  { %1923 = vmatmul.f32.gmra.mxu2 %v9282_v6  ;;  %1964 = vmatmul.f32.gmra.mxu3 %v9282_v6  ;;  %v6792_v6 = vld [vmem:[#allocation9 + $0x2d0] sm:$0xff] }
 0x536   :  { %2048 = vmatpush.msra.mxu1 %v6759_v62  ;;  %9300 = vst [vmem:[#allocation24_spill] sm:$0xff] %v6792_v6  ;;  %2068 = vmatpush.msra.mxu2 %v6792_v6 }
 0x538   :  { %2049 = vmatpush.msra.mxu1 %v6772_v11 }
 0x53c   :  { %1844 = vmatmul.f32.gmra.mxu0 %v9287_v28  ;;  %1885 = vmatmul.f32.gmra.mxu1 %v9287_v28 }
 0x53d   :  { %1926 = vmatmul.f32.gmra.mxu2 %v9287_v28  ;;  %1967 = vmatmul.f32.gmra.mxu3 %v9287_v28 }
 0x544   :  { %1847 = vmatmul.f32.gmra.mxu0 %v6518_v23  ;;  %1888 = vmatmul.f32.gmra.mxu1 %v6518_v23 }
 0x545   :  { %1929 = vmatmul.f32.gmra.mxu2 %v6518_v23  ;;  %1970 = vmatmul.f32.gmra.mxu3 %v6518_v23  ;;  %v6686_v23 = vld [vmem:[#allocation9 + $0x3b8] sm:$0xff] }
 0x546   :  { %9288 = vst [vmem:[#allocation21_spill] sm:$0xff] %v6686_v23  ;;  %2081 = vmatpush.msra.mxu3 %v6686_v23 }
 0x548   :  { %2082 = vmatpush.msra.mxu3 %v6702_v17 }
 0x54a   :  { %2083 = vmatpush.msra.mxu3 %v6710_v61 }
 0x54c   :  { %1850 = vmatmul.f32.gmra.mxu0 %v6600_v56  ;;  %1891 = vmatmul.f32.gmra.mxu1 %v6600_v56 }
 0x54d   :  { %1932 = vmatmul.f32.gmra.mxu2 %v6600_v56  ;;  %1973 = vmatmul.f32.gmra.mxu3 %v6600_v56  ;;  %v6695_v56 = vld [vmem:[#allocation9 + $0x360] sm:$0xff] }
 0x54e   :  { %2023 = vmatpush.msra.mxu0 %v6695_v56  ;;  %2084 = vmatpush.msra.mxu3 %v6724_v34 }
 0x550   :  { %2024 = vmatpush.msra.mxu0 %v6720_v31  ;;  %2085 = vmatpush.msra.mxu3 %v6735_v46 }
 0x552   :  { %2025 = vmatpush.msra.mxu0 %v6730_v53  ;;  %2086 = vmatpush.msra.mxu3 %v6754_v50 }
 0x554   :  { %1853 = vmatmul.f32.gmra.mxu0 %v1511_v15  ;;  %1894 = vmatmul.f32.gmra.mxu1 %v1511_v15 }
 0x555   :  { %1935 = vmatmul.f32.gmra.mxu2 %v1511_v15  ;;  %1976 = vmatmul.f32.gmra.mxu3 %v1511_v15  ;;  %v6786_v15 = vld [vmem:[#allocation9 + $0x288] sm:$0xff] }
 0x556   :  { %2026 = vmatpush.msra.mxu0 %v6742_v45  ;;  %2087 = vmatpush.msra.mxu3 %v6761_v49  ;;  %9298 = vst [vmem:[#allocation57_spill] sm:$0xff] %v6786_v15 }
 0x557   :  { %2050 = vmatpush.msra.mxu1 %v6786_v15 }
 0x558   :  { %2027 = vmatpush.msra.mxu0 %v6750_v58  ;;  %2088 = vmatpush.msra.mxu3 %v6767_v48 }
 0x55a   :  { %2028 = vmatpush.msra.mxu0 %v6757_v55  ;;  %2089 = vmatpush.msra.mxu3 %v6778_v10 }
 0x55c   :  { %2029 = vmatpush.msra.mxu0 %v6770_v25  ;;  %2090 = vmatpush.msra.mxu3 %v6790_v16  ;;  %v6848_v16 = vld [vmem:[#allocation9 + $0x218] sm:$0xff] }
 0x55d   :  { %9317 = vst [vmem:[#allocation40_spill] sm:$0xff] %v6848_v16 }
 0x55e   :  { %2030 = vmatpush.msra.mxu0 %v6784_v19 }
 0x560   :  { %2031 = vmatpush.msra.mxu0 %v6796_v63 }
 0x599   :  { %v1538_v35 = vpop.f32.mrf.mxu0  ;;  %v1558_v60 = vpop.f32.mrf.mxu1 }
 0x59a   :  { %v1601_v37 = vadd.f32 %v1538_v35, %v266_v51  ;;  %v1602_v38 = vadd.f32 %v1558_v60, %v307_v26  ;;  %v6798_v51 = vld [vmem:[#allocation9 + $0x268] sm:$0xff]  ;;  %v6804_v35 = vld [vmem:[#allocation9 + $0x2b0] sm:$0xff]  ;;  %v6806_v60 = vld [vmem:[#allocation9 + $0x278] sm:$0xff] }
 0x59b   :  { %9302 = vst [vmem:[#allocation25_spill] sm:$0xff] %v6798_v51  ;;  %2051 = vmatpush.msra.mxu1 %v6798_v51  ;;  %2069 = vmatpush.msra.mxu2 %v6804_v35  ;;  %v9314_v51 = vld [vmem:[#allocation73_spill] sm:$0xff] }
 0x59c   :  { %v4848_v43 = vmul.f32 -1.442695, %v1601_v37  ;;  %v4849_v44 = vmul.f32 -1.442695, %v1602_v38  ;;  %9303 = vst [vmem:[#allocation27_spill] sm:$0xff] %v6804_v35  ;;  %v6812_v38 = vld [vmem:[#allocation9 + $0x240] sm:$0xff]  ;;  %2091 = vmatpush.msra.mxu3 %v6806_v60  ;;  %v348_v63 = vadd.f32 %v9314_v51, %v9274_v9 }
 0x59d   :  { %9304 = vst [vmem:[#allocation28_spill] sm:$0xff] %v6806_v60  ;;  %2032 = vmatpush.msra.mxu0 %v6812_v38  ;;  %v6856_v9 = vld [vmem:[#allocation9 + $0x230] sm:$0xff] }
 0x59e   :  { %5023 = vpow2.f32 %v4848_v43  ;;  %9305 = vst [vmem:[#allocation30_spill] sm:$0xff] %v6812_v38  ;;  %v6814_v43 = vld [vmem:[#allocation9 + $0x248] sm:$0xff]  ;;  %v6846_v38 = vld [vmem:[#allocation9 + $0x238] sm:$0xff] }
 0x59f   :  { %5025 = vpow2.f32 %v4849_v44  ;;  %9306 = vst [vmem:[#allocation29_spill] sm:$0xff] %v6814_v43  ;;  %v6819_v44 = vld [vmem:[#allocation9 + $0x290] sm:$0xff]  ;;  %2052 = vmatpush.msra.mxu1 %v6814_v43  ;;  %2033 = vmatpush.msra.mxu0 %v6824_v13 }
 0x5a0   :  { %v1598_v57 = vpop.f32.mrf.mxu3  ;;  %9307 = vst [vmem:[#allocation31_spill] sm:$0xff] %v6819_v44  ;;  %2070 = vmatpush.msra.mxu2 %v6819_v44  ;;  %v6844_v43 = vld [vmem:[#allocation9 + $0x250] sm:$0xff] }
 0x5a1   :  { %v1604_v14 = vadd.f32 %v1598_v57, %v389_v21  ;;  %v6826_v21 = vld [vmem:[#allocation9 + $0x228] sm:$0xff]  ;;  %v6828_v57 = vld [vmem:[#allocation9 + $0x258] sm:$0xff]  ;;  %9315 = vst [vmem:[#allocation38_spill] sm:$0xff] %v6844_v43 }
 0x5a2   :  { %9309 = vst [vmem:[#allocation34_spill] sm:$0xff] %v6826_v21  ;;  %2092 = vmatpush.msra.mxu3 %v6828_v57  ;;  %2053 = vmatpush.msra.mxu1 %v6826_v21 }
 0x5a3   :  { %v4850_v54 = vmul.f32 -1.442695, %v1604_v14  ;;  %9310 = vst [vmem:[#allocation33_spill] sm:$0xff] %v6828_v57  ;;  %v6832_v14 = vld [vmem:[#allocation9 + $0x270] sm:$0xff] }
 0x5a4   :  { %v5024_v28 = vpop.eup %5023  ;;  %9311 = vst [vmem:[#allocation35_spill] sm:$0xff] %v6832_v14  ;;  %2071 = vmatpush.msra.mxu2 %v6832_v14  ;;  %2093 = vmatpush.msra.mxu3 %v6846_v38 }
 0x5a5   :  { %v5026_v30 = vpop.eup %5025  ;;  %v6800_v26 = vadd.f32 1.0, %v5024_v28  ;;  %5027 = vpow2.f32 %v4850_v54  ;;  %v1578_v54 = vpop.f32.mrf.mxu2  ;;  %v6836_v28 = vld [vmem:[#allocation9 + $0x200] sm:$0xff]  ;;  %9316 = vst [vmem:[#allocation39_spill] sm:$0xff] %v6846_v38  ;;  %v6863_v38 = vld [vmem:[#allocation9 + $0x210] sm:$0xff] }
 0x5a6   :  { %v6808_v37 = vadd.f32 1.0, %v5026_v30  ;;  %9312 = vst [vmem:[#allocation36_spill] sm:$0xff] %v6836_v28  ;;  %v6838_v30 = vld [vmem:[#allocation9 + $0x208] sm:$0xff]  ;;  %v1603_v15 = vadd.f32 %v1578_v54, %v348_v63  ;;  %2034 = vmatpush.msra.mxu0 %v6836_v28  ;;  %2072 = vmatpush.msra.mxu2 %v6844_v43 }
 0x5a7   :  { %5029 = vrcp.f32 %v6800_v26  ;;  %9313 = vst [vmem:[#allocation37_spill] sm:$0xff] %v6838_v30  ;;  %2054 = vmatpush.msra.mxu1 %v6838_v30  ;;  %2094 = vmatpush.msra.mxu3 %v6848_v16  ;;  %v1620_v30 = vand.u32 2147483648, %v6800_v26  ;;  %vm1614_vm6 = vweird.f32 %v6800_v26 }
 0x5a8   :  { %5031 = vrcp.f32 %v6808_v37  ;;  %9318 = vst [vmem:[#allocation41_spill] sm:$0xff] %v6856_v9  ;;  %2171 = vmatpush.msrb.mxu0 %v6644_v5  ;;  %2073 = vmatpush.msra.mxu2 %v6856_v9  ;;  %v1639_v16 = vand.u32 2147483648, %v6808_v37  ;;  %v1618_v5 = vand.u32 2147483647, %v6800_v26  ;;  %vm1633_vm7 = vweird.f32 %v6808_v37 }
 0x5a9   :  { %9319 = vst [vmem:[#allocation42_spill] sm:$0xff] %v6863_v38  ;;  %2191 = vmatpush.msrb.mxu1 %v6646_v3  ;;  %2231 = vmatpush.msrb.mxu3 %v6654_v42 }
 0x5aa   :  { %2172 = vmatpush.msrb.mxu0 %v6648_v24  ;;  %2074 = vmatpush.msra.mxu2 %v6863_v38  ;;  %vm1619_vm10 = vcmp.eq.f32.partialorder %v1618_v5, 8.507059e+37 }
 0x5ab   :  { %v5028_v60 = vpop.eup %5027  ;;  %2192 = vmatpush.msrb.mxu1 %v6652_v7  ;;  %2232 = vmatpush.msrb.mxu3 %v6661_v4 }
 0x5ac   :  { %v6850_v44 = vadd.f32 1.0, %v5028_v60  ;;  %2211 = vmatpush.msrb.mxu2 %v6680_v18  ;;  %2173 = vmatpush.msrb.mxu0 %v6657_v22 }
 0x5ad   :  { %v5030_v57 = vpop.eup %5029  ;;  %2193 = vmatpush.msrb.mxu1 %v6659_v1  ;;  %2233 = vmatpush.msrb.mxu3 %v6686_v23 }
 0x5ae   :  { %v5032_v51 = vpop.eup %5031  ;;  %v1610_v21 = vmul.f32 %v5030_v57, %v6800_v26  ;;  %5033 = vrcp.f32 %v6850_v44  ;;  %vm1615_vm4 = vweird.f32 %v5030_v57  ;;  %2212 = vmatpush.msrb.mxu2 %v6683_v8  ;;  %2174 = vmatpush.msrb.mxu0 %v6690_v32  ;;  %v1640_v26 = vor.u32 1.1754944e-38, %v1639_v16 }
 0x5af   :  { %v1629_v60 = vmul.f32 %v5032_v51, %v6808_v37  ;;  %5035 = vtanh.f32 %v1603_v15  ;;  %vm1634_vm5 = vweird.f32 %v5032_v51  ;;  %vm1616_vm8 = vmor %vm1614_vm6, %vm1615_vm4  ;;  %2194 = vmatpush.msrb.mxu1 %v6692_v20  ;;  %2234 = vmatpush.msrb.mxu3 %v6702_v17  ;;  %vm1653_vm13 = vweird.f32 %v6850_v44 }
 0x5b0   :  { %v1611_v63 = vsub.f32 1.0, %v1610_v21  ;;  %vm1635_vm9 = vmor %vm1633_vm7, %vm1634_vm5  ;;  %2213 = vmatpush.msrb.mxu2 %v6688_v29  ;;  %2175 = vmatpush.msrb.mxu0 %v6695_v56 }
 0x5b1   :  { %v1630_v54 = vsub.f32 1.0, %v1629_v60  ;;  %v1637_v60 = vand.u32 2147483647, %v6808_v37  ;;  %2195 = vmatpush.msrb.mxu1 %v6700_v2  ;;  %2235 = vmatpush.msrb.mxu3 %v6710_v61 }
 0x5b2   :  { %v1612_v28 = vmul.f32 %v5030_v57, %v1611_v63  ;;  %v1621_v63 = vor.u32 1.1754944e-38, %v1620_v30  ;;  %2214 = vmatpush.msrb.mxu2 %v6704_v27  ;;  %2176 = vmatpush.msrb.mxu0 %v6720_v31 }
 0x5b3   :  { %v1631_v21 = vmul.f32 %v5032_v51, %v1630_v54  ;;  %vm1638_vm11 = vcmp.eq.f32.partialorder %v1637_v60, 8.507059e+37  ;;  %2196 = vmatpush.msrb.mxu1 %v6722_v33  ;;  %2236 = vmatpush.msrb.mxu3 %v6724_v34  ;;  %v9320_v60 = vld [vmem:[#allocation57_spill] sm:$0xff] }
 0x5b4   :  { %v6879_v15 = vpop.eup %5033  ;;  %v1613_v7 = vadd.f32 %v5030_v57, %v1612_v28  ;;  %2215 = vmatpush.msrb.mxu2 %v6712_v39  ;;  %2177 = vmatpush.msrb.mxu0 %v6730_v53 }
 0x5b5   :  { %v1632_v54 = vadd.f32 %v5032_v51, %v1631_v21  ;;  %v1649_v4 = vmul.f32 %v6879_v15, %v6850_v44  ;;  %v5036_v37 = vpop.eup %5035  ;;  %vm1654_vm12 = vweird.f32 %v6879_v15  ;;  %2197 = vmatpush.msrb.mxu1 %v6732_v40  ;;  %2237 = vmatpush.msrb.mxu3 %v6735_v46 }
 0x5b6   :  { %v1617_v28 = vsel %vm1616_vm8, %v5030_v57, %v1613_v7  ;;  %2216 = vmatpush.msrb.mxu2 %v6728_v36  ;;  %2178 = vmatpush.msrb.mxu0 %v6742_v45  ;;  %vm1655_vm14 = vmor %vm1653_vm13, %vm1654_vm12 }
 0x5b7   :  { %v1622_v23 = vsel %vm1619_vm10, %v1621_v63, %v1617_v28  ;;  %v1636_v30 = vsel %vm1635_vm9, %v5032_v51, %v1632_v54  ;;  %v1650_v21 = vsub.f32 1.0, %v1649_v4  ;;  %2198 = vmatpush.msrb.mxu1 %v6744_v47  ;;  %2238 = vmatpush.msrb.mxu3 %v6754_v50  ;;  %v9322_v63 = vld [vmem:[#allocation31_spill] sm:$0xff]  ;;  %v9323_v54 = vld [vmem:[#allocation26_spill] sm:$0xff]  ;;  %v9325_v28 = vld [vmem:[#allocation28_spill] sm:$0xff] }
 0x5b8   :  { %v1641_v1 = vsel %vm1638_vm11, %v1640_v26, %v1636_v30  ;;  %v1664_v32 = vmul.f32 %v5036_v37, %v1622_v23  ;;  %2217 = vmatpush.msrb.mxu2 %v6740_v41  ;;  %2179 = vmatpush.msrb.mxu0 %v6750_v58  ;;  %v9324_v26 = vld [vmem:[#allocation25_spill] sm:$0xff]  ;;  %v9326_v37 = vld [vmem:[#allocation30_spill] sm:$0xff] }
 0x5b9   :  { %v1663_v5 = vmul.f32 %v1641_v1, %v6629_v59  ;;  %v1651_v7 = vmul.f32 %v6879_v15, %v1650_v21  ;;  %v1659_v59 = vand.u32 2147483648, %v6850_v44  ;;  %v1657_v1 = vand.u32 2147483647, %v6850_v44  ;;  %2199 = vmatpush.msrb.mxu1 %v6752_v0  ;;  %2239 = vmatpush.msrb.mxu3 %v6761_v49  ;;  %v9327_v30 = vld [vmem:[#allocation29_spill] sm:$0xff] }
 0x5ba   :  { %2218 = vmatpush.msrb.mxu2 %v6774_v12  ;;  %2180 = vmatpush.msrb.mxu0 %v6757_v55  ;;  %v9328_v21 = vld [vmem:[#allocation33_spill] sm:$0xff] }
 0x5bb   :  { %v1665_v4 = vadd.f32 %v1664_v32, %v1663_v5  ;;  %v1652_v23 = vadd.f32 %v6879_v15, %v1651_v7  ;;  %v1660_v16 = vor.u32 1.1754944e-38, %v1659_v59  ;;  %vm1658_vm15 = vcmp.eq.f32.partialorder %v1657_v1, 8.507059e+37  ;;  %2200 = vmatpush.msrb.mxu1 %v6759_v62  ;;  %2240 = vmatpush.msrb.mxu3 %v6767_v48  ;;  %v9330_v7 = vld [vmem:[#allocation34_spill] sm:$0xff]  ;;  %v9333_v59 = vld [vmem:[#allocation37_spill] sm:$0xff]  ;;  %v9334_v1 = vld [vmem:[#allocation40_spill] sm:$0xff] }
 0x5bc   :  { %2219 = vmatpush.msrb.mxu2 %v6780_v52  ;;  %2181 = vmatpush.msrb.mxu0 %v6770_v25  ;;  %v9329_v5 = vmov 0.0  }
 0x5bd   :  { %5037 = vtanh.f32 %v1665_v4  ;;  %v1656_v32 = vsel %vm1655_vm14, %v6879_v15, %v1652_v23  ;;  %2201 = vmatpush.msrb.mxu1 %v6772_v11  ;;  %2241 = vmatpush.msrb.mxu3 %v6778_v10  ;;  %v9321_v15 = vld [vmem:[#allocation60_spill] sm:$0xff]  ;;  %v9331_v4 = vld [vmem:[#allocation39_spill] sm:$0xff] }
 0x5be   :  { %v1661_v57 = vsel %vm1658_vm15, %v1660_v16, %v1656_v32  ;;  %2220 = vmatpush.msrb.mxu2 %v6792_v6  ;;  %2182 = vmatpush.msrb.mxu0 %v6784_v19  ;;  %v9332_v23 = vld [vmem:[#allocation36_spill] sm:$0xff]  ;;  %v9335_v32 = vld [vmem:[#allocation17_spill] sm:$0xff]  ;;  %v9336_v16 = vld [vmem:[#allocation19_spill] sm:$0xff] }
 0x5bf   :  { %2202 = vmatpush.msrb.mxu1 %v9320_v60  ;;  %2242 = vmatpush.msrb.mxu3 %v9321_v15 }
 0x5c0   :  { %2221 = vmatpush.msrb.mxu2 %v6804_v35  ;;  %2183 = vmatpush.msrb.mxu0 %v9323_v54 }
 0x5c1   :  { %2203 = vmatpush.msrb.mxu1 %v9324_v26  ;;  %2243 = vmatpush.msrb.mxu3 %v9325_v28 }
 0x5c2   :  { %2222 = vmatpush.msrb.mxu2 %v9322_v63  ;;  %2184 = vmatpush.msrb.mxu0 %v9326_v37 }
 0x5c3   :  { %v5038_v44 = vpop.eup %5037  ;;  %2204 = vmatpush.msrb.mxu1 %v9327_v30  ;;  %2244 = vmatpush.msrb.mxu3 %v9328_v21 }
 0x5c4   :  { %v1667_v51 = vmul.f32 %v5038_v44, %v1661_v57  ;;  %2223 = vmatpush.msrb.mxu2 %v6832_v14  ;;  %2185 = vmatpush.msrb.mxu0 %v6824_v13  ;;  %v9337_v44 = vld [vmem:[#allocation22_spill] sm:$0xff]  ;;  %v9338_v57 = vld [vmem:[#allocation20_spill] sm:$0xff] }
 0x5c5   :  { %2205 = vmatpush.msrb.mxu1 %v9330_v7  ;;  %2245 = vmatpush.msrb.mxu3 %v9331_v4 }
 0x5c6   :  { %1856 = vmatmul.f32.gmra.mxu0 %v1667_v51  ;;  %1897 = vmatmul.f32.gmra.mxu1 %v1667_v51 }
 0x5c7   :  { %1938 = vmatmul.f32.gmra.mxu2 %v1667_v51  ;;  %1979 = vmatmul.f32.gmra.mxu3 %v1667_v51  ;;  %v9339_v51 = vld [vmem:[#allocation21_spill] sm:$0xff] }
 0x5c8   :  { %2224 = vmatpush.msrb.mxu2 %v6844_v43  ;;  %2186 = vmatpush.msrb.mxu0 %v9332_v23 }
 0x5c9   :  { %2206 = vmatpush.msrb.mxu1 %v9333_v59  ;;  %2246 = vmatpush.msrb.mxu3 %v9334_v1 }
 0x5ca   :  { %2225 = vmatpush.msrb.mxu2 %v6856_v9 }
 0x5cc   :  { %2226 = vmatpush.msrb.mxu2 %v6863_v38 }
 0x5ce   :  { %2035 = vmatmul.f32.vlgmr.msra.gmra.mxu0 %v9329_v5  ;;  %2055 = vmatmul.f32.vlgmr.msra.gmra.mxu1 %v9329_v5 }
 0x5cf   :  { %2075 = vmatmul.f32.vlgmr.msra.gmra.mxu2 %v9329_v5  ;;  %2095 = vmatmul.f32.vlgmr.msra.gmra.mxu3 %v9329_v5  ;;  %v9340_v5 = vld [vmem:[#allocation51_spill] sm:$0xff] }
 0x5d0   :  { %2323 = vmatpush.msra.mxu0 %v9335_v32  ;;  %2343 = vmatpush.msra.mxu1 %v6646_v3 }
 0x5d1   :  { %2363 = vmatpush.msra.mxu2 %v6680_v18  ;;  %2383 = vmatpush.msra.mxu3 %v6654_v42 }
 0x5d2   :  { %2324 = vmatpush.msra.mxu0 %v6648_v24  ;;  %2344 = vmatpush.msra.mxu1 %v9336_v16 }
 0x5d3   :  { %2364 = vmatpush.msra.mxu2 %v6683_v8  ;;  %2384 = vmatpush.msra.mxu3 %v9337_v44 }
 0x5d4   :  { %2325 = vmatpush.msra.mxu0 %v6657_v22  ;;  %2345 = vmatpush.msra.mxu1 %v9338_v57 }
 0x5d5   :  { %2365 = vmatpush.msra.mxu2 %v6688_v29  ;;  %2385 = vmatpush.msra.mxu3 %v9339_v51 }
 0x5d6   :  { %2326 = vmatpush.msra.mxu0 %v9340_v5  ;;  %2346 = vmatpush.msra.mxu1 %v6692_v20 }
 0x5d7   :  { %2366 = vmatpush.msra.mxu2 %v6704_v27  ;;  %2386 = vmatpush.msra.mxu3 %v6702_v17 }
 0x5d8   :  { %2327 = vmatpush.msra.mxu0 %v6695_v56  ;;  %2347 = vmatpush.msra.mxu1 %v6700_v2 }
 0x5d9   :  { %2367 = vmatpush.msra.mxu2 %v6712_v39  ;;  %2387 = vmatpush.msra.mxu3 %v6710_v61 }
 0x5da   :  { %2328 = vmatpush.msra.mxu0 %v6720_v31  ;;  %2348 = vmatpush.msra.mxu1 %v6722_v33 }
 0x5db   :  { %2368 = vmatpush.msra.mxu2 %v6728_v36  ;;  %2388 = vmatpush.msra.mxu3 %v6724_v34 }
 0x5dc   :  { %2329 = vmatpush.msra.mxu0 %v6730_v53  ;;  %2349 = vmatpush.msra.mxu1 %v6732_v40 }
 0x5dd   :  { %2369 = vmatpush.msra.mxu2 %v6740_v41  ;;  %2389 = vmatpush.msra.mxu3 %v6735_v46 }
 0x5de   :  { %2330 = vmatpush.msra.mxu0 %v6742_v45  ;;  %2350 = vmatpush.msra.mxu1 %v6744_v47 }
 0x5df   :  { %2370 = vmatpush.msra.mxu2 %v6774_v12  ;;  %2390 = vmatpush.msra.mxu3 %v6754_v50 }
 0x5e0   :  { %2331 = vmatpush.msra.mxu0 %v6750_v58  ;;  %2351 = vmatpush.msra.mxu1 %v6752_v0 }
 0x5e1   :  { %2371 = vmatpush.msra.mxu2 %v6780_v52  ;;  %2391 = vmatpush.msra.mxu3 %v6761_v49 }
 0x5e2   :  { %2332 = vmatpush.msra.mxu0 %v6757_v55  ;;  %2352 = vmatpush.msra.mxu1 %v6759_v62 }
 0x5e3   :  { %2372 = vmatpush.msra.mxu2 %v6792_v6  ;;  %2392 = vmatpush.msra.mxu3 %v6767_v48 }
 0x5e4   :  { %2333 = vmatpush.msra.mxu0 %v6770_v25  ;;  %2353 = vmatpush.msra.mxu1 %v6772_v11 }
 0x5e5   :  { %2373 = vmatpush.msra.mxu2 %v6804_v35  ;;  %2393 = vmatpush.msra.mxu3 %v6778_v10 }
 0x5e6   :  { %2334 = vmatpush.msra.mxu0 %v6784_v19  ;;  %2354 = vmatpush.msra.mxu1 %v9320_v60 }
 0x5e7   :  { %2374 = vmatpush.msra.mxu2 %v9322_v63  ;;  %2394 = vmatpush.msra.mxu3 %v9321_v15 }
 0x5e8   :  { %2335 = vmatpush.msra.mxu0 %v9323_v54  ;;  %2355 = vmatpush.msra.mxu1 %v9324_v26 }
 0x5e9   :  { %2375 = vmatpush.msra.mxu2 %v6832_v14  ;;  %2395 = vmatpush.msra.mxu3 %v9325_v28 }
 0x5ea   :  { %2336 = vmatpush.msra.mxu0 %v9326_v37  ;;  %2356 = vmatpush.msra.mxu1 %v9327_v30  ;;  %v1836_v30 = vpop.f32.mrf.mxu0  ;;  %v1959_v37 = vpop.f32.mrf.mxu3 }
 0x5eb   :  { %2376 = vmatpush.msra.mxu2 %v6844_v43  ;;  %2396 = vmatpush.msra.mxu3 %v9328_v21  ;;  %v1877_v43 = vpop.f32.mrf.mxu1 }
 0x5ec   :  { %2337 = vmatpush.msra.mxu0 %v6824_v13  ;;  %2357 = vmatpush.msra.mxu1 %v9330_v7  ;;  %v1918_v7 = vpop.f32.mrf.mxu2 }
 0x5ed   :  { %2377 = vmatpush.msra.mxu2 %v6856_v9  ;;  %2397 = vmatpush.msra.mxu3 %v9331_v4 }
 0x5ee   :  { %2338 = vmatpush.msra.mxu0 %v9332_v23  ;;  %2358 = vmatpush.msra.mxu1 %v9333_v59 }
 0x5ef   :  { %2378 = vmatpush.msra.mxu2 %v6863_v38  ;;  %2398 = vmatpush.msra.mxu3 %v9334_v1 }
 0x5f2   :  { %v7019_v21 = vpop.f32.mrf.mxu0  ;;  %v7023_v28 = vpop.f32.mrf.mxu3 }
 0x5f3   :  { %9341 = vst [vmem:[#allocation43_spill] sm:$0xff] %v7019_v21  ;;  %v7021_v13 = vpop.f32.mrf.mxu1 }
 0x5f4   :  { %9342 = vst [vmem:[#allocation44_spill] sm:$0xff] %v7021_v13  ;;  %v7029_v23 = vpop.f32.mrf.mxu2 }
 0x5f5   :  { %9343 = vst [vmem:[#allocation46_spill] sm:$0xff] %v7023_v28 }
 0x5f6   :  { %9346 = vst [vmem:[#allocation48_spill] sm:$0xff] %v7029_v23 }
 0x5fa   :  { %v7025_v9 = vpop.f32.mrf.mxu0  ;;  %v7031_v59 = vpop.f32.mrf.mxu3 }
 0x5fb   :  { %9344 = vst [vmem:[#allocation45_spill] sm:$0xff] %v7025_v9  ;;  %v7027_v4 = vpop.f32.mrf.mxu1 }
 0x5fc   :  { %9345 = vst [vmem:[#allocation47_spill] sm:$0xff] %v7027_v4  ;;  %v7037_v14 = vpop.f32.mrf.mxu2 }
 0x5fd   :  { %9347 = vst [vmem:[#allocation50_spill] sm:$0xff] %v7031_v59 }
 0x5fe   :  { %9350 = vst [vmem:[#allocation69_spill] sm:$0xff] %v7037_v14 }
 0x602   :  { %v7033_v38 = vpop.f32.mrf.mxu0  ;;  %v7039_v21 = vpop.f32.mrf.mxu3 }
 0x603   :  { %9348 = vst [vmem:[#allocation68_spill] sm:$0xff] %v7033_v38  ;;  %v7035_v1 = vpop.f32.mrf.mxu1 }
 0x604   :  { %9349 = vst [vmem:[#allocation58_spill] sm:$0xff] %v7035_v1  ;;  %v7045_v28 = vpop.f32.mrf.mxu2 }
 0x605   :  { %9351 = vst [vmem:[#allocation59_spill] sm:$0xff] %v7039_v21 }
 0x606   :  { %9354 = vst [vmem:[#allocation74_spill] sm:$0xff] %v7045_v28 }
 0x60a   :  { %v7041_v13 = vpop.f32.mrf.mxu0  ;;  %v7047_v9 = vpop.f32.mrf.mxu3 }
 0x60b   :  { %9352 = vst [vmem:[#allocation72_spill] sm:$0xff] %v7041_v13  ;;  %v7043_v26 = vpop.f32.mrf.mxu1 }
 0x60c   :  { %9353 = vst [vmem:[#allocation61_spill] sm:$0xff] %v7043_v26  ;;  %v7053_v59 = vpop.f32.mrf.mxu2  ;;  %v1801_v26 = vld [vmem:[#allocation10 + $0x4] sm:$0xf] }
 0x60d   :  { %9355 = vst [vmem:[#allocation64_spill] sm:$0xff] %v7047_v9  ;;  %v7079_v63 = vperm.slane %v1801_v26, 3 }
 0x60e   :  { %9358 = vst [vmem:[#allocation65_spill] sm:$0xff] %v7053_v59 }
 0x60f   :  { %9370 = vst [vmem:[#allocation22_spill] sm:$0xff] %v7079_v63  ;;  %v1960_v60 = vadd.f32 %v1959_v37, %v7079_v63 }
 0x612   :  { %v7049_v4 = vpop.f32.mrf.mxu0  ;;  %v7055_v38 = vpop.f32.mrf.mxu3 }
 0x613   :  { %9356 = vst [vmem:[#allocation62_spill] sm:$0xff] %v7049_v4  ;;  %v7051_v23 = vpop.f32.mrf.mxu1  ;;  %v7069_v4 = vperm.slane %v1801_v26, 0 }
 0x614   :  { %9357 = vst [vmem:[#allocation63_spill] sm:$0xff] %v7051_v23  ;;  %v7061_v21 = vpop.f32.mrf.mxu2  ;;  %v7071_v23 = vperm.slane %v1801_v26, 1 }
 0x615   :  { %9359 = vst [vmem:[#allocation70_spill] sm:$0xff] %v7055_v38  ;;  %v1837_v59 = vadd.f32 %v1836_v30, %v7069_v4 }
 0x616   :  { %9362 = vst [vmem:[#allocation23_spill] sm:$0xff] %v7061_v21  ;;  %v1878_v38 = vadd.f32 %v1877_v43, %v7071_v23 }
 0x617   :  { %9366 = vst [vmem:[#allocation71_spill] sm:$0xff] %v7069_v4 }
 0x618   :  { %9367 = vst [vmem:[#allocation73_spill] sm:$0xff] %v7071_v23 }
 0x61a   :  { %v7057_v1 = vpop.f32.mrf.mxu0  ;;  %v7063_v13 = vpop.f32.mrf.mxu3 }
 0x61b   :  { %9360 = vst [vmem:[#allocation75_spill] sm:$0xff] %v7057_v1  ;;  %v7059_v14 = vpop.f32.mrf.mxu1 }
 0x61c   :  { %9361 = vst [vmem:[#allocation18_spill] sm:$0xff] %v7059_v14  ;;  %v7075_v1 = vpop.f32.mrf.mxu2 }
 0x61d   :  { %9363 = vst [vmem:[#allocation49_spill] sm:$0xff] %v7063_v13 }
 0x61e   :  { %9368 = vst [vmem:[#allocation17_spill] sm:$0xff] %v7075_v1 }
 0x643   :  { %v7065_v28 = vpop.f32.mrf.mxu0  ;;  %v7067_v9 = vpop.f32.mrf.mxu1 }
 0x644   :  { %9364 = vst [vmem:[#allocation66_spill] sm:$0xff] %v7065_v28 }
 0x645   :  { %9365 = vst [vmem:[#allocation67_spill] sm:$0xff] %v7067_v9 }
 0x64a   :  { %v7077_v14 = vpop.f32.mrf.mxu3  ;;  %v7082_v19 = vpop.f32.mrf.mxu2 }
 0x64b   :  { %9369 = vst [vmem:[#allocation19_spill] sm:$0xff] %v7077_v14  ;;  %v2036_v21 = vpop.f32.mrf.mxu0  ;;  %v2056_v54 = vpop.f32.mrf.mxu1 }
 0x64c   :  { %v2099_v13 = vadd.f32 %v2036_v21, %v1837_v59  ;;  %v2100_v15 = vadd.f32 %v2056_v54, %v1878_v38  ;;  %9371 = vst [vmem:[#allocation20_spill] sm:$0xff] %v7082_v19  ;;  %v7084_v21 = vperm.slane %v1801_v26, 2 }
 0x64e   :  { %v4851_v28 = vmul.f32 -1.442695, %v2099_v13  ;;  %v4852_v9 = vmul.f32 -1.442695, %v2100_v15  ;;  %9372 = vst [vmem:[#allocation21_spill] sm:$0xff] %v7084_v21  ;;  %v1919_v15 = vadd.f32 %v1918_v7, %v7084_v21 }
 0x650   :  { %5039 = vpow2.f32 %v4851_v28 }
 0x651   :  { %5041 = vpow2.f32 %v4852_v9 }
 0x652   :  { %v2096_v30 = vpop.f32.mrf.mxu3  ;;  %v2076_v38 = vpop.f32.mrf.mxu2 }
 0x653   :  { %v2102_v43 = vadd.f32 %v2096_v30, %v1960_v60  ;;  %v2101_v28 = vadd.f32 %v2076_v38, %v1919_v15 }
 0x655   :  { %v4853_v23 = vmul.f32 -1.442695, %v2102_v43 }
 0x656   :  { %v5040_v1 = vpop.eup %5039 }
 0x657   :  { %v5042_v4 = vpop.eup %5041  ;;  %v2106_v14 = vadd.f32 1.0, %v5040_v1  ;;  %5043 = vpow2.f32 %v4853_v23 }
 0x658   :  { %v2125_v10 = vadd.f32 1.0, %v5042_v4 }
 0x659   :  { %5045 = vrcp.f32 %v2106_v14  ;;  %v2118_v1 = vand.u32 2147483648, %v2106_v14  ;;  %v2116_v23 = vand.u32 2147483647, %v2106_v14  ;;  %vm2112_vm2 = vweird.f32 %v2106_v14 }
 0x65a   :  { %5047 = vrcp.f32 %v2125_v10  ;;  %v2137_v4 = vand.u32 2147483648, %v2125_v10  ;;  %v2135_v63 = vand.u32 2147483647, %v2125_v10  ;;  %vm2131_vm3 = vweird.f32 %v2125_v10 }
 0x65b   :  { %v2119_v38 = vor.u32 1.1754944e-38, %v2118_v1  ;;  %vm2117_vm5 = vcmp.eq.f32.partialorder %v2116_v23, 8.507059e+37 }
 0x65c   :  { %v2138_v21 = vor.u32 1.1754944e-38, %v2137_v4  ;;  %vm2136_vm7 = vcmp.eq.f32.partialorder %v2135_v63, 8.507059e+37 }
 0x65d   :  { %v5044_v13 = vpop.eup %5043 }
 0x65e   :  { %v2145_v54 = vadd.f32 1.0, %v5044_v13 }
 0x65f   :  { %v5046_v9 = vpop.eup %5045 }
 0x660   :  { %v5048_v37 = vpop.eup %5047  ;;  %v2108_v59 = vmul.f32 %v5046_v9, %v2106_v14  ;;  %5049 = vrcp.f32 %v2145_v54  ;;  %vm2113_vm0 = vweird.f32 %v5046_v9  ;;  %vm2151_vm9 = vweird.f32 %v2145_v54 }
 0x661   :  { %v2127_v60 = vmul.f32 %v5048_v37, %v2125_v10  ;;  %5051 = vtanh.f32 %v2101_v28  ;;  %vm2132_vm1 = vweird.f32 %v5048_v37  ;;  %vm2114_vm4 = vmor %vm2112_vm2, %vm2113_vm0  ;;  %v2155_v14 = vand.u32 2147483647, %v2145_v54 }
 0x662   :  { %v2109_v30 = vsub.f32 1.0, %v2108_v59  ;;  %vm2133_vm6 = vmor %vm2131_vm3, %vm2132_vm1 }
 0x663   :  { %v2128_v43 = vsub.f32 1.0, %v2127_v60  ;;  %vm2156_vm11 = vcmp.eq.f32.partialorder %v2155_v14, 8.507059e+37 }
 0x664   :  { %v2110_v26 = vmul.f32 %v5046_v9, %v2109_v30 }
 0x665   :  { %v2129_v19 = vmul.f32 %v5048_v37, %v2128_v43 }
 0x666   :  { %v5050_v35 = vpop.eup %5049  ;;  %v2111_v7 = vadd.f32 %v5046_v9, %v2110_v26 }
 0x667   :  { %v2130_v13 = vadd.f32 %v5048_v37, %v2129_v19  ;;  %v2147_v15 = vmul.f32 %v5050_v35, %v2145_v54  ;;  %v5052_v28 = vpop.eup %5051  ;;  %vm2152_vm8 = vweird.f32 %v5050_v35  ;;  %v2157_v19 = vand.u32 2147483648, %v2145_v54 }
 0x668   :  { %v2115_v59 = vsel %vm2114_vm4, %v5046_v9, %v2111_v7  ;;  %vm2153_vm10 = vmor %vm2151_vm9, %vm2152_vm8 }
 0x669   :  { %v2120_v60 = vsel %vm2117_vm5, %v2119_v38, %v2115_v59  ;;  %v2134_v30 = vsel %vm2133_vm6, %v5048_v37, %v2130_v13  ;;  %v2148_v11 = vsub.f32 1.0, %v2147_v15  ;;  %v2158_v1 = vor.u32 1.1754944e-38, %v2157_v19  ;;  %v9406_v59 = vld [vmem:[#allocation21_spill] sm:$0xff] }
 0x66a   :  { %v2139_v43 = vsel %vm2136_vm7, %v2138_v21, %v2134_v30  ;;  %v2162_v25 = vmul.f32 %v5052_v28, %v2120_v60  ;;  %v9407_v28 = vld [vmem:[#allocation48_spill] sm:$0xff] }
 0x66b   :  { %v2161_v48 = vmul.f32 0.0, %v2139_v43  ;;  %v2149_v6 = vmul.f32 %v5050_v35, %v2148_v11  ;;  %v1922_v60 = vadd.f32 %v9407_v28, %v9406_v59  ;;  %v7232_v28 = vld [vmem:[#allocation9 + $0x370] sm:$0xff] }
 0x66d   :  { %v7087_v26 = vadd.f32 %v2162_v25, %v2161_v48  ;;  %v2150_v10 = vadd.f32 %v5050_v35, %v2149_v6  ;;  %v9403_v48 = vld [vmem:[#allocation44_spill] sm:$0xff] }
 0x66f   :  { %5053 = vtanh.f32 %v7087_v26  ;;  %v2154_v9 = vsel %vm2153_vm10, %v5050_v35, %v2150_v10 }
 0x670   :  { %v2159_v63 = vsel %vm2156_vm11, %v2158_v1, %v2154_v9 }
 0x675   :  { %v5054_v37 = vpop.eup %5053 }
 0x676   :  { %v7090_v4 = vmul.f32 %v5054_v37, %v2159_v63 }
 0x678   :  { %9373 = vst [vmem:[#allocation51_spill] sm:$0xff] %v7090_v4  ;;  %2187 = vmatmul.f32.vlgmr.msrb.gmra.mxu0 %v7090_v4  ;;  %2207 = vmatmul.f32.vlgmr.msrb.gmra.mxu1 %v7090_v4 }
 0x679   :  { %2227 = vmatmul.f32.vlgmr.msrb.gmra.mxu2 %v7090_v4  ;;  %2247 = vmatmul.f32.vlgmr.msrb.gmra.mxu3 %v7090_v4  ;;  %v7349_v4 = vld [vmem:[#allocation9 + $0x228] sm:$0xff] }
 0x67a   :  { %2475 = vmatpush.msrb.mxu0 %v9335_v32  ;;  %2495 = vmatpush.msrb.mxu1 %v6646_v3  ;;  %v9374_v3 = vld [vmem:[#allocation24_spill] sm:$0xff]  ;;  %v9404_v32 = vld [vmem:[#allocation22_spill] sm:$0xff] }
 0x67b   :  { %2515 = vmatpush.msrb.mxu2 %v6680_v18  ;;  %2535 = vmatpush.msrb.mxu3 %v6654_v42  ;;  %v9376_v42 = vld [vmem:[#allocation54_spill] sm:$0xff]  ;;  %v9378_v18 = vld [vmem:[#allocation27_spill] sm:$0xff] }
 0x67c   :  { %2476 = vmatpush.msrb.mxu0 %v6648_v24  ;;  %2496 = vmatpush.msrb.mxu1 %v9336_v16  ;;  %v9375_v24 = vld [vmem:[#allocation52_spill] sm:$0xff]  ;;  %v9405_v16 = vld [vmem:[#allocation46_spill] sm:$0xff] }
 0x67d   :  { %2516 = vmatpush.msrb.mxu2 %v6683_v8  ;;  %2536 = vmatpush.msrb.mxu3 %v9337_v44  ;;  %v9379_v8 = vld [vmem:[#allocation55_spill] sm:$0xff]  ;;  %v1963_v44 = vadd.f32 %v9405_v16, %v9404_v32 }
 0x67e   :  { %2477 = vmatpush.msrb.mxu0 %v6657_v22  ;;  %2497 = vmatpush.msrb.mxu1 %v9338_v57  ;;  %v9377_v22 = vld [vmem:[#allocation53_spill] sm:$0xff]  ;;  %v7199_v16 = vld [vmem:[#allocation9 + $0x3d8] sm:$0xff] }
 0x67f   :  { %2517 = vmatpush.msrb.mxu2 %v6688_v29  ;;  %2537 = vmatpush.msrb.mxu3 %v9339_v51  ;;  %v9380_v29 = vld [vmem:[#allocation56_spill] sm:$0xff] }
 0x680   :  { %2478 = vmatpush.msrb.mxu0 %v9340_v5  ;;  %2498 = vmatpush.msrb.mxu1 %v6692_v20  ;;  %v9381_v20 = vld [vmem:[#allocation57_spill] sm:$0xff] }
 0x681   :  { %2518 = vmatpush.msrb.mxu2 %v6704_v27  ;;  %2538 = vmatpush.msrb.mxu3 %v6702_v17  ;;  %v9384_v17 = vld [vmem:[#allocation26_spill] sm:$0xff]  ;;  %v9385_v27 = vld [vmem:[#allocation25_spill] sm:$0xff] }
 0x682   :  { %2479 = vmatpush.msrb.mxu0 %v6695_v56  ;;  %2499 = vmatpush.msrb.mxu1 %v6700_v2  ;;  %v9382_v56 = vld [vmem:[#allocation31_spill] sm:$0xff]  ;;  %v9383_v2 = vld [vmem:[#allocation60_spill] sm:$0xff] }
 0x683   :  { %2519 = vmatpush.msrb.mxu2 %v6712_v39  ;;  %2539 = vmatpush.msrb.mxu3 %v6710_v61  ;;  %v9386_v61 = vld [vmem:[#allocation35_spill] sm:$0xff]  ;;  %v9387_v39 = vld [vmem:[#allocation28_spill] sm:$0xff] }
 0x684   :  { %2480 = vmatpush.msrb.mxu0 %v6720_v31  ;;  %2500 = vmatpush.msrb.mxu1 %v6722_v33  ;;  %v9388_v31 = vld [vmem:[#allocation30_spill] sm:$0xff]  ;;  %v9389_v33 = vld [vmem:[#allocation29_spill] sm:$0xff] }
 0x685   :  { %2520 = vmatpush.msrb.mxu2 %v6728_v36  ;;  %2540 = vmatpush.msrb.mxu3 %v6724_v34  ;;  %v9390_v34 = vld [vmem:[#allocation38_spill] sm:$0xff]  ;;  %v9391_v36 = vld [vmem:[#allocation33_spill] sm:$0xff] }
 0x686   :  { %2481 = vmatpush.msrb.mxu0 %v6730_v53  ;;  %2501 = vmatpush.msrb.mxu1 %v6732_v40  ;;  %v9392_v53 = vld [vmem:[#allocation32_spill] sm:$0xff]  ;;  %v9393_v40 = vld [vmem:[#allocation34_spill] sm:$0xff] }
 0x687   :  { %2521 = vmatpush.msrb.mxu2 %v6740_v41  ;;  %2541 = vmatpush.msrb.mxu3 %v6735_v46  ;;  %v9394_v46 = vld [vmem:[#allocation41_spill] sm:$0xff]  ;;  %v9395_v41 = vld [vmem:[#allocation39_spill] sm:$0xff] }
 0x688   :  { %2482 = vmatpush.msrb.mxu0 %v6742_v45  ;;  %2502 = vmatpush.msrb.mxu1 %v6744_v47  ;;  %v9396_v45 = vld [vmem:[#allocation36_spill] sm:$0xff]  ;;  %v9397_v47 = vld [vmem:[#allocation37_spill] sm:$0xff]  ;;  %9428 = vst [vmem:[#allocation41_spill] sm:$0xff] %v7349_v4 }
 0x689   :  { %2522 = vmatpush.msrb.mxu2 %v6774_v12  ;;  %2542 = vmatpush.msrb.mxu3 %v6754_v50  ;;  %v9400_v50 = vld [vmem:[#allocation71_spill] sm:$0xff] }
 0x68a   :  { %2483 = vmatpush.msrb.mxu0 %v6750_v58  ;;  %2503 = vmatpush.msrb.mxu1 %v6752_v0  ;;  %v9398_v58 = vld [vmem:[#allocation42_spill] sm:$0xff]  ;;  %v9399_v0 = vld [vmem:[#allocation40_spill] sm:$0xff] }
 0x68b   :  { %2523 = vmatpush.msrb.mxu2 %v6780_v52  ;;  %2543 = vmatpush.msrb.mxu3 %v6761_v49  ;;  %v9402_v49 = vld [vmem:[#allocation73_spill] sm:$0xff] }
 0x68c   :  { %2484 = vmatpush.msrb.mxu0 %v6757_v55  ;;  %2504 = vmatpush.msrb.mxu1 %v6759_v62  ;;  %v9401_v55 = vld [vmem:[#allocation43_spill] sm:$0xff]  ;;  %v1881_v25 = vadd.f32 %v9403_v48, %v9402_v49 }
 0x68d   :  { %2524 = vmatpush.msrb.mxu2 %v9374_v3  ;;  %2544 = vmatpush.msrb.mxu3 %v9375_v24  ;;  %v1840_v62 = vadd.f32 %v9401_v55, %v9400_v50 }
 0x68e   :  { %2485 = vmatpush.msrb.mxu0 %v9376_v42  ;;  %2505 = vmatpush.msrb.mxu1 %v9377_v22 }
 0x68f   :  { %2525 = vmatpush.msrb.mxu2 %v9378_v18  ;;  %2545 = vmatpush.msrb.mxu3 %v9379_v8 }
 0x690   :  { %2486 = vmatpush.msrb.mxu0 %v9380_v29  ;;  %2506 = vmatpush.msrb.mxu1 %v9381_v20 }
 0x691   :  { %2526 = vmatpush.msrb.mxu2 %v9382_v56  ;;  %2546 = vmatpush.msrb.mxu3 %v9383_v2 }
 0x692   :  { %2487 = vmatpush.msrb.mxu0 %v9384_v17  ;;  %2507 = vmatpush.msrb.mxu1 %v9385_v27 }
 0x693   :  { %2527 = vmatpush.msrb.mxu2 %v9386_v61  ;;  %2547 = vmatpush.msrb.mxu3 %v9387_v39 }
 0x694   :  { %2488 = vmatpush.msrb.mxu0 %v9388_v31  ;;  %2508 = vmatpush.msrb.mxu1 %v9389_v33 }
 0x695   :  { %2528 = vmatpush.msrb.mxu2 %v9390_v34  ;;  %2548 = vmatpush.msrb.mxu3 %v9391_v36 }
 0x696   :  { %2489 = vmatpush.msrb.mxu0 %v9392_v53  ;;  %2509 = vmatpush.msrb.mxu1 %v9393_v40 }
 0x697   :  { %2529 = vmatpush.msrb.mxu2 %v9394_v46  ;;  %2549 = vmatpush.msrb.mxu3 %v9395_v41 }
 0x698   :  { %2490 = vmatpush.msrb.mxu0 %v9396_v45  ;;  %2510 = vmatpush.msrb.mxu1 %v9397_v47 }
 0x699   :  { %2530 = vmatpush.msrb.mxu2 %v9398_v58  ;;  %2550 = vmatpush.msrb.mxu3 %v9399_v0 }
 0x6f5   :  { %v2188_v11 = vpop.f32.mrf.mxu0  ;;  %v2208_v12 = vpop.f32.mrf.mxu1 }
 0x6f6   :  { %v2251_v52 = vadd.f32 %v2188_v11, %v1840_v62  ;;  %v2252_v6 = vadd.f32 %v2208_v12, %v1881_v25  ;;  %v7181_v11 = vld [vmem:[#allocation9 + $0x3e8] sm:$0xff]  ;;  %v7184_v12 = vld [vmem:[#allocation9 + $0x3f0] sm:$0xff] }
 0x6f8   :  { %v4854_v35 = vmul.f32 -1.442695, %v2251_v52  ;;  %v4855_v5 = vmul.f32 -1.442695, %v2252_v6  ;;  %v7187_v52 = vld [vmem:[#allocation9 + $0x3f8] sm:$0xff]  ;;  %v7190_v6 = vld [vmem:[#allocation9 + $0x3c0] sm:$0xff] }
 0x6fa   :  { %5055 = vpow2.f32 %v4854_v35  ;;  %v7193_v35 = vld [vmem:[#allocation9 + $0x3c8] sm:$0xff] }
 0x6fb   :  { %5057 = vpow2.f32 %v4855_v5  ;;  %v7196_v5 = vld [vmem:[#allocation9 + $0x3d0] sm:$0xff] }
 0x6fc   :  { %v2248_v57 = vpop.f32.mrf.mxu3  ;;  %v2228_v13 = vpop.f32.mrf.mxu2 }
 0x6fd   :  { %v2254_v51 = vadd.f32 %v2248_v57, %v1963_v44  ;;  %v2253_v10 = vadd.f32 %v2228_v13, %v1922_v60  ;;  %v7202_v44 = vld [vmem:[#allocation9 + $0x3a0] sm:$0xff]  ;;  %v7205_v57 = vld [vmem:[#allocation9 + $0x3a8] sm:$0xff]  ;;  %v7235_v60 = vld [vmem:[#allocation9 + $0x378] sm:$0xff] }
 0x6fe   :  { %v7226_v13 = vld [vmem:[#allocation9 + $0x360] sm:$0xff] }
 0x6ff   :  { %v4856_v21 = vmul.f32 -1.442695, %v2254_v51  ;;  %v7208_v51 = vld [vmem:[#allocation9 + $0x3b0] sm:$0xff] }
 0x700   :  { %v5056_v54 = vpop.eup %5055 }
 0x701   :  { %v5058_v23 = vpop.eup %5057  ;;  %v2258_v7 = vadd.f32 1.0, %v5056_v54  ;;  %5059 = vpow2.f32 %v4856_v21  ;;  %v7211_v21 = vld [vmem:[#allocation9 + $0x3b8] sm:$0xff]  ;;  %v7214_v54 = vld [vmem:[#allocation9 + $0x380] sm:$0xff] }
 0x702   :  { %v2277_v38 = vadd.f32 1.0, %v5058_v23  ;;  %v7217_v23 = vld [vmem:[#allocation9 + $0x388] sm:$0xff] }
 0x703   :  { %5061 = vrcp.f32 %v2258_v7  ;;  %v2270_v63 = vand.u32 2147483648, %v2258_v7  ;;  %v2268_v42 = vand.u32 2147483647, %v2258_v7  ;;  %vm2264_vm14 = vweird.f32 %v2258_v7 }
 0x704   :  { %5063 = vrcp.f32 %v2277_v38  ;;  %v2289_v3 = vand.u32 2147483648, %v2277_v38  ;;  %v2287_v18 = vand.u32 2147483647, %v2277_v38  ;;  %vm2283_vm15 = vweird.f32 %v2277_v38 }
 0x705   :  { %v2271_v20 = vor.u32 1.1754944e-38, %v2270_v63  ;;  %vm2269_vm2 = vcmp.eq.f32.partialorder %v2268_v42, 8.507059e+37  ;;  %v7262_v63 = vld [vmem:[#allocation9 + $0x300] sm:$0xff]  ;;  %v7271_v42 = vld [vmem:[#allocation9 + $0x318] sm:$0xff] }
 0x706   :  { %v2290_v17 = vor.u32 1.1754944e-38, %v2289_v3  ;;  %vm2288_vm3 = vcmp.eq.f32.partialorder %v2287_v18, 8.507059e+37  ;;  %v7265_v3 = vld [vmem:[#allocation9 + $0x308] sm:$0xff] }
 0x707   :  { %v5060_v15 = vpop.eup %5059  ;;  %v7277_v18 = vld [vmem:[#allocation9 + $0x2e8] sm:$0xff] }
 0x708   :  { %v2297_v30 = vadd.f32 1.0, %v5060_v15  ;;  %v7229_v15 = vld [vmem:[#allocation9 + $0x368] sm:$0xff] }
 0x709   :  { %v5062_v43 = vpop.eup %5061 }
 0x70a   :  { %v5064_v19 = vpop.eup %5063  ;;  %v2260_v14 = vmul.f32 %v5062_v43, %v2258_v7  ;;  %5065 = vrcp.f32 %v2297_v30  ;;  %vm2265_vm12 = vweird.f32 %v5062_v43  ;;  %v2309_v45 = vand.u32 2147483648, %v2297_v30  ;;  %v7220_v7 = vld [vmem:[#allocation9 + $0x390] sm:$0xff] }
 0x70b   :  { %v2279_v9 = vmul.f32 %v5064_v19, %v2277_v38  ;;  %5067 = vtanh.f32 %v2253_v10  ;;  %vm2284_vm13 = vweird.f32 %v5064_v19  ;;  %vm2266_vm0 = vmor %vm2264_vm14, %vm2265_vm12  ;;  %vm2303_vm5 = vweird.f32 %v2297_v30  ;;  %v7223_v38 = vld [vmem:[#allocation9 + $0x398] sm:$0xff]  ;;  %v7244_v10 = vld [vmem:[#allocation9 + $0x350] sm:$0xff] }
 0x70c   :  { %v2261_v1 = vsub.f32 1.0, %v2260_v14  ;;  %vm2285_vm1 = vmor %vm2283_vm15, %vm2284_vm13  ;;  %v2307_v47 = vand.u32 2147483647, %v2297_v30  ;;  %v2310_v55 = vor.u32 1.1754944e-38, %v2309_v45  ;;  %v7250_v14 = vld [vmem:[#allocation9 + $0x320] sm:$0xff]  ;;  %v7328_v45 = vld [vmem:[#allocation9 + $0x270] sm:$0xff] }
 0x70d   :  { %v2280_v37 = vsub.f32 1.0, %v2279_v9  ;;  %v7253_v9 = vld [vmem:[#allocation9 + $0x328] sm:$0xff]  ;;  %9421 = vst [vmem:[#allocation28_spill] sm:$0xff] %v7328_v45 }
 0x70e   :  { %v2262_v24 = vmul.f32 %v5062_v43, %v2261_v1  ;;  %vm2308_vm7 = vcmp.eq.f32.partialorder %v2307_v47, 8.507059e+37  ;;  %v7256_v1 = vld [vmem:[#allocation9 + $0x330] sm:$0xff]  ;;  %v7331_v47 = vld [vmem:[#allocation9 + $0x278] sm:$0xff] }
 0x70f   :  { %v2281_v22 = vmul.f32 %v5064_v19, %v2280_v37  ;;  %v7259_v37 = vld [vmem:[#allocation9 + $0x338] sm:$0xff]  ;;  %9422 = vst [vmem:[#allocation30_spill] sm:$0xff] %v7331_v47 }
 0x710   :  { %v5066_v8 = vpop.eup %5065  ;;  %v2263_v29 = vadd.f32 %v5062_v43, %v2262_v24  ;;  %v7268_v24 = vld [vmem:[#allocation9 + $0x310] sm:$0xff] }
 0x711   :  { %v2282_v56 = vadd.f32 %v5064_v19, %v2281_v22  ;;  %v2299_v2 = vmul.f32 %v5066_v8, %v2297_v30  ;;  %v5068_v61 = vpop.eup %5067  ;;  %vm2304_vm4 = vweird.f32 %v5066_v8  ;;  %v7238_v30 = vld [vmem:[#allocation9 + $0x340] sm:$0xff] }
 0x712   :  { %v2267_v27 = vsel %vm2266_vm0, %v5062_v43, %v2263_v29  ;;  %vm2305_vm6 = vmor %vm2303_vm5, %vm2304_vm4  ;;  %v7241_v43 = vld [vmem:[#allocation9 + $0x348] sm:$0xff]  ;;  %v7274_v22 = vld [vmem:[#allocation9 + $0x2e0] sm:$0xff] }
 0x713   :  { %v2272_v39 = vsel %vm2269_vm2, %v2271_v20, %v2267_v27  ;;  %v2286_v31 = vsel %vm2285_vm1, %v5064_v19, %v2282_v56  ;;  %v2300_v33 = vsub.f32 1.0, %v2299_v2  ;;  %v7247_v19 = vld [vmem:[#allocation9 + $0x358] sm:$0xff]  ;;  %v7286_v20 = vld [vmem:[#allocation9 + $0x2c0] sm:$0xff]  ;;  %v7289_v56 = vld [vmem:[#allocation9 + $0x2c8] sm:$0xff] }
 0x714   :  { %v2291_v34 = vsel %vm2288_vm3, %v2290_v17, %v2286_v31  ;;  %v2314_v36 = vmul.f32 %v5068_v61, %v2272_v39  ;;  %v7283_v29 = vld [vmem:[#allocation9 + $0x2f8] sm:$0xff]  ;;  %v7292_v2 = vld [vmem:[#allocation9 + $0x2d0] sm:$0xff]  ;;  %v7298_v27 = vld [vmem:[#allocation9 + $0x2a0] sm:$0xff] }
 0x715   :  { %v2313_v53 = vmul.f32 %v2291_v34, %v7087_v26  ;;  %v2301_v40 = vmul.f32 %v5066_v8, %v2300_v33  ;;  %v7178_v26 = vld [vmem:[#allocation9 + $0x3e0] sm:$0xff]  ;;  %9409 = vst [vmem:[#allocation52_spill] sm:$0xff] %v7292_v2  ;;  %v7295_v17 = vld [vmem:[#allocation9 + $0x2d8] sm:$0xff]  ;;  %v7301_v61 = vld [vmem:[#allocation9 + $0x2a8] sm:$0xff] }
 0x716   :  { %9410 = vst [vmem:[#allocation54_spill] sm:$0xff] %v7295_v17  ;;  %v7304_v39 = vld [vmem:[#allocation9 + $0x2b0] sm:$0xff]  ;;  %v7307_v31 = vld [vmem:[#allocation9 + $0x2b8] sm:$0xff]  ;;  %v7310_v33 = vld [vmem:[#allocation9 + $0x280] sm:$0xff] }
 0x717   :  { %v7169_v46 = vadd.f32 %v2314_v36, %v2313_v53  ;;  %v2302_v41 = vadd.f32 %v5066_v8, %v2301_v40  ;;  %9411 = vst [vmem:[#allocation53_spill] sm:$0xff] %v7298_v27  ;;  %v7313_v34 = vld [vmem:[#allocation9 + $0x288] sm:$0xff]  ;;  %v7316_v36 = vld [vmem:[#allocation9 + $0x290] sm:$0xff]  ;;  %v7319_v53 = vld [vmem:[#allocation9 + $0x298] sm:$0xff] }
 0x718   :  { %9412 = vst [vmem:[#allocation27_spill] sm:$0xff] %v7301_v61  ;;  %v7322_v40 = vld [vmem:[#allocation9 + $0x260] sm:$0xff] }
 0x719   :  { %5069 = vtanh.f32 %v7169_v46  ;;  %v2306_v0 = vsel %vm2305_vm6, %v5066_v8, %v2302_v41  ;;  %v7280_v8 = vld [vmem:[#allocation9 + $0x2f0] sm:$0xff]  ;;  %9413 = vst [vmem:[#allocation55_spill] sm:$0xff] %v7304_v39  ;;  %v7325_v41 = vld [vmem:[#allocation9 + $0x268] sm:$0xff] }
 0x71a   :  { %v2311_v48 = vsel %vm2308_vm7, %v2310_v55, %v2306_v0  ;;  %9414 = vst [vmem:[#allocation56_spill] sm:$0xff] %v7307_v31  ;;  %v7334_v0 = vld [vmem:[#allocation9 + $0x240] sm:$0xff]  ;;  %v7337_v55 = vld [vmem:[#allocation9 + $0x248] sm:$0xff] }
 0x71b   :  { %9415 = vst [vmem:[#allocation57_spill] sm:$0xff] %v7310_v33 }
 0x71c   :  { %9416 = vst [vmem:[#allocation31_spill] sm:$0xff] %v7313_v34 }
 0x71d   :  { %9417 = vst [vmem:[#allocation60_spill] sm:$0xff] %v7316_v36 }
 0x71e   :  { %9418 = vst [vmem:[#allocation26_spill] sm:$0xff] %v7319_v53 }
 0x71f   :  { %v5070_v62 = vpop.eup %5069  ;;  %9419 = vst [vmem:[#allocation25_spill] sm:$0xff] %v7322_v40 }
 0x720   :  { %v7172_v25 = vmul.f32 %v5070_v62, %v2311_v48  ;;  %9420 = vst [vmem:[#allocation35_spill] sm:$0xff] %v7325_v41  ;;  %v7340_v62 = vld [vmem:[#allocation9 + $0x250] sm:$0xff]  ;;  %v7343_v48 = vld [vmem:[#allocation9 + $0x258] sm:$0xff] }
 0x721   :  { %9423 = vst [vmem:[#allocation29_spill] sm:$0xff] %v7334_v0 }
 0x722   :  { %9408 = vst [vmem:[#allocation24_spill] sm:$0xff] %v7172_v25  ;;  %2339 = vmatmul.f32.vlgmr.msra.gmra.mxu0 %v7172_v25  ;;  %2359 = vmatmul.f32.vlgmr.msra.gmra.mxu1 %v7172_v25 }
 0x723   :  { %2379 = vmatmul.f32.vlgmr.msra.gmra.mxu2 %v7172_v25  ;;  %2399 = vmatmul.f32.vlgmr.msra.gmra.mxu3 %v7172_v25  ;;  %9424 = vst [vmem:[#allocation38_spill] sm:$0xff] %v7337_v55  ;;  %v7346_v25 = vld [vmem:[#allocation9 + $0x220] sm:$0xff] }
 0x724   :  { %2627 = vmatpush.msra.mxu0 %v7178_v26  ;;  %2647 = vmatpush.msra.mxu1 %v7181_v11  ;;  %9425 = vst [vmem:[#allocation33_spill] sm:$0xff] %v7340_v62 }
 0x725   :  { %2667 = vmatpush.msra.mxu2 %v7184_v12  ;;  %2687 = vmatpush.msra.mxu3 %v7187_v52  ;;  %9426 = vst [vmem:[#allocation32_spill] sm:$0xff] %v7343_v48 }
 0x726   :  { %2628 = vmatpush.msra.mxu0 %v7190_v6  ;;  %2648 = vmatpush.msra.mxu1 %v7193_v35  ;;  %9427 = vst [vmem:[#allocation34_spill] sm:$0xff] %v7346_v25 }
 0x727   :  { %2668 = vmatpush.msra.mxu2 %v7196_v5  ;;  %2688 = vmatpush.msra.mxu3 %v7199_v16 }
 0x728   :  { %2629 = vmatpush.msra.mxu0 %v7202_v44  ;;  %2649 = vmatpush.msra.mxu1 %v7205_v57 }
 0x729   :  { %2669 = vmatpush.msra.mxu2 %v7208_v51  ;;  %2689 = vmatpush.msra.mxu3 %v7211_v21 }
 0x72a   :  { %2630 = vmatpush.msra.mxu0 %v7214_v54  ;;  %2650 = vmatpush.msra.mxu1 %v7217_v23 }
 0x72b   :  { %2670 = vmatpush.msra.mxu2 %v7220_v7  ;;  %2690 = vmatpush.msra.mxu3 %v7223_v38 }
 0x72c   :  { %2631 = vmatpush.msra.mxu0 %v7226_v13  ;;  %2651 = vmatpush.msra.mxu1 %v7229_v15 }
 0x72d   :  { %2671 = vmatpush.msra.mxu2 %v7232_v28  ;;  %2691 = vmatpush.msra.mxu3 %v7235_v60 }
 0x72e   :  { %2632 = vmatpush.msra.mxu0 %v7238_v30  ;;  %2652 = vmatpush.msra.mxu1 %v7241_v43 }
 0x72f   :  { %2672 = vmatpush.msra.mxu2 %v7244_v10  ;;  %2692 = vmatpush.msra.mxu3 %v7247_v19 }
 0x730   :  { %2633 = vmatpush.msra.mxu0 %v7250_v14  ;;  %2653 = vmatpush.msra.mxu1 %v7253_v9 }
 0x731   :  { %2673 = vmatpush.msra.mxu2 %v7256_v1  ;;  %2693 = vmatpush.msra.mxu3 %v7259_v37 }
 0x732   :  { %2634 = vmatpush.msra.mxu0 %v7262_v63  ;;  %2654 = vmatpush.msra.mxu1 %v7265_v3 }
 0x733   :  { %2674 = vmatpush.msra.mxu2 %v7268_v24  ;;  %2694 = vmatpush.msra.mxu3 %v7271_v42 }
 0x734   :  { %2635 = vmatpush.msra.mxu0 %v7274_v22  ;;  %2655 = vmatpush.msra.mxu1 %v7277_v18 }
 0x735   :  { %2675 = vmatpush.msra.mxu2 %v7280_v8  ;;  %2695 = vmatpush.msra.mxu3 %v7283_v29 }
 0x736   :  { %2636 = vmatpush.msra.mxu0 %v7286_v20  ;;  %2656 = vmatpush.msra.mxu1 %v7289_v56 }
 0x737   :  { %2676 = vmatpush.msra.mxu2 %v7292_v2  ;;  %2696 = vmatpush.msra.mxu3 %v7295_v17 }
 0x738   :  { %2637 = vmatpush.msra.mxu0 %v7298_v27  ;;  %2657 = vmatpush.msra.mxu1 %v7301_v61 }
 0x739   :  { %2677 = vmatpush.msra.mxu2 %v7304_v39  ;;  %2697 = vmatpush.msra.mxu3 %v7307_v31 }
 0x73a   :  { %2638 = vmatpush.msra.mxu0 %v7310_v33  ;;  %2658 = vmatpush.msra.mxu1 %v7313_v34 }
 0x73b   :  { %2678 = vmatpush.msra.mxu2 %v7316_v36  ;;  %2698 = vmatpush.msra.mxu3 %v7319_v53 }
 0x73c   :  { %2639 = vmatpush.msra.mxu0 %v7322_v40  ;;  %2659 = vmatpush.msra.mxu1 %v7325_v41 }
 0x73d   :  { %2679 = vmatpush.msra.mxu2 %v7328_v45  ;;  %2699 = vmatpush.msra.mxu3 %v7331_v47  ;;  %v9435_v47 = vld [vmem:[#allocation47_spill] sm:$0xff] }
 0x73e   :  { %2640 = vmatpush.msra.mxu0 %v7334_v0  ;;  %2660 = vmatpush.msra.mxu1 %v7337_v55  ;;  %v7352_v0 = vld [vmem:[#allocation9 + $0x230] sm:$0xff]  ;;  %v7355_v55 = vld [vmem:[#allocation9 + $0x238] sm:$0xff] }
 0x73f   :  { %2680 = vmatpush.msra.mxu2 %v7340_v62  ;;  %2700 = vmatpush.msra.mxu3 %v7343_v48  ;;  %9429 = vst [vmem:[#allocation39_spill] sm:$0xff] %v7352_v0  ;;  %v7358_v62 = vld [vmem:[#allocation9 + $0x200] sm:$0xff]  ;;  %v7361_v48 = vld [vmem:[#allocation9 + $0x208] sm:$0xff] }
 0x740   :  { %2641 = vmatpush.msra.mxu0 %v7346_v25  ;;  %2661 = vmatpush.msra.mxu1 %v7349_v4  ;;  %9430 = vst [vmem:[#allocation36_spill] sm:$0xff] %v7355_v55  ;;  %v7365_v25 = vld [vmem:[#allocation9 + $0x218] sm:$0xff] }
 0x741   :  { %2681 = vmatpush.msra.mxu2 %v7352_v0  ;;  %2701 = vmatpush.msra.mxu3 %v7355_v55  ;;  %9431 = vst [vmem:[#allocation37_spill] sm:$0xff] %v7358_v62  ;;  %v9434_v0 = vld [vmem:[#allocation45_spill] sm:$0xff]  ;;  %v1884_v55 = vadd.f32 %v9435_v47, %v9402_v49 }
 0x742   :  { %2642 = vmatpush.msra.mxu0 %v7358_v62  ;;  %9432 = vst [vmem:[#allocation42_spill] sm:$0xff] %v7361_v48  ;;  %2662 = vmatpush.msra.mxu1 %v7361_v48  ;;  %v1843_v4 = vadd.f32 %v9434_v0, %v9400_v50  ;;  %v9436_v48 = vld [vmem:[#allocation50_spill] sm:$0xff] }
 0x743   :  { %2682 = vmatpush.msra.mxu2 %v9398_v58  ;;  %9433 = vst [vmem:[#allocation40_spill] sm:$0xff] %v7365_v25  ;;  %2702 = vmatpush.msra.mxu3 %v7365_v25  ;;  %v1966_v58 = vadd.f32 %v9436_v48, %v9404_v32 }
 0x79f   :  { %v2340_v45 = vpop.f32.mrf.mxu0  ;;  %v2360_v41 = vpop.f32.mrf.mxu1 }
 0x7a0   :  { %v2403_v40 = vadd.f32 %v2340_v45, %v1843_v4  ;;  %v2404_v62 = vadd.f32 %v2360_v41, %v1884_v55 }
 0x7a2   :  { %v4857_v53 = vmul.f32 -1.442695, %v2403_v40  ;;  %v4858_v36 = vmul.f32 -1.442695, %v2404_v62  ;;  %v9437_v40 = vld [vmem:[#allocation69_spill] sm:$0xff] }
 0x7a3   :  { %v1925_v41 = vadd.f32 %v9437_v40, %v9406_v59 }
 0x7a4   :  { %5071 = vpow2.f32 %v4857_v53 }
 0x7a5   :  { %5073 = vpow2.f32 %v4858_v36 }
 0x7a6   :  { %v2400_v34 = vpop.f32.mrf.mxu3  ;;  %v2380_v47 = vpop.f32.mrf.mxu2 }
 0x7a7   :  { %v2406_v33 = vadd.f32 %v2400_v34, %v1966_v58  ;;  %v2405_v55 = vadd.f32 %v2380_v47, %v1925_v41 }
 0x7a9   :  { %v4859_v25 = vmul.f32 -1.442695, %v2406_v33 }
 0x7aa   :  { %v5072_v31 = vpop.eup %5071 }
 0x7ab   :  { %v5074_v39 = vpop.eup %5073  ;;  %v2410_v0 = vadd.f32 1.0, %v5072_v31  ;;  %5075 = vpow2.f32 %v4859_v25 }
 0x7ac   :  { %v2429_v50 = vadd.f32 1.0, %v5074_v39 }
 0x7ad   :  { %5077 = vrcp.f32 %v2410_v0  ;;  %v2422_v58 = vand.u32 2147483648, %v2410_v0  ;;  %v2420_v31 = vand.u32 2147483647, %v2410_v0  ;;  %vm2416_vm10 = vweird.f32 %v2410_v0 }
 0x7ae   :  { %5079 = vrcp.f32 %v2429_v50  ;;  %v2441_v25 = vand.u32 2147483648, %v2429_v50  ;;  %v2439_v49 = vand.u32 2147483647, %v2429_v50  ;;  %vm2435_vm11 = vweird.f32 %v2429_v50 }
 0x7af   :  { %v2423_v47 = vor.u32 1.1754944e-38, %v2422_v58  ;;  %vm2421_vm14 = vcmp.eq.f32.partialorder %v2420_v31, 8.507059e+37 }
 0x7b0   :  { %vm2440_vm15 = vcmp.eq.f32.partialorder %v2439_v49, 8.507059e+37 }
 0x7b1   :  { %v5076_v4 = vpop.eup %5075 }
 0x7b2   :  { %v2449_v53 = vadd.f32 1.0, %v5076_v4 }
 0x7b3   :  { %v5078_v45 = vpop.eup %5077 }
 0x7b4   :  { %v5080_v62 = vpop.eup %5079  ;;  %v2412_v36 = vmul.f32 %v5078_v45, %v2410_v0  ;;  %5081 = vrcp.f32 %v2449_v53  ;;  %vm2417_vm8 = vweird.f32 %v5078_v45  ;;  %vm2455_vm1 = vweird.f32 %v2449_v53 }
 0x7b5   :  { %v2431_v34 = vmul.f32 %v5080_v62, %v2429_v50  ;;  %5083 = vtanh.f32 %v2405_v55  ;;  %vm2436_vm9 = vweird.f32 %v5080_v62  ;;  %vm2418_vm12 = vmor %vm2416_vm10, %vm2417_vm8 }
 0x7b6   :  { %v2413_v33 = vsub.f32 1.0, %v2412_v36  ;;  %vm2437_vm13 = vmor %vm2435_vm11, %vm2436_vm9  ;;  %v2442_v36 = vor.u32 1.1754944e-38, %v2441_v25 }
 0x7b7   :  { %v2432_v48 = vsub.f32 1.0, %v2431_v34 }
 0x7b8   :  { %v2414_v39 = vmul.f32 %v5078_v45, %v2413_v33 }
 0x7b9   :  { %v2433_v32 = vmul.f32 %v5080_v62, %v2432_v48 }
 0x7ba   :  { %v5082_v61 = vpop.eup %5081  ;;  %v2415_v40 = vadd.f32 %v5078_v45, %v2414_v39 }
 0x7bb   :  { %v2434_v4 = vadd.f32 %v5080_v62, %v2433_v32  ;;  %v2451_v41 = vmul.f32 %v5082_v61, %v2449_v53  ;;  %v5084_v55 = vpop.eup %5083  ;;  %vm2456_vm0 = vweird.f32 %v5082_v61  ;;  %v2461_v32 = vand.u32 2147483648, %v2449_v53 }
 0x7bc   :  { %v2419_v34 = vsel %vm2418_vm12, %v5078_v45, %v2415_v40  ;;  %v2459_v45 = vand.u32 2147483647, %v2449_v53  ;;  %vm2457_vm2 = vmor %vm2455_vm1, %vm2456_vm0  ;;  %v9445_v53 = vld [vmem:[#allocation57_spill] sm:$0xff]  ;;  %v9446_v40 = vld [vmem:[#allocation31_spill] sm:$0xff] }
 0x7bd   :  { %v2424_v59 = vsel %vm2421_vm14, %v2423_v47, %v2419_v34  ;;  %v2438_v33 = vsel %vm2437_vm13, %v5080_v62, %v2434_v4  ;;  %v2452_v27 = vsub.f32 1.0, %v2451_v41  ;;  %v2462_v25 = vor.u32 1.1754944e-38, %v2461_v32  ;;  %v9447_v47 = vld [vmem:[#allocation60_spill] sm:$0xff]  ;;  %v9448_v4 = vld [vmem:[#allocation26_spill] sm:$0xff]  ;;  %v9449_v41 = vld [vmem:[#allocation25_spill] sm:$0xff] }
 0x7be   :  { %v2443_v48 = vsel %vm2440_vm15, %v2442_v36, %v2438_v33  ;;  %v2466_v17 = vmul.f32 %v5084_v55, %v2424_v59  ;;  %vm2460_vm3 = vcmp.eq.f32.partialorder %v2459_v45, 8.507059e+37  ;;  %v9439_v59 = vld [vmem:[#allocation52_spill] sm:$0xff]  ;;  %v9450_v36 = vld [vmem:[#allocation35_spill] sm:$0xff]  ;;  %v9452_v55 = vld [vmem:[#allocation30_spill] sm:$0xff] }
 0x7bf   :  { %v2465_v2 = vmul.f32 %v2443_v48, %v7169_v46  ;;  %v2453_v39 = vmul.f32 %v5082_v61, %v2452_v27  ;;  %v9440_v46 = vld [vmem:[#allocation54_spill] sm:$0xff]  ;;  %v9443_v27 = vld [vmem:[#allocation55_spill] sm:$0xff]  ;;  %v9451_v34 = vld [vmem:[#allocation28_spill] sm:$0xff] }
 0x7c0   :  { %v9453_v33 = vld [vmem:[#allocation29_spill] sm:$0xff]  ;;  %v9454_v48 = vld [vmem:[#allocation38_spill] sm:$0xff] }
 0x7c1   :  { %v7377_v0 = vadd.f32 %v2466_v17, %v2465_v2  ;;  %v2454_v50 = vadd.f32 %v5082_v61, %v2453_v39  ;;  %v9441_v2 = vld [vmem:[#allocation53_spill] sm:$0xff]  ;;  %v9442_v17 = vld [vmem:[#allocation27_spill] sm:$0xff]  ;;  %v9457_v32 = vld [vmem:[#allocation34_spill] sm:$0xff] }
 0x7c2   :  { %v9455_v39 = vld [vmem:[#allocation33_spill] sm:$0xff] }
 0x7c3   :  { %5085 = vtanh.f32 %v7377_v0  ;;  %v2458_v58 = vsel %vm2457_vm2, %v5082_v61, %v2454_v50  ;;  %v9444_v61 = vld [vmem:[#allocation56_spill] sm:$0xff]  ;;  %v9458_v45 = vld [vmem:[#allocation41_spill] sm:$0xff] }
 0x7c4   :  { %v2463_v62 = vsel %vm2460_vm3, %v2462_v25, %v2458_v58  ;;  %v9456_v50 = vld [vmem:[#allocation32_spill] sm:$0xff]  ;;  %v9459_v58 = vld [vmem:[#allocation39_spill] sm:$0xff] }
 0x7c5   :  { %v9460_v25 = vld [vmem:[#allocation36_spill] sm:$0xff] }
 0x7c9   :  { %v5086_v49 = vpop.eup %5085 }
 0x7ca   :  { %v7380_v31 = vmul.f32 %v5086_v49, %v2463_v62  ;;  %v9461_v49 = vld [vmem:[#allocation37_spill] sm:$0xff]  ;;  %v9462_v62 = vld [vmem:[#allocation42_spill] sm:$0xff] }
 0x7cc   :  { %9438 = vst [vmem:[#allocation43_spill] sm:$0xff] %v7380_v31  ;;  %2491 = vmatmul.f32.vlgmr.msrb.gmra.mxu0 %v7380_v31  ;;  %2511 = vmatmul.f32.vlgmr.msrb.gmra.mxu1 %v7380_v31 }
 0x7cd   :  { %2531 = vmatmul.f32.vlgmr.msrb.gmra.mxu2 %v7380_v31  ;;  %2551 = vmatmul.f32.vlgmr.msrb.gmra.mxu3 %v7380_v31  ;;  %v7448_v31 = vld [vmem:[#allocation9 + $0x210] sm:$0xff] }
 0x7ce   :  { %2779 = vmatpush.msrb.mxu0 %v7178_v26  ;;  %2799 = vmatpush.msrb.mxu1 %v7181_v11  ;;  %9463 = vst [vmem:[#allocation44_spill] sm:$0xff] %v7448_v31 }
 0x7cf   :  { %2819 = vmatpush.msrb.mxu2 %v7184_v12  ;;  %2839 = vmatpush.msrb.mxu3 %v7187_v52 }
 0x7d0   :  { %2780 = vmatpush.msrb.mxu0 %v7190_v6  ;;  %2800 = vmatpush.msrb.mxu1 %v7193_v35 }
 0x7d1   :  { %2820 = vmatpush.msrb.mxu2 %v7196_v5  ;;  %2840 = vmatpush.msrb.mxu3 %v7199_v16 }
 0x7d2   :  { %2781 = vmatpush.msrb.mxu0 %v7202_v44  ;;  %2801 = vmatpush.msrb.mxu1 %v7205_v57 }
 0x7d3   :  { %2821 = vmatpush.msrb.mxu2 %v7208_v51  ;;  %2841 = vmatpush.msrb.mxu3 %v7211_v21 }
 0x7d4   :  { %2782 = vmatpush.msrb.mxu0 %v7214_v54  ;;  %2802 = vmatpush.msrb.mxu1 %v7217_v23 }
 0x7d5   :  { %2822 = vmatpush.msrb.mxu2 %v7220_v7  ;;  %2842 = vmatpush.msrb.mxu3 %v7223_v38 }
 0x7d6   :  { %2783 = vmatpush.msrb.mxu0 %v7226_v13  ;;  %2803 = vmatpush.msrb.mxu1 %v7229_v15 }
 0x7d7   :  { %2823 = vmatpush.msrb.mxu2 %v7232_v28  ;;  %2843 = vmatpush.msrb.mxu3 %v7235_v60 }
 0x7d8   :  { %2784 = vmatpush.msrb.mxu0 %v7238_v30  ;;  %2804 = vmatpush.msrb.mxu1 %v7241_v43 }
 0x7d9   :  { %2824 = vmatpush.msrb.mxu2 %v7244_v10  ;;  %2844 = vmatpush.msrb.mxu3 %v7247_v19 }
 0x7da   :  { %2785 = vmatpush.msrb.mxu0 %v7250_v14  ;;  %2805 = vmatpush.msrb.mxu1 %v7253_v9 }
 0x7db   :  { %2825 = vmatpush.msrb.mxu2 %v7256_v1  ;;  %2845 = vmatpush.msrb.mxu3 %v7259_v37 }
 0x7dc   :  { %2786 = vmatpush.msrb.mxu0 %v7262_v63  ;;  %2806 = vmatpush.msrb.mxu1 %v7265_v3 }
 0x7dd   :  { %2826 = vmatpush.msrb.mxu2 %v7268_v24  ;;  %2846 = vmatpush.msrb.mxu3 %v7271_v42 }
 0x7de   :  { %2787 = vmatpush.msrb.mxu0 %v7274_v22  ;;  %2807 = vmatpush.msrb.mxu1 %v7277_v18 }
 0x7df   :  { %2827 = vmatpush.msrb.mxu2 %v7280_v8  ;;  %2847 = vmatpush.msrb.mxu3 %v7283_v29 }
 0x7e0   :  { %2788 = vmatpush.msrb.mxu0 %v7286_v20  ;;  %2808 = vmatpush.msrb.mxu1 %v7289_v56 }
 0x7e1   :  { %2828 = vmatpush.msrb.mxu2 %v9439_v59  ;;  %2848 = vmatpush.msrb.mxu3 %v9440_v46 }
 0x7e2   :  { %2789 = vmatpush.msrb.mxu0 %v9441_v2  ;;  %2809 = vmatpush.msrb.mxu1 %v9442_v17 }
 0x7e3   :  { %2829 = vmatpush.msrb.mxu2 %v9443_v27  ;;  %2849 = vmatpush.msrb.mxu3 %v9444_v61 }
 0x7e4   :  { %2790 = vmatpush.msrb.mxu0 %v9445_v53  ;;  %2810 = vmatpush.msrb.mxu1 %v9446_v40 }
 0x7e5   :  { %2830 = vmatpush.msrb.mxu2 %v9447_v47  ;;  %2850 = vmatpush.msrb.mxu3 %v9448_v4  ;;  %v9470_v4 = vld [vmem:[#allocation59_spill] sm:$0xff] }
 0x7e6   :  { %2791 = vmatpush.msrb.mxu0 %v9449_v41  ;;  %2811 = vmatpush.msrb.mxu1 %v9450_v36 }
 0x7e7   :  { %2831 = vmatpush.msrb.mxu2 %v9451_v34  ;;  %2851 = vmatpush.msrb.mxu3 %v9452_v55  ;;  %v9468_v55 = vld [vmem:[#allocation58_spill] sm:$0xff] }
 0x7e8   :  { %2792 = vmatpush.msrb.mxu0 %v9453_v33  ;;  %2812 = vmatpush.msrb.mxu1 %v9454_v48  ;;  %v9464_v48 = vld [vmem:[#allocation40_spill] sm:$0xff] }
 0x7e9   :  { %2832 = vmatpush.msrb.mxu2 %v9455_v39  ;;  %2852 = vmatpush.msrb.mxu3 %v9456_v50  ;;  %v9465_v39 = vld [vmem:[#allocation71_spill] sm:$0xff]  ;;  %v9466_v50 = vld [vmem:[#allocation68_spill] sm:$0xff] }
 0x7ea   :  { %2793 = vmatpush.msrb.mxu0 %v9457_v32  ;;  %2813 = vmatpush.msrb.mxu1 %v9458_v45  ;;  %v1846_v33 = vadd.f32 %v9466_v50, %v9465_v39  ;;  %v9467_v32 = vld [vmem:[#allocation73_spill] sm:$0xff] }
 0x7eb   :  { %2833 = vmatpush.msrb.mxu2 %v9459_v58  ;;  %2853 = vmatpush.msrb.mxu3 %v9460_v25  ;;  %v1887_v45 = vadd.f32 %v9468_v55, %v9467_v32 }
 0x7ec   :  { %2794 = vmatpush.msrb.mxu0 %v9461_v49  ;;  %2814 = vmatpush.msrb.mxu1 %v9462_v62  ;;  %v9469_v62 = vld [vmem:[#allocation22_spill] sm:$0xff] }
 0x7ed   :  { %2834 = vmatpush.msrb.mxu2 %v7448_v31  ;;  %2854 = vmatpush.msrb.mxu3 %v9464_v48  ;;  %v1969_v47 = vadd.f32 %v9470_v4, %v9469_v62 }
 0x849   :  { %v2492_v34 = vpop.f32.mrf.mxu0  ;;  %v2512_v58 = vpop.f32.mrf.mxu1 }
 0x84a   :  { %v2555_v36 = vadd.f32 %v2492_v34, %v1846_v33  ;;  %v2556_v25 = vadd.f32 %v2512_v58, %v1887_v45  ;;  %v9471_v33 = vld [vmem:[#allocation21_spill] sm:$0xff] }
 0x84c   :  { %v4860_v41 = vmul.f32 -1.442695, %v2555_v36  ;;  %v4861_v49 = vmul.f32 -1.442695, %v2556_v25  ;;  %v9472_v36 = vld [vmem:[#allocation74_spill] sm:$0xff] }
 0x84d   :  { %v1928_v45 = vadd.f32 %v9472_v36, %v9471_v33 }
 0x84e   :  { %5087 = vpow2.f32 %v4860_v41 }
 0x84f   :  { %5089 = vpow2.f32 %v4861_v49 }
 0x850   :  { %v2552_v31 = vpop.f32.mrf.mxu3  ;;  %v2532_v55 = vpop.f32.mrf.mxu2 }
 0x851   :  { %v2558_v40 = vadd.f32 %v2552_v31, %v1969_v47  ;;  %v2557_v25 = vadd.f32 %v2532_v55, %v1928_v45 }
 0x853   :  { %v4862_v48 = vmul.f32 -1.442695, %v2558_v40 }
 0x854   :  { %v5088_v53 = vpop.eup %5087 }
 0x855   :  { %v5090_v61 = vpop.eup %5089  ;;  %v2562_v50 = vadd.f32 1.0, %v5088_v53  ;;  %5091 = vpow2.f32 %v4862_v48 }
 0x856   :  { %v2581_v39 = vadd.f32 1.0, %v5090_v61 }
 0x857   :  { %5093 = vrcp.f32 %v2562_v50  ;;  %v2574_v62 = vand.u32 2147483648, %v2562_v50  ;;  %v2572_v48 = vand.u32 2147483647, %v2562_v50  ;;  %vm2568_vm6 = vweird.f32 %v2562_v50 }
 0x858   :  { %5095 = vrcp.f32 %v2581_v39  ;;  %v2593_v53 = vand.u32 2147483648, %v2581_v39  ;;  %v2591_v27 = vand.u32 2147483647, %v2581_v39  ;;  %vm2587_vm7 = vweird.f32 %v2581_v39 }
 0x859   :  { %v2575_v55 = vor.u32 1.1754944e-38, %v2574_v62  ;;  %vm2573_vm10 = vcmp.eq.f32.partialorder %v2572_v48, 8.507059e+37 }
 0x85a   :  { %vm2592_vm11 = vcmp.eq.f32.partialorder %v2591_v27, 8.507059e+37 }
 0x85b   :  { %v5092_v34 = vpop.eup %5091 }
 0x85c   :  { %v2601_v41 = vadd.f32 1.0, %v5092_v34 }
 0x85d   :  { %v5094_v58 = vpop.eup %5093 }
 0x85e   :  { %v5096_v4 = vpop.eup %5095  ;;  %v2564_v49 = vmul.f32 %v5094_v58, %v2562_v50  ;;  %5097 = vrcp.f32 %v2601_v41  ;;  %vm2569_vm4 = vweird.f32 %v5094_v58  ;;  %vm2607_vm13 = vweird.f32 %v2601_v41 }
 0x85f   :  { %v2583_v31 = vmul.f32 %v5096_v4, %v2581_v39  ;;  %5099 = vtanh.f32 %v2557_v25  ;;  %vm2588_vm5 = vweird.f32 %v5096_v4  ;;  %vm2570_vm8 = vmor %vm2568_vm6, %vm2569_vm4  ;;  %v2611_v62 = vand.u32 2147483647, %v2601_v41 }
 0x860   :  { %v2565_v40 = vsub.f32 1.0, %v2564_v49  ;;  %vm2589_vm9 = vmor %vm2587_vm7, %vm2588_vm5  ;;  %v2594_v49 = vor.u32 1.1754944e-38, %v2593_v53 }
 0x861   :  { %v2584_v47 = vsub.f32 1.0, %v2583_v31  ;;  %vm2612_vm15 = vcmp.eq.f32.partialorder %v2611_v62, 8.507059e+37  ;;  %v9493_v62 = vld [vmem:[#allocation41_spill] sm:$0xff] }
 0x862   :  { %v2566_v61 = vmul.f32 %v5094_v58, %v2565_v40 }
 0x863   :  { %v2585_v32 = vmul.f32 %v5096_v4, %v2584_v47 }
 0x864   :  { %v5098_v17 = vpop.eup %5097  ;;  %v2567_v36 = vadd.f32 %v5094_v58, %v2566_v61 }
 0x865   :  { %v2586_v34 = vadd.f32 %v5096_v4, %v2585_v32  ;;  %v2603_v45 = vmul.f32 %v5098_v17, %v2601_v41  ;;  %v5100_v25 = vpop.eup %5099  ;;  %vm2608_vm12 = vweird.f32 %v5098_v17  ;;  %v2613_v32 = vand.u32 2147483648, %v2601_v41  ;;  %v9480_v41 = vld [vmem:[#allocation57_spill] sm:$0xff] }
 0x866   :  { %v2571_v31 = vsel %vm2570_vm8, %v5094_v58, %v2567_v36  ;;  %vm2609_vm14 = vmor %vm2607_vm13, %vm2608_vm12  ;;  %v9481_v36 = vld [vmem:[#allocation31_spill] sm:$0xff] }
 0x867   :  { %v2576_v33 = vsel %vm2573_vm10, %v2575_v55, %v2571_v31  ;;  %v2590_v40 = vsel %vm2589_vm9, %v5096_v4, %v2586_v34  ;;  %v2604_v2 = vsub.f32 1.0, %v2603_v45  ;;  %v2614_v53 = vor.u32 1.1754944e-38, %v2613_v32  ;;  %v9482_v55 = vld [vmem:[#allocation60_spill] sm:$0xff]  ;;  %v9483_v34 = vld [vmem:[#allocation26_spill] sm:$0xff]  ;;  %v9484_v45 = vld [vmem:[#allocation25_spill] sm:$0xff] }
 0x868   :  { %v2595_v47 = vsel %vm2592_vm11, %v2594_v49, %v2590_v40  ;;  %v2618_v46 = vmul.f32 %v5100_v25, %v2576_v33  ;;  %v9479_v33 = vld [vmem:[#allocation56_spill] sm:$0xff]  ;;  %v9485_v49 = vld [vmem:[#allocation35_spill] sm:$0xff]  ;;  %v9487_v25 = vld [vmem:[#allocation30_spill] sm:$0xff] }
 0x869   :  { %v2617_v59 = vmul.f32 %v2595_v47, %v7377_v0  ;;  %v2605_v61 = vmul.f32 %v5098_v17, %v2604_v2  ;;  %v9474_v0 = vld [vmem:[#allocation52_spill] sm:$0xff]  ;;  %v9477_v2 = vld [vmem:[#allocation27_spill] sm:$0xff]  ;;  %v9488_v40 = vld [vmem:[#allocation29_spill] sm:$0xff] }
 0x86a   :  { %v9486_v31 = vld [vmem:[#allocation28_spill] sm:$0xff]  ;;  %v9489_v47 = vld [vmem:[#allocation38_spill] sm:$0xff] }
 0x86b   :  { %v7461_v50 = vadd.f32 %v2618_v46, %v2617_v59  ;;  %v2606_v39 = vadd.f32 %v5098_v17, %v2605_v61  ;;  %v9475_v59 = vld [vmem:[#allocation54_spill] sm:$0xff]  ;;  %v9476_v46 = vld [vmem:[#allocation53_spill] sm:$0xff] }
 0x86c   :  { %v9490_v61 = vld [vmem:[#allocation33_spill] sm:$0xff]  ;;  %v9492_v32 = vld [vmem:[#allocation34_spill] sm:$0xff] }
 0x86d   :  { %5101 = vtanh.f32 %v7461_v50  ;;  %v2610_v58 = vsel %vm2609_vm14, %v5098_v17, %v2606_v39  ;;  %v9478_v17 = vld [vmem:[#allocation55_spill] sm:$0xff]  ;;  %v9491_v39 = vld [vmem:[#allocation32_spill] sm:$0xff] }
 0x86e   :  { %v2615_v4 = vsel %vm2612_vm15, %v2614_v53, %v2610_v58  ;;  %v9494_v58 = vld [vmem:[#allocation39_spill] sm:$0xff]  ;;  %v9495_v53 = vld [vmem:[#allocation36_spill] sm:$0xff] }
 0x873   :  { %v5102_v27 = vpop.eup %5101 }
 0x874   :  { %v7464_v48 = vmul.f32 %v5102_v27, %v2615_v4  ;;  %v9496_v27 = vld [vmem:[#allocation37_spill] sm:$0xff]  ;;  %v9497_v4 = vld [vmem:[#allocation42_spill] sm:$0xff] }
 0x876   :  { %9473 = vst [vmem:[#allocation46_spill] sm:$0xff] %v7464_v48  ;;  %2643 = vmatmul.f32.vlgmr.msra.gmra.mxu0 %v7464_v48  ;;  %2663 = vmatmul.f32.vlgmr.msra.gmra.mxu1 %v7464_v48 }
 0x877   :  { %2683 = vmatmul.f32.vlgmr.msra.gmra.mxu2 %v7464_v48  ;;  %2703 = vmatmul.f32.vlgmr.msra.gmra.mxu3 %v7464_v48  ;;  %v9498_v48 = vld [vmem:[#allocation44_spill] sm:$0xff] }
 0x878   :  { %2931 = vmatpush.msra.mxu0 %v7178_v26  ;;  %2951 = vmatpush.msra.mxu1 %v7181_v11 }
 0x879   :  { %2971 = vmatpush.msra.mxu2 %v7184_v12  ;;  %2991 = vmatpush.msra.mxu3 %v7187_v52 }
 0x87a   :  { %2932 = vmatpush.msra.mxu0 %v7190_v6  ;;  %2952 = vmatpush.msra.mxu1 %v7193_v35 }
 0x87b   :  { %2972 = vmatpush.msra.mxu2 %v7196_v5  ;;  %2992 = vmatpush.msra.mxu3 %v7199_v16 }
 0x87c   :  { %2933 = vmatpush.msra.mxu0 %v7202_v44  ;;  %2953 = vmatpush.msra.mxu1 %v7205_v57 }
 0x87d   :  { %2973 = vmatpush.msra.mxu2 %v7208_v51  ;;  %2993 = vmatpush.msra.mxu3 %v7211_v21 }
 0x87e   :  { %2934 = vmatpush.msra.mxu0 %v7214_v54  ;;  %2954 = vmatpush.msra.mxu1 %v7217_v23 }
 0x87f   :  { %2974 = vmatpush.msra.mxu2 %v7220_v7  ;;  %2994 = vmatpush.msra.mxu3 %v7223_v38 }
 0x880   :  { %2935 = vmatpush.msra.mxu0 %v7226_v13  ;;  %2955 = vmatpush.msra.mxu1 %v7229_v15 }
 0x881   :  { %2975 = vmatpush.msra.mxu2 %v7232_v28  ;;  %2995 = vmatpush.msra.mxu3 %v7235_v60 }
 0x882   :  { %2936 = vmatpush.msra.mxu0 %v7238_v30  ;;  %2956 = vmatpush.msra.mxu1 %v7241_v43 }
 0x883   :  { %2976 = vmatpush.msra.mxu2 %v7244_v10  ;;  %2996 = vmatpush.msra.mxu3 %v7247_v19 }
 0x884   :  { %2937 = vmatpush.msra.mxu0 %v7250_v14  ;;  %2957 = vmatpush.msra.mxu1 %v7253_v9 }
 0x885   :  { %2977 = vmatpush.msra.mxu2 %v7256_v1  ;;  %2997 = vmatpush.msra.mxu3 %v7259_v37 }
 0x886   :  { %2938 = vmatpush.msra.mxu0 %v7262_v63  ;;  %2958 = vmatpush.msra.mxu1 %v7265_v3 }
 0x887   :  { %2978 = vmatpush.msra.mxu2 %v7268_v24  ;;  %2998 = vmatpush.msra.mxu3 %v7271_v42 }
 0x888   :  { %2939 = vmatpush.msra.mxu0 %v7274_v22  ;;  %2959 = vmatpush.msra.mxu1 %v7277_v18 }
 0x889   :  { %2979 = vmatpush.msra.mxu2 %v7280_v8  ;;  %2999 = vmatpush.msra.mxu3 %v7283_v29 }
 0x88a   :  { %2940 = vmatpush.msra.mxu0 %v7286_v20  ;;  %2960 = vmatpush.msra.mxu1 %v7289_v56 }
 0x88b   :  { %2980 = vmatpush.msra.mxu2 %v9474_v0  ;;  %3000 = vmatpush.msra.mxu3 %v9475_v59 }
 0x88c   :  { %2941 = vmatpush.msra.mxu0 %v9476_v46  ;;  %2961 = vmatpush.msra.mxu1 %v9477_v2 }
 0x88d   :  { %2981 = vmatpush.msra.mxu2 %v9478_v17  ;;  %3001 = vmatpush.msra.mxu3 %v9479_v33 }
 0x88e   :  { %2942 = vmatpush.msra.mxu0 %v9480_v41  ;;  %2962 = vmatpush.msra.mxu1 %v9481_v36 }
 0x88f   :  { %2982 = vmatpush.msra.mxu2 %v9482_v55  ;;  %3002 = vmatpush.msra.mxu3 %v9483_v34  ;;  %v9505_v55 = vld [vmem:[#allocation64_spill] sm:$0xff] }
 0x890   :  { %2943 = vmatpush.msra.mxu0 %v9484_v45  ;;  %2963 = vmatpush.msra.mxu1 %v9485_v49 }
 0x891   :  { %2983 = vmatpush.msra.mxu2 %v9486_v31  ;;  %3003 = vmatpush.msra.mxu3 %v9487_v25  ;;  %v9503_v31 = vld [vmem:[#allocation61_spill] sm:$0xff] }
 0x892   :  { %2944 = vmatpush.msra.mxu0 %v9488_v40  ;;  %2964 = vmatpush.msra.mxu1 %v9489_v47  ;;  %v9499_v40 = vld [vmem:[#allocation40_spill] sm:$0xff]  ;;  %v9500_v47 = vld [vmem:[#allocation71_spill] sm:$0xff] }
 0x893   :  { %2984 = vmatpush.msra.mxu2 %v9490_v61  ;;  %3004 = vmatpush.msra.mxu3 %v9491_v39  ;;  %v9501_v61 = vld [vmem:[#allocation72_spill] sm:$0xff]  ;;  %v9502_v39 = vld [vmem:[#allocation73_spill] sm:$0xff] }
 0x894   :  { %2945 = vmatpush.msra.mxu0 %v9492_v32  ;;  %2965 = vmatpush.msra.mxu1 %v9493_v62  ;;  %v1849_v25 = vadd.f32 %v9501_v61, %v9500_v47  ;;  %v1890_v32 = vadd.f32 %v9503_v31, %v9502_v39 }
 0x895   :  { %2985 = vmatpush.msra.mxu2 %v9494_v58  ;;  %3005 = vmatpush.msra.mxu3 %v9495_v53 }
 0x896   :  { %2946 = vmatpush.msra.mxu0 %v9496_v27  ;;  %2966 = vmatpush.msra.mxu1 %v9497_v4  ;;  %v9504_v27 = vld [vmem:[#allocation22_spill] sm:$0xff] }
 0x897   :  { %2986 = vmatpush.msra.mxu2 %v9498_v48  ;;  %3006 = vmatpush.msra.mxu3 %v9499_v40  ;;  %v1972_v4 = vadd.f32 %v9505_v55, %v9504_v27 }
 0x8f3   :  { %v2644_v49 = vpop.f32.mrf.mxu0  ;;  %v2664_v62 = vpop.f32.mrf.mxu1 }
 0x8f4   :  { %v2707_v45 = vadd.f32 %v2644_v49, %v1849_v25  ;;  %v2708_v58 = vadd.f32 %v2664_v62, %v1890_v32  ;;  %v9506_v25 = vld [vmem:[#allocation21_spill] sm:$0xff] }
 0x8f6   :  { %v4863_v34 = vmul.f32 -1.442695, %v2707_v45  ;;  %v4864_v53 = vmul.f32 -1.442695, %v2708_v58  ;;  %v9507_v45 = vld [vmem:[#allocation65_spill] sm:$0xff] }
 0x8f7   :  { %v1931_v32 = vadd.f32 %v9507_v45, %v9506_v25 }
 0x8f8   :  { %5103 = vpow2.f32 %v4863_v34 }
 0x8f9   :  { %5105 = vpow2.f32 %v4864_v53 }
 0x8fa   :  { %v2704_v48 = vpop.f32.mrf.mxu3  ;;  %v2684_v31 = vpop.f32.mrf.mxu2 }
 0x8fb   :  { %v2710_v36 = vadd.f32 %v2704_v48, %v1972_v4  ;;  %v2709_v58 = vadd.f32 %v2684_v31, %v1931_v32 }
 0x8fd   :  { %v4865_v40 = vmul.f32 -1.442695, %v2710_v36 }
 0x8fe   :  { %v5104_v41 = vpop.eup %5103 }
 0x8ff   :  { %v5106_v33 = vpop.eup %5105  ;;  %v2714_v61 = vadd.f32 1.0, %v5104_v41  ;;  %5107 = vpow2.f32 %v4865_v40 }
 0x900   :  { %v2733_v47 = vadd.f32 1.0, %v5106_v33 }
 0x901   :  { %5109 = vrcp.f32 %v2714_v61  ;;  %v2726_v27 = vand.u32 2147483648, %v2714_v61  ;;  %v2724_v40 = vand.u32 2147483647, %v2714_v61  ;;  %vm2720_vm2 = vweird.f32 %v2714_v61 }
 0x902   :  { %5111 = vrcp.f32 %v2733_v47  ;;  %v2745_v41 = vand.u32 2147483648, %v2733_v47  ;;  %v2743_v17 = vand.u32 2147483647, %v2733_v47  ;;  %vm2739_vm3 = vweird.f32 %v2733_v47 }
 0x903   :  { %v2727_v31 = vor.u32 1.1754944e-38, %v2726_v27  ;;  %vm2725_vm6 = vcmp.eq.f32.partialorder %v2724_v40, 8.507059e+37 }
 0x904   :  { %vm2744_vm7 = vcmp.eq.f32.partialorder %v2743_v17, 8.507059e+37 }
 0x905   :  { %v5108_v49 = vpop.eup %5107 }
 0x906   :  { %v2753_v34 = vadd.f32 1.0, %v5108_v49 }
 0x907   :  { %v5110_v62 = vpop.eup %5109 }
 0x908   :  { %v5112_v55 = vpop.eup %5111  ;;  %v2716_v53 = vmul.f32 %v5110_v62, %v2714_v61  ;;  %5113 = vrcp.f32 %v2753_v34  ;;  %vm2721_vm0 = vweird.f32 %v5110_v62  ;;  %vm2759_vm9 = vweird.f32 %v2753_v34 }
 0x909   :  { %v2735_v48 = vmul.f32 %v5112_v55, %v2733_v47  ;;  %5115 = vtanh.f32 %v2709_v58  ;;  %vm2740_vm1 = vweird.f32 %v5112_v55  ;;  %vm2722_vm4 = vmor %vm2720_vm2, %vm2721_vm0  ;;  %v2763_v27 = vand.u32 2147483647, %v2753_v34 }
 0x90a   :  { %v2717_v36 = vsub.f32 1.0, %v2716_v53  ;;  %vm2741_vm5 = vmor %vm2739_vm3, %vm2740_vm1  ;;  %v2746_v53 = vor.u32 1.1754944e-38, %v2745_v41 }
 0x90b   :  { %v2736_v4 = vsub.f32 1.0, %v2735_v48  ;;  %vm2764_vm11 = vcmp.eq.f32.partialorder %v2763_v27, 8.507059e+37 }
 0x90c   :  { %v2718_v33 = vmul.f32 %v5110_v62, %v2717_v36 }
 0x90d   :  { %v2737_v39 = vmul.f32 %v5112_v55, %v2736_v4 }
 0x90e   :  { %v5114_v2 = vpop.eup %5113  ;;  %v2719_v45 = vadd.f32 %v5110_v62, %v2718_v33 }
 0x90f   :  { %v2738_v49 = vadd.f32 %v5112_v55, %v2737_v39  ;;  %v2755_v32 = vmul.f32 %v5114_v2, %v2753_v34  ;;  %v5116_v58 = vpop.eup %5115  ;;  %vm2760_vm8 = vweird.f32 %v5114_v2  ;;  %v2765_v39 = vand.u32 2147483648, %v2753_v34 }
 0x910   :  { %v2723_v48 = vsel %vm2722_vm4, %v5110_v62, %v2719_v45  ;;  %vm2761_vm10 = vmor %vm2759_vm9, %vm2760_vm8 }
 0x911   :  { %v2728_v25 = vsel %vm2725_vm6, %v2727_v31, %v2723_v48  ;;  %v2742_v36 = vsel %vm2741_vm5, %v5112_v55, %v2738_v49  ;;  %v2756_v46 = vsub.f32 1.0, %v2755_v32  ;;  %v2766_v41 = vor.u32 1.1754944e-38, %v2765_v39  ;;  %v9540_v48 = vld [vmem:[#allocation21_spill] sm:$0xff] }
 0x912   :  { %v2747_v4 = vsel %vm2744_vm7, %v2746_v53, %v2742_v36  ;;  %v2770_v59 = vmul.f32 %v5116_v58, %v2728_v25  ;;  %v9541_v58 = vld [vmem:[#allocation23_spill] sm:$0xff] }
 0x913   :  { %v2769_v0 = vmul.f32 %v2747_v4, %v7461_v50  ;;  %v2757_v33 = vmul.f32 %v5114_v2, %v2756_v46  ;;  %v9538_v50 = vld [vmem:[#allocation22_spill] sm:$0xff]  ;;  %v1934_v36 = vadd.f32 %v9541_v58, %v9540_v48  ;;  %v9542_v58 = vld [vmem:[#allocation75_spill] sm:$0xff] }
 0x915   :  { %v7543_v61 = vadd.f32 %v2770_v59, %v2769_v0  ;;  %v2758_v47 = vadd.f32 %v5114_v2, %v2757_v33  ;;  %v9539_v0 = vld [vmem:[#allocation70_spill] sm:$0xff] }
 0x916   :  { %v1975_v59 = vadd.f32 %v9539_v0, %v9538_v50  ;;  %v3284_v0 = vld [vmem:[#allocation7 + $0x5a0] sm:$0xff] }
 0x917   :  { %5117 = vtanh.f32 %v7543_v61  ;;  %v2762_v62 = vsel %vm2761_vm10, %v5114_v2, %v2758_v47 }
 0x918   :  { %v2767_v55 = vsel %vm2764_vm11, %v2766_v41, %v2762_v62 }
 0x91d   :  { %v5118_v17 = vpop.eup %5117 }
 0x91e   :  { %v7546_v40 = vmul.f32 %v5118_v17, %v2767_v55 }
 0x920   :  { %2795 = vmatmul.f32.vlgmr.msrb.gmra.mxu0 %v7546_v40  ;;  %2815 = vmatmul.f32.vlgmr.msrb.gmra.mxu1 %v7546_v40 }
 0x921   :  { %2835 = vmatmul.f32.vlgmr.msrb.gmra.mxu2 %v7546_v40  ;;  %2855 = vmatmul.f32.vlgmr.msrb.gmra.mxu3 %v7546_v40 }
 0x922   :  { %3083 = vmatpush.msrb.mxu0 %v7178_v26  ;;  %3103 = vmatpush.msrb.mxu1 %v7181_v11  ;;  %v9508_v26 = vld [vmem:[#allocation52_spill] sm:$0xff]  ;;  %v9509_v11 = vld [vmem:[#allocation54_spill] sm:$0xff] }
 0x923   :  { %3123 = vmatpush.msrb.mxu2 %v7184_v12  ;;  %3143 = vmatpush.msrb.mxu3 %v7187_v52  ;;  %v9510_v12 = vld [vmem:[#allocation53_spill] sm:$0xff]  ;;  %v9511_v52 = vld [vmem:[#allocation27_spill] sm:$0xff] }
 0x924   :  { %3084 = vmatpush.msrb.mxu0 %v7190_v6  ;;  %3104 = vmatpush.msrb.mxu1 %v7193_v35  ;;  %v9512_v6 = vld [vmem:[#allocation55_spill] sm:$0xff]  ;;  %v9513_v35 = vld [vmem:[#allocation56_spill] sm:$0xff] }
 0x925   :  { %3124 = vmatpush.msrb.mxu2 %v7196_v5  ;;  %3144 = vmatpush.msrb.mxu3 %v7199_v16  ;;  %v9514_v5 = vld [vmem:[#allocation57_spill] sm:$0xff]  ;;  %v9515_v16 = vld [vmem:[#allocation31_spill] sm:$0xff] }
 0x926   :  { %3085 = vmatpush.msrb.mxu0 %v7202_v44  ;;  %3105 = vmatpush.msrb.mxu1 %v7205_v57  ;;  %v9516_v44 = vld [vmem:[#allocation60_spill] sm:$0xff]  ;;  %v9517_v57 = vld [vmem:[#allocation26_spill] sm:$0xff] }
 0x927   :  { %3125 = vmatpush.msrb.mxu2 %v7208_v51  ;;  %3145 = vmatpush.msrb.mxu3 %v7211_v21  ;;  %v9518_v51 = vld [vmem:[#allocation25_spill] sm:$0xff]  ;;  %v9519_v21 = vld [vmem:[#allocation35_spill] sm:$0xff] }
 0x928   :  { %3086 = vmatpush.msrb.mxu0 %v7214_v54  ;;  %3106 = vmatpush.msrb.mxu1 %v7217_v23  ;;  %v9520_v54 = vld [vmem:[#allocation28_spill] sm:$0xff]  ;;  %v9521_v23 = vld [vmem:[#allocation30_spill] sm:$0xff] }
 0x929   :  { %3126 = vmatpush.msrb.mxu2 %v7220_v7  ;;  %3146 = vmatpush.msrb.mxu3 %v7223_v38  ;;  %v9522_v7 = vld [vmem:[#allocation29_spill] sm:$0xff]  ;;  %v9523_v38 = vld [vmem:[#allocation38_spill] sm:$0xff] }
 0x92a   :  { %3087 = vmatpush.msrb.mxu0 %v7226_v13  ;;  %3107 = vmatpush.msrb.mxu1 %v7229_v15  ;;  %v9524_v13 = vld [vmem:[#allocation33_spill] sm:$0xff]  ;;  %v9525_v15 = vld [vmem:[#allocation32_spill] sm:$0xff] }
 0x92b   :  { %3127 = vmatpush.msrb.mxu2 %v7232_v28  ;;  %3147 = vmatpush.msrb.mxu3 %v7235_v60  ;;  %v9526_v28 = vld [vmem:[#allocation34_spill] sm:$0xff]  ;;  %v9527_v60 = vld [vmem:[#allocation41_spill] sm:$0xff] }
 0x92c   :  { %3088 = vmatpush.msrb.mxu0 %v7238_v30  ;;  %3108 = vmatpush.msrb.mxu1 %v7241_v43  ;;  %v9528_v30 = vld [vmem:[#allocation39_spill] sm:$0xff]  ;;  %v9529_v43 = vld [vmem:[#allocation36_spill] sm:$0xff] }
 0x92d   :  { %3128 = vmatpush.msrb.mxu2 %v7244_v10  ;;  %3148 = vmatpush.msrb.mxu3 %v7247_v19  ;;  %v9530_v10 = vld [vmem:[#allocation37_spill] sm:$0xff]  ;;  %v9531_v19 = vld [vmem:[#allocation42_spill] sm:$0xff] }
 0x92e   :  { %3089 = vmatpush.msrb.mxu0 %v7250_v14  ;;  %3109 = vmatpush.msrb.mxu1 %v7253_v9  ;;  %v9532_v14 = vld [vmem:[#allocation44_spill] sm:$0xff] }
 0x92f   :  { %3129 = vmatpush.msrb.mxu2 %v7256_v1  ;;  %3149 = vmatpush.msrb.mxu3 %v7259_v37  ;;  %v9533_v9 = vld [vmem:[#allocation40_spill] sm:$0xff]  ;;  %v9534_v1 = vld [vmem:[#allocation71_spill] sm:$0xff]  ;;  %v9535_v37 = vld [vmem:[#allocation62_spill] sm:$0xff] }
 0x930   :  { %3090 = vmatpush.msrb.mxu0 %v7262_v63  ;;  %3110 = vmatpush.msrb.mxu1 %v7265_v3  ;;  %v1852_v63 = vadd.f32 %v9535_v37, %v9534_v1  ;;  %v9536_v3 = vld [vmem:[#allocation73_spill] sm:$0xff] }
 0x931   :  { %3130 = vmatpush.msrb.mxu2 %v7268_v24  ;;  %3150 = vmatpush.msrb.mxu3 %v7271_v42  ;;  %v9537_v24 = vld [vmem:[#allocation63_spill] sm:$0xff] }
 0x932   :  { %3091 = vmatpush.msrb.mxu0 %v7274_v22  ;;  %3111 = vmatpush.msrb.mxu1 %v7277_v18  ;;  %v1893_v42 = vadd.f32 %v9537_v24, %v9536_v3 }
 0x933   :  { %3131 = vmatpush.msrb.mxu2 %v7280_v8  ;;  %3151 = vmatpush.msrb.mxu3 %v7283_v29 }
 0x934   :  { %3092 = vmatpush.msrb.mxu0 %v7286_v20  ;;  %3112 = vmatpush.msrb.mxu1 %v7289_v56 }
 0x935   :  { %3132 = vmatpush.msrb.mxu2 %v9508_v26  ;;  %3152 = vmatpush.msrb.mxu3 %v9509_v11 }
 0x936   :  { %3093 = vmatpush.msrb.mxu0 %v9510_v12  ;;  %3113 = vmatpush.msrb.mxu1 %v9511_v52 }
 0x937   :  { %3133 = vmatpush.msrb.mxu2 %v9512_v6  ;;  %3153 = vmatpush.msrb.mxu3 %v9513_v35 }
 0x938   :  { %3094 = vmatpush.msrb.mxu0 %v9514_v5  ;;  %3114 = vmatpush.msrb.mxu1 %v9515_v16 }
 0x939   :  { %3134 = vmatpush.msrb.mxu2 %v9516_v44  ;;  %3154 = vmatpush.msrb.mxu3 %v9517_v57 }
 0x93a   :  { %3095 = vmatpush.msrb.mxu0 %v9518_v51  ;;  %3115 = vmatpush.msrb.mxu1 %v9519_v21 }
 0x93b   :  { %3135 = vmatpush.msrb.mxu2 %v9520_v54  ;;  %3155 = vmatpush.msrb.mxu3 %v9521_v23 }
 0x93c   :  { %3096 = vmatpush.msrb.mxu0 %v9522_v7  ;;  %3116 = vmatpush.msrb.mxu1 %v9523_v38 }
 0x93d   :  { %3136 = vmatpush.msrb.mxu2 %v9524_v13  ;;  %3156 = vmatpush.msrb.mxu3 %v9525_v15 }
 0x93e   :  { %3097 = vmatpush.msrb.mxu0 %v9526_v28  ;;  %3117 = vmatpush.msrb.mxu1 %v9527_v60 }
 0x93f   :  { %3137 = vmatpush.msrb.mxu2 %v9528_v30  ;;  %3157 = vmatpush.msrb.mxu3 %v9529_v43 }
 0x940   :  { %3098 = vmatpush.msrb.mxu0 %v9530_v10  ;;  %3118 = vmatpush.msrb.mxu1 %v9531_v19 }
 0x941   :  { %3138 = vmatpush.msrb.mxu2 %v9532_v14  ;;  %3158 = vmatpush.msrb.mxu3 %v9533_v9 }
 0x99d   :  { %v2796_v22 = vpop.f32.mrf.mxu0  ;;  %v2816_v18 = vpop.f32.mrf.mxu1 }
 0x99e   :  { %v2859_v8 = vadd.f32 %v2796_v22, %v1852_v63  ;;  %v2860_v29 = vadd.f32 %v2816_v18, %v1893_v42  ;;  %v3293_v42 = vld [vmem:[#allocation7 + $0x5e8] sm:$0xff]  ;;  %v3294_v22 = vld [vmem:[#allocation7 + $0x5f0] sm:$0xff]  ;;  %v3295_v18 = vld [vmem:[#allocation7 + $0x5f8] sm:$0xff] }
 0x9a0   :  { %v4866_v20 = vmul.f32 -1.442695, %v2859_v8  ;;  %v4867_v56 = vmul.f32 -1.442695, %v2860_v29  ;;  %v3288_v8 = vld [vmem:[#allocation7 + $0x5c0] sm:$0xff]  ;;  %v3289_v29 = vld [vmem:[#allocation7 + $0x5c8] sm:$0xff] }
 0x9a2   :  { %5119 = vpow2.f32 %v4866_v20  ;;  %v3290_v20 = vld [vmem:[#allocation7 + $0x5d0] sm:$0xff] }
 0x9a3   :  { %5121 = vpow2.f32 %v4867_v56  ;;  %v3291_v56 = vld [vmem:[#allocation7 + $0x5d8] sm:$0xff] }
 0x9a4   :  { %v2856_v46 = vpop.f32.mrf.mxu3  ;;  %v2836_v32 = vpop.f32.mrf.mxu2 }
 0x9a5   :  { %v2862_v2 = vadd.f32 %v2856_v46, %v1975_v59  ;;  %v2861_v47 = vadd.f32 %v2836_v32, %v1934_v36  ;;  %v3285_v59 = vld [vmem:[#allocation7 + $0x5a8] sm:$0xff]  ;;  %v3286_v46 = vld [vmem:[#allocation7 + $0x5b0] sm:$0xff]  ;;  %v1855_v36 = vadd.f32 %v9542_v58, %v9534_v1 }
 0x9a6   :  { %v3277_v32 = vld [vmem:[#allocation7 + $0x568] sm:$0xff] }
 0x9a7   :  { %v4868_v25 = vmul.f32 -1.442695, %v2862_v2  ;;  %v3287_v2 = vld [vmem:[#allocation7 + $0x5b8] sm:$0xff] }
 0x9a8   :  { %v5120_v34 = vpop.eup %5119 }
 0x9a9   :  { %v5122_v45 = vpop.eup %5121  ;;  %v2866_v31 = vadd.f32 1.0, %v5120_v34  ;;  %5123 = vpow2.f32 %v4868_v25  ;;  %v3280_v25 = vld [vmem:[#allocation7 + $0x580] sm:$0xff]  ;;  %v3281_v34 = vld [vmem:[#allocation7 + $0x588] sm:$0xff] }
 0x9aa   :  { %v2885_v49 = vadd.f32 1.0, %v5122_v45  ;;  %v3282_v45 = vld [vmem:[#allocation7 + $0x590] sm:$0xff] }
 0x9ab   :  { %5125 = vrcp.f32 %v2866_v31  ;;  %v2878_v55 = vand.u32 2147483648, %v2866_v31  ;;  %v2876_v12 = vand.u32 2147483647, %v2866_v31  ;;  %vm2872_vm14 = vweird.f32 %v2866_v31 }
 0x9ac   :  { %5127 = vrcp.f32 %v2885_v49  ;;  %v2897_v26 = vand.u32 2147483648, %v2885_v49  ;;  %v2895_v6 = vand.u32 2147483647, %v2885_v49  ;;  %vm2891_vm15 = vweird.f32 %v2885_v49 }
 0x9ad   :  { %v2879_v16 = vor.u32 1.1754944e-38, %v2878_v55  ;;  %vm2877_vm2 = vcmp.eq.f32.partialorder %v2876_v12, 8.507059e+37  ;;  %v3268_v12 = vld [vmem:[#allocation7 + $0x520] sm:$0xff] }
 0x9ae   :  { %v2898_v51 = vor.u32 1.1754944e-38, %v2897_v26  ;;  %vm2896_vm3 = vcmp.eq.f32.partialorder %v2895_v6, 8.507059e+37  ;;  %v3270_v6 = vld [vmem:[#allocation7 + $0x530] sm:$0xff] }
 0x9af   :  { %v5124_v53 = vpop.eup %5123 }
 0x9b0   :  { %v2905_v4 = vadd.f32 1.0, %v5124_v53  ;;  %v3278_v53 = vld [vmem:[#allocation7 + $0x570] sm:$0xff] }
 0x9b1   :  { %v5126_v33 = vpop.eup %5125 }
 0x9b2   :  { %v5128_v39 = vpop.eup %5127  ;;  %v2868_v27 = vmul.f32 %v5126_v33, %v2866_v31  ;;  %5129 = vrcp.f32 %v2905_v4  ;;  %vm2873_vm12 = vweird.f32 %v5126_v33  ;;  %v2917_v10 = vand.u32 2147483648, %v2905_v4  ;;  %v3283_v31 = vld [vmem:[#allocation7 + $0x598] sm:$0xff] }
 0x9b3   :  { %v2887_v62 = vmul.f32 %v5128_v39, %v2885_v49  ;;  %5131 = vtanh.f32 %v2861_v47  ;;  %vm2892_vm13 = vweird.f32 %v5128_v39  ;;  %vm2874_vm0 = vmor %vm2872_vm14, %vm2873_vm12  ;;  %vm2911_vm5 = vweird.f32 %v2905_v4  ;;  %v3276_v49 = vld [vmem:[#allocation7 + $0x560] sm:$0xff]  ;;  %v3279_v47 = vld [vmem:[#allocation7 + $0x578] sm:$0xff] }
 0x9b4   :  { %v2869_v41 = vsub.f32 1.0, %v2868_v27  ;;  %vm2893_vm1 = vmor %vm2891_vm15, %vm2892_vm13  ;;  %v2915_v19 = vand.u32 2147483647, %v2905_v4  ;;  %v2918_v9 = vor.u32 1.1754944e-38, %v2917_v10  ;;  %v3257_v10 = vld [vmem:[#allocation7 + $0x4c8] sm:$0xff] }
 0x9b5   :  { %v2888_v17 = vsub.f32 1.0, %v2887_v62  ;;  %v3272_v62 = vld [vmem:[#allocation7 + $0x540] sm:$0xff] }
 0x9b6   :  { %v2870_v11 = vmul.f32 %v5126_v33, %v2869_v41  ;;  %vm2916_vm7 = vcmp.eq.f32.partialorder %v2915_v19, 8.507059e+37  ;;  %v3273_v41 = vld [vmem:[#allocation7 + $0x548] sm:$0xff]  ;;  %v3258_v19 = vld [vmem:[#allocation7 + $0x4d0] sm:$0xff] }
 0x9b7   :  { %v2889_v52 = vmul.f32 %v5128_v39, %v2888_v17  ;;  %v3274_v17 = vld [vmem:[#allocation7 + $0x550] sm:$0xff] }
 0x9b8   :  { %v5130_v35 = vpop.eup %5129  ;;  %v2871_v5 = vadd.f32 %v5126_v33, %v2870_v11  ;;  %v3275_v11 = vld [vmem:[#allocation7 + $0x558] sm:$0xff] }
 0x9b9   :  { %v2890_v44 = vadd.f32 %v5128_v39, %v2889_v52  ;;  %v2907_v57 = vmul.f32 %v5130_v35, %v2905_v4  ;;  %v5132_v54 = vpop.eup %5131  ;;  %vm2912_vm4 = vweird.f32 %v5130_v35  ;;  %v9543_v4 = vld [vmem:[#allocation18_spill] sm:$0xff]  ;;  %v3269_v52 = vld [vmem:[#allocation7 + $0x528] sm:$0xff] }
 0x9ba   :  { %v2875_v21 = vsel %vm2874_vm0, %v5126_v33, %v2871_v5  ;;  %vm2913_vm6 = vmor %vm2911_vm5, %vm2912_vm4  ;;  %v1896_v33 = vadd.f32 %v9543_v4, %v9536_v3  ;;  %v3238_v4 = vld [vmem:[#allocation7 + $0x430] sm:$0xff] }
 0x9bb   :  { %v2880_v23 = vsel %vm2877_vm2, %v2879_v16, %v2875_v21  ;;  %v2894_v7 = vsel %vm2893_vm1, %v5128_v39, %v2890_v44  ;;  %v2908_v38 = vsub.f32 1.0, %v2907_v57  ;;  %v3271_v16 = vld [vmem:[#allocation7 + $0x538] sm:$0xff]  ;;  %v3264_v44 = vld [vmem:[#allocation7 + $0x500] sm:$0xff]  ;;  %v3265_v57 = vld [vmem:[#allocation7 + $0x508] sm:$0xff] }
 0x9bc   :  { %v2899_v13 = vsel %vm2896_vm3, %v2898_v51, %v2894_v7  ;;  %v2922_v15 = vmul.f32 %v5132_v54, %v2880_v23  ;;  %v3266_v51 = vld [vmem:[#allocation7 + $0x510] sm:$0xff]  ;;  %v3267_v21 = vld [vmem:[#allocation7 + $0x518] sm:$0xff]  ;;  %v3260_v7 = vld [vmem:[#allocation7 + $0x4e0] sm:$0xff] }
 0x9bd   :  { %v2921_v28 = vmul.f32 %v2899_v13, %v7543_v61  ;;  %v2909_v60 = vmul.f32 %v5130_v35, %v2908_v38  ;;  %v3292_v61 = vld [vmem:[#allocation7 + $0x5e0] sm:$0xff]  ;;  %v9544_v54 = vld [vmem:[#allocation49_spill] sm:$0xff] }
 0x9be   :  { %v1978_v23 = vadd.f32 %v9544_v54, %v9538_v50  ;;  %v3261_v38 = vld [vmem:[#allocation7 + $0x4e8] sm:$0xff]  ;;  %v3262_v13 = vld [vmem:[#allocation7 + $0x4f0] sm:$0xff] }
 0x9bf   :  { %v7625_v30 = vadd.f32 %v2922_v15, %v2921_v28  ;;  %v2910_v43 = vadd.f32 %v5130_v35, %v2909_v60  ;;  %v3263_v28 = vld [vmem:[#allocation7 + $0x4f8] sm:$0xff] }
 0x9c1   :  { %5133 = vtanh.f32 %v7625_v30  ;;  %v2914_v14 = vsel %vm2913_vm6, %v5130_v35, %v2910_v43  ;;  %v3256_v43 = vld [vmem:[#allocation7 + $0x4c0] sm:$0xff] }
 0x9c2   :  { %v2919_v63 = vsel %vm2916_vm7, %v2918_v9, %v2914_v14  ;;  %v3259_v14 = vld [vmem:[#allocation7 + $0x4d8] sm:$0xff] }
 0x9c7   :  { %v5134_v37 = vpop.eup %5133 }
 0x9c8   :  { %v7628_v24 = vmul.f32 %v5134_v37, %v2919_v63  ;;  %v3252_v37 = vld [vmem:[#allocation7 + $0x4a0] sm:$0xff]  ;;  %v3253_v63 = vld [vmem:[#allocation7 + $0x4a8] sm:$0xff] }
 0x9ca   :  { %2947 = vmatmul.f32.vlgmr.msra.gmra.mxu0 %v7628_v24  ;;  %2967 = vmatmul.f32.vlgmr.msra.gmra.mxu1 %v7628_v24 }
 0x9cb   :  { %2987 = vmatmul.f32.vlgmr.msra.gmra.mxu2 %v7628_v24  ;;  %3007 = vmatmul.f32.vlgmr.msra.gmra.mxu3 %v7628_v24 }
 0x9cc   :  { %3380 = vmatpush.msra.mxu0 %v3292_v61  ;;  %3421 = vmatpush.msra.mxu1 %v3293_v42  ;;  %v3254_v61 = vld [vmem:[#allocation7 + $0x4b0] sm:$0xff] }
 0x9cd   :  { %3462 = vmatpush.msra.mxu2 %v3294_v22  ;;  %3503 = vmatpush.msra.mxu3 %v3295_v18  ;;  %v3255_v22 = vld [vmem:[#allocation7 + $0x4b8] sm:$0xff]  ;;  %v3248_v18 = vld [vmem:[#allocation7 + $0x480] sm:$0xff] }
 0x9ce   :  { %3381 = vmatpush.msra.mxu0 %v3288_v8  ;;  %3422 = vmatpush.msra.mxu1 %v3289_v29  ;;  %v3249_v8 = vld [vmem:[#allocation7 + $0x488] sm:$0xff] }
 0x9cf   :  { %3463 = vmatpush.msra.mxu2 %v3290_v20  ;;  %3504 = vmatpush.msra.mxu3 %v3291_v56  ;;  %v3250_v56 = vld [vmem:[#allocation7 + $0x490] sm:$0xff] }
 0x9d0   :  { %3382 = vmatpush.msra.mxu0 %v3284_v0  ;;  %3423 = vmatpush.msra.mxu1 %v3285_v59  ;;  %v3251_v0 = vld [vmem:[#allocation7 + $0x498] sm:$0xff] }
 0x9d1   :  { %3464 = vmatpush.msra.mxu2 %v3286_v46  ;;  %3505 = vmatpush.msra.mxu3 %v3287_v2  ;;  %v3244_v46 = vld [vmem:[#allocation7 + $0x460] sm:$0xff]  ;;  %v3245_v2 = vld [vmem:[#allocation7 + $0x468] sm:$0xff] }
 0x9d2   :  { %3383 = vmatpush.msra.mxu0 %v3280_v25  ;;  %3424 = vmatpush.msra.mxu1 %v3281_v34  ;;  %v3246_v25 = vld [vmem:[#allocation7 + $0x470] sm:$0xff]  ;;  %v3247_v34 = vld [vmem:[#allocation7 + $0x478] sm:$0xff] }
 0x9d3   :  { %3465 = vmatpush.msra.mxu2 %v3282_v45  ;;  %3506 = vmatpush.msra.mxu3 %v3283_v31  ;;  %v3240_v45 = vld [vmem:[#allocation7 + $0x440] sm:$0xff]  ;;  %v3241_v31 = vld [vmem:[#allocation7 + $0x448] sm:$0xff] }
 0x9d4   :  { %3384 = vmatpush.msra.mxu0 %v3276_v49  ;;  %3425 = vmatpush.msra.mxu1 %v3277_v32  ;;  %v3242_v49 = vld [vmem:[#allocation7 + $0x450] sm:$0xff]  ;;  %v3243_v32 = vld [vmem:[#allocation7 + $0x458] sm:$0xff] }
 0x9d5   :  { %3466 = vmatpush.msra.mxu2 %v3278_v53  ;;  %3507 = vmatpush.msra.mxu3 %v3279_v47  ;;  %v3236_v53 = vld [vmem:[#allocation7 + $0x420] sm:$0xff] }
 0x9d6   :  { %3385 = vmatpush.msra.mxu0 %v3272_v62  ;;  %3426 = vmatpush.msra.mxu1 %v3273_v41  ;;  %v3232_v62 = vld [vmem:[#allocation7 + $0x400] sm:$0xff]  ;;  %v3233_v41 = vld [vmem:[#allocation7 + $0x408] sm:$0xff] }
 0x9d7   :  { %3467 = vmatpush.msra.mxu2 %v3274_v17  ;;  %3508 = vmatpush.msra.mxu3 %v3275_v11 }
 0x9d8   :  { %3386 = vmatpush.msra.mxu0 %v3268_v12  ;;  %3427 = vmatpush.msra.mxu1 %v3269_v52 }
 0x9d9   :  { %3468 = vmatpush.msra.mxu2 %v3270_v6  ;;  %3509 = vmatpush.msra.mxu3 %v3271_v16 }
 0x9da   :  { %3387 = vmatpush.msra.mxu0 %v3264_v44  ;;  %3428 = vmatpush.msra.mxu1 %v3265_v57 }
 0x9db   :  { %3469 = vmatpush.msra.mxu2 %v3266_v51  ;;  %3510 = vmatpush.msra.mxu3 %v3267_v21 }
 0x9dc   :  { %3388 = vmatpush.msra.mxu0 %v3260_v7  ;;  %3429 = vmatpush.msra.mxu1 %v3261_v38 }
 0x9dd   :  { %3470 = vmatpush.msra.mxu2 %v3262_v13  ;;  %3511 = vmatpush.msra.mxu3 %v3263_v28 }
 0x9de   :  { %3389 = vmatpush.msra.mxu0 %v3256_v43  ;;  %3430 = vmatpush.msra.mxu1 %v3257_v10 }
 0x9df   :  { %3471 = vmatpush.msra.mxu2 %v3258_v19  ;;  %3512 = vmatpush.msra.mxu3 %v3259_v14 }
 0x9e0   :  { %3390 = vmatpush.msra.mxu0 %v3252_v37  ;;  %3431 = vmatpush.msra.mxu1 %v3253_v63 }
 0x9e1   :  { %3472 = vmatpush.msra.mxu2 %v3254_v61  ;;  %3513 = vmatpush.msra.mxu3 %v3255_v22 }
 0x9e2   :  { %3391 = vmatpush.msra.mxu0 %v3248_v18  ;;  %3432 = vmatpush.msra.mxu1 %v3249_v8 }
 0x9e3   :  { %3473 = vmatpush.msra.mxu2 %v3250_v56  ;;  %3514 = vmatpush.msra.mxu3 %v3251_v0 }
 0x9e4   :  { %3392 = vmatpush.msra.mxu0 %v3244_v46  ;;  %3433 = vmatpush.msra.mxu1 %v3245_v2  ;;  %v9547_v2 = vld [vmem:[#allocation24_spill] sm:$0xff] }
 0x9e5   :  { %3474 = vmatpush.msra.mxu2 %v3246_v25  ;;  %3515 = vmatpush.msra.mxu3 %v3247_v34  ;;  %v9548_v25 = vld [vmem:[#allocation43_spill] sm:$0xff] }
 0x9e6   :  { %3393 = vmatpush.msra.mxu0 %v3240_v45  ;;  %3434 = vmatpush.msra.mxu1 %v3241_v31  ;;  %v7672_v34 = vld [vmem:[#allocation9 + $0x5e0] sm:$0xff]  ;;  %v7674_v45 = vld [vmem:[#allocation9 + $0x5e8] sm:$0xff] }
 0x9e7   :  { %3475 = vmatpush.msra.mxu2 %v3242_v49  ;;  %3516 = vmatpush.msra.mxu3 %v3243_v32  ;;  %9549 = vst [vmem:[#allocation48_spill] sm:$0xff] %v7672_v34  ;;  %v7676_v31 = vld [vmem:[#allocation9 + $0x5c0] sm:$0xff]  ;;  %v7680_v49 = vld [vmem:[#allocation9 + $0x5c8] sm:$0xff]  ;;  %v7682_v32 = vld [vmem:[#allocation9 + $0x5f8] sm:$0xff] }
 0x9e8   :  { %3394 = vmatpush.msra.mxu0 %v3236_v53  ;;  %9550 = vst [vmem:[#allocation45_spill] sm:$0xff] %v7680_v49  ;;  %v7685_v53 = vld [vmem:[#allocation9 + $0x5a0] sm:$0xff] }
 0x9e9   :  { %3476 = vmatpush.msra.mxu2 %v3238_v4  ;;  %v9553_v4 = vld [vmem:[#allocation46_spill] sm:$0xff] }
 0x9ea   :  { %3395 = vmatpush.msra.mxu0 %v3232_v62  ;;  %v7720_v62 = vld [vmem:[#allocation9 + $0x588] sm:$0xff] }
 0xa47   :  { %v2948_v39 = vpop.f32.mrf.mxu0  ;;  %v2968_v27 = vpop.f32.mrf.mxu1 }
 0xa48   :  { %v3011_v55 = vadd.f32 %v2948_v39, %v1855_v36  ;;  %v3012_v26 = vadd.f32 %v2968_v27, %v1896_v33  ;;  %v3237_v36 = vld [vmem:[#allocation7 + $0x428] sm:$0xff]  ;;  %v3239_v33 = vld [vmem:[#allocation7 + $0x438] sm:$0xff] }
 0xa49   :  { %v9545_v39 = vld [vmem:[#allocation17_spill] sm:$0xff]  ;;  %3435 = vmatpush.msra.mxu1 %v3237_v36  ;;  %3517 = vmatpush.msra.mxu3 %v3239_v33  ;;  %v7689_v36 = vld [vmem:[#allocation9 + $0x5d8] sm:$0xff] }
 0xa4a   :  { %v4869_v35 = vmul.f32 -1.442695, %v3011_v55  ;;  %v4870_v5 = vmul.f32 -1.442695, %v3012_v26  ;;  %v1937_v27 = vadd.f32 %v9545_v39, %v9540_v48  ;;  %v3234_v55 = vld [vmem:[#allocation7 + $0x410] sm:$0xff]  ;;  %v3235_v26 = vld [vmem:[#allocation7 + $0x418] sm:$0xff] }
 0xa4b   :  { %3436 = vmatpush.msra.mxu1 %v3233_v41  ;;  %3477 = vmatpush.msra.mxu2 %v3234_v55  ;;  %9552 = vst [vmem:[#allocation50_spill] sm:$0xff] %v7689_v36  ;;  %v7708_v33 = vld [vmem:[#allocation9 + $0x5f0] sm:$0xff]  ;;  %v7728_v41 = vld [vmem:[#allocation9 + $0x568] sm:$0xff] }
 0xa4c   :  { %5135 = vpow2.f32 %v4869_v35  ;;  %3518 = vmatpush.msra.mxu3 %v3235_v26  ;;  %v7716_v39 = vld [vmem:[#allocation9 + $0x5b0] sm:$0xff]  ;;  %v7738_v26 = vld [vmem:[#allocation9 + $0x578] sm:$0xff] }
 0xa4d   :  { %5137 = vpow2.f32 %v4870_v5  ;;  %v7732_v55 = vld [vmem:[#allocation9 + $0x590] sm:$0xff] }
 0xa4e   :  { %v3008_v15 = vpop.f32.mrf.mxu3  ;;  %v2988_v58 = vpop.f32.mrf.mxu2 }
 0xa4f   :  { %v3014_v60 = vadd.f32 %v3008_v15, %v1978_v23  ;;  %v3013_v12 = vadd.f32 %v2988_v58, %v1937_v27  ;;  %v7687_v58 = vld [vmem:[#allocation9 + $0x5a8] sm:$0xff]  ;;  %v7718_v27 = vld [vmem:[#allocation9 + $0x580] sm:$0xff] }
 0xa50   :  { %9551 = vst [vmem:[#allocation47_spill] sm:$0xff] %v7687_v58 }
 0xa51   :  { %v4871_v9 = vmul.f32 -1.442695, %v3014_v60  ;;  %9555 = vst [vmem:[#allocation68_spill] sm:$0xff] %v7718_v27 }
 0xa52   :  { %v5136_v42 = vpop.eup %5135 }
 0xa53   :  { %v5138_v29 = vpop.eup %5137  ;;  %v7640_v20 = vadd.f32 1.0, %v5136_v42  ;;  %5139 = vpow2.f32 %v4871_v9 }
 0xa54   :  { %v7642_v59 = vadd.f32 1.0, %v5138_v29 }
 0xa55   :  { %5141 = vrcp.f32 %v7640_v20  ;;  %v3030_v44 = vand.u32 2147483648, %v7640_v20  ;;  %v3028_v21 = vand.u32 2147483647, %v7640_v20  ;;  %vm3024_vm10 = vweird.f32 %v7640_v20 }
 0xa56   :  { %5143 = vrcp.f32 %v7642_v59  ;;  %v3049_v57 = vand.u32 2147483648, %v7642_v59  ;;  %v3047_v23 = vand.u32 2147483647, %v7642_v59  ;;  %vm3043_vm11 = vweird.f32 %v7642_v59 }
 0xa57   :  { %v3031_v13 = vor.u32 1.1754944e-38, %v3030_v44  ;;  %vm3029_vm14 = vcmp.eq.f32.partialorder %v3028_v21, 8.507059e+37  ;;  %v7752_v44 = vld [vmem:[#allocation9 + $0x558] sm:$0xff]  ;;  %v7756_v21 = vld [vmem:[#allocation9 + $0x550] sm:$0xff] }
 0xa58   :  { %v3050_v60 = vor.u32 1.1754944e-38, %v3049_v57  ;;  %vm3048_vm15 = vcmp.eq.f32.partialorder %v3047_v23, 8.507059e+37 }
 0xa59   :  { %v5140_v47 = vpop.eup %5139 }
 0xa5a   :  { %v3057_v17 = vadd.f32 1.0, %v5140_v47  ;;  %v7711_v47 = vld [vmem:[#allocation9 + $0x5d0] sm:$0xff] }
 0xa5b   :  { %v5142_v11 = vpop.eup %5141 }
 0xa5c   :  { %v5144_v52 = vpop.eup %5143  ;;  %v3020_v6 = vmul.f32 %v5142_v11, %v7640_v20  ;;  %5145 = vrcp.f32 %v3057_v17  ;;  %vm3025_vm8 = vweird.f32 %v5142_v11  ;;  %v3069_v8 = vand.u32 2147483648, %v3057_v17 }
 0xa5d   :  { %v3039_v35 = vmul.f32 %v5144_v52, %v7642_v59  ;;  %5147 = vtanh.f32 %v3013_v12  ;;  %vm3044_vm9 = vweird.f32 %v5144_v52  ;;  %vm3026_vm12 = vmor %vm3024_vm10, %vm3025_vm8  ;;  %vm3063_vm1 = vweird.f32 %v3057_v17  ;;  %v9556_v12 = vld [vmem:[#allocation66_spill] sm:$0xff] }
 0xa5e   :  { %v3021_v5 = vsub.f32 1.0, %v3020_v6  ;;  %vm3045_vm13 = vmor %vm3043_vm11, %vm3044_vm9  ;;  %v3067_v29 = vand.u32 2147483647, %v3057_v17  ;;  %v3070_v56 = vor.u32 1.1754944e-38, %v3069_v8  ;;  %v9557_v6 = vld [vmem:[#allocation67_spill] sm:$0xff] }
 0xa5f   :  { %v3040_v16 = vsub.f32 1.0, %v3039_v35  ;;  %v1899_v35 = vadd.f32 %v9557_v6, %v9536_v3  ;;  %v7763_v3 = vld [vmem:[#allocation9 + $0x538] sm:$0xff]  ;;  %v7798_v8 = vld [vmem:[#allocation9 + $0x4a0] sm:$0xff] }
 0xa60   :  { %v3022_v51 = vmul.f32 %v5142_v11, %v3021_v5  ;;  %vm3068_vm3 = vcmp.eq.f32.partialorder %v3067_v29, 8.507059e+37  ;;  %v7748_v5 = vld [vmem:[#allocation9 + $0x540] sm:$0xff]  ;;  %9560 = vst [vmem:[#allocation59_spill] sm:$0xff] %v7798_v8  ;;  %v7800_v29 = vld [vmem:[#allocation9 + $0x4a8] sm:$0xff] }
 0xa61   :  { %v3041_v54 = vmul.f32 %v5144_v52, %v3040_v16  ;;  %v7750_v16 = vld [vmem:[#allocation9 + $0x548] sm:$0xff]  ;;  %9561 = vst [vmem:[#allocation74_spill] sm:$0xff] %v7800_v29 }
 0xa62   :  { %v5146_v7 = vpop.eup %5145  ;;  %v3023_v38 = vadd.f32 %v5142_v11, %v3022_v51 }
 0xa63   :  { %v3042_v15 = vadd.f32 %v5144_v52, %v3041_v54  ;;  %v3059_v28 = vmul.f32 %v5146_v7, %v3057_v17  ;;  %v5148_v10 = vpop.eup %5147  ;;  %vm3064_vm0 = vweird.f32 %v5146_v7  ;;  %v7730_v17 = vld [vmem:[#allocation9 + $0x598] sm:$0xff] }
 0xa64   :  { %v3027_v43 = vsel %vm3026_vm12, %v5142_v11, %v3023_v38  ;;  %vm3065_vm2 = vmor %vm3063_vm1, %vm3064_vm0  ;;  %v7740_v11 = vld [vmem:[#allocation9 + $0x570] sm:$0xff] }
 0xa65   :  { %v3032_v19 = vsel %vm3029_vm14, %v3031_v13, %v3027_v43  ;;  %v3046_v14 = vsel %vm3045_vm13, %v5144_v52, %v3042_v15  ;;  %v3060_v9 = vsub.f32 1.0, %v3059_v28  ;;  %v1858_v52 = vadd.f32 %v9556_v12, %v9534_v1  ;;  %v7758_v1 = vld [vmem:[#allocation9 + $0x520] sm:$0xff]  ;;  %v7768_v38 = vld [vmem:[#allocation9 + $0x530] sm:$0xff] }
 0xa66   :  { %v3051_v37 = vsel %vm3048_vm15, %v3050_v60, %v3046_v14  ;;  %v3074_v63 = vmul.f32 %v5148_v10, %v3032_v19  ;;  %v7770_v28 = vld [vmem:[#allocation9 + $0x500] sm:$0xff]  ;;  %v7772_v60 = vld [vmem:[#allocation9 + $0x508] sm:$0xff]  ;;  %v7782_v19 = vld [vmem:[#allocation9 + $0x518] sm:$0xff] }
 0xa67   :  { %v3073_v61 = vmul.f32 %v3051_v37, %v7625_v30  ;;  %v3061_v42 = vmul.f32 %v5146_v7, %v3060_v9  ;;  %v9546_v30 = vld [vmem:[#allocation51_spill] sm:$0xff]  ;;  %v7780_v10 = vld [vmem:[#allocation9 + $0x4e8] sm:$0xff] }
 0xa68   :  { %v7778_v43 = vld [vmem:[#allocation9 + $0x4e0] sm:$0xff]  ;;  %v7787_v9 = vld [vmem:[#allocation9 + $0x4c8] sm:$0xff]  ;;  %v7789_v37 = vld [vmem:[#allocation9 + $0x4f8] sm:$0xff] }
 0xa69   :  { %v7657_v22 = vadd.f32 %v3074_v63, %v3073_v61  ;;  %v3062_v18 = vadd.f32 %v5146_v7, %v3061_v42  ;;  %v7785_v14 = vld [vmem:[#allocation9 + $0x4c0] sm:$0xff]  ;;  %v7795_v42 = vld [vmem:[#allocation9 + $0x4d8] sm:$0xff] }
 0xa6a   :  { %v9558_v63 = vld [vmem:[#allocation19_spill] sm:$0xff]  ;;  %9559 = vst [vmem:[#allocation58_spill] sm:$0xff] %v7795_v42 }
 0xa6b   :  { %5149 = vtanh.f32 %v7657_v22  ;;  %v3066_v20 = vsel %vm3065_vm2, %v5146_v7, %v3062_v18  ;;  %v7760_v7 = vld [vmem:[#allocation9 + $0x528] sm:$0xff]  ;;  %v1981_v61 = vadd.f32 %v9558_v63, %v9538_v50  ;;  %v7806_v50 = vld [vmem:[#allocation9 + $0x4b8] sm:$0xff]  ;;  %v7824_v12 = vld [vmem:[#allocation9 + $0x460] sm:$0xff] }
 0xa6c   :  { %v3071_v59 = vsel %vm3068_vm3, %v3070_v56, %v3066_v20  ;;  %v7802_v20 = vld [vmem:[#allocation9 + $0x510] sm:$0xff]  ;;  %9562 = vst [vmem:[#allocation72_spill] sm:$0xff] %v7806_v50  ;;  %v7852_v63 = vld [vmem:[#allocation9 + $0x420] sm:$0xff] }
 0xa6d   :  { %9567 = vst [vmem:[#allocation54_spill] sm:$0xff] %v7824_v12 }
 0xa6e   :  { %9574 = vst [vmem:[#allocation60_spill] sm:$0xff] %v7852_v63 }
 0xa71   :  { %v5150_v0 = vpop.eup %5149 }
 0xa72   :  { %v3077_v46 = vmul.f32 %v5150_v0, %v3071_v59  ;;  %v7808_v0 = vld [vmem:[#allocation9 + $0x4f0] sm:$0xff]  ;;  %v7812_v59 = vld [vmem:[#allocation9 + $0x480] sm:$0xff] }
 0xa73   :  { %9563 = vst [vmem:[#allocation61_spill] sm:$0xff] %v7812_v59 }
 0xa74   :  { %3099 = vmatmul.f32.vlgmr.msrb.gmra.mxu0 %v3077_v46  ;;  %3119 = vmatmul.f32.vlgmr.msrb.gmra.mxu1 %v3077_v46 }
 0xa75   :  { %3139 = vmatmul.f32.vlgmr.msrb.gmra.mxu2 %v3077_v46  ;;  %3159 = vmatmul.f32.vlgmr.msrb.gmra.mxu3 %v3077_v46 }
 0xa76   :  { %3580 = vmatpush.msrb.mxu0 %v7672_v34  ;;  %3600 = vmatpush.msrb.mxu1 %v7674_v45 }
 0xa77   :  { %3640 = vmatpush.msrb.mxu3 %v7682_v32  ;;  %3620 = vmatpush.msrb.mxu2 %v7708_v33 }
 0xa78   :  { %3581 = vmatpush.msrb.mxu0 %v7676_v31  ;;  %3601 = vmatpush.msrb.mxu1 %v7680_v49 }
 0xa79   :  { %3641 = vmatpush.msrb.mxu3 %v7689_v36  ;;  %3621 = vmatpush.msrb.mxu2 %v7711_v47 }
 0xa7a   :  { %3582 = vmatpush.msrb.mxu0 %v7685_v53  ;;  %3602 = vmatpush.msrb.mxu1 %v7687_v58 }
 0xa7b   :  { %3622 = vmatpush.msrb.mxu2 %v7716_v39 }
 0xa7c   :  { %3396 = vmatmul.f32.vlgmr.msra.gmra.mxu0 %v9546_v30  ;;  %3437 = vmatmul.f32.vlgmr.msra.gmra.mxu1 %v9546_v30 }
 0xa7d   :  { %3478 = vmatmul.f32.vlgmr.msra.gmra.mxu2 %v9546_v30  ;;  %3519 = vmatmul.f32.vlgmr.msra.gmra.mxu3 %v9546_v30 }
 0xa7e   :  { %3583 = vmatpush.msrb.mxu0 %v7718_v27  ;;  %3603 = vmatpush.msrb.mxu1 %v7720_v62 }
 0xa7f   :  { %3623 = vmatpush.msrb.mxu2 %v7732_v55 }
 0xa80   :  { %3604 = vmatpush.msrb.mxu1 %v7728_v41 }
 0xa81   :  { %3624 = vmatpush.msrb.mxu2 %v7740_v11 }
 0xa82   :  { %3605 = vmatpush.msrb.mxu1 %v7750_v16 }
 0xa83   :  { %3625 = vmatpush.msrb.mxu2 %v7756_v21 }
 0xa84   :  { %3399 = vmatmul.f32.gmra.mxu0 %v9547_v2  ;;  %3440 = vmatmul.f32.gmra.mxu1 %v9547_v2 }
 0xa85   :  { %3481 = vmatmul.f32.gmra.mxu2 %v9547_v2  ;;  %3522 = vmatmul.f32.gmra.mxu3 %v9547_v2  ;;  %v7818_v2 = vld [vmem:[#allocation9 + $0x498] sm:$0xff] }
 0xa86   :  { %3606 = vmatpush.msrb.mxu1 %v7760_v7  ;;  %3626 = vmatpush.msrb.mxu2 %v7768_v38  ;;  %9565 = vst [vmem:[#allocation65_spill] sm:$0xff] %v7818_v2 }
 0xa88   :  { %3607 = vmatpush.msrb.mxu1 %v7772_v60  ;;  %3627 = vmatpush.msrb.mxu2 %v7802_v20 }
 0xa8a   :  { %3608 = vmatpush.msrb.mxu1 %v7780_v10  ;;  %3628 = vmatpush.msrb.mxu2 %v7808_v0 }
 0xa8c   :  { %3402 = vmatmul.f32.gmra.mxu0 %v9548_v25  ;;  %3443 = vmatmul.f32.gmra.mxu1 %v9548_v25 }
 0xa8d   :  { %3484 = vmatmul.f32.gmra.mxu2 %v9548_v25  ;;  %3525 = vmatmul.f32.gmra.mxu3 %v9548_v25  ;;  %v7820_v25 = vld [vmem:[#allocation9 + $0x4d0] sm:$0xff] }
 0xa8e   :  { %3609 = vmatpush.msrb.mxu1 %v7787_v9  ;;  %9566 = vst [vmem:[#allocation52_spill] sm:$0xff] %v7820_v25  ;;  %3629 = vmatpush.msrb.mxu2 %v7820_v25 }
 0xa90   :  { %3610 = vmatpush.msrb.mxu1 %v7800_v29 }
 0xa94   :  { %3405 = vmatmul.f32.gmra.mxu0 %v9553_v4  ;;  %3446 = vmatmul.f32.gmra.mxu1 %v9553_v4 }
 0xa95   :  { %3487 = vmatmul.f32.gmra.mxu2 %v9553_v4  ;;  %3528 = vmatmul.f32.gmra.mxu3 %v9553_v4 }
 0xa9c   :  { %3408 = vmatmul.f32.gmra.mxu0 %v7546_v40  ;;  %3449 = vmatmul.f32.gmra.mxu1 %v7546_v40 }
 0xa9d   :  { %3490 = vmatmul.f32.gmra.mxu2 %v7546_v40  ;;  %3531 = vmatmul.f32.gmra.mxu3 %v7546_v40  ;;  %v7714_v40 = vld [vmem:[#allocation9 + $0x5b8] sm:$0xff] }
 0xa9e   :  { %9554 = vst [vmem:[#allocation69_spill] sm:$0xff] %v7714_v40  ;;  %3642 = vmatpush.msrb.mxu3 %v7714_v40 }
 0xaa0   :  { %3643 = vmatpush.msrb.mxu3 %v7730_v17 }
 0xaa2   :  { %3644 = vmatpush.msrb.mxu3 %v7738_v26 }
 0xaa4   :  { %3411 = vmatmul.f32.gmra.mxu0 %v7628_v24  ;;  %3452 = vmatmul.f32.gmra.mxu1 %v7628_v24 }
 0xaa5   :  { %3493 = vmatmul.f32.gmra.mxu2 %v7628_v24  ;;  %3534 = vmatmul.f32.gmra.mxu3 %v7628_v24  ;;  %v7723_v24 = vld [vmem:[#allocation9 + $0x560] sm:$0xff] }
 0xaa6   :  { %3584 = vmatpush.msrb.mxu0 %v7723_v24  ;;  %3645 = vmatpush.msrb.mxu3 %v7752_v44 }
 0xaa8   :  { %3585 = vmatpush.msrb.mxu0 %v7748_v5  ;;  %3646 = vmatpush.msrb.mxu3 %v7763_v3 }
 0xaaa   :  { %3586 = vmatpush.msrb.mxu0 %v7758_v1  ;;  %3647 = vmatpush.msrb.mxu3 %v7782_v19 }
 0xaac   :  { %3414 = vmatmul.f32.gmra.mxu0 %v3077_v46  ;;  %3455 = vmatmul.f32.gmra.mxu1 %v3077_v46 }
 0xaad   :  { %3496 = vmatmul.f32.gmra.mxu2 %v3077_v46  ;;  %3537 = vmatmul.f32.gmra.mxu3 %v3077_v46  ;;  %v7814_v46 = vld [vmem:[#allocation9 + $0x488] sm:$0xff] }
 0xaae   :  { %3587 = vmatpush.msrb.mxu0 %v7770_v28  ;;  %3648 = vmatpush.msrb.mxu3 %v7789_v37  ;;  %9564 = vst [vmem:[#allocation64_spill] sm:$0xff] %v7814_v46 }
 0xaaf   :  { %3611 = vmatpush.msrb.mxu1 %v7814_v46 }
 0xab0   :  { %3588 = vmatpush.msrb.mxu0 %v7778_v43  ;;  %3649 = vmatpush.msrb.mxu3 %v7795_v42 }
 0xab2   :  { %3589 = vmatpush.msrb.mxu0 %v7785_v14  ;;  %3650 = vmatpush.msrb.mxu3 %v7806_v50 }
 0xab4   :  { %3590 = vmatpush.msrb.mxu0 %v7798_v8  ;;  %3651 = vmatpush.msrb.mxu3 %v7818_v2  ;;  %v7876_v2 = vld [vmem:[#allocation9 + $0x418] sm:$0xff] }
 0xab5   :  { %9583 = vst [vmem:[#allocation33_spill] sm:$0xff] %v7876_v2 }
 0xab6   :  { %3591 = vmatpush.msrb.mxu0 %v7812_v59 }
 0xab8   :  { %3592 = vmatpush.msrb.mxu0 %v7824_v12 }
 0xaf1   :  { %v3100_v57 = vpop.f32.mrf.mxu0  ;;  %v3120_v51 = vpop.f32.mrf.mxu1 }
 0xaf2   :  { %v3163_v54 = vadd.f32 %v3100_v57, %v1858_v52  ;;  %v3164_v23 = vadd.f32 %v3120_v51, %v1899_v35  ;;  %v7826_v52 = vld [vmem:[#allocation9 + $0x468] sm:$0xff]  ;;  %v7832_v57 = vld [vmem:[#allocation9 + $0x4b0] sm:$0xff]  ;;  %v7834_v51 = vld [vmem:[#allocation9 + $0x478] sm:$0xff] }
 0xaf3   :  { %9568 = vst [vmem:[#allocation53_spill] sm:$0xff] %v7826_v52  ;;  %3612 = vmatpush.msrb.mxu1 %v7826_v52  ;;  %3630 = vmatpush.msrb.mxu2 %v7832_v57  ;;  %v9580_v52 = vld [vmem:[#allocation20_spill] sm:$0xff] }
 0xaf4   :  { %v4872_v13 = vmul.f32 -1.442695, %v3163_v54  ;;  %v4873_v15 = vmul.f32 -1.442695, %v3164_v23  ;;  %9569 = vst [vmem:[#allocation27_spill] sm:$0xff] %v7832_v57  ;;  %v7840_v23 = vld [vmem:[#allocation9 + $0x440] sm:$0xff]  ;;  %3652 = vmatpush.msrb.mxu3 %v7834_v51  ;;  %v1940_v12 = vadd.f32 %v9580_v52, %v9540_v48 }
 0xaf5   :  { %9570 = vst [vmem:[#allocation55_spill] sm:$0xff] %v7834_v51  ;;  %3593 = vmatpush.msrb.mxu0 %v7840_v23  ;;  %v7884_v48 = vld [vmem:[#allocation9 + $0x430] sm:$0xff] }
 0xaf6   :  { %5151 = vpow2.f32 %v4872_v13  ;;  %9571 = vst [vmem:[#allocation56_spill] sm:$0xff] %v7840_v23  ;;  %v7842_v13 = vld [vmem:[#allocation9 + $0x448] sm:$0xff]  ;;  %v7874_v23 = vld [vmem:[#allocation9 + $0x438] sm:$0xff] }
 0xaf7   :  { %5153 = vpow2.f32 %v4873_v15  ;;  %9572 = vst [vmem:[#allocation57_spill] sm:$0xff] %v7842_v13  ;;  %v7847_v15 = vld [vmem:[#allocation9 + $0x490] sm:$0xff]  ;;  %3613 = vmatpush.msrb.mxu1 %v7842_v13  ;;  %3594 = vmatpush.msrb.mxu0 %v7852_v63 }
 0xaf8   :  { %v3160_v18 = vpop.f32.mrf.mxu3  ;;  %9573 = vst [vmem:[#allocation31_spill] sm:$0xff] %v7847_v15  ;;  %3631 = vmatpush.msrb.mxu2 %v7847_v15  ;;  %v7872_v13 = vld [vmem:[#allocation9 + $0x450] sm:$0xff] }
 0xaf9   :  { %v3166_v56 = vadd.f32 %v3160_v18, %v1981_v61  ;;  %v7854_v61 = vld [vmem:[#allocation9 + $0x428] sm:$0xff]  ;;  %v7856_v18 = vld [vmem:[#allocation9 + $0x458] sm:$0xff]  ;;  %9581 = vst [vmem:[#allocation29_spill] sm:$0xff] %v7872_v13 }
 0xafa   :  { %9575 = vst [vmem:[#allocation26_spill] sm:$0xff] %v7854_v61  ;;  %3653 = vmatpush.msrb.mxu3 %v7856_v18  ;;  %3614 = vmatpush.msrb.mxu1 %v7854_v61 }
 0xafb   :  { %v4874_v30 = vmul.f32 -1.442695, %v3166_v56  ;;  %9576 = vst [vmem:[#allocation25_spill] sm:$0xff] %v7856_v18  ;;  %v7860_v56 = vld [vmem:[#allocation9 + $0x470] sm:$0xff] }
 0xafc   :  { %v5152_v4 = vpop.eup %5151  ;;  %9577 = vst [vmem:[#allocation35_spill] sm:$0xff] %v7860_v56  ;;  %3632 = vmatpush.msrb.mxu2 %v7860_v56  ;;  %3654 = vmatpush.msrb.mxu3 %v7874_v23 }
 0xafd   :  { %v5154_v6 = vpop.eup %5153  ;;  %v7828_v35 = vadd.f32 1.0, %v5152_v4  ;;  %5155 = vpow2.f32 %v4874_v30  ;;  %v3140_v30 = vpop.f32.mrf.mxu2  ;;  %v7864_v4 = vld [vmem:[#allocation9 + $0x400] sm:$0xff]  ;;  %9582 = vst [vmem:[#allocation38_spill] sm:$0xff] %v7874_v23  ;;  %v7891_v23 = vld [vmem:[#allocation9 + $0x410] sm:$0xff] }
 0xafe   :  { %v7836_v54 = vadd.f32 1.0, %v5154_v6  ;;  %9578 = vst [vmem:[#allocation28_spill] sm:$0xff] %v7864_v4  ;;  %v7866_v6 = vld [vmem:[#allocation9 + $0x408] sm:$0xff]  ;;  %v3165_v46 = vadd.f32 %v3140_v30, %v1940_v12  ;;  %3595 = vmatpush.msrb.mxu0 %v7864_v4  ;;  %3633 = vmatpush.msrb.mxu2 %v7872_v13 }
 0xaff   :  { %5157 = vrcp.f32 %v7828_v35  ;;  %9579 = vst [vmem:[#allocation30_spill] sm:$0xff] %v7866_v6  ;;  %3615 = vmatpush.msrb.mxu1 %v7866_v6  ;;  %3655 = vmatpush.msrb.mxu3 %v7876_v2  ;;  %v3182_v6 = vand.u32 2147483648, %v7828_v35  ;;  %vm3176_vm6 = vweird.f32 %v7828_v35 }
 0xb00   :  { %5159 = vrcp.f32 %v7836_v54  ;;  %9584 = vst [vmem:[#allocation32_spill] sm:$0xff] %v7884_v48  ;;  %3732 = vmatpush.msra.mxu0 %v7672_v34  ;;  %3634 = vmatpush.msrb.mxu2 %v7884_v48  ;;  %v3201_v2 = vand.u32 2147483648, %v7836_v54  ;;  %v3180_v34 = vand.u32 2147483647, %v7828_v35  ;;  %vm3195_vm7 = vweird.f32 %v7836_v54 }
 0xb01   :  { %9585 = vst [vmem:[#allocation34_spill] sm:$0xff] %v7891_v23  ;;  %3752 = vmatpush.msra.mxu1 %v7674_v45  ;;  %3792 = vmatpush.msra.mxu3 %v7682_v32 }
 0xb02   :  { %3733 = vmatpush.msra.mxu0 %v7676_v31  ;;  %3635 = vmatpush.msrb.mxu2 %v7891_v23  ;;  %vm3181_vm10 = vcmp.eq.f32.partialorder %v3180_v34, 8.507059e+37 }
 0xb03   :  { %v5156_v51 = vpop.eup %5155  ;;  %3753 = vmatpush.msra.mxu1 %v7680_v49  ;;  %3793 = vmatpush.msra.mxu3 %v7689_v36 }
 0xb04   :  { %v7878_v15 = vadd.f32 1.0, %v5156_v51  ;;  %3772 = vmatpush.msra.mxu2 %v7708_v33  ;;  %3734 = vmatpush.msra.mxu0 %v7685_v53 }
 0xb05   :  { %v5158_v18 = vpop.eup %5157  ;;  %3754 = vmatpush.msra.mxu1 %v7687_v58  ;;  %3794 = vmatpush.msra.mxu3 %v7714_v40 }
 0xb06   :  { %v5160_v52 = vpop.eup %5159  ;;  %v3172_v61 = vmul.f32 %v5158_v18, %v7828_v35  ;;  %5161 = vrcp.f32 %v7878_v15  ;;  %vm3177_vm4 = vweird.f32 %v5158_v18  ;;  %3773 = vmatpush.msra.mxu2 %v7711_v47  ;;  %3735 = vmatpush.msra.mxu0 %v7718_v27  ;;  %v3202_v35 = vor.u32 1.1754944e-38, %v3201_v2 }
 0xb07   :  { %v3191_v51 = vmul.f32 %v5160_v52, %v7836_v54  ;;  %5163 = vtanh.f32 %v3165_v46  ;;  %vm3196_vm5 = vweird.f32 %v5160_v52  ;;  %vm3178_vm8 = vmor %vm3176_vm6, %vm3177_vm4  ;;  %3755 = vmatpush.msra.mxu1 %v7720_v62  ;;  %3795 = vmatpush.msra.mxu3 %v7730_v17  ;;  %vm3215_vm13 = vweird.f32 %v7878_v15 }
 0xb08   :  { %v3173_v12 = vsub.f32 1.0, %v3172_v61  ;;  %vm3197_vm9 = vmor %vm3195_vm7, %vm3196_vm5  ;;  %3774 = vmatpush.msra.mxu2 %v7716_v39  ;;  %3736 = vmatpush.msra.mxu0 %v7723_v24 }
 0xb09   :  { %v3192_v30 = vsub.f32 1.0, %v3191_v51  ;;  %v3199_v51 = vand.u32 2147483647, %v7836_v54  ;;  %3756 = vmatpush.msra.mxu1 %v7728_v41  ;;  %3796 = vmatpush.msra.mxu3 %v7738_v26 }
 0xb0a   :  { %v3174_v4 = vmul.f32 %v5158_v18, %v3173_v12  ;;  %v3183_v12 = vor.u32 1.1754944e-38, %v3182_v6  ;;  %3775 = vmatpush.msra.mxu2 %v7732_v55  ;;  %3737 = vmatpush.msra.mxu0 %v7748_v5 }
 0xb0b   :  { %v3193_v61 = vmul.f32 %v5160_v52, %v3192_v30  ;;  %vm3200_vm11 = vcmp.eq.f32.partialorder %v3199_v51, 8.507059e+37  ;;  %3757 = vmatpush.msra.mxu1 %v7750_v16  ;;  %3797 = vmatpush.msra.mxu3 %v7752_v44  ;;  %v9586_v51 = vld [vmem:[#allocation64_spill] sm:$0xff] }
 0xb0c   :  { %v7907_v46 = vpop.eup %5161  ;;  %v3175_v49 = vadd.f32 %v5158_v18, %v3174_v4  ;;  %3776 = vmatpush.msra.mxu2 %v7740_v11  ;;  %3738 = vmatpush.msra.mxu0 %v7758_v1 }
 0xb0d   :  { %v3194_v30 = vadd.f32 %v5160_v52, %v3193_v61  ;;  %v3211_v36 = vmul.f32 %v7907_v46, %v7878_v15  ;;  %v5164_v54 = vpop.eup %5163  ;;  %vm3216_vm12 = vweird.f32 %v7907_v46  ;;  %3758 = vmatpush.msra.mxu1 %v7760_v7  ;;  %3798 = vmatpush.msra.mxu3 %v7763_v3 }
 0xb0e   :  { %v3179_v4 = vsel %vm3178_vm8, %v5158_v18, %v3175_v49  ;;  %3777 = vmatpush.msra.mxu2 %v7756_v21  ;;  %3739 = vmatpush.msra.mxu0 %v7770_v28  ;;  %vm3217_vm14 = vmor %vm3215_vm13, %vm3216_vm12 }
 0xb0f   :  { %v3184_v40 = vsel %vm3181_vm10, %v3183_v12, %v3179_v4  ;;  %v3198_v6 = vsel %vm3197_vm9, %v5160_v52, %v3194_v30  ;;  %v3212_v61 = vsub.f32 1.0, %v3211_v36  ;;  %3759 = vmatpush.msra.mxu1 %v7772_v60  ;;  %3799 = vmatpush.msra.mxu3 %v7782_v19  ;;  %v9588_v12 = vld [vmem:[#allocation31_spill] sm:$0xff]  ;;  %v9589_v30 = vld [vmem:[#allocation54_spill] sm:$0xff] }
 0xb10   :  { %v3203_v58 = vsel %vm3200_vm11, %v3202_v35, %v3198_v6  ;;  %v3226_v27 = vmul.f32 %v5164_v54, %v3184_v40  ;;  %3778 = vmatpush.msra.mxu2 %v7768_v38  ;;  %3740 = vmatpush.msra.mxu0 %v7778_v43  ;;  %v9590_v35 = vld [vmem:[#allocation53_spill] sm:$0xff]  ;;  %v9591_v4 = vld [vmem:[#allocation55_spill] sm:$0xff]  ;;  %v9592_v54 = vld [vmem:[#allocation56_spill] sm:$0xff] }
 0xb11   :  { %v3225_v34 = vmul.f32 %v3203_v58, %v7657_v22  ;;  %v3213_v49 = vmul.f32 %v7907_v46, %v3212_v61  ;;  %v3221_v22 = vand.u32 2147483648, %v7878_v15  ;;  %v3219_v58 = vand.u32 2147483647, %v7878_v15  ;;  %3760 = vmatpush.msra.mxu1 %v7780_v10  ;;  %3800 = vmatpush.msra.mxu3 %v7789_v37  ;;  %v9593_v6 = vld [vmem:[#allocation57_spill] sm:$0xff] }
 0xb12   :  { %3779 = vmatpush.msra.mxu2 %v7802_v20  ;;  %3741 = vmatpush.msra.mxu0 %v7785_v14  ;;  %v9594_v61 = vld [vmem:[#allocation25_spill] sm:$0xff] }
 0xb13   :  { %v3227_v36 = vadd.f32 %v3226_v27, %v3225_v34  ;;  %v3214_v40 = vadd.f32 %v7907_v46, %v3213_v49  ;;  %v3222_v2 = vor.u32 1.1754944e-38, %v3221_v22  ;;  %vm3220_vm15 = vcmp.eq.f32.partialorder %v3219_v58, 8.507059e+37  ;;  %3761 = vmatpush.msra.mxu1 %v7787_v9  ;;  %3801 = vmatpush.msra.mxu3 %v7795_v42  ;;  %v9596_v49 = vld [vmem:[#allocation26_spill] sm:$0xff]  ;;  %v9600_v58 = vld [vmem:[#allocation33_spill] sm:$0xff] }
 0xb14   :  { %3780 = vmatpush.msra.mxu2 %v7808_v0  ;;  %3742 = vmatpush.msra.mxu0 %v7798_v8  ;;  %v9595_v34 = vmov 0.0   ;;  %v9599_v22 = vld [vmem:[#allocation30_spill] sm:$0xff] }
 0xb15   :  { %5165 = vtanh.f32 %v3227_v36  ;;  %v3218_v27 = vsel %vm3217_vm14, %v7907_v46, %v3214_v40  ;;  %3762 = vmatpush.msra.mxu1 %v7800_v29  ;;  %3802 = vmatpush.msra.mxu3 %v7806_v50  ;;  %v9587_v46 = vld [vmem:[#allocation65_spill] sm:$0xff]  ;;  %v9597_v36 = vld [vmem:[#allocation38_spill] sm:$0xff]  ;;  %v9598_v40 = vld [vmem:[#allocation28_spill] sm:$0xff] }
 0xb16   :  { %v3223_v18 = vsel %vm3220_vm15, %v3222_v2, %v3218_v27  ;;  %3781 = vmatpush.msra.mxu2 %v7820_v25  ;;  %3743 = vmatpush.msra.mxu0 %v7812_v59  ;;  %v9601_v27 = vld [vmem:[#allocation48_spill] sm:$0xff]  ;;  %v9602_v2 = vld [vmem:[#allocation45_spill] sm:$0xff] }
 0xb17   :  { %3763 = vmatpush.msra.mxu1 %v9586_v51  ;;  %3803 = vmatpush.msra.mxu3 %v9587_v46 }
 0xb18   :  { %3782 = vmatpush.msra.mxu2 %v7832_v57  ;;  %3744 = vmatpush.msra.mxu0 %v9589_v30 }
 0xb19   :  { %3764 = vmatpush.msra.mxu1 %v9590_v35  ;;  %3804 = vmatpush.msra.mxu3 %v9591_v4 }
 0xb1a   :  { %3783 = vmatpush.msra.mxu2 %v9588_v12  ;;  %3745 = vmatpush.msra.mxu0 %v9592_v54 }
 0xb1b   :  { %v5166_v15 = vpop.eup %5165  ;;  %3765 = vmatpush.msra.mxu1 %v9593_v6  ;;  %3805 = vmatpush.msra.mxu3 %v9594_v61 }
 0xb1c   :  { %v3229_v52 = vmul.f32 %v5166_v15, %v3223_v18  ;;  %3784 = vmatpush.msra.mxu2 %v7860_v56  ;;  %3746 = vmatpush.msra.mxu0 %v7852_v63  ;;  %v9603_v15 = vld [vmem:[#allocation50_spill] sm:$0xff]  ;;  %v9604_v18 = vld [vmem:[#allocation47_spill] sm:$0xff] }
 0xb1d   :  { %3766 = vmatpush.msra.mxu1 %v9596_v49  ;;  %3806 = vmatpush.msra.mxu3 %v9597_v36 }
 0xb1e   :  { %3417 = vmatmul.f32.gmra.mxu0 %v3229_v52  ;;  %3458 = vmatmul.f32.gmra.mxu1 %v3229_v52 }
 0xb1f   :  { %3499 = vmatmul.f32.gmra.mxu2 %v3229_v52  ;;  %3540 = vmatmul.f32.gmra.mxu3 %v3229_v52  ;;  %v9605_v52 = vld [vmem:[#allocation69_spill] sm:$0xff] }
 0xb20   :  { %3785 = vmatpush.msra.mxu2 %v7872_v13  ;;  %3747 = vmatpush.msra.mxu0 %v9598_v40 }
 0xb21   :  { %3767 = vmatpush.msra.mxu1 %v9599_v22  ;;  %3807 = vmatpush.msra.mxu3 %v9600_v58 }
 0xb22   :  { %3786 = vmatpush.msra.mxu2 %v7884_v48 }
 0xb24   :  { %3787 = vmatpush.msra.mxu2 %v7891_v23 }
 0xb26   :  { %3596 = vmatmul.f32.vlgmr.msrb.gmra.mxu0 %v9595_v34  ;;  %3616 = vmatmul.f32.vlgmr.msrb.gmra.mxu1 %v9595_v34 }
 0xb27   :  { %3636 = vmatmul.f32.vlgmr.msrb.gmra.mxu2 %v9595_v34  ;;  %3656 = vmatmul.f32.vlgmr.msrb.gmra.mxu3 %v9595_v34  ;;  %v9606_v34 = vld [vmem:[#allocation68_spill] sm:$0xff] }
 0xb28   :  { %3885 = vmatpush.msrb.mxu0 %v9601_v27  ;;  %3905 = vmatpush.msrb.mxu1 %v7674_v45 }
 0xb29   :  { %3925 = vmatpush.msrb.mxu2 %v7708_v33  ;;  %3945 = vmatpush.msrb.mxu3 %v7682_v32 }
 0xb2a   :  { %3886 = vmatpush.msrb.mxu0 %v7676_v31  ;;  %3906 = vmatpush.msrb.mxu1 %v9602_v2 }
 0xb2b   :  { %3926 = vmatpush.msrb.mxu2 %v7711_v47  ;;  %3946 = vmatpush.msrb.mxu3 %v9603_v15 }
 0xb2c   :  { %3887 = vmatpush.msrb.mxu0 %v7685_v53  ;;  %3907 = vmatpush.msrb.mxu1 %v9604_v18 }
 0xb2d   :  { %3927 = vmatpush.msrb.mxu2 %v7716_v39  ;;  %3947 = vmatpush.msrb.mxu3 %v9605_v52 }
 0xb2e   :  { %3888 = vmatpush.msrb.mxu0 %v9606_v34  ;;  %3908 = vmatpush.msrb.mxu1 %v7720_v62 }
 0xb2f   :  { %3928 = vmatpush.msrb.mxu2 %v7732_v55  ;;  %3948 = vmatpush.msrb.mxu3 %v7730_v17 }
 0xb30   :  { %3889 = vmatpush.msrb.mxu0 %v7723_v24  ;;  %3909 = vmatpush.msrb.mxu1 %v7728_v41 }
 0xb31   :  { %3929 = vmatpush.msrb.mxu2 %v7740_v11  ;;  %3949 = vmatpush.msrb.mxu3 %v7738_v26 }
 0xb32   :  { %3890 = vmatpush.msrb.mxu0 %v7748_v5  ;;  %3910 = vmatpush.msrb.mxu1 %v7750_v16 }
 0xb33   :  { %3930 = vmatpush.msrb.mxu2 %v7756_v21  ;;  %3950 = vmatpush.msrb.mxu3 %v7752_v44 }
 0xb34   :  { %3891 = vmatpush.msrb.mxu0 %v7758_v1  ;;  %3911 = vmatpush.msrb.mxu1 %v7760_v7 }
 0xb35   :  { %3931 = vmatpush.msrb.mxu2 %v7768_v38  ;;  %3951 = vmatpush.msrb.mxu3 %v7763_v3 }
 0xb36   :  { %3892 = vmatpush.msrb.mxu0 %v7770_v28  ;;  %3912 = vmatpush.msrb.mxu1 %v7772_v60 }
 0xb37   :  { %3932 = vmatpush.msrb.mxu2 %v7802_v20  ;;  %3952 = vmatpush.msrb.mxu3 %v7782_v19 }
 0xb38   :  { %3893 = vmatpush.msrb.mxu0 %v7778_v43  ;;  %3913 = vmatpush.msrb.mxu1 %v7780_v10 }
 0xb39   :  { %3933 = vmatpush.msrb.mxu2 %v7808_v0  ;;  %3953 = vmatpush.msrb.mxu3 %v7789_v37 }
 0xb3a   :  { %3894 = vmatpush.msrb.mxu0 %v7785_v14  ;;  %3914 = vmatpush.msrb.mxu1 %v7787_v9 }
 0xb3b   :  { %3934 = vmatpush.msrb.mxu2 %v7820_v25  ;;  %3954 = vmatpush.msrb.mxu3 %v7795_v42 }
 0xb3c   :  { %3895 = vmatpush.msrb.mxu0 %v7798_v8  ;;  %3915 = vmatpush.msrb.mxu1 %v7800_v29 }
 0xb3d   :  { %3935 = vmatpush.msrb.mxu2 %v7832_v57  ;;  %3955 = vmatpush.msrb.mxu3 %v7806_v50 }
 0xb3e   :  { %3896 = vmatpush.msrb.mxu0 %v7812_v59  ;;  %3916 = vmatpush.msrb.mxu1 %v9586_v51 }
 0xb3f   :  { %3936 = vmatpush.msrb.mxu2 %v9588_v12  ;;  %3956 = vmatpush.msrb.mxu3 %v9587_v46 }
 0xb40   :  { %3897 = vmatpush.msrb.mxu0 %v9589_v30  ;;  %3917 = vmatpush.msrb.mxu1 %v9590_v35 }
 0xb41   :  { %3937 = vmatpush.msrb.mxu2 %v7860_v56  ;;  %3957 = vmatpush.msrb.mxu3 %v9591_v4 }
 0xb42   :  { %3898 = vmatpush.msrb.mxu0 %v9592_v54  ;;  %3918 = vmatpush.msrb.mxu1 %v9593_v6  ;;  %v3397_v6 = vpop.f32.mrf.mxu0  ;;  %v3520_v54 = vpop.f32.mrf.mxu3 }
 0xb43   :  { %3938 = vmatpush.msrb.mxu2 %v7872_v13  ;;  %3958 = vmatpush.msrb.mxu3 %v9594_v61  ;;  %v3438_v13 = vpop.f32.mrf.mxu1 }
 0xb44   :  { %3899 = vmatpush.msrb.mxu0 %v7852_v63  ;;  %3919 = vmatpush.msrb.mxu1 %v9596_v49  ;;  %v3479_v49 = vpop.f32.mrf.mxu2 }
 0xb45   :  { %3939 = vmatpush.msrb.mxu2 %v7884_v48  ;;  %3959 = vmatpush.msrb.mxu3 %v9597_v36 }
 0xb46   :  { %3900 = vmatpush.msrb.mxu0 %v9598_v40  ;;  %3920 = vmatpush.msrb.mxu1 %v9599_v22 }
 0xb47   :  { %3940 = vmatpush.msrb.mxu2 %v7891_v23  ;;  %3960 = vmatpush.msrb.mxu3 %v9600_v58 }
 0xb4a   :  { %v8047_v61 = vpop.f32.mrf.mxu0  ;;  %v8051_v4 = vpop.f32.mrf.mxu3 }
 0xb4b   :  { %9607 = vst [vmem:[#allocation41_spill] sm:$0xff] %v8047_v61  ;;  %v8049_v63 = vpop.f32.mrf.mxu1 }
 0xb4c   :  { %9608 = vst [vmem:[#allocation39_spill] sm:$0xff] %v8049_v63  ;;  %v8057_v40 = vpop.f32.mrf.mxu2 }
 0xb4d   :  { %9609 = vst [vmem:[#allocation36_spill] sm:$0xff] %v8051_v4 }
 0xb4e   :  { %9612 = vst [vmem:[#allocation44_spill] sm:$0xff] %v8057_v40 }
 0xb52   :  { %v8053_v48 = vpop.f32.mrf.mxu0  ;;  %v8059_v22 = vpop.f32.mrf.mxu3 }
 0xb53   :  { %9610 = vst [vmem:[#allocation37_spill] sm:$0xff] %v8053_v48  ;;  %v8055_v36 = vpop.f32.mrf.mxu1 }
 0xb54   :  { %9611 = vst [vmem:[#allocation42_spill] sm:$0xff] %v8055_v36  ;;  %v8065_v56 = vpop.f32.mrf.mxu2 }
 0xb55   :  { %9613 = vst [vmem:[#allocation40_spill] sm:$0xff] %v8059_v22 }
 0xb56   :  { %9616 = vst [vmem:[#allocation73_spill] sm:$0xff] %v8065_v56 }
 0xb5a   :  { %v8061_v23 = vpop.f32.mrf.mxu0  ;;  %v8067_v61 = vpop.f32.mrf.mxu3 }
 0xb5b   :  { %9614 = vst [vmem:[#allocation71_spill] sm:$0xff] %v8061_v23  ;;  %v8063_v58 = vpop.f32.mrf.mxu1 }
 0xb5c   :  { %9615 = vst [vmem:[#allocation62_spill] sm:$0xff] %v8063_v58  ;;  %v8073_v4 = vpop.f32.mrf.mxu2 }
 0xb5d   :  { %9617 = vst [vmem:[#allocation63_spill] sm:$0xff] %v8067_v61 }
 0xb5e   :  { %9620 = vst [vmem:[#allocation21_spill] sm:$0xff] %v8073_v4 }
 0xb62   :  { %v8069_v63 = vpop.f32.mrf.mxu0  ;;  %v8075_v48 = vpop.f32.mrf.mxu3 }
 0xb63   :  { %9618 = vst [vmem:[#allocation22_spill] sm:$0xff] %v8069_v63  ;;  %v8071_v35 = vpop.f32.mrf.mxu1 }
 0xb64   :  { %9619 = vst [vmem:[#allocation70_spill] sm:$0xff] %v8071_v35  ;;  %v8081_v22 = vpop.f32.mrf.mxu2  ;;  %v3362_v35 = vld [vmem:[#allocation10 + $0x8] sm:$0xf] }
 0xb65   :  { %9621 = vst [vmem:[#allocation23_spill] sm:$0xff] %v8075_v48  ;;  %v8107_v12 = vperm.slane %v3362_v35, 3 }
 0xb66   :  { %9624 = vst [vmem:[#allocation49_spill] sm:$0xff] %v8081_v22 }
 0xb67   :  { %9636 = vst [vmem:[#allocation50_spill] sm:$0xff] %v8107_v12  ;;  %v3521_v51 = vadd.f32 %v3520_v54, %v8107_v12 }
 0xb6a   :  { %v8077_v36 = vpop.f32.mrf.mxu0  ;;  %v8083_v23 = vpop.f32.mrf.mxu3 }
 0xb6b   :  { %9622 = vst [vmem:[#allocation75_spill] sm:$0xff] %v8077_v36  ;;  %v8079_v40 = vpop.f32.mrf.mxu1  ;;  %v8097_v36 = vperm.slane %v3362_v35, 0 }
 0xb6c   :  { %9623 = vst [vmem:[#allocation18_spill] sm:$0xff] %v8079_v40  ;;  %v8089_v61 = vpop.f32.mrf.mxu2  ;;  %v8099_v40 = vperm.slane %v3362_v35, 1 }
 0xb6d   :  { %9625 = vst [vmem:[#allocation17_spill] sm:$0xff] %v8083_v23  ;;  %v3398_v22 = vadd.f32 %v3397_v6, %v8097_v36 }
 0xb6e   :  { %9628 = vst [vmem:[#allocation43_spill] sm:$0xff] %v8089_v61  ;;  %v3439_v23 = vadd.f32 %v3438_v13, %v8099_v40 }
 0xb6f   :  { %9632 = vst [vmem:[#allocation19_spill] sm:$0xff] %v8097_v36 }
 0xb70   :  { %9633 = vst [vmem:[#allocation20_spill] sm:$0xff] %v8099_v40 }
 0xb72   :  { %v8085_v58 = vpop.f32.mrf.mxu0  ;;  %v8091_v63 = vpop.f32.mrf.mxu3 }
 0xb73   :  { %9626 = vst [vmem:[#allocation51_spill] sm:$0xff] %v8085_v58  ;;  %v8087_v56 = vpop.f32.mrf.mxu1 }
 0xb74   :  { %9627 = vst [vmem:[#allocation24_spill] sm:$0xff] %v8087_v56  ;;  %v8103_v58 = vpop.f32.mrf.mxu2 }
 0xb75   :  { %9629 = vst [vmem:[#allocation46_spill] sm:$0xff] %v8091_v63 }
 0xb76   :  { %9634 = vst [vmem:[#allocation48_spill] sm:$0xff] %v8103_v58 }
 0xb9b   :  { %v8093_v4 = vpop.f32.mrf.mxu0  ;;  %v8095_v48 = vpop.f32.mrf.mxu1 }
 0xb9c   :  { %9630 = vst [vmem:[#allocation66_spill] sm:$0xff] %v8093_v4 }
 0xb9d   :  { %9631 = vst [vmem:[#allocation67_spill] sm:$0xff] %v8095_v48 }
 0xba2   :  { %v8105_v56 = vpop.f32.mrf.mxu3  ;;  %v8110_v59 = vpop.f32.mrf.mxu2 }
 0xba3   :  { %9635 = vst [vmem:[#allocation45_spill] sm:$0xff] %v8105_v56  ;;  %v3597_v61 = vpop.f32.mrf.mxu0  ;;  %v3617_v30 = vpop.f32.mrf.mxu1 }
 0xba4   :  { %v3660_v63 = vadd.f32 %v3597_v61, %v3398_v22  ;;  %v3661_v46 = vadd.f32 %v3617_v30, %v3439_v23  ;;  %9637 = vst [vmem:[#allocation47_spill] sm:$0xff] %v8110_v59  ;;  %v8112_v61 = vperm.slane %v3362_v35, 2 }
 0xba6   :  { %v4875_v4 = vmul.f32 -1.442695, %v3660_v63  ;;  %v4876_v48 = vmul.f32 -1.442695, %v3661_v46  ;;  %9638 = vst [vmem:[#allocation69_spill] sm:$0xff] %v8112_v61  ;;  %v3480_v46 = vadd.f32 %v3479_v49, %v8112_v61 }
 0xba8   :  { %5167 = vpow2.f32 %v4875_v4 }
 0xba9   :  { %5169 = vpow2.f32 %v4876_v48 }
 0xbaa   :  { %v3657_v6 = vpop.f32.mrf.mxu3  ;;  %v3637_v23 = vpop.f32.mrf.mxu2 }
 0xbab   :  { %v3663_v13 = vadd.f32 %v3657_v6, %v3521_v51  ;;  %v3662_v4 = vadd.f32 %v3637_v23, %v3480_v46 }
 0xbad   :  { %v4877_v40 = vmul.f32 -1.442695, %v3663_v13 }
 0xbae   :  { %v5168_v58 = vpop.eup %5167 }
 0xbaf   :  { %v5170_v36 = vpop.eup %5169  ;;  %v3667_v56 = vadd.f32 1.0, %v5168_v58  ;;  %5171 = vpow2.f32 %v4877_v40 }
 0xbb0   :  { %v3686_v50 = vadd.f32 1.0, %v5170_v36 }
 0xbb1   :  { %5173 = vrcp.f32 %v3667_v56  ;;  %v3679_v58 = vand.u32 2147483648, %v3667_v56  ;;  %v3677_v40 = vand.u32 2147483647, %v3667_v56  ;;  %vm3673_vm2 = vweird.f32 %v3667_v56 }
 0xbb2   :  { %5175 = vrcp.f32 %v3686_v50  ;;  %v3698_v36 = vand.u32 2147483648, %v3686_v50  ;;  %v3696_v12 = vand.u32 2147483647, %v3686_v50  ;;  %vm3692_vm3 = vweird.f32 %v3686_v50 }
 0xbb3   :  { %v3680_v23 = vor.u32 1.1754944e-38, %v3679_v58  ;;  %vm3678_vm5 = vcmp.eq.f32.partialorder %v3677_v40, 8.507059e+37 }
 0xbb4   :  { %v3699_v61 = vor.u32 1.1754944e-38, %v3698_v36  ;;  %vm3697_vm7 = vcmp.eq.f32.partialorder %v3696_v12, 8.507059e+37 }
 0xbb5   :  { %v5172_v63 = vpop.eup %5171 }
 0xbb6   :  { %v3706_v30 = vadd.f32 1.0, %v5172_v63 }
 0xbb7   :  { %v5174_v48 = vpop.eup %5173 }
 0xbb8   :  { %v5176_v54 = vpop.eup %5175  ;;  %v3669_v22 = vmul.f32 %v5174_v48, %v3667_v56  ;;  %5177 = vrcp.f32 %v3706_v30  ;;  %vm3674_vm0 = vweird.f32 %v5174_v48  ;;  %vm3712_vm9 = vweird.f32 %v3706_v30 }
 0xbb9   :  { %v3688_v51 = vmul.f32 %v5176_v54, %v3686_v50  ;;  %5179 = vtanh.f32 %v3662_v4  ;;  %vm3693_vm1 = vweird.f32 %v5176_v54  ;;  %vm3675_vm4 = vmor %vm3673_vm2, %vm3674_vm0  ;;  %v3716_v56 = vand.u32 2147483647, %v3706_v30 }
 0xbba   :  { %v3670_v6 = vsub.f32 1.0, %v3669_v22  ;;  %vm3694_vm6 = vmor %vm3692_vm3, %vm3693_vm1 }
 0xbbb   :  { %v3689_v13 = vsub.f32 1.0, %v3688_v51  ;;  %vm3717_vm11 = vcmp.eq.f32.partialorder %v3716_v56, 8.507059e+37 }
 0xbbc   :  { %v3671_v35 = vmul.f32 %v5174_v48, %v3670_v6 }
 0xbbd   :  { %v3690_v59 = vmul.f32 %v5176_v54, %v3689_v13 }
 0xbbe   :  { %v5178_v57 = vpop.eup %5177  ;;  %v3672_v49 = vadd.f32 %v5174_v48, %v3671_v35 }
 0xbbf   :  { %v3691_v63 = vadd.f32 %v5176_v54, %v3690_v59  ;;  %v3708_v46 = vmul.f32 %v5178_v57, %v3706_v30  ;;  %v5180_v4 = vpop.eup %5179  ;;  %vm3713_vm8 = vweird.f32 %v5178_v57  ;;  %v3718_v59 = vand.u32 2147483648, %v3706_v30 }
 0xbc0   :  { %v3676_v22 = vsel %vm3675_vm4, %v5174_v48, %v3672_v49  ;;  %vm3714_vm10 = vmor %vm3712_vm9, %vm3713_vm8 }
 0xbc1   :  { %v3681_v51 = vsel %vm3678_vm5, %v3680_v23, %v3676_v22  ;;  %v3695_v6 = vsel %vm3694_vm6, %v5176_v54, %v3691_v63  ;;  %v3709_v29 = vsub.f32 1.0, %v3708_v46  ;;  %v3719_v58 = vor.u32 1.1754944e-38, %v3718_v59  ;;  %v9671_v22 = vld [vmem:[#allocation69_spill] sm:$0xff] }
 0xbc2   :  { %v3700_v13 = vsel %vm3697_vm7, %v3699_v61, %v3695_v6  ;;  %v3723_v8 = vmul.f32 %v5180_v4, %v3681_v51  ;;  %v9672_v4 = vld [vmem:[#allocation44_spill] sm:$0xff] }
 0xbc3   :  { %v3722_v42 = vmul.f32 0.0, %v3700_v13  ;;  %v3710_v25 = vmul.f32 %v5178_v57, %v3709_v29  ;;  %v3483_v51 = vadd.f32 %v9672_v4, %v9671_v22  ;;  %v8254_v4 = vld [vmem:[#allocation9 + $0x540] sm:$0xff] }
 0xbc5   :  { %v8115_v35 = vadd.f32 %v3723_v8, %v3722_v42  ;;  %v3711_v50 = vadd.f32 %v5178_v57, %v3710_v25  ;;  %v9668_v42 = vld [vmem:[#allocation39_spill] sm:$0xff] }
 0xbc7   :  { %5181 = vtanh.f32 %v8115_v35  ;;  %v3715_v48 = vsel %vm3714_vm10, %v5178_v57, %v3711_v50 }
 0xbc8   :  { %v3720_v12 = vsel %vm3717_vm11, %v3719_v58, %v3715_v48 }
 0xbcd   :  { %v5182_v54 = vpop.eup %5181 }
 0xbce   :  { %v3726_v36 = vmul.f32 %v5182_v54, %v3720_v12 }
 0xbd0   :  { %3727 = vst [vmem:[#allocation12] sm:$0xff] %v3726_v36  ;;  %3748 = vmatmul.f32.vlgmr.msra.gmra.mxu0 %v3726_v36  ;;  %3768 = vmatmul.f32.vlgmr.msra.gmra.mxu1 %v3726_v36 }
 0xbd1   :  { %3788 = vmatmul.f32.vlgmr.msra.gmra.mxu2 %v3726_v36  ;;  %3808 = vmatmul.f32.vlgmr.msra.gmra.mxu3 %v3726_v36 }
 0xbd2   :  { %4038 = vmatpush.msra.mxu0 %v9601_v27  ;;  %4058 = vmatpush.msra.mxu1 %v7674_v45  ;;  %v9639_v45 = vld [vmem:[#allocation52_spill] sm:$0xff] }
 0xbd3   :  { %4078 = vmatpush.msra.mxu2 %v7708_v33  ;;  %4098 = vmatpush.msra.mxu3 %v7682_v32  ;;  %v9641_v32 = vld [vmem:[#allocation59_spill] sm:$0xff] }
 0xbd4   :  { %4039 = vmatpush.msra.mxu0 %v7676_v31  ;;  %4059 = vmatpush.msra.mxu1 %v9602_v2  ;;  %v9640_v31 = vld [vmem:[#allocation58_spill] sm:$0xff]  ;;  %v9643_v33 = vld [vmem:[#allocation27_spill] sm:$0xff] }
 0xbd5   :  { %4079 = vmatpush.msra.mxu2 %v7711_v47  ;;  %4099 = vmatpush.msra.mxu3 %v9603_v15  ;;  %v9644_v47 = vld [vmem:[#allocation72_spill] sm:$0xff]  ;;  %v9669_v2 = vld [vmem:[#allocation50_spill] sm:$0xff] }
 0xbd6   :  { %4040 = vmatpush.msra.mxu0 %v7685_v53  ;;  %4060 = vmatpush.msra.mxu1 %v9604_v18  ;;  %v9642_v53 = vld [vmem:[#allocation74_spill] sm:$0xff]  ;;  %v9670_v15 = vld [vmem:[#allocation36_spill] sm:$0xff] }
 0xbd7   :  { %4080 = vmatpush.msra.mxu2 %v7716_v39  ;;  %4100 = vmatpush.msra.mxu3 %v9605_v52  ;;  %v9645_v39 = vld [vmem:[#allocation61_spill] sm:$0xff]  ;;  %v3524_v18 = vadd.f32 %v9670_v15, %v9669_v2 }
 0xbd8   :  { %4041 = vmatpush.msra.mxu0 %v9606_v34  ;;  %4061 = vmatpush.msra.mxu1 %v7720_v62  ;;  %v9646_v62 = vld [vmem:[#allocation64_spill] sm:$0xff] }
 0xbd9   :  { %4081 = vmatpush.msra.mxu2 %v7732_v55  ;;  %4101 = vmatpush.msra.mxu3 %v7730_v17  ;;  %v9649_v17 = vld [vmem:[#allocation54_spill] sm:$0xff]  ;;  %v9650_v55 = vld [vmem:[#allocation53_spill] sm:$0xff] }
 0xbda   :  { %4042 = vmatpush.msra.mxu0 %v7723_v24  ;;  %4062 = vmatpush.msra.mxu1 %v7728_v41  ;;  %v9647_v24 = vld [vmem:[#allocation31_spill] sm:$0xff]  ;;  %v9648_v41 = vld [vmem:[#allocation65_spill] sm:$0xff] }
 0xbdb   :  { %4082 = vmatpush.msra.mxu2 %v7740_v11  ;;  %4102 = vmatpush.msra.mxu3 %v7738_v26  ;;  %v9651_v26 = vld [vmem:[#allocation35_spill] sm:$0xff]  ;;  %v8221_v15 = vld [vmem:[#allocation9 + $0x5a8] sm:$0xff] }
 0xbdc   :  { %4043 = vmatpush.msra.mxu0 %v7748_v5  ;;  %4063 = vmatpush.msra.mxu1 %v7750_v16  ;;  %v9652_v11 = vld [vmem:[#allocation55_spill] sm:$0xff]  ;;  %v9653_v5 = vld [vmem:[#allocation56_spill] sm:$0xff]  ;;  %v9654_v16 = vld [vmem:[#allocation57_spill] sm:$0xff] }
 0xbdd   :  { %4083 = vmatpush.msra.mxu2 %v7756_v21  ;;  %4103 = vmatpush.msra.mxu3 %v7752_v44  ;;  %v9655_v44 = vld [vmem:[#allocation29_spill] sm:$0xff] }
 0xbde   :  { %4044 = vmatpush.msra.mxu0 %v7758_v1  ;;  %4064 = vmatpush.msra.mxu1 %v7760_v7  ;;  %v9656_v21 = vld [vmem:[#allocation25_spill] sm:$0xff]  ;;  %v9657_v1 = vld [vmem:[#allocation60_spill] sm:$0xff]  ;;  %v9658_v7 = vld [vmem:[#allocation26_spill] sm:$0xff] }
 0xbdf   :  { %4084 = vmatpush.msra.mxu2 %v7768_v38  ;;  %4104 = vmatpush.msra.mxu3 %v7763_v3  ;;  %v9659_v3 = vld [vmem:[#allocation32_spill] sm:$0xff]  ;;  %v9660_v38 = vld [vmem:[#allocation38_spill] sm:$0xff] }
 0xbe0   :  { %4045 = vmatpush.msra.mxu0 %v7770_v28  ;;  %4065 = vmatpush.msra.mxu1 %v7772_v60  ;;  %v9661_v28 = vld [vmem:[#allocation28_spill] sm:$0xff]  ;;  %v9662_v60 = vld [vmem:[#allocation30_spill] sm:$0xff] }
 0xbe1   :  { %4085 = vmatpush.msra.mxu2 %v7802_v20  ;;  %4105 = vmatpush.msra.mxu3 %v7782_v19  ;;  %v9665_v19 = vld [vmem:[#allocation19_spill] sm:$0xff] }
 0xbe2   :  { %4046 = vmatpush.msra.mxu0 %v7778_v43  ;;  %4066 = vmatpush.msra.mxu1 %v7780_v10  ;;  %v9663_v43 = vld [vmem:[#allocation34_spill] sm:$0xff]  ;;  %v9664_v10 = vld [vmem:[#allocation33_spill] sm:$0xff] }
 0xbe3   :  { %4086 = vmatpush.msra.mxu2 %v7808_v0  ;;  %4106 = vmatpush.msra.mxu3 %v7789_v37  ;;  %v9667_v37 = vld [vmem:[#allocation20_spill] sm:$0xff] }
 0xbe4   :  { %4047 = vmatpush.msra.mxu0 %v7785_v14  ;;  %4067 = vmatpush.msra.mxu1 %v7787_v9  ;;  %v9666_v14 = vld [vmem:[#allocation41_spill] sm:$0xff]  ;;  %v3442_v8 = vadd.f32 %v9668_v42, %v9667_v37 }
 0xbe5   :  { %4087 = vmatpush.msra.mxu2 %v9639_v45  ;;  %4107 = vmatpush.msra.mxu3 %v9640_v31  ;;  %v3401_v9 = vadd.f32 %v9666_v14, %v9665_v19  ;;  %v8197_v42 = vld [vmem:[#allocation9 + $0x5e8] sm:$0xff] }
 0xbe6   :  { %4048 = vmatpush.msra.mxu0 %v9641_v32  ;;  %4068 = vmatpush.msra.mxu1 %v9642_v53 }
 0xbe7   :  { %4088 = vmatpush.msra.mxu2 %v9643_v33  ;;  %4108 = vmatpush.msra.mxu3 %v9644_v47 }
 0xbe8   :  { %4049 = vmatpush.msra.mxu0 %v9645_v39  ;;  %4069 = vmatpush.msra.mxu1 %v9646_v62 }
 0xbe9   :  { %4089 = vmatpush.msra.mxu2 %v9647_v24  ;;  %4109 = vmatpush.msra.mxu3 %v9648_v41 }
 0xbea   :  { %4050 = vmatpush.msra.mxu0 %v9649_v17  ;;  %4070 = vmatpush.msra.mxu1 %v9650_v55 }
 0xbeb   :  { %4090 = vmatpush.msra.mxu2 %v9651_v26  ;;  %4110 = vmatpush.msra.mxu3 %v9652_v11 }
 0xbec   :  { %4051 = vmatpush.msra.mxu0 %v9653_v5  ;;  %4071 = vmatpush.msra.mxu1 %v9654_v16 }
 0xbed   :  { %4091 = vmatpush.msra.mxu2 %v9655_v44  ;;  %4111 = vmatpush.msra.mxu3 %v9656_v21 }
 0xbee   :  { %4052 = vmatpush.msra.mxu0 %v9657_v1  ;;  %4072 = vmatpush.msra.mxu1 %v9658_v7 }
 0xbef   :  { %4092 = vmatpush.msra.mxu2 %v9659_v3  ;;  %4112 = vmatpush.msra.mxu3 %v9660_v38 }
 0xbf0   :  { %4053 = vmatpush.msra.mxu0 %v9661_v28  ;;  %4073 = vmatpush.msra.mxu1 %v9662_v60 }
 0xbf1   :  { %4093 = vmatpush.msra.mxu2 %v9663_v43  ;;  %4113 = vmatpush.msra.mxu3 %v9664_v10 }
 0xc4d   :  { %v3749_v29 = vpop.f32.mrf.mxu0  ;;  %v3769_v20 = vpop.f32.mrf.mxu1 }
 0xc4e   :  { %v3812_v0 = vadd.f32 %v3749_v29, %v3401_v9  ;;  %v3813_v25 = vadd.f32 %v3769_v20, %v3442_v8  ;;  %v8200_v8 = vld [vmem:[#allocation9 + $0x5f0] sm:$0xff]  ;;  %v8203_v29 = vld [vmem:[#allocation9 + $0x5f8] sm:$0xff]  ;;  %v8206_v20 = vld [vmem:[#allocation9 + $0x5c0] sm:$0xff] }
 0xc50   :  { %v4878_v57 = vmul.f32 -1.442695, %v3812_v0  ;;  %v4879_v27 = vmul.f32 -1.442695, %v3813_v25  ;;  %v8209_v0 = vld [vmem:[#allocation9 + $0x5c8] sm:$0xff]  ;;  %v8212_v25 = vld [vmem:[#allocation9 + $0x5d0] sm:$0xff] }
 0xc52   :  { %5183 = vpow2.f32 %v4878_v57  ;;  %v8215_v57 = vld [vmem:[#allocation9 + $0x5d8] sm:$0xff] }
 0xc53   :  { %5185 = vpow2.f32 %v4879_v27  ;;  %v8218_v27 = vld [vmem:[#allocation9 + $0x5a0] sm:$0xff] }
 0xc54   :  { %v3809_v52 = vpop.f32.mrf.mxu3  ;;  %v3789_v63 = vpop.f32.mrf.mxu2 }
 0xc55   :  { %v3815_v34 = vadd.f32 %v3809_v52, %v3524_v18  ;;  %v3814_v50 = vadd.f32 %v3789_v63, %v3483_v51  ;;  %v8224_v18 = vld [vmem:[#allocation9 + $0x5b0] sm:$0xff]  ;;  %v8227_v52 = vld [vmem:[#allocation9 + $0x5b8] sm:$0xff]  ;;  %v8257_v51 = vld [vmem:[#allocation9 + $0x548] sm:$0xff] }
 0xc56   :  { %v8248_v63 = vld [vmem:[#allocation9 + $0x570] sm:$0xff] }
 0xc57   :  { %v4880_v61 = vmul.f32 -1.442695, %v3815_v34  ;;  %v8230_v34 = vld [vmem:[#allocation9 + $0x580] sm:$0xff] }
 0xc58   :  { %v5184_v30 = vpop.eup %5183 }
 0xc59   :  { %v5186_v40 = vpop.eup %5185  ;;  %v3819_v49 = vadd.f32 1.0, %v5184_v30  ;;  %5187 = vpow2.f32 %v4880_v61  ;;  %v8233_v61 = vld [vmem:[#allocation9 + $0x588] sm:$0xff]  ;;  %v8236_v30 = vld [vmem:[#allocation9 + $0x590] sm:$0xff] }
 0xc5a   :  { %v3838_v23 = vadd.f32 1.0, %v5186_v40  ;;  %v8239_v40 = vld [vmem:[#allocation9 + $0x598] sm:$0xff] }
 0xc5b   :  { %5189 = vrcp.f32 %v3819_v49  ;;  %v3831_v12 = vand.u32 2147483648, %v3819_v49  ;;  %v3829_v31 = vand.u32 2147483647, %v3819_v49  ;;  %vm3825_vm14 = vweird.f32 %v3819_v49 }
 0xc5c   :  { %5191 = vrcp.f32 %v3838_v23  ;;  %v3850_v36 = vand.u32 2147483648, %v3838_v23  ;;  %v3848_v53 = vand.u32 2147483647, %v3838_v23  ;;  %vm3844_vm15 = vweird.f32 %v3838_v23 }
 0xc5d   :  { %v3832_v39 = vor.u32 1.1754944e-38, %v3831_v12  ;;  %vm3830_vm2 = vcmp.eq.f32.partialorder %v3829_v31, 8.507059e+37  ;;  %v8284_v12 = vld [vmem:[#allocation9 + $0x510] sm:$0xff]  ;;  %v8293_v31 = vld [vmem:[#allocation9 + $0x4e8] sm:$0xff] }
 0xc5e   :  { %v3851_v41 = vor.u32 1.1754944e-38, %v3850_v36  ;;  %vm3849_vm3 = vcmp.eq.f32.partialorder %v3848_v53, 8.507059e+37  ;;  %v8287_v36 = vld [vmem:[#allocation9 + $0x518] sm:$0xff] }
 0xc5f   :  { %v5188_v46 = vpop.eup %5187  ;;  %v8299_v53 = vld [vmem:[#allocation9 + $0x4f8] sm:$0xff] }
 0xc60   :  { %v3858_v6 = vadd.f32 1.0, %v5188_v46  ;;  %v8251_v46 = vld [vmem:[#allocation9 + $0x578] sm:$0xff] }
 0xc61   :  { %v5190_v13 = vpop.eup %5189 }
 0xc62   :  { %v5192_v59 = vpop.eup %5191  ;;  %v3821_v56 = vmul.f32 %v5190_v13, %v3819_v49  ;;  %5193 = vrcp.f32 %v3858_v6  ;;  %vm3826_vm12 = vweird.f32 %v5190_v13  ;;  %v3870_v38 = vand.u32 2147483648, %v3858_v6  ;;  %v8242_v49 = vld [vmem:[#allocation9 + $0x560] sm:$0xff] }
 0xc63   :  { %v3840_v48 = vmul.f32 %v5192_v59, %v3838_v23  ;;  %5195 = vtanh.f32 %v3814_v50  ;;  %vm3845_vm13 = vweird.f32 %v5192_v59  ;;  %vm3827_vm0 = vmor %vm3825_vm14, %vm3826_vm12  ;;  %vm3864_vm5 = vweird.f32 %v3858_v6  ;;  %v8245_v23 = vld [vmem:[#allocation9 + $0x568] sm:$0xff]  ;;  %v8266_v50 = vld [vmem:[#allocation9 + $0x520] sm:$0xff] }
 0xc64   :  { %v3822_v58 = vsub.f32 1.0, %v3821_v56  ;;  %vm3846_vm1 = vmor %vm3844_vm15, %vm3845_vm13  ;;  %v3868_v28 = vand.u32 2147483647, %v3858_v6  ;;  %v3871_v43 = vor.u32 1.1754944e-38, %v3870_v38  ;;  %v8272_v56 = vld [vmem:[#allocation9 + $0x530] sm:$0xff]  ;;  %v8350_v38 = vld [vmem:[#allocation9 + $0x440] sm:$0xff] }
 0xc65   :  { %v3841_v54 = vsub.f32 1.0, %v3840_v48  ;;  %v8275_v48 = vld [vmem:[#allocation9 + $0x538] sm:$0xff]  ;;  %9687 = vst [vmem:[#allocation55_spill] sm:$0xff] %v8350_v38 }
 0xc66   :  { %v3823_v45 = vmul.f32 %v5190_v13, %v3822_v58  ;;  %vm3869_vm7 = vcmp.eq.f32.partialorder %v3868_v28, 8.507059e+37  ;;  %v8278_v58 = vld [vmem:[#allocation9 + $0x500] sm:$0xff]  ;;  %v8353_v28 = vld [vmem:[#allocation9 + $0x448] sm:$0xff] }
 0xc67   :  { %v3842_v32 = vmul.f32 %v5192_v59, %v3841_v54  ;;  %v8281_v54 = vld [vmem:[#allocation9 + $0x508] sm:$0xff]  ;;  %9688 = vst [vmem:[#allocation56_spill] sm:$0xff] %v8353_v28 }
 0xc68   :  { %v5194_v33 = vpop.eup %5193  ;;  %v3824_v47 = vadd.f32 %v5190_v13, %v3823_v45  ;;  %v8290_v45 = vld [vmem:[#allocation9 + $0x4e0] sm:$0xff] }
 0xc69   :  { %v3843_v62 = vadd.f32 %v5192_v59, %v3842_v32  ;;  %v3860_v24 = vmul.f32 %v5194_v33, %v3858_v6  ;;  %v5196_v55 = vpop.eup %5195  ;;  %vm3865_vm4 = vweird.f32 %v5194_v33  ;;  %v8260_v6 = vld [vmem:[#allocation9 + $0x550] sm:$0xff] }
 0xc6a   :  { %v3828_v17 = vsel %vm3827_vm0, %v5190_v13, %v3824_v47  ;;  %vm3866_vm6 = vmor %vm3864_vm5, %vm3865_vm4  ;;  %v8263_v13 = vld [vmem:[#allocation9 + $0x558] sm:$0xff]  ;;  %v8296_v32 = vld [vmem:[#allocation9 + $0x4f0] sm:$0xff] }
 0xc6b   :  { %v3833_v26 = vsel %vm3830_vm2, %v3832_v39, %v3828_v17  ;;  %v3847_v11 = vsel %vm3846_vm1, %v5192_v59, %v3843_v62  ;;  %v3861_v5 = vsub.f32 1.0, %v3860_v24  ;;  %v8269_v59 = vld [vmem:[#allocation9 + $0x528] sm:$0xff]  ;;  %v8308_v39 = vld [vmem:[#allocation9 + $0x4d0] sm:$0xff]  ;;  %v8311_v62 = vld [vmem:[#allocation9 + $0x4d8] sm:$0xff] }
 0xc6c   :  { %v3852_v16 = vsel %vm3849_vm3, %v3851_v41, %v3847_v11  ;;  %v3875_v44 = vmul.f32 %v5196_v55, %v3833_v26  ;;  %v8305_v47 = vld [vmem:[#allocation9 + $0x4c8] sm:$0xff]  ;;  %9673 = vst [vmem:[#allocation68_spill] sm:$0xff] %v8308_v39  ;;  %v8314_v24 = vld [vmem:[#allocation9 + $0x4a0] sm:$0xff]  ;;  %v8320_v17 = vld [vmem:[#allocation9 + $0x4b0] sm:$0xff] }
 0xc6d   :  { %v3874_v21 = vmul.f32 %v3852_v16, %v8115_v35  ;;  %v3862_v1 = vmul.f32 %v5194_v33, %v3861_v5  ;;  %v8194_v35 = vld [vmem:[#allocation9 + $0x5e0] sm:$0xff]  ;;  %9674 = vst [vmem:[#allocation52_spill] sm:$0xff] %v8311_v62  ;;  %v8317_v41 = vld [vmem:[#allocation9 + $0x4a8] sm:$0xff]  ;;  %v8323_v55 = vld [vmem:[#allocation9 + $0x4b8] sm:$0xff] }
 0xc6e   :  { %9675 = vst [vmem:[#allocation58_spill] sm:$0xff] %v8314_v24  ;;  %v8326_v26 = vld [vmem:[#allocation9 + $0x480] sm:$0xff]  ;;  %v8329_v11 = vld [vmem:[#allocation9 + $0x488] sm:$0xff]  ;;  %v8332_v5 = vld [vmem:[#allocation9 + $0x490] sm:$0xff] }
 0xc6f   :  { %v8191_v7 = vadd.f32 %v3875_v44, %v3874_v21  ;;  %v3863_v3 = vadd.f32 %v5194_v33, %v3862_v1  ;;  %9676 = vst [vmem:[#allocation59_spill] sm:$0xff] %v8317_v41  ;;  %v8335_v16 = vld [vmem:[#allocation9 + $0x498] sm:$0xff]  ;;  %v8338_v44 = vld [vmem:[#allocation9 + $0x460] sm:$0xff]  ;;  %v8341_v21 = vld [vmem:[#allocation9 + $0x468] sm:$0xff] }
 0xc70   :  { %9677 = vst [vmem:[#allocation74_spill] sm:$0xff] %v8320_v17  ;;  %v8344_v1 = vld [vmem:[#allocation9 + $0x470] sm:$0xff] }
 0xc71   :  { %5197 = vtanh.f32 %v8191_v7  ;;  %v3867_v60 = vsel %vm3866_vm6, %v5194_v33, %v3863_v3  ;;  %v8302_v33 = vld [vmem:[#allocation9 + $0x4c0] sm:$0xff]  ;;  %9678 = vst [vmem:[#allocation27_spill] sm:$0xff] %v8323_v55  ;;  %v8347_v3 = vld [vmem:[#allocation9 + $0x478] sm:$0xff] }
 0xc72   :  { %v3872_v14 = vsel %vm3869_vm7, %v3871_v43, %v3867_v60  ;;  %9679 = vst [vmem:[#allocation72_spill] sm:$0xff] %v8326_v26  ;;  %v8356_v60 = vld [vmem:[#allocation9 + $0x450] sm:$0xff]  ;;  %v8359_v43 = vld [vmem:[#allocation9 + $0x458] sm:$0xff] }
 0xc73   :  { %9680 = vst [vmem:[#allocation61_spill] sm:$0xff] %v8329_v11 }
 0xc74   :  { %9681 = vst [vmem:[#allocation64_spill] sm:$0xff] %v8332_v5 }
 0xc75   :  { %9682 = vst [vmem:[#allocation31_spill] sm:$0xff] %v8335_v16 }
 0xc76   :  { %9683 = vst [vmem:[#allocation65_spill] sm:$0xff] %v8338_v44 }
 0xc77   :  { %v5198_v10 = vpop.eup %5197  ;;  %9684 = vst [vmem:[#allocation54_spill] sm:$0xff] %v8341_v21 }
 0xc78   :  { %v3878_v9 = vmul.f32 %v5198_v10, %v3872_v14  ;;  %9685 = vst [vmem:[#allocation53_spill] sm:$0xff] %v8344_v1  ;;  %v8362_v10 = vld [vmem:[#allocation9 + $0x420] sm:$0xff]  ;;  %v8365_v14 = vld [vmem:[#allocation9 + $0x428] sm:$0xff] }
 0xc79   :  { %9686 = vst [vmem:[#allocation35_spill] sm:$0xff] %v8347_v3 }
 0xc7a   :  { %3880 = vst [vmem:[#allocation12 + $0x8] sm:$0xff] %v3878_v9  ;;  %3901 = vmatmul.f32.vlgmr.msrb.gmra.mxu0 %v3878_v9  ;;  %3921 = vmatmul.f32.vlgmr.msrb.gmra.mxu1 %v3878_v9 }
 0xc7b   :  { %3941 = vmatmul.f32.vlgmr.msrb.gmra.mxu2 %v3878_v9  ;;  %3961 = vmatmul.f32.vlgmr.msrb.gmra.mxu3 %v3878_v9  ;;  %9689 = vst [vmem:[#allocation57_spill] sm:$0xff] %v8356_v60  ;;  %v8368_v9 = vld [vmem:[#allocation9 + $0x430] sm:$0xff] }
 0xc7c   :  { %4191 = vmatpush.msrb.mxu0 %v8194_v35  ;;  %4211 = vmatpush.msrb.mxu1 %v8197_v42  ;;  %9690 = vst [vmem:[#allocation29_spill] sm:$0xff] %v8359_v43 }
 0xc7d   :  { %4231 = vmatpush.msrb.mxu2 %v8200_v8  ;;  %4251 = vmatpush.msrb.mxu3 %v8203_v29  ;;  %9691 = vst [vmem:[#allocation25_spill] sm:$0xff] %v8362_v10 }
 0xc7e   :  { %4192 = vmatpush.msrb.mxu0 %v8206_v20  ;;  %4212 = vmatpush.msrb.mxu1 %v8209_v0  ;;  %9692 = vst [vmem:[#allocation60_spill] sm:$0xff] %v8365_v14 }
 0xc7f   :  { %4232 = vmatpush.msrb.mxu2 %v8212_v25  ;;  %4252 = vmatpush.msrb.mxu3 %v8215_v57  ;;  %9693 = vst [vmem:[#allocation26_spill] sm:$0xff] %v8368_v9 }
 0xc80   :  { %4193 = vmatpush.msrb.mxu0 %v8218_v27  ;;  %4213 = vmatpush.msrb.mxu1 %v8221_v15 }
 0xc81   :  { %4233 = vmatpush.msrb.mxu2 %v8224_v18  ;;  %4253 = vmatpush.msrb.mxu3 %v8227_v52 }
 0xc82   :  { %4194 = vmatpush.msrb.mxu0 %v8230_v34  ;;  %4214 = vmatpush.msrb.mxu1 %v8233_v61 }
 0xc83   :  { %4234 = vmatpush.msrb.mxu2 %v8236_v30  ;;  %4254 = vmatpush.msrb.mxu3 %v8239_v40 }
 0xc84   :  { %4195 = vmatpush.msrb.mxu0 %v8242_v49  ;;  %4215 = vmatpush.msrb.mxu1 %v8245_v23 }
 0xc85   :  { %4235 = vmatpush.msrb.mxu2 %v8248_v63  ;;  %4255 = vmatpush.msrb.mxu3 %v8251_v46 }
 0xc86   :  { %4196 = vmatpush.msrb.mxu0 %v8254_v4  ;;  %4216 = vmatpush.msrb.mxu1 %v8257_v51 }
 0xc87   :  { %4236 = vmatpush.msrb.mxu2 %v8260_v6  ;;  %4256 = vmatpush.msrb.mxu3 %v8263_v13 }
 0xc88   :  { %4197 = vmatpush.msrb.mxu0 %v8266_v50  ;;  %4217 = vmatpush.msrb.mxu1 %v8269_v59 }
 0xc89   :  { %4237 = vmatpush.msrb.mxu2 %v8272_v56  ;;  %4257 = vmatpush.msrb.mxu3 %v8275_v48 }
 0xc8a   :  { %4198 = vmatpush.msrb.mxu0 %v8278_v58  ;;  %4218 = vmatpush.msrb.mxu1 %v8281_v54 }
 0xc8b   :  { %4238 = vmatpush.msrb.mxu2 %v8284_v12  ;;  %4258 = vmatpush.msrb.mxu3 %v8287_v36 }
 0xc8c   :  { %4199 = vmatpush.msrb.mxu0 %v8290_v45  ;;  %4219 = vmatpush.msrb.mxu1 %v8293_v31 }
 0xc8d   :  { %4239 = vmatpush.msrb.mxu2 %v8296_v32  ;;  %4259 = vmatpush.msrb.mxu3 %v8299_v53 }
 0xc8e   :  { %4200 = vmatpush.msrb.mxu0 %v8302_v33  ;;  %4220 = vmatpush.msrb.mxu1 %v8305_v47 }
 0xc8f   :  { %4240 = vmatpush.msrb.mxu2 %v8308_v39  ;;  %4260 = vmatpush.msrb.mxu3 %v8311_v62 }
 0xc90   :  { %4201 = vmatpush.msrb.mxu0 %v8314_v24  ;;  %4221 = vmatpush.msrb.mxu1 %v8317_v41 }
 0xc91   :  { %4241 = vmatpush.msrb.mxu2 %v8320_v17  ;;  %4261 = vmatpush.msrb.mxu3 %v8323_v55 }
 0xc92   :  { %4202 = vmatpush.msrb.mxu0 %v8326_v26  ;;  %4222 = vmatpush.msrb.mxu1 %v8329_v11 }
 0xc93   :  { %4242 = vmatpush.msrb.mxu2 %v8332_v5  ;;  %4262 = vmatpush.msrb.mxu3 %v8335_v16  ;;  %v9701_v5 = vld [vmem:[#allocation40_spill] sm:$0xff] }
 0xc94   :  { %4203 = vmatpush.msrb.mxu0 %v8338_v44  ;;  %4223 = vmatpush.msrb.mxu1 %v8341_v21 }
 0xc95   :  { %4243 = vmatpush.msrb.mxu2 %v8344_v1  ;;  %4263 = vmatpush.msrb.mxu3 %v8347_v3 }
 0xc96   :  { %4204 = vmatpush.msrb.mxu0 %v8350_v38  ;;  %4224 = vmatpush.msrb.mxu1 %v8353_v28  ;;  %v8371_v28 = vld [vmem:[#allocation9 + $0x438] sm:$0xff] }
 0xc97   :  { %4244 = vmatpush.msrb.mxu2 %v8356_v60  ;;  %4264 = vmatpush.msrb.mxu3 %v8359_v43  ;;  %9694 = vst [vmem:[#allocation32_spill] sm:$0xff] %v8371_v28  ;;  %v8374_v60 = vld [vmem:[#allocation9 + $0x400] sm:$0xff]  ;;  %v8377_v43 = vld [vmem:[#allocation9 + $0x408] sm:$0xff] }
 0xc98   :  { %4205 = vmatpush.msrb.mxu0 %v8362_v10  ;;  %4225 = vmatpush.msrb.mxu1 %v8365_v14  ;;  %9695 = vst [vmem:[#allocation38_spill] sm:$0xff] %v8374_v60  ;;  %v8380_v10 = vld [vmem:[#allocation9 + $0x410] sm:$0xff]  ;;  %v8383_v14 = vld [vmem:[#allocation9 + $0x418] sm:$0xff] }
 0xc99   :  { %4245 = vmatpush.msrb.mxu2 %v8368_v9  ;;  %4265 = vmatpush.msrb.mxu3 %v8371_v28  ;;  %9696 = vst [vmem:[#allocation28_spill] sm:$0xff] %v8377_v43  ;;  %v9699_v9 = vld [vmem:[#allocation37_spill] sm:$0xff]  ;;  %v9700_v28 = vld [vmem:[#allocation42_spill] sm:$0xff] }
 0xc9a   :  { %4206 = vmatpush.msrb.mxu0 %v8374_v60  ;;  %4226 = vmatpush.msrb.mxu1 %v8377_v43  ;;  %9697 = vst [vmem:[#allocation30_spill] sm:$0xff] %v8380_v10  ;;  %v3404_v38 = vadd.f32 %v9699_v9, %v9665_v19  ;;  %v3445_v3 = vadd.f32 %v9700_v28, %v9667_v37 }
 0xc9b   :  { %4246 = vmatpush.msrb.mxu2 %v8380_v10  ;;  %9698 = vst [vmem:[#allocation34_spill] sm:$0xff] %v8383_v14  ;;  %4266 = vmatpush.msrb.mxu3 %v8383_v14  ;;  %v3527_v10 = vadd.f32 %v9701_v5, %v9669_v2 }
 0xcf7   :  { %v3902_v1 = vpop.f32.mrf.mxu0  ;;  %v3922_v60 = vpop.f32.mrf.mxu1 }
 0xcf8   :  { %v3965_v21 = vadd.f32 %v3902_v1, %v3404_v38  ;;  %v3966_v44 = vadd.f32 %v3922_v60, %v3445_v3 }
 0xcfa   :  { %v4881_v16 = vmul.f32 -1.442695, %v3965_v21  ;;  %v4882_v43 = vmul.f32 -1.442695, %v3966_v44  ;;  %v9702_v21 = vld [vmem:[#allocation73_spill] sm:$0xff] }
 0xcfb   :  { %v3486_v44 = vadd.f32 %v9702_v21, %v9671_v22 }
 0xcfc   :  { %5199 = vpow2.f32 %v4881_v16 }
 0xcfd   :  { %5201 = vpow2.f32 %v4882_v43 }
 0xcfe   :  { %v3962_v11 = vpop.f32.mrf.mxu3  ;;  %v3942_v28 = vpop.f32.mrf.mxu2 }
 0xcff   :  { %v3968_v26 = vadd.f32 %v3962_v11, %v3527_v10  ;;  %v3967_v38 = vadd.f32 %v3942_v28, %v3486_v44 }
 0xd01   :  { %v4883_v14 = vmul.f32 -1.442695, %v3968_v26 }
 0xd02   :  { %v5200_v55 = vpop.eup %5199 }
 0xd03   :  { %v5202_v17 = vpop.eup %5201  ;;  %v3972_v9 = vadd.f32 1.0, %v5200_v55  ;;  %5203 = vpow2.f32 %v4883_v14 }
 0xd04   :  { %v3991_v19 = vadd.f32 1.0, %v5202_v17 }
 0xd05   :  { %5205 = vrcp.f32 %v3972_v9  ;;  %v3984_v10 = vand.u32 2147483648, %v3972_v9  ;;  %v3982_v14 = vand.u32 2147483647, %v3972_v9  ;;  %vm3978_vm10 = vweird.f32 %v3972_v9 }
 0xd06   :  { %5207 = vrcp.f32 %v3991_v19  ;;  %v4003_v55 = vand.u32 2147483648, %v3991_v19  ;;  %v4001_v37 = vand.u32 2147483647, %v3991_v19  ;;  %vm3997_vm11 = vweird.f32 %v3991_v19 }
 0xd07   :  { %v3985_v28 = vor.u32 1.1754944e-38, %v3984_v10  ;;  %vm3983_vm14 = vcmp.eq.f32.partialorder %v3982_v14, 8.507059e+37 }
 0xd08   :  { %vm4002_vm15 = vcmp.eq.f32.partialorder %v4001_v37, 8.507059e+37 }
 0xd09   :  { %v5204_v1 = vpop.eup %5203 }
 0xd0a   :  { %v4011_v16 = vadd.f32 1.0, %v5204_v1 }
 0xd0b   :  { %v5206_v3 = vpop.eup %5205 }
 0xd0c   :  { %v5208_v5 = vpop.eup %5207  ;;  %v3974_v60 = vmul.f32 %v5206_v3, %v3972_v9  ;;  %5209 = vrcp.f32 %v4011_v16  ;;  %vm3979_vm8 = vweird.f32 %v5206_v3  ;;  %vm4017_vm1 = vweird.f32 %v4011_v16 }
 0xd0d   :  { %v3993_v11 = vmul.f32 %v5208_v5, %v3991_v19  ;;  %5211 = vtanh.f32 %v3967_v38  ;;  %vm3998_vm9 = vweird.f32 %v5208_v5  ;;  %vm3980_vm12 = vmor %vm3978_vm10, %vm3979_vm8 }
 0xd0e   :  { %v3975_v26 = vsub.f32 1.0, %v3974_v60  ;;  %vm3999_vm13 = vmor %vm3997_vm11, %vm3998_vm9  ;;  %v4004_v60 = vor.u32 1.1754944e-38, %v4003_v55 }
 0xd0f   :  { %v3994_v43 = vsub.f32 1.0, %v3993_v11 }
 0xd10   :  { %v3976_v17 = vmul.f32 %v5206_v3, %v3975_v26 }
 0xd11   :  { %v3995_v2 = vmul.f32 %v5208_v5, %v3994_v43 }
 0xd12   :  { %v5210_v41 = vpop.eup %5209  ;;  %v3977_v21 = vadd.f32 %v5206_v3, %v3976_v17 }
 0xd13   :  { %v3996_v1 = vadd.f32 %v5208_v5, %v3995_v2  ;;  %v4013_v44 = vmul.f32 %v5210_v41, %v4011_v16  ;;  %v5212_v38 = vpop.eup %5211  ;;  %vm4018_vm0 = vweird.f32 %v5210_v41  ;;  %v4023_v2 = vand.u32 2147483648, %v4011_v16 }
 0xd14   :  { %v3981_v11 = vsel %vm3980_vm12, %v5206_v3, %v3977_v21  ;;  %v4021_v3 = vand.u32 2147483647, %v4011_v16  ;;  %vm4019_vm2 = vmor %vm4017_vm1, %vm4018_vm0  ;;  %v9709_v16 = vld [vmem:[#allocation72_spill] sm:$0xff]  ;;  %v9710_v21 = vld [vmem:[#allocation61_spill] sm:$0xff] }
 0xd15   :  { %v3986_v22 = vsel %vm3983_vm14, %v3985_v28, %v3981_v11  ;;  %v4000_v26 = vsel %vm3999_vm13, %v5208_v5, %v3996_v1  ;;  %v4014_v24 = vsub.f32 1.0, %v4013_v44  ;;  %v4024_v55 = vor.u32 1.1754944e-38, %v4023_v2  ;;  %v9711_v28 = vld [vmem:[#allocation64_spill] sm:$0xff]  ;;  %v9712_v1 = vld [vmem:[#allocation31_spill] sm:$0xff]  ;;  %v9713_v44 = vld [vmem:[#allocation65_spill] sm:$0xff] }
 0xd16   :  { %v4005_v43 = vsel %vm4002_vm15, %v4004_v60, %v4000_v26  ;;  %v4028_v62 = vmul.f32 %v5212_v38, %v3986_v22  ;;  %vm4022_vm3 = vcmp.eq.f32.partialorder %v4021_v3, 8.507059e+37  ;;  %v9703_v22 = vld [vmem:[#allocation68_spill] sm:$0xff]  ;;  %v9714_v60 = vld [vmem:[#allocation54_spill] sm:$0xff]  ;;  %v9715_v11 = vld [vmem:[#allocation53_spill] sm:$0xff] }
 0xd17   :  { %v4027_v39 = vmul.f32 %v4005_v43, %v8191_v7  ;;  %v4015_v17 = vmul.f32 %v5210_v41, %v4014_v24  ;;  %v9704_v7 = vld [vmem:[#allocation52_spill] sm:$0xff]  ;;  %v9707_v24 = vld [vmem:[#allocation74_spill] sm:$0xff]  ;;  %v9716_v38 = vld [vmem:[#allocation35_spill] sm:$0xff] }
 0xd18   :  { %v9717_v26 = vld [vmem:[#allocation55_spill] sm:$0xff]  ;;  %v9718_v43 = vld [vmem:[#allocation56_spill] sm:$0xff]  ;;  %v9721_v2 = vld [vmem:[#allocation25_spill] sm:$0xff] }
 0xd19   :  { %v8395_v9 = vadd.f32 %v4028_v62, %v4027_v39  ;;  %v4016_v19 = vadd.f32 %v5210_v41, %v4015_v17  ;;  %v9705_v39 = vld [vmem:[#allocation58_spill] sm:$0xff]  ;;  %v9706_v62 = vld [vmem:[#allocation59_spill] sm:$0xff]  ;;  %v9719_v17 = vld [vmem:[#allocation57_spill] sm:$0xff] }
 0xd1a   :  { %v9722_v3 = vld [vmem:[#allocation60_spill] sm:$0xff] }
 0xd1b   :  { %5213 = vtanh.f32 %v8395_v9  ;;  %v4020_v10 = vsel %vm4019_vm2, %v5210_v41, %v4016_v19  ;;  %v9708_v41 = vld [vmem:[#allocation27_spill] sm:$0xff]  ;;  %v9720_v19 = vld [vmem:[#allocation29_spill] sm:$0xff] }
 0xd1c   :  { %v4025_v5 = vsel %vm4022_vm3, %v4024_v55, %v4020_v10  ;;  %v9723_v10 = vld [vmem:[#allocation26_spill] sm:$0xff]  ;;  %v9724_v55 = vld [vmem:[#allocation32_spill] sm:$0xff] }
 0xd21   :  { %v5214_v37 = vpop.eup %5213 }
 0xd22   :  { %v4031_v14 = vmul.f32 %v5214_v37, %v4025_v5  ;;  %v9725_v37 = vld [vmem:[#allocation38_spill] sm:$0xff]  ;;  %v9726_v5 = vld [vmem:[#allocation28_spill] sm:$0xff] }
 0xd24   :  { %4033 = vst [vmem:[#allocation12 + $0x10] sm:$0xff] %v4031_v14  ;;  %4054 = vmatmul.f32.vlgmr.msra.gmra.mxu0 %v4031_v14  ;;  %4074 = vmatmul.f32.vlgmr.msra.gmra.mxu1 %v4031_v14 }
 0xd25   :  { %4094 = vmatmul.f32.vlgmr.msra.gmra.mxu2 %v4031_v14  ;;  %4114 = vmatmul.f32.vlgmr.msra.gmra.mxu3 %v4031_v14  ;;  %v9727_v14 = vld [vmem:[#allocation30_spill] sm:$0xff] }
 0xd26   :  { %4344 = vmatpush.msra.mxu0 %v8194_v35  ;;  %4364 = vmatpush.msra.mxu1 %v8197_v42 }
 0xd27   :  { %4384 = vmatpush.msra.mxu2 %v8200_v8  ;;  %4404 = vmatpush.msra.mxu3 %v8203_v29 }
 0xd28   :  { %4345 = vmatpush.msra.mxu0 %v8206_v20  ;;  %4365 = vmatpush.msra.mxu1 %v8209_v0 }
 0xd29   :  { %4385 = vmatpush.msra.mxu2 %v8212_v25  ;;  %4405 = vmatpush.msra.mxu3 %v8215_v57 }
 0xd2a   :  { %4346 = vmatpush.msra.mxu0 %v8218_v27  ;;  %4366 = vmatpush.msra.mxu1 %v8221_v15 }
 0xd2b   :  { %4386 = vmatpush.msra.mxu2 %v8224_v18  ;;  %4406 = vmatpush.msra.mxu3 %v8227_v52 }
 0xd2c   :  { %4347 = vmatpush.msra.mxu0 %v8230_v34  ;;  %4367 = vmatpush.msra.mxu1 %v8233_v61 }
 0xd2d   :  { %4387 = vmatpush.msra.mxu2 %v8236_v30  ;;  %4407 = vmatpush.msra.mxu3 %v8239_v40 }
 0xd2e   :  { %4348 = vmatpush.msra.mxu0 %v8242_v49  ;;  %4368 = vmatpush.msra.mxu1 %v8245_v23 }
 0xd2f   :  { %4388 = vmatpush.msra.mxu2 %v8248_v63  ;;  %4408 = vmatpush.msra.mxu3 %v8251_v46 }
 0xd30   :  { %4349 = vmatpush.msra.mxu0 %v8254_v4  ;;  %4369 = vmatpush.msra.mxu1 %v8257_v51 }
 0xd31   :  { %4389 = vmatpush.msra.mxu2 %v8260_v6  ;;  %4409 = vmatpush.msra.mxu3 %v8263_v13 }
 0xd32   :  { %4350 = vmatpush.msra.mxu0 %v8266_v50  ;;  %4370 = vmatpush.msra.mxu1 %v8269_v59 }
 0xd33   :  { %4390 = vmatpush.msra.mxu2 %v8272_v56  ;;  %4410 = vmatpush.msra.mxu3 %v8275_v48 }
 0xd34   :  { %4351 = vmatpush.msra.mxu0 %v8278_v58  ;;  %4371 = vmatpush.msra.mxu1 %v8281_v54 }
 0xd35   :  { %4391 = vmatpush.msra.mxu2 %v8284_v12  ;;  %4411 = vmatpush.msra.mxu3 %v8287_v36 }
 0xd36   :  { %4352 = vmatpush.msra.mxu0 %v8290_v45  ;;  %4372 = vmatpush.msra.mxu1 %v8293_v31 }
 0xd37   :  { %4392 = vmatpush.msra.mxu2 %v8296_v32  ;;  %4412 = vmatpush.msra.mxu3 %v8299_v53 }
 0xd38   :  { %4353 = vmatpush.msra.mxu0 %v8302_v33  ;;  %4373 = vmatpush.msra.mxu1 %v8305_v47 }
 0xd39   :  { %4393 = vmatpush.msra.mxu2 %v9703_v22  ;;  %4413 = vmatpush.msra.mxu3 %v9704_v7 }
 0xd3a   :  { %4354 = vmatpush.msra.mxu0 %v9705_v39  ;;  %4374 = vmatpush.msra.mxu1 %v9706_v62 }
 0xd3b   :  { %4394 = vmatpush.msra.mxu2 %v9707_v24  ;;  %4414 = vmatpush.msra.mxu3 %v9708_v41 }
 0xd3c   :  { %4355 = vmatpush.msra.mxu0 %v9709_v16  ;;  %4375 = vmatpush.msra.mxu1 %v9710_v21 }
 0xd3d   :  { %4395 = vmatpush.msra.mxu2 %v9711_v28  ;;  %4415 = vmatpush.msra.mxu3 %v9712_v1  ;;  %v9734_v28 = vld [vmem:[#allocation63_spill] sm:$0xff] }
 0xd3e   :  { %4356 = vmatpush.msra.mxu0 %v9713_v44  ;;  %4376 = vmatpush.msra.mxu1 %v9714_v60 }
 0xd3f   :  { %4396 = vmatpush.msra.mxu2 %v9715_v11  ;;  %4416 = vmatpush.msra.mxu3 %v9716_v38  ;;  %v9732_v11 = vld [vmem:[#allocation62_spill] sm:$0xff] }
 0xd40   :  { %4357 = vmatpush.msra.mxu0 %v9717_v26  ;;  %4377 = vmatpush.msra.mxu1 %v9718_v43  ;;  %v9728_v26 = vld [vmem:[#allocation34_spill] sm:$0xff]  ;;  %v9729_v43 = vld [vmem:[#allocation19_spill] sm:$0xff] }
 0xd41   :  { %4397 = vmatpush.msra.mxu2 %v9719_v17  ;;  %4417 = vmatpush.msra.mxu3 %v9720_v19  ;;  %v9730_v17 = vld [vmem:[#allocation71_spill] sm:$0xff]  ;;  %v9731_v19 = vld [vmem:[#allocation20_spill] sm:$0xff] }
 0xd42   :  { %4358 = vmatpush.msra.mxu0 %v9721_v2  ;;  %4378 = vmatpush.msra.mxu1 %v9722_v3  ;;  %v3407_v38 = vadd.f32 %v9730_v17, %v9729_v43  ;;  %v3448_v2 = vadd.f32 %v9732_v11, %v9731_v19 }
 0xd43   :  { %4398 = vmatpush.msra.mxu2 %v9723_v10  ;;  %4418 = vmatpush.msra.mxu3 %v9724_v55 }
 0xd44   :  { %4359 = vmatpush.msra.mxu0 %v9725_v37  ;;  %4379 = vmatpush.msra.mxu1 %v9726_v5  ;;  %v9733_v37 = vld [vmem:[#allocation50_spill] sm:$0xff] }
 0xd45   :  { %4399 = vmatpush.msra.mxu2 %v9727_v14  ;;  %4419 = vmatpush.msra.mxu3 %v9728_v26  ;;  %v3530_v5 = vadd.f32 %v9734_v28, %v9733_v37 }
 0xda1   :  { %v4055_v60 = vpop.f32.mrf.mxu0  ;;  %v4075_v3 = vpop.f32.mrf.mxu1 }
 0xda2   :  { %v4118_v44 = vadd.f32 %v4055_v60, %v3407_v38  ;;  %v4119_v10 = vadd.f32 %v4075_v3, %v3448_v2  ;;  %v9735_v38 = vld [vmem:[#allocation69_spill] sm:$0xff] }
 0xda4   :  { %v4884_v1 = vmul.f32 -1.442695, %v4118_v44  ;;  %v4885_v55 = vmul.f32 -1.442695, %v4119_v10  ;;  %v9736_v44 = vld [vmem:[#allocation21_spill] sm:$0xff] }
 0xda5   :  { %v3489_v2 = vadd.f32 %v9736_v44, %v9735_v38 }
 0xda6   :  { %5215 = vpow2.f32 %v4884_v1 }
 0xda7   :  { %5217 = vpow2.f32 %v4885_v55 }
 0xda8   :  { %v4115_v14 = vpop.f32.mrf.mxu3  ;;  %v4095_v11 = vpop.f32.mrf.mxu2 }
 0xda9   :  { %v4121_v21 = vadd.f32 %v4115_v14, %v3530_v5  ;;  %v4120_v10 = vadd.f32 %v4095_v11, %v3489_v2 }
 0xdab   :  { %v4886_v26 = vmul.f32 -1.442695, %v4121_v21 }
 0xdac   :  { %v5216_v16 = vpop.eup %5215 }
 0xdad   :  { %v5218_v41 = vpop.eup %5217  ;;  %v4125_v17 = vadd.f32 1.0, %v5216_v16  ;;  %5219 = vpow2.f32 %v4886_v26 }
 0xdae   :  { %v4144_v43 = vadd.f32 1.0, %v5218_v41 }
 0xdaf   :  { %5221 = vrcp.f32 %v4125_v17  ;;  %v4137_v37 = vand.u32 2147483648, %v4125_v17  ;;  %v4135_v26 = vand.u32 2147483647, %v4125_v17  ;;  %vm4131_vm6 = vweird.f32 %v4125_v17 }
 0xdb0   :  { %5223 = vrcp.f32 %v4144_v43  ;;  %v4156_v16 = vand.u32 2147483648, %v4144_v43  ;;  %v4154_v24 = vand.u32 2147483647, %v4144_v43  ;;  %vm4150_vm7 = vweird.f32 %v4144_v43 }
 0xdb1   :  { %v4138_v11 = vor.u32 1.1754944e-38, %v4137_v37  ;;  %vm4136_vm10 = vcmp.eq.f32.partialorder %v4135_v26, 8.507059e+37 }
 0xdb2   :  { %vm4155_vm11 = vcmp.eq.f32.partialorder %v4154_v24, 8.507059e+37 }
 0xdb3   :  { %v5220_v60 = vpop.eup %5219 }
 0xdb4   :  { %v4164_v1 = vadd.f32 1.0, %v5220_v60 }
 0xdb5   :  { %v5222_v3 = vpop.eup %5221 }
 0xdb6   :  { %v5224_v28 = vpop.eup %5223  ;;  %v4127_v55 = vmul.f32 %v5222_v3, %v4125_v17  ;;  %5225 = vrcp.f32 %v4164_v1  ;;  %vm4132_vm4 = vweird.f32 %v5222_v3  ;;  %vm4170_vm13 = vweird.f32 %v4164_v1 }
 0xdb7   :  { %v4146_v5 = vmul.f32 %v5224_v28, %v4144_v43  ;;  %5227 = vtanh.f32 %v4120_v10  ;;  %vm4151_vm5 = vweird.f32 %v5224_v28  ;;  %vm4133_vm8 = vmor %vm4131_vm6, %vm4132_vm4  ;;  %v4174_v37 = vand.u32 2147483647, %v4164_v1 }
 0xdb8   :  { %v4128_v21 = vsub.f32 1.0, %v4127_v55  ;;  %vm4152_vm9 = vmor %vm4150_vm7, %vm4151_vm5  ;;  %v4157_v55 = vor.u32 1.1754944e-38, %v4156_v16 }
 0xdb9   :  { %v4147_v14 = vsub.f32 1.0, %v4146_v5  ;;  %vm4175_vm15 = vcmp.eq.f32.partialorder %v4174_v37, 8.507059e+37  ;;  %v9756_v37 = vld [vmem:[#allocation60_spill] sm:$0xff] }
 0xdba   :  { %v4129_v41 = vmul.f32 %v5222_v3, %v4128_v21 }
 0xdbb   :  { %v4148_v19 = vmul.f32 %v5224_v28, %v4147_v14 }
 0xdbc   :  { %v5226_v62 = vpop.eup %5225  ;;  %v4130_v44 = vadd.f32 %v5222_v3, %v4129_v41 }
 0xdbd   :  { %v4149_v60 = vadd.f32 %v5224_v28, %v4148_v19  ;;  %v4166_v2 = vmul.f32 %v5226_v62, %v4164_v1  ;;  %v5228_v10 = vpop.eup %5227  ;;  %vm4171_vm12 = vweird.f32 %v5226_v62  ;;  %v4176_v19 = vand.u32 2147483648, %v4164_v1  ;;  %v9743_v1 = vld [vmem:[#allocation72_spill] sm:$0xff] }
 0xdbe   :  { %v4134_v5 = vsel %vm4133_vm8, %v5222_v3, %v4130_v44  ;;  %vm4172_vm14 = vmor %vm4170_vm13, %vm4171_vm12  ;;  %v9744_v44 = vld [vmem:[#allocation61_spill] sm:$0xff] }
 0xdbf   :  { %v4139_v38 = vsel %vm4136_vm10, %v4138_v11, %v4134_v5  ;;  %v4153_v21 = vsel %vm4152_vm9, %v5224_v28, %v4149_v60  ;;  %v4167_v39 = vsub.f32 1.0, %v4166_v2  ;;  %v4177_v16 = vor.u32 1.1754944e-38, %v4176_v19  ;;  %v9745_v11 = vld [vmem:[#allocation64_spill] sm:$0xff]  ;;  %v9746_v60 = vld [vmem:[#allocation31_spill] sm:$0xff]  ;;  %v9747_v2 = vld [vmem:[#allocation65_spill] sm:$0xff] }
 0xdc0   :  { %v4158_v14 = vsel %vm4155_vm11, %v4157_v55, %v4153_v21  ;;  %v4181_v7 = vmul.f32 %v5228_v10, %v4139_v38  ;;  %v9742_v38 = vld [vmem:[#allocation27_spill] sm:$0xff]  ;;  %v9748_v55 = vld [vmem:[#allocation54_spill] sm:$0xff]  ;;  %v9749_v5 = vld [vmem:[#allocation53_spill] sm:$0xff] }
 0xdc1   :  { %v4180_v22 = vmul.f32 %v4158_v14, %v8395_v9  ;;  %v4168_v41 = vmul.f32 %v5226_v62, %v4167_v39  ;;  %v9737_v9 = vld [vmem:[#allocation68_spill] sm:$0xff]  ;;  %v9740_v39 = vld [vmem:[#allocation59_spill] sm:$0xff]  ;;  %v9755_v19 = vld [vmem:[#allocation25_spill] sm:$0xff] }
 0xdc2   :  { %v9750_v10 = vld [vmem:[#allocation35_spill] sm:$0xff]  ;;  %v9752_v14 = vld [vmem:[#allocation56_spill] sm:$0xff] }
 0xdc3   :  { %v8471_v17 = vadd.f32 %v4181_v7, %v4180_v22  ;;  %v4169_v43 = vadd.f32 %v5226_v62, %v4168_v41  ;;  %v9738_v22 = vld [vmem:[#allocation52_spill] sm:$0xff]  ;;  %v9739_v7 = vld [vmem:[#allocation58_spill] sm:$0xff]  ;;  %v9751_v21 = vld [vmem:[#allocation55_spill] sm:$0xff] }
 0xdc4   :  { %v9753_v41 = vld [vmem:[#allocation57_spill] sm:$0xff] }
 0xdc5   :  { %5229 = vtanh.f32 %v8471_v17  ;;  %v4173_v3 = vsel %vm4172_vm14, %v5226_v62, %v4169_v43  ;;  %v9741_v62 = vld [vmem:[#allocation74_spill] sm:$0xff]  ;;  %v9754_v43 = vld [vmem:[#allocation29_spill] sm:$0xff] }
 0xdc6   :  { %v4178_v28 = vsel %vm4175_vm15, %v4177_v16, %v4173_v3  ;;  %v9757_v3 = vld [vmem:[#allocation26_spill] sm:$0xff]  ;;  %v9758_v16 = vld [vmem:[#allocation32_spill] sm:$0xff] }
 0xdcb   :  { %v5230_v24 = vpop.eup %5229 }
 0xdcc   :  { %v4184_v26 = vmul.f32 %v5230_v24, %v4178_v28  ;;  %v9759_v24 = vld [vmem:[#allocation38_spill] sm:$0xff]  ;;  %v9760_v28 = vld [vmem:[#allocation28_spill] sm:$0xff] }
 0xdce   :  { %4186 = vst [vmem:[#allocation12 + $0x18] sm:$0xff] %v4184_v26  ;;  %4207 = vmatmul.f32.vlgmr.msrb.gmra.mxu0 %v4184_v26  ;;  %4227 = vmatmul.f32.vlgmr.msrb.gmra.mxu1 %v4184_v26 }
 0xdcf   :  { %4247 = vmatmul.f32.vlgmr.msrb.gmra.mxu2 %v4184_v26  ;;  %4267 = vmatmul.f32.vlgmr.msrb.gmra.mxu3 %v4184_v26  ;;  %v9761_v26 = vld [vmem:[#allocation30_spill] sm:$0xff] }
 0xdd0   :  { %4497 = vmatpush.msrb.mxu0 %v8194_v35  ;;  %4517 = vmatpush.msrb.mxu1 %v8197_v42 }
 0xdd1   :  { %4537 = vmatpush.msrb.mxu2 %v8200_v8  ;;  %4557 = vmatpush.msrb.mxu3 %v8203_v29 }
 0xdd2   :  { %4498 = vmatpush.msrb.mxu0 %v8206_v20  ;;  %4518 = vmatpush.msrb.mxu1 %v8209_v0 }
 0xdd3   :  { %4538 = vmatpush.msrb.mxu2 %v8212_v25  ;;  %4558 = vmatpush.msrb.mxu3 %v8215_v57 }
 0xdd4   :  { %4499 = vmatpush.msrb.mxu0 %v8218_v27  ;;  %4519 = vmatpush.msrb.mxu1 %v8221_v15 }
 0xdd5   :  { %4539 = vmatpush.msrb.mxu2 %v8224_v18  ;;  %4559 = vmatpush.msrb.mxu3 %v8227_v52 }
 0xdd6   :  { %4500 = vmatpush.msrb.mxu0 %v8230_v34  ;;  %4520 = vmatpush.msrb.mxu1 %v8233_v61 }
 0xdd7   :  { %4540 = vmatpush.msrb.mxu2 %v8236_v30  ;;  %4560 = vmatpush.msrb.mxu3 %v8239_v40 }
 0xdd8   :  { %4501 = vmatpush.msrb.mxu0 %v8242_v49  ;;  %4521 = vmatpush.msrb.mxu1 %v8245_v23 }
 0xdd9   :  { %4541 = vmatpush.msrb.mxu2 %v8248_v63  ;;  %4561 = vmatpush.msrb.mxu3 %v8251_v46 }
 0xdda   :  { %4502 = vmatpush.msrb.mxu0 %v8254_v4  ;;  %4522 = vmatpush.msrb.mxu1 %v8257_v51 }
 0xddb   :  { %4542 = vmatpush.msrb.mxu2 %v8260_v6  ;;  %4562 = vmatpush.msrb.mxu3 %v8263_v13 }
 0xddc   :  { %4503 = vmatpush.msrb.mxu0 %v8266_v50  ;;  %4523 = vmatpush.msrb.mxu1 %v8269_v59 }
 0xddd   :  { %4543 = vmatpush.msrb.mxu2 %v8272_v56  ;;  %4563 = vmatpush.msrb.mxu3 %v8275_v48 }
 0xdde   :  { %4504 = vmatpush.msrb.mxu0 %v8278_v58  ;;  %4524 = vmatpush.msrb.mxu1 %v8281_v54 }
 0xddf   :  { %4544 = vmatpush.msrb.mxu2 %v8284_v12  ;;  %4564 = vmatpush.msrb.mxu3 %v8287_v36 }
 0xde0   :  { %4505 = vmatpush.msrb.mxu0 %v8290_v45  ;;  %4525 = vmatpush.msrb.mxu1 %v8293_v31 }
 0xde1   :  { %4545 = vmatpush.msrb.mxu2 %v8296_v32  ;;  %4565 = vmatpush.msrb.mxu3 %v8299_v53 }
 0xde2   :  { %4506 = vmatpush.msrb.mxu0 %v8302_v33  ;;  %4526 = vmatpush.msrb.mxu1 %v8305_v47 }
 0xde3   :  { %4546 = vmatpush.msrb.mxu2 %v9737_v9  ;;  %4566 = vmatpush.msrb.mxu3 %v9738_v22 }
 0xde4   :  { %4507 = vmatpush.msrb.mxu0 %v9739_v7  ;;  %4527 = vmatpush.msrb.mxu1 %v9740_v39 }
 0xde5   :  { %4547 = vmatpush.msrb.mxu2 %v9741_v62  ;;  %4567 = vmatpush.msrb.mxu3 %v9742_v38 }
 0xde6   :  { %4508 = vmatpush.msrb.mxu0 %v9743_v1  ;;  %4528 = vmatpush.msrb.mxu1 %v9744_v44 }
 0xde7   :  { %4548 = vmatpush.msrb.mxu2 %v9745_v11  ;;  %4568 = vmatpush.msrb.mxu3 %v9746_v60  ;;  %v9768_v11 = vld [vmem:[#allocation23_spill] sm:$0xff] }
 0xde8   :  { %4509 = vmatpush.msrb.mxu0 %v9747_v2  ;;  %4529 = vmatpush.msrb.mxu1 %v9748_v55 }
 0xde9   :  { %4549 = vmatpush.msrb.mxu2 %v9749_v5  ;;  %4569 = vmatpush.msrb.mxu3 %v9750_v10  ;;  %v9766_v5 = vld [vmem:[#allocation70_spill] sm:$0xff] }
 0xdea   :  { %4510 = vmatpush.msrb.mxu0 %v9751_v21  ;;  %4530 = vmatpush.msrb.mxu1 %v9752_v14  ;;  %v9762_v21 = vld [vmem:[#allocation34_spill] sm:$0xff]  ;;  %v9763_v14 = vld [vmem:[#allocation19_spill] sm:$0xff] }
 0xdeb   :  { %4550 = vmatpush.msrb.mxu2 %v9753_v41  ;;  %4570 = vmatpush.msrb.mxu3 %v9754_v43  ;;  %v9764_v41 = vld [vmem:[#allocation22_spill] sm:$0xff]  ;;  %v9765_v43 = vld [vmem:[#allocation20_spill] sm:$0xff] }
 0xdec   :  { %4511 = vmatpush.msrb.mxu0 %v9755_v19  ;;  %4531 = vmatpush.msrb.mxu1 %v9756_v37  ;;  %v3410_v10 = vadd.f32 %v9764_v41, %v9763_v14  ;;  %v3451_v19 = vadd.f32 %v9766_v5, %v9765_v43 }
 0xded   :  { %4551 = vmatpush.msrb.mxu2 %v9757_v3  ;;  %4571 = vmatpush.msrb.mxu3 %v9758_v16 }
 0xdee   :  { %4512 = vmatpush.msrb.mxu0 %v9759_v24  ;;  %4532 = vmatpush.msrb.mxu1 %v9760_v28  ;;  %v9767_v24 = vld [vmem:[#allocation50_spill] sm:$0xff] }
 0xdef   :  { %4552 = vmatpush.msrb.mxu2 %v9761_v26  ;;  %4572 = vmatpush.msrb.mxu3 %v9762_v21  ;;  %v3533_v28 = vadd.f32 %v9768_v11, %v9767_v24 }
 0xe4b   :  { %v4208_v55 = vpop.f32.mrf.mxu0  ;;  %v4228_v37 = vpop.f32.mrf.mxu1 }
 0xe4c   :  { %v4271_v2 = vadd.f32 %v4208_v55, %v3410_v10  ;;  %v4272_v3 = vadd.f32 %v4228_v37, %v3451_v19  ;;  %v9769_v10 = vld [vmem:[#allocation69_spill] sm:$0xff] }
 0xe4e   :  { %v4887_v60 = vmul.f32 -1.442695, %v4271_v2  ;;  %v4888_v16 = vmul.f32 -1.442695, %v4272_v3  ;;  %v9770_v2 = vld [vmem:[#allocation49_spill] sm:$0xff] }
 0xe4f   :  { %v3492_v19 = vadd.f32 %v9770_v2, %v9769_v10 }
 0xe50   :  { %5231 = vpow2.f32 %v4887_v60 }
 0xe51   :  { %5233 = vpow2.f32 %v4888_v16 }
 0xe52   :  { %v4268_v26 = vpop.f32.mrf.mxu3  ;;  %v4248_v5 = vpop.f32.mrf.mxu2 }
 0xe53   :  { %v4274_v44 = vadd.f32 %v4268_v26, %v3533_v28  ;;  %v4273_v3 = vadd.f32 %v4248_v5, %v3492_v19 }
 0xe55   :  { %v4889_v21 = vmul.f32 -1.442695, %v4274_v44 }
 0xe56   :  { %v5232_v1 = vpop.eup %5231 }
 0xe57   :  { %v5234_v38 = vpop.eup %5233  ;;  %v4278_v41 = vadd.f32 1.0, %v5232_v1  ;;  %5235 = vpow2.f32 %v4889_v21 }
 0xe58   :  { %v4297_v14 = vadd.f32 1.0, %v5234_v38 }
 0xe59   :  { %5237 = vrcp.f32 %v4278_v41  ;;  %v4290_v24 = vand.u32 2147483648, %v4278_v41  ;;  %v4288_v21 = vand.u32 2147483647, %v4278_v41  ;;  %vm4284_vm2 = vweird.f32 %v4278_v41 }
 0xe5a   :  { %5239 = vrcp.f32 %v4297_v14  ;;  %v4309_v1 = vand.u32 2147483648, %v4297_v14  ;;  %v4307_v62 = vand.u32 2147483647, %v4297_v14  ;;  %vm4303_vm3 = vweird.f32 %v4297_v14 }
 0xe5b   :  { %v4291_v5 = vor.u32 1.1754944e-38, %v4290_v24  ;;  %vm4289_vm6 = vcmp.eq.f32.partialorder %v4288_v21, 8.507059e+37 }
 0xe5c   :  { %vm4308_vm7 = vcmp.eq.f32.partialorder %v4307_v62, 8.507059e+37 }
 0xe5d   :  { %v5236_v55 = vpop.eup %5235 }
 0xe5e   :  { %v4317_v60 = vadd.f32 1.0, %v5236_v55 }
 0xe5f   :  { %v5238_v37 = vpop.eup %5237 }
 0xe60   :  { %v5240_v11 = vpop.eup %5239  ;;  %v4280_v16 = vmul.f32 %v5238_v37, %v4278_v41  ;;  %5241 = vrcp.f32 %v4317_v60  ;;  %vm4285_vm0 = vweird.f32 %v5238_v37  ;;  %vm4323_vm9 = vweird.f32 %v4317_v60 }
 0xe61   :  { %v4299_v28 = vmul.f32 %v5240_v11, %v4297_v14  ;;  %5243 = vtanh.f32 %v4273_v3  ;;  %vm4304_vm1 = vweird.f32 %v5240_v11  ;;  %vm4286_vm4 = vmor %vm4284_vm2, %vm4285_vm0  ;;  %v4327_v24 = vand.u32 2147483647, %v4317_v60 }
 0xe62   :  { %v4281_v44 = vsub.f32 1.0, %v4280_v16  ;;  %vm4305_vm5 = vmor %vm4303_vm3, %vm4304_vm1  ;;  %v4310_v16 = vor.u32 1.1754944e-38, %v4309_v1 }
 0xe63   :  { %v4300_v26 = vsub.f32 1.0, %v4299_v28  ;;  %vm4328_vm11 = vcmp.eq.f32.partialorder %v4327_v24, 8.507059e+37 }
 0xe64   :  { %v4282_v38 = vmul.f32 %v5238_v37, %v4281_v44 }
 0xe65   :  { %v4301_v43 = vmul.f32 %v5240_v11, %v4300_v26 }
 0xe66   :  { %v5242_v39 = vpop.eup %5241  ;;  %v4283_v2 = vadd.f32 %v5238_v37, %v4282_v38 }
 0xe67   :  { %v4302_v55 = vadd.f32 %v5240_v11, %v4301_v43  ;;  %v4319_v19 = vmul.f32 %v5242_v39, %v4317_v60  ;;  %v5244_v3 = vpop.eup %5243  ;;  %vm4324_vm8 = vweird.f32 %v5242_v39  ;;  %v4329_v43 = vand.u32 2147483648, %v4317_v60 }
 0xe68   :  { %v4287_v28 = vsel %vm4286_vm4, %v5238_v37, %v4283_v2  ;;  %vm4325_vm10 = vmor %vm4323_vm9, %vm4324_vm8 }
 0xe69   :  { %v4292_v10 = vsel %vm4289_vm6, %v4291_v5, %v4287_v28  ;;  %v4306_v44 = vsel %vm4305_vm5, %v5240_v11, %v4302_v55  ;;  %v4320_v7 = vsub.f32 1.0, %v4319_v19  ;;  %v4330_v1 = vor.u32 1.1754944e-38, %v4329_v43  ;;  %v9803_v28 = vld [vmem:[#allocation69_spill] sm:$0xff] }
 0xe6a   :  { %v4311_v26 = vsel %vm4308_vm7, %v4310_v16, %v4306_v44  ;;  %v4334_v22 = vmul.f32 %v5244_v3, %v4292_v10  ;;  %v9804_v3 = vld [vmem:[#allocation43_spill] sm:$0xff] }
 0xe6b   :  { %v4333_v9 = vmul.f32 %v4311_v26, %v8471_v17  ;;  %v4321_v38 = vmul.f32 %v5242_v39, %v4320_v7  ;;  %v9801_v17 = vld [vmem:[#allocation50_spill] sm:$0xff]  ;;  %v3495_v44 = vadd.f32 %v9804_v3, %v9803_v28 }
 0xe6d   :  { %v8547_v41 = vadd.f32 %v4334_v22, %v4333_v9  ;;  %v4322_v14 = vadd.f32 %v5242_v39, %v4321_v38  ;;  %v9802_v9 = vld [vmem:[#allocation17_spill] sm:$0xff] }
 0xe6e   :  { %v3536_v22 = vadd.f32 %v9802_v9, %v9801_v17 }
 0xe6f   :  { %5245 = vtanh.f32 %v8547_v41  ;;  %v4326_v37 = vsel %vm4325_vm10, %v5242_v39, %v4322_v14 }
 0xe70   :  { %v4331_v11 = vsel %vm4328_vm11, %v4330_v1, %v4326_v37 }
 0xe75   :  { %v5246_v62 = vpop.eup %5245 }
 0xe76   :  { %v4337_v21 = vmul.f32 %v5246_v62, %v4331_v11 }
 0xe78   :  { %4339 = vst [vmem:[#allocation12 + $0x20] sm:$0xff] %v4337_v21  ;;  %4360 = vmatmul.f32.vlgmr.msra.gmra.mxu0 %v4337_v21  ;;  %4380 = vmatmul.f32.vlgmr.msra.gmra.mxu1 %v4337_v21 }
 0xe79   :  { %4400 = vmatmul.f32.vlgmr.msra.gmra.mxu2 %v4337_v21  ;;  %4420 = vmatmul.f32.vlgmr.msra.gmra.mxu3 %v4337_v21 }
 0xe7a   :  { %4650 = vmatpush.msra.mxu0 %v8194_v35  ;;  %4670 = vmatpush.msra.mxu1 %v8197_v42  ;;  %v9771_v35 = vld [vmem:[#allocation68_spill] sm:$0xff] }
 0xe7b   :  { %4690 = vmatpush.msra.mxu2 %v8200_v8  ;;  %4710 = vmatpush.msra.mxu3 %v8203_v29  ;;  %v9772_v42 = vld [vmem:[#allocation52_spill] sm:$0xff]  ;;  %v9773_v8 = vld [vmem:[#allocation58_spill] sm:$0xff]  ;;  %v9774_v29 = vld [vmem:[#allocation59_spill] sm:$0xff] }
 0xe7c   :  { %4651 = vmatpush.msra.mxu0 %v8206_v20  ;;  %4671 = vmatpush.msra.mxu1 %v8209_v0  ;;  %v9775_v20 = vld [vmem:[#allocation74_spill] sm:$0xff]  ;;  %v9776_v0 = vld [vmem:[#allocation27_spill] sm:$0xff] }
 0xe7d   :  { %4691 = vmatpush.msra.mxu2 %v8212_v25  ;;  %4711 = vmatpush.msra.mxu3 %v8215_v57  ;;  %v9777_v25 = vld [vmem:[#allocation72_spill] sm:$0xff]  ;;  %v9778_v57 = vld [vmem:[#allocation61_spill] sm:$0xff] }
 0xe7e   :  { %4652 = vmatpush.msra.mxu0 %v8218_v27  ;;  %4672 = vmatpush.msra.mxu1 %v8221_v15  ;;  %v9779_v27 = vld [vmem:[#allocation64_spill] sm:$0xff]  ;;  %v9780_v15 = vld [vmem:[#allocation31_spill] sm:$0xff] }
 0xe7f   :  { %4692 = vmatpush.msra.mxu2 %v8224_v18  ;;  %4712 = vmatpush.msra.mxu3 %v8227_v52  ;;  %v9781_v18 = vld [vmem:[#allocation65_spill] sm:$0xff]  ;;  %v9782_v52 = vld [vmem:[#allocation54_spill] sm:$0xff] }
 0xe80   :  { %4653 = vmatpush.msra.mxu0 %v8230_v34  ;;  %4673 = vmatpush.msra.mxu1 %v8233_v61  ;;  %v9783_v34 = vld [vmem:[#allocation53_spill] sm:$0xff]  ;;  %v9784_v61 = vld [vmem:[#allocation35_spill] sm:$0xff] }
 0xe81   :  { %4693 = vmatpush.msra.mxu2 %v8236_v30  ;;  %4713 = vmatpush.msra.mxu3 %v8239_v40  ;;  %v9785_v30 = vld [vmem:[#allocation55_spill] sm:$0xff]  ;;  %v9786_v40 = vld [vmem:[#allocation56_spill] sm:$0xff] }
 0xe82   :  { %4654 = vmatpush.msra.mxu0 %v8242_v49  ;;  %4674 = vmatpush.msra.mxu1 %v8245_v23  ;;  %v9787_v49 = vld [vmem:[#allocation57_spill] sm:$0xff] }
 0xe83   :  { %4694 = vmatpush.msra.mxu2 %v8248_v63  ;;  %4714 = vmatpush.msra.mxu3 %v8251_v46  ;;  %v9788_v23 = vld [vmem:[#allocation29_spill] sm:$0xff]  ;;  %v9790_v46 = vld [vmem:[#allocation60_spill] sm:$0xff] }
 0xe84   :  { %4655 = vmatpush.msra.mxu0 %v8254_v4  ;;  %4675 = vmatpush.msra.mxu1 %v8257_v51  ;;  %v9789_v63 = vld [vmem:[#allocation25_spill] sm:$0xff]  ;;  %v9791_v4 = vld [vmem:[#allocation26_spill] sm:$0xff]  ;;  %v9792_v51 = vld [vmem:[#allocation32_spill] sm:$0xff] }
 0xe85   :  { %4695 = vmatpush.msra.mxu2 %v8260_v6  ;;  %4715 = vmatpush.msra.mxu3 %v8263_v13  ;;  %v9793_v6 = vld [vmem:[#allocation38_spill] sm:$0xff]  ;;  %v9794_v13 = vld [vmem:[#allocation28_spill] sm:$0xff] }
 0xe86   :  { %4656 = vmatpush.msra.mxu0 %v8266_v50  ;;  %4676 = vmatpush.msra.mxu1 %v8269_v59  ;;  %v9795_v50 = vld [vmem:[#allocation30_spill] sm:$0xff] }
 0xe87   :  { %4696 = vmatpush.msra.mxu2 %v8272_v56  ;;  %4716 = vmatpush.msra.mxu3 %v8275_v48  ;;  %v9796_v59 = vld [vmem:[#allocation34_spill] sm:$0xff]  ;;  %v9797_v56 = vld [vmem:[#allocation19_spill] sm:$0xff] }
 0xe88   :  { %4657 = vmatpush.msra.mxu0 %v8278_v58  ;;  %4677 = vmatpush.msra.mxu1 %v8281_v54  ;;  %v9798_v48 = vld [vmem:[#allocation75_spill] sm:$0xff]  ;;  %v9799_v54 = vld [vmem:[#allocation20_spill] sm:$0xff] }
 0xe89   :  { %4697 = vmatpush.msra.mxu2 %v8284_v12  ;;  %4717 = vmatpush.msra.mxu3 %v8287_v36  ;;  %v3413_v58 = vadd.f32 %v9798_v48, %v9797_v56  ;;  %v9800_v12 = vld [vmem:[#allocation18_spill] sm:$0xff] }
 0xe8a   :  { %4658 = vmatpush.msra.mxu0 %v8290_v45  ;;  %4678 = vmatpush.msra.mxu1 %v8293_v31  ;;  %v3454_v36 = vadd.f32 %v9800_v12, %v9799_v54 }
 0xe8b   :  { %4698 = vmatpush.msra.mxu2 %v8296_v32  ;;  %4718 = vmatpush.msra.mxu3 %v8299_v53 }
 0xe8c   :  { %4659 = vmatpush.msra.mxu0 %v8302_v33  ;;  %4679 = vmatpush.msra.mxu1 %v8305_v47 }
 0xe8d   :  { %4699 = vmatpush.msra.mxu2 %v9771_v35  ;;  %4719 = vmatpush.msra.mxu3 %v9772_v42 }
 0xe8e   :  { %4660 = vmatpush.msra.mxu0 %v9773_v8  ;;  %4680 = vmatpush.msra.mxu1 %v9774_v29 }
 0xe8f   :  { %4700 = vmatpush.msra.mxu2 %v9775_v20  ;;  %4720 = vmatpush.msra.mxu3 %v9776_v0 }
 0xe90   :  { %4661 = vmatpush.msra.mxu0 %v9777_v25  ;;  %4681 = vmatpush.msra.mxu1 %v9778_v57 }
 0xe91   :  { %4701 = vmatpush.msra.mxu2 %v9779_v27  ;;  %4721 = vmatpush.msra.mxu3 %v9780_v15 }
 0xe92   :  { %4662 = vmatpush.msra.mxu0 %v9781_v18  ;;  %4682 = vmatpush.msra.mxu1 %v9782_v52 }
 0xe93   :  { %4702 = vmatpush.msra.mxu2 %v9783_v34  ;;  %4722 = vmatpush.msra.mxu3 %v9784_v61 }
 0xe94   :  { %4663 = vmatpush.msra.mxu0 %v9785_v30  ;;  %4683 = vmatpush.msra.mxu1 %v9786_v40 }
 0xe95   :  { %4703 = vmatpush.msra.mxu2 %v9787_v49  ;;  %4723 = vmatpush.msra.mxu3 %v9788_v23 }
 0xe96   :  { %4664 = vmatpush.msra.mxu0 %v9789_v63  ;;  %4684 = vmatpush.msra.mxu1 %v9790_v46 }
 0xe97   :  { %4704 = vmatpush.msra.mxu2 %v9791_v4  ;;  %4724 = vmatpush.msra.mxu3 %v9792_v51 }
 0xe98   :  { %4665 = vmatpush.msra.mxu0 %v9793_v6  ;;  %4685 = vmatpush.msra.mxu1 %v9794_v13 }
 0xe99   :  { %4705 = vmatpush.msra.mxu2 %v9795_v50  ;;  %4725 = vmatpush.msra.mxu3 %v9796_v59 }
 0xef5   :  { %v4361_v45 = vpop.f32.mrf.mxu0  ;;  %v4381_v31 = vpop.f32.mrf.mxu1 }
 0xef6   :  { %v4424_v32 = vadd.f32 %v4361_v45, %v3413_v58  ;;  %v4425_v53 = vadd.f32 %v4381_v31, %v3454_v36  ;;  %v9806_v36 = vld [vmem:[#allocation24_spill] sm:$0xff] }
 0xef7   :  { %v3457_v45 = vadd.f32 %v9806_v36, %v9799_v54 }
 0xef8   :  { %v4890_v33 = vmul.f32 -1.442695, %v4424_v32  ;;  %v4891_v47 = vmul.f32 -1.442695, %v4425_v53 }
 0xefa   :  { %5247 = vpow2.f32 %v4890_v33 }
 0xefb   :  { %5249 = vpow2.f32 %v4891_v47 }
 0xefc   :  { %v4421_v7 = vpop.f32.mrf.mxu3  ;;  %v4401_v19 = vpop.f32.mrf.mxu2 }
 0xefd   :  { %v4427_v39 = vadd.f32 %v4421_v7, %v3536_v22  ;;  %v4426_v14 = vadd.f32 %v4401_v19, %v3495_v44  ;;  %v9807_v22 = vld [vmem:[#allocation46_spill] sm:$0xff]  ;;  %v9808_v44 = vld [vmem:[#allocation48_spill] sm:$0xff] }
 0xefe   :  { %v3539_v7 = vadd.f32 %v9807_v22, %v9801_v17 }
 0xeff   :  { %v4892_v10 = vmul.f32 -1.442695, %v4427_v39 }
 0xf00   :  { %v5248_v60 = vpop.eup %5247 }
 0xf01   :  { %v5250_v2 = vpop.eup %5249  ;;  %v4431_v5 = vadd.f32 1.0, %v5248_v60  ;;  %5251 = vpow2.f32 %v4892_v10 }
 0xf02   :  { %v4450_v55 = vadd.f32 1.0, %v5250_v2 }
 0xf03   :  { %5253 = vrcp.f32 %v4431_v5  ;;  %v4443_v11 = vand.u32 2147483648, %v4431_v5  ;;  %v4441_v42 = vand.u32 2147483647, %v4431_v5  ;;  %vm4437_vm14 = vweird.f32 %v4431_v5 }
 0xf04   :  { %5255 = vrcp.f32 %v4450_v55  ;;  %v4462_v21 = vand.u32 2147483648, %v4450_v55  ;;  %v4460_v29 = vand.u32 2147483647, %v4450_v55  ;;  %vm4456_vm15 = vweird.f32 %v4450_v55 }
 0xf05   :  { %v4444_v25 = vor.u32 1.1754944e-38, %v4443_v11  ;;  %vm4442_vm2 = vcmp.eq.f32.partialorder %v4441_v42, 8.507059e+37 }
 0xf06   :  { %v4463_v15 = vor.u32 1.1754944e-38, %v4462_v21  ;;  %vm4461_vm3 = vcmp.eq.f32.partialorder %v4460_v29, 8.507059e+37 }
 0xf07   :  { %v5252_v16 = vpop.eup %5251 }
 0xf08   :  { %v4470_v26 = vadd.f32 1.0, %v5252_v16 }
 0xf09   :  { %v5254_v38 = vpop.eup %5253 }
 0xf0a   :  { %v5256_v43 = vpop.eup %5255  ;;  %v4433_v24 = vmul.f32 %v5254_v38, %v4431_v5  ;;  %5257 = vrcp.f32 %v4470_v26  ;;  %vm4438_vm12 = vweird.f32 %v5254_v38  ;;  %v4482_v51 = vand.u32 2147483648, %v4470_v26 }
 0xf0b   :  { %v4452_v37 = vmul.f32 %v5256_v43, %v4450_v55  ;;  %5259 = vtanh.f32 %v4426_v14  ;;  %vm4457_vm13 = vweird.f32 %v5256_v43  ;;  %vm4439_vm0 = vmor %vm4437_vm14, %vm4438_vm12  ;;  %vm4476_vm5 = vweird.f32 %v4470_v26 }
 0xf0c   :  { %v4434_v1 = vsub.f32 1.0, %v4433_v24  ;;  %vm4458_vm1 = vmor %vm4456_vm15, %vm4457_vm13  ;;  %v4480_v6 = vand.u32 2147483647, %v4470_v26  ;;  %v4483_v50 = vor.u32 1.1754944e-38, %v4482_v51 }
 0xf0d   :  { %v4453_v62 = vsub.f32 1.0, %v4452_v37 }
 0xf0e   :  { %v4435_v35 = vmul.f32 %v5254_v38, %v4434_v1  ;;  %vm4481_vm7 = vcmp.eq.f32.partialorder %v4480_v6, 8.507059e+37 }
 0xf0f   :  { %v4454_v8 = vmul.f32 %v5256_v43, %v4453_v62 }
 0xf10   :  { %v5258_v20 = vpop.eup %5257  ;;  %v4436_v0 = vadd.f32 %v5254_v38, %v4435_v35 }
 0xf11   :  { %v4455_v57 = vadd.f32 %v5256_v43, %v4454_v8  ;;  %v4472_v27 = vmul.f32 %v5258_v20, %v4470_v26  ;;  %v5260_v52 = vpop.eup %5259  ;;  %vm4477_vm4 = vweird.f32 %v5258_v20  ;;  %v3498_v26 = vadd.f32 %v9808_v44, %v9803_v28 }
 0xf12   :  { %v4440_v18 = vsel %vm4439_vm0, %v5254_v38, %v4436_v0  ;;  %vm4478_vm6 = vmor %vm4476_vm5, %vm4477_vm4 }
 0xf13   :  { %v4445_v34 = vsel %vm4442_vm2, %v4444_v25, %v4440_v18  ;;  %v4459_v61 = vsel %vm4458_vm1, %v5256_v43, %v4455_v57  ;;  %v4473_v30 = vsub.f32 1.0, %v4472_v27 }
 0xf14   :  { %v4464_v40 = vsel %vm4461_vm3, %v4463_v15, %v4459_v61  ;;  %v4487_v49 = vmul.f32 %v5260_v52, %v4445_v34 }
 0xf15   :  { %v4486_v23 = vmul.f32 %v4464_v40, %v8547_v41  ;;  %v4474_v63 = vmul.f32 %v5258_v20, %v4473_v30  ;;  %v9805_v41 = vld [vmem:[#allocation51_spill] sm:$0xff] }
 0xf16   :  { %v3416_v12 = vadd.f32 %v9805_v41, %v9797_v56 }
 0xf17   :  { %v8623_v46 = vadd.f32 %v4487_v49, %v4486_v23  ;;  %v4475_v4 = vadd.f32 %v5258_v20, %v4474_v63 }
 0xf19   :  { %5261 = vtanh.f32 %v8623_v46  ;;  %v4479_v13 = vsel %vm4478_vm6, %v5258_v20, %v4475_v4 }
 0xf1a   :  { %v4484_v48 = vsel %vm4481_vm7, %v4483_v50, %v4479_v13 }
 0xf1f   :  { %v5262_v59 = vpop.eup %5261 }
 0xf20   :  { %v4490_v58 = vmul.f32 %v5262_v59, %v4484_v48 }
 0xf22   :  { %4492 = vst [vmem:[#allocation12 + $0x28] sm:$0xff] %v4490_v58  ;;  %4513 = vmatmul.f32.vlgmr.msrb.gmra.mxu0 %v4490_v58  ;;  %4533 = vmatmul.f32.vlgmr.msrb.gmra.mxu1 %v4490_v58 }
 0xf23   :  { %4553 = vmatmul.f32.vlgmr.msrb.gmra.mxu2 %v4490_v58  ;;  %4573 = vmatmul.f32.vlgmr.msrb.gmra.mxu3 %v4490_v58 }
 0xf9f   :  { %v4514_v31 = vpop.f32.mrf.mxu0  ;;  %v4534_v32 = vpop.f32.mrf.mxu1 }
 0xfa0   :  { %v4577_v53 = vadd.f32 %v4514_v31, %v3416_v12  ;;  %v4578_v33 = vadd.f32 %v4534_v32, %v3457_v45  ;;  %v9810_v45 = vld [vmem:[#allocation67_spill] sm:$0xff] }
 0xfa1   :  { %v3460_v31 = vadd.f32 %v9810_v45, %v9799_v54 }
 0xfa2   :  { %v4893_v47 = vmul.f32 -1.442695, %v4577_v53  ;;  %v4894_v9 = vmul.f32 -1.442695, %v4578_v33 }
 0xfa4   :  { %5263 = vpow2.f32 %v4893_v47 }
 0xfa5   :  { %5265 = vpow2.f32 %v4894_v9 }
 0xfa6   :  { %v4574_v39 = vpop.f32.mrf.mxu3  ;;  %v4554_v16 = vpop.f32.mrf.mxu2 }
 0xfa7   :  { %v4580_v10 = vadd.f32 %v4574_v39, %v3539_v7  ;;  %v4579_v43 = vadd.f32 %v4554_v16, %v3498_v26  ;;  %v9811_v7 = vld [vmem:[#allocation45_spill] sm:$0xff] }
 0xfa8   :  { %v3542_v39 = vadd.f32 %v9811_v7, %v9801_v17 }
 0xfa9   :  { %v4895_v60 = vmul.f32 -1.442695, %v4580_v10 }
 0xfaa   :  { %v5264_v2 = vpop.eup %5263 }
 0xfab   :  { %v5266_v5 = vpop.eup %5265  ;;  %v4584_v55 = vadd.f32 1.0, %v5264_v2  ;;  %5267 = vpow2.f32 %v4895_v60 }
 0xfac   :  { %v4603_v19 = vadd.f32 1.0, %v5266_v5 }
 0xfad   :  { %5269 = vrcp.f32 %v4584_v55  ;;  %v4596_v21 = vand.u32 2147483648, %v4584_v55  ;;  %v4594_v8 = vand.u32 2147483647, %v4584_v55  ;;  %vm4590_vm10 = vweird.f32 %v4584_v55 }
 0xfae   :  { %5271 = vrcp.f32 %v4603_v19  ;;  %v4615_v35 = vand.u32 2147483648, %v4603_v19  ;;  %v4613_v20 = vand.u32 2147483647, %v4603_v19  ;;  %vm4609_vm11 = vweird.f32 %v4603_v19 }
 0xfaf   :  { %v4597_v57 = vor.u32 1.1754944e-38, %v4596_v21  ;;  %vm4595_vm14 = vcmp.eq.f32.partialorder %v4594_v8, 8.507059e+37 }
 0xfb0   :  { %v4616_v18 = vor.u32 1.1754944e-38, %v4615_v35  ;;  %vm4614_vm15 = vcmp.eq.f32.partialorder %v4613_v20, 8.507059e+37 }
 0xfb1   :  { %v5268_v3 = vpop.eup %5267 }
 0xfb2   :  { %v4623_v38 = vadd.f32 1.0, %v5268_v3  ;;  %v9812_v3 = vld [vmem:[#allocation47_spill] sm:$0xff] }
 0xfb3   :  { %v5270_v14 = vpop.eup %5269  ;;  %v3501_v44 = vadd.f32 %v9812_v3, %v9803_v28 }
 0xfb4   :  { %v5272_v24 = vpop.eup %5271  ;;  %v4586_v37 = vmul.f32 %v5270_v14, %v4584_v55  ;;  %5273 = vrcp.f32 %v4623_v38  ;;  %vm4591_vm8 = vweird.f32 %v5270_v14  ;;  %v4635_v13 = vand.u32 2147483648, %v4623_v38 }
 0xfb5   :  { %v4605_v1 = vmul.f32 %v5272_v24, %v4603_v19  ;;  %5275 = vtanh.f32 %v4579_v43  ;;  %vm4610_vm9 = vweird.f32 %v5272_v24  ;;  %vm4592_vm12 = vmor %vm4590_vm10, %vm4591_vm8  ;;  %vm4629_vm1 = vweird.f32 %v4623_v38 }
 0xfb6   :  { %v4587_v62 = vsub.f32 1.0, %v4586_v37  ;;  %vm4611_vm13 = vmor %vm4609_vm11, %vm4610_vm9  ;;  %v4633_v50 = vand.u32 2147483647, %v4623_v38  ;;  %v4636_v48 = vor.u32 1.1754944e-38, %v4635_v13 }
 0xfb7   :  { %v4606_v11 = vsub.f32 1.0, %v4605_v1 }
 0xfb8   :  { %v4588_v42 = vmul.f32 %v5270_v14, %v4587_v62  ;;  %vm4634_vm3 = vcmp.eq.f32.partialorder %v4633_v50, 8.507059e+37 }
 0xfb9   :  { %v4607_v29 = vmul.f32 %v5272_v24, %v4606_v11 }
 0xfba   :  { %v5274_v0 = vpop.eup %5273  ;;  %v4589_v25 = vadd.f32 %v5270_v14, %v4588_v42 }
 0xfbb   :  { %v4608_v27 = vadd.f32 %v5272_v24, %v4607_v29  ;;  %v4625_v15 = vmul.f32 %v5274_v0, %v4623_v38  ;;  %v5276_v34 = vpop.eup %5275  ;;  %vm4630_vm0 = vweird.f32 %v5274_v0 }
 0xfbc   :  { %v4593_v52 = vsel %vm4592_vm12, %v5270_v14, %v4589_v25  ;;  %vm4631_vm2 = vmor %vm4629_vm1, %vm4630_vm0 }
 0xfbd   :  { %v4598_v61 = vsel %vm4595_vm14, %v4597_v57, %v4593_v52  ;;  %v4612_v30 = vsel %vm4611_vm13, %v5272_v24, %v4608_v27  ;;  %v4626_v40 = vsub.f32 1.0, %v4625_v15 }
 0xfbe   :  { %v4617_v49 = vsel %vm4614_vm15, %v4616_v18, %v4612_v30  ;;  %v4640_v23 = vmul.f32 %v5276_v34, %v4598_v61 }
 0xfbf   :  { %v4639_v63 = vmul.f32 %v4617_v49, %v8623_v46  ;;  %v4627_v4 = vmul.f32 %v5274_v0, %v4626_v40  ;;  %v9809_v46 = vld [vmem:[#allocation66_spill] sm:$0xff] }
 0xfc0   :  { %v3419_v36 = vadd.f32 %v9809_v46, %v9797_v56 }
 0xfc1   :  { %v8635_v51 = vadd.f32 %v4640_v23, %v4639_v63  ;;  %v4628_v6 = vadd.f32 %v5274_v0, %v4627_v4 }
 0xfc3   :  { %5277 = vtanh.f32 %v8635_v51  ;;  %v4632_v59 = vsel %vm4631_vm2, %v5274_v0, %v4628_v6 }
 0xfc4   :  { %v4637_v41 = vsel %vm4634_vm3, %v4636_v48, %v4632_v59 }
 0xfc9   :  { %v5278_v58 = vpop.eup %5277 }
 0xfca   :  { %v4643_v12 = vmul.f32 %v5278_v58, %v4637_v41 }
 0xfcc   :  { %4645 = vst [vmem:[#allocation12 + $0x30] sm:$0xff] %v4643_v12  ;;  %4666 = vmatmul.f32.vlgmr.msra.gmra.mxu0 %v4643_v12  ;;  %4686 = vmatmul.f32.vlgmr.msra.gmra.mxu1 %v4643_v12 }
 0xfcd   :  { %4706 = vmatmul.f32.vlgmr.msra.gmra.mxu2 %v4643_v12  ;;  %4726 = vmatmul.f32.vlgmr.msra.gmra.mxu3 %v4643_v12 }
0x1049   :  { %v4667_v32 = vpop.f32.mrf.mxu0  ;;  %v4687_v53 = vpop.f32.mrf.mxu1 }
0x104a   :  { %v4730_v33 = vadd.f32 %v4667_v32, %v3419_v36  ;;  %v4731_v47 = vadd.f32 %v4687_v53, %v3460_v31 }
0x104c   :  { %v4896_v9 = vmul.f32 -1.442695, %v4730_v33  ;;  %v4897_v22 = vmul.f32 -1.442695, %v4731_v47 }
0x104e   :  { %5279 = vpow2.f32 %v4896_v9 }
0x104f   :  { %5281 = vpow2.f32 %v4897_v22 }
0x1050   :  { %v4727_v10 = vpop.f32.mrf.mxu3  ;;  %v4707_v54 = vpop.f32.mrf.mxu2 }
0x1051   :  { %v4733_v60 = vadd.f32 %v4727_v10, %v3542_v39  ;;  %v4732_v14 = vadd.f32 %v4707_v54, %v3501_v44 }
0x1053   :  { %v4898_v2 = vmul.f32 -1.442695, %v4733_v60 }
0x1054   :  { %v5280_v5 = vpop.eup %5279 }
0x1055   :  { %v5282_v55 = vpop.eup %5281  ;;  %v4737_v56 = vadd.f32 1.0, %v5280_v5  ;;  %5283 = vpow2.f32 %v4898_v2 }
0x1056   :  { %v4756_v19 = vadd.f32 1.0, %v5282_v55 }
0x1057   :  { %5285 = vrcp.f32 %v4737_v56  ;;  %v4749_v62 = vand.u32 2147483648, %v4737_v56  ;;  %v4747_v35 = vand.u32 2147483647, %v4737_v56  ;;  %vm4743_vm6 = vweird.f32 %v4737_v56 }
0x1058   :  { %5287 = vrcp.f32 %v4756_v19  ;;  %v4768_v11 = vand.u32 2147483648, %v4756_v19  ;;  %v4766_v8 = vand.u32 2147483647, %v4756_v19  ;;  %vm4762_vm7 = vweird.f32 %v4756_v19 }
0x1059   :  { %v4750_v20 = vor.u32 1.1754944e-38, %v4749_v62  ;;  %vm4748_vm10 = vcmp.eq.f32.partialorder %v4747_v35, 8.507059e+37 }
0x105a   :  { %v4769_v57 = vor.u32 1.1754944e-38, %v4768_v11  ;;  %vm4767_vm11 = vcmp.eq.f32.partialorder %v4766_v8, 8.507059e+37 }
0x105b   :  { %v5284_v16 = vpop.eup %5283 }
0x105c   :  { %v4776_v26 = vadd.f32 1.0, %v5284_v16 }
0x105d   :  { %v5286_v38 = vpop.eup %5285 }
0x105e   :  { %v5288_v17 = vpop.eup %5287  ;;  %v4739_v43 = vmul.f32 %v5286_v38, %v4737_v56  ;;  %5289 = vrcp.f32 %v4776_v26  ;;  %vm4744_vm4 = vweird.f32 %v5286_v38  ;;  %v4788_v4 = vand.u32 2147483648, %v4776_v26 }
0x105f   :  { %v4758_v24 = vmul.f32 %v5288_v17, %v4756_v19  ;;  %5291 = vtanh.f32 %v4732_v14  ;;  %vm4763_vm5 = vweird.f32 %v5288_v17  ;;  %vm4745_vm8 = vmor %vm4743_vm6, %vm4744_vm4  ;;  %vm4782_vm13 = vweird.f32 %v4776_v26 }
0x1060   :  { %v4740_v37 = vsub.f32 1.0, %v4739_v43  ;;  %vm4764_vm9 = vmor %vm4762_vm7, %vm4763_vm5  ;;  %v4786_v6 = vand.u32 2147483647, %v4776_v26  ;;  %v4789_v50 = vor.u32 1.1754944e-38, %v4788_v4 }
0x1061   :  { %v4759_v1 = vsub.f32 1.0, %v4758_v24 }
0x1062   :  { %v4741_v21 = vmul.f32 %v5286_v38, %v4740_v37  ;;  %vm4787_vm15 = vcmp.eq.f32.partialorder %v4786_v6, 8.507059e+37 }
0x1063   :  { %v4760_v42 = vmul.f32 %v5288_v17, %v4759_v1 }
0x1064   :  { %v5290_v29 = vpop.eup %5289  ;;  %v4742_v28 = vadd.f32 %v5286_v38, %v4741_v21 }
0x1065   :  { %v4761_v0 = vadd.f32 %v5288_v17, %v4760_v42  ;;  %v4778_v25 = vmul.f32 %v5290_v29, %v4776_v26  ;;  %v5292_v15 = vpop.eup %5291  ;;  %vm4783_vm12 = vweird.f32 %v5290_v29 }
0x1066   :  { %v4746_v27 = vsel %vm4745_vm8, %v5286_v38, %v4742_v28  ;;  %vm4784_vm14 = vmor %vm4782_vm13, %vm4783_vm12 }
0x1067   :  { %v4751_v18 = vsel %vm4748_vm10, %v4750_v20, %v4746_v27  ;;  %v4765_v52 = vsel %vm4764_vm9, %v5288_v17, %v4761_v0  ;;  %v4779_v34 = vsub.f32 1.0, %v4778_v25 }
0x1068   :  { %v4770_v61 = vsel %vm4767_vm11, %v4769_v57, %v4765_v52  ;;  %v4793_v30 = vmul.f32 %v5292_v15, %v4751_v18 }
0x1069   :  { %v4792_v40 = vmul.f32 %v4770_v61, %v8635_v51  ;;  %v4780_v49 = vmul.f32 %v5290_v29, %v4779_v34 }
0x106b   :  { %v4794_v23 = vadd.f32 %v4793_v30, %v4792_v40  ;;  %v4781_v63 = vadd.f32 %v5290_v29, %v4780_v49 }
0x106d   :  { %5293 = vtanh.f32 %v4794_v23  ;;  %v4785_v13 = vsel %vm4784_vm14, %v5290_v29, %v4781_v63 }
0x106e   :  { %v4790_v51 = vsel %vm4787_vm15, %v4789_v50, %v4785_v13 }
0x1073   :  { %v5294_v59 = vpop.eup %5293 }
0x1074   :  { %v4796_v48 = vmul.f32 %v5294_v59, %v4790_v51 }
0x1076   :  { %4798 = vst [vmem:[#allocation12 + $0x38] sm:$0xff] %v4796_v48 }
0x1077   :  { %4811 = dma.vmem_to_hbm [thread:$0]  %s4804_s3, 1024, %s4806_s15, [#allocation6], %s5619_s27, %s5619_s27, %s5620_s28  }
0x1078   :  { %5613 = dma.done.wait [#allocation6], 1024  }
0x1079   :  { %5614 = vsyncadd [#allocation6], 4294966272 }
0x107a   :  { %4816 = vsyncpa [#allocation5], 1 }
0x107b   :  { %4817 = vsyncpa [#allocation8], 1 }
0x107c   :  { %4818 = vsyncpa [#allocation11], 1 }
0x107d   :  { %4819 = vsyncpa [#allocation6], 1 }

</bundles_post_ra>
